<compile_context>
chip_gen: v7x
topology: tpu7x:2x2x1
jax: 0.10.0
libtpu: 0.0.40
codegen_flags: <defaults>
</compile_context>

<pallas_src>
import itertools
import numpy as np
import jax
import jax.numpy as jnp
from jax.experimental import pallas as pl
from jax.experimental.pallas import tpu as pltpu

# ---- small Attention4D hyper-parameters (stride=None branch) ----
DIM = 32          # dim
KEY_DIM = 8       # key_dim
NUM_HEADS = 2     # num_heads
ATTN_RATIO = 2    # attn_ratio
RES = 4           # resolution  (H = W = RES)
NH_KD = KEY_DIM * NUM_HEADS          # 16
D = ATTN_RATIO * KEY_DIM             # 16
DH = D * NUM_HEADS                   # 32
N = RES * RES                        # 16 tokens
SCALE = KEY_DIM ** (-0.5)
BN_EPS = 1e-5
QKV_W = 2 * NH_KD + DH               # 64 (fused q|k|v output width)

# batch blocking
SUB_B = 8                            # batch elems per attention sub-block
SUB = SUB_B * N                      # 128 rows  (softmax row = one lane width)
NSUB = 2                             # attention sub-blocks per grid step
BBLK = SUB_B * NSUB                  # 16 batch elems per grid step
SLAB = BBLK * N                      # 256 rows per grid step

MASK_NEG = -1e9                      # off-block additive mask (softmax -> exact 0)

# row shift for 3x3 depthwise tap (kh, kw), k = kh*3+kw
TAP_SHIFTS = tuple((kh - 1) * RES + (kw - 1) for kh in range(3) for kw in range(3))

# ---- attention bias index table (exactly as in Attention4D.__init__) ----
_points = list(itertools.product(range(RES), range(RES)))
_offsets = {}
_idxs = []
for _p1 in _points:
    for _p2 in _points:
        _off = (abs(_p1[0] - _p2[0]), abs(_p1[1] - _p2[1]))
        if _off not in _offsets:
            _offsets[_off] = len(_offsets)
        _idxs.append(_offsets[_off])
IDXS = np.array(_idxs, dtype=np.int32).reshape(N, N)
NUM_OFFSETS = len(_offsets)


def make_shift_mats(H, W):
    """G[k] @ v_tokens == 3x3 (padding=1) neighbourhood gather, k = kh*3+kw."""
    Nt = H * W
    G = np.zeros((9, Nt, Nt), dtype=np.float32)
    for kh in range(3):
        for kw in range(3):
            k = kh * 3 + kw
            for h in range(H):
                for w in range(W):
                    hh, ww = h + kh - 1, w + kw - 1
                    if 0 <= hh < H and 0 <= ww < W:
                        G[k, h * W + w, hh * W + ww] = 1.0
    return G


def _shift_rows(v, d):
    """out[r] = v[r + d] (zero-filled outside the slab).  Static shift, so this
    is pure relayout work; cross-batch reads inside the slab are killed by the
    precomputed boundary mask (tap_scale)."""
    if d == 0:
        return v
    rows, cols = v.shape
    pad = jnp.zeros((abs(d), cols), v.dtype)
    if d > 0:
        return jnp.concatenate([v[d:, :], pad], axis=0)
    return jnp.concatenate([pad, v[:rows + d, :]], axis=0)


# ============================ Pallas kernel ============================
def attn4d_kernel(x_ref, wqkv_ref, bqkv_ref, tap_ref, bdw_ref, bias1m_ref,
                  blkmask_ref, th1w_ref, th2w_ref, th2b_ref,
                  wp0_ref, wp1_ref, bproj_ref, o_ref):
    x = x_ref[...]                                                # (SLAB, 32)

    # fused q|k|v 1x1 convs (+ folded BN; SCALE folded into the q columns)
    qkv = jnp.dot(x, wqkv_ref[...],
                  preferred_element_type=jnp.float32) + bqkv_ref[...]   # (SLAB, 64)
    q = qkv[:, :NH_KD]                                            # (SLAB, 16), pre-scaled
    k = qkv[:, NH_KD:2 * NH_KD]                                   # (SLAB, 16)
    v = qkv[:, 2 * NH_KD:]                                        # (SLAB, 32)

    # v_local: 3x3 depthwise conv (+ folded BN) as 9 shifted reads of v, each
    # scaled by (boundary mask x folded channel weight).  Pure VPU work.
    vloc = None
    for t, d in enumerate(TAP_SHIFTS):
        contrib = tap_ref[t] * _shift_rows(v, d)                  # (SLAB, 32)
        vloc = contrib if vloc is None else vloc + contrib
    vloc = vloc + bdw_ref[...]                                    # (SLAB, 32)

    blkmask = blkmask_ref[...]                                    # (SUB, SUB) 0/1
    wp = (wp0_ref, wp1_ref)

    # attention on 128-row sub-blocks (8 batch elems each); all matmuls and all
    # softmax / talking-head VPU work are lane-dense (128 wide).
    for s in range(NSUB):
        r0 = s * SUB
        qs = q[r0:r0 + SUB, :]
        ks = k[r0:r0 + SUB, :]
        vs = v[r0:r0 + SUB, :]

        # raw (already SCALEd) scores per head: (128, 8) x (128, 8)^T -> (128, 128)
        raw = []
        for h in range(NUM_HEADS):
            qh = qs[:, h * KEY_DIM:(h + 1) * KEY_DIM]
            kh = ks[:, h * KEY_DIM:(h + 1) * KEY_DIM]
            raw.append(jax.lax.dot_general(qh, kh, (((1,), (1,)), ((), ())),
                                           preferred_element_type=jnp.float32))

        # talking_head1: mix heads; attention bias + th1 bias + (-1e9) off-block
        # mask are all pre-folded into bias1m.  Softmax over 128-wide rows;
        # off-block entries become exactly 0.
        sm = []
        for hp in range(NUM_HEADS):
            a1 = th1w_ref[hp, 0] * raw[0]
            for h in range(1, NUM_HEADS):
                a1 = a1 + th1w_ref[hp, h] * raw[h]
            a1 = a1 + bias1m_ref[hp]
            z = a1 - jnp.max(a1, axis=-1, keepdims=True)
            e = jnp.exp(z)
            inv = pl.reciprocal(jnp.sum(e, axis=-1, keepdims=True), approx=True)
            sm.append(e * inv)

        # talking_head2 (re-masked so off-block columns contribute exactly 0),
        # attn @ v per head, ReLU(+v_local), head-split projection (no concat).
        acc = None
        for hp in range(NUM_HEADS):
            a2 = th2w_ref[hp, 0] * sm[0]
            for h in range(1, NUM_HEADS):
                a2 = a2 + th2w_ref[hp, h] * sm[h]
            a2 = (a2 + th2b_ref[hp]) * blkmask                    # (128, 128)
            vh = vs[:, hp * D:(hp + 1) * D]                       # (128, 16)
            oh = jnp.dot(a2, vh, preferred_element_type=jnp.float32)
            zh = jnp.maximum(oh + vloc[r0:r0 + SUB, hp * D:(hp + 1) * D], 0.0)
            ph = jnp.dot(zh, wp[hp][...], preferred_element_type=jnp.float32)
            acc = ph if acc is None else acc + ph
        o_ref[r0:r0 + SUB, :] = acc + bproj_ref[...]              # (128, 32)


def run_attention4d(x_nchw, p):
    B = x_nchw.shape[0]
    # NCHW -> token-major flat slab (B*N, C); single HBM transpose.
    x_tok = jnp.transpose(x_nchw.reshape(B, DIM, N), (0, 2, 1)).reshape(B * N, DIM)

    B_pad = ((B + BBLK - 1) // BBLK) * BBLK
    if B_pad != B:
        x_tok = jnp.pad(x_tok, ((0, (B_pad - B) * N), (0, 0)))
    nsteps = B_pad // BBLK

    flops_per_step = (
        2 * SLAB * DIM * QKV_W                          # fused qkv matmul
        + 2 * 9 * SLAB * DH                             # depthwise taps
        + NSUB * NUM_HEADS * 2 * SUB * SUB * KEY_DIM    # scores
        + NSUB * NUM_HEADS * 2 * SUB * SUB * D          # attn @ v
        + NSUB * NUM_HEADS * 2 * SUB * D * DIM          # projection
        + NSUB * NUM_HEADS * 8 * SUB * SUB)             # talking heads / softmax VPU
    transc_per_step = NSUB * NUM_HEADS * SUB * SUB      # exp
    const_bytes = 4 * (DIM * QKV_W + QKV_W + 9 * SLAB * DH + DH
                       + NUM_HEADS * SUB * SUB + SUB * SUB
                       + 2 * NUM_HEADS * NUM_HEADS + NUM_HEADS
                       + 2 * D * DIM + DIM)
    cost = pl.CostEstimate(
        flops=int(nsteps * flops_per_step),
        transcendentals=int(nsteps * transc_per_step),
        bytes_accessed=int(4 * 2 * B_pad * N * DIM + const_bytes))

    out_flat = pl.pallas_call(
        attn4d_kernel,
        out_shape=jax.ShapeDtypeStruct((B_pad * N, DIM), jnp.float32),
        grid=(nsteps,),
        in_specs=[
            pl.BlockSpec((SLAB, DIM), lambda i: (i, 0)),              # x slab
            pl.BlockSpec((DIM, QKV_W), lambda i: (0, 0)),             # fused Wqkv
            pl.BlockSpec((1, QKV_W), lambda i: (0, 0)),               # fused bqkv
            pl.BlockSpec((9, SLAB, DH), lambda i: (0, 0, 0)),         # dw tap mask*scale
            pl.BlockSpec((1, DH), lambda i: (0, 0)),                  # dw bias
            pl.BlockSpec((NUM_HEADS, SUB, SUB), lambda i: (0, 0, 0)), # bias (+th1) + mask
            pl.BlockSpec((SUB, SUB), lambda i: (0, 0)),               # 0/1 block mask
            pl.BlockSpec(memory_space=pltpu.MemorySpace.SMEM),        # th1 w (2,2)
            pl.BlockSpec(memory_space=pltpu.MemorySpace.SMEM),        # th2 w (2,2)
            pl.BlockSpec(memory_space=pltpu.MemorySpace.SMEM),        # th2 b (2,)
            pl.BlockSpec((D, DIM), lambda i: (0, 0)),                 # Wproj head 0
            pl.BlockSpec((D, DIM), lambda i: (0, 0)),                 # Wproj head 1
            pl.BlockSpec((1, DIM), lambda i: (0, 0)),                 # bproj
        ],
        out_specs=pl.BlockSpec((SLAB, DIM), lambda i: (i, 0)),
        compiler_params=pltpu.CompilerParams(
            dimension_semantics=("parallel",),
            vmem_limit_bytes=16 * 1024 * 1024),
        cost_estimate=cost,
    )(x_tok, p["wqkv"], p["bqkv"], p["tap_scale"], p["bdw"], p["bias1m"],
      p["blkmask"], p["th1w"], p["th2w"], p["th2b"], p["wp0"], p["wp1"], p["bproj"])

    out_tok = out_flat[:B * N].reshape(B, N, DIM)
    return jnp.transpose(out_tok, (0, 2, 1)).reshape(B, DIM, RES, RES)


# ============================ parameters ============================
def init_params(key):
    keys = list(jax.random.split(key, 16))
    ki = iter(keys)

    def bn_stats(k, c):
        k1, k2, k3, k4 = jax.random.split(k, 4)
        gamma = 1.0 + 0.1 * jax.random.normal(k1, (c,), jnp.float32)
        beta = 0.1 * jax.random.normal(k2, (c,), jnp.float32)
        mean = 0.1 * jax.random.normal(k3, (c,), jnp.float32)
        var = 0.9 + 0.1 * jnp.abs(jax.random.normal(k4, (c,), jnp.float32))
        return gamma, beta, mean, var

    def fold_1x1(k, cin, cout):  # Conv2d(cin,cout,1) + BatchNorm2d(cout), eval-mode fold
        k1, k2, k3 = jax.random.split(k, 3)
        w = 0.1 * jax.random.normal(k1, (cout, cin), jnp.float32)
        b = 0.1 * jax.random.normal(k2, (cout,), jnp.float32)
        gamma, beta, mean, var = bn_stats(k3, cout)
        s = gamma / jnp.sqrt(var + BN_EPS)
        return (w * s[:, None]).T, (s * (b - mean) + beta)[None, :]

    p = {}
    p["wq"], p["bq"] = fold_1x1(next(ki), DIM, NH_KD)
    p["wk"], p["bk"] = fold_1x1(next(ki), DIM, NH_KD)
    p["wv"], p["bv"] = fold_1x1(next(ki), DIM, DH)
    p["wproj"], p["bproj"] = fold_1x1(next(ki), DH, DIM)

    # v_local: depthwise 3x3 conv + BN (folded)
    k1, k2, k3 = jax.random.split(next(ki), 3)
    wdw_raw = 0.1 * jax.random.normal(k1, (DH, 3, 3), jnp.float32)
    bdw_raw = 0.1 * jax.random.normal(k2, (DH,), jnp.float32)
    gamma, beta, mean, var = bn_stats(k3, DH)
    s = gamma / jnp.sqrt(var + BN_EPS)
    p["wdw"] = (wdw_raw * s[:, None, None]).reshape(DH, 9).T      # (9, DH), k = kh*3+kw
    p["bdw"] = (s * (bdw_raw - mean) + beta)[None, :]

    # talking-head 1x1 convs (no BN)
    p["th1w"] = jnp.eye(NUM_HEADS, dtype=jnp.float32) + \
        0.3 * jax.random.normal(next(ki), (NUM_HEADS, NUM_HEADS), jnp.float32)
    p["th1b"] = 0.05 * jax.random.normal(next(ki), (NUM_HEADS,), jnp.float32)
    p["th2w"] = jnp.eye(NUM_HEADS, dtype=jnp.float32) + \
        0.3 * jax.random.normal(next(ki), (NUM_HEADS, NUM_HEADS), jnp.float32)
    p["th2b"] = 0.05 * jax.random.normal(next(ki), (NUM_HEADS,), jnp.float32)

    # attention_biases_seg gathered by attention_bias_idxs_seg (bicubic resize is identity)
    ab_seg = 0.1 * jax.random.normal(next(ki), (NUM_HEADS, NUM_OFFSETS), jnp.float32)
    p["bias_attn"] = ab_seg[:, IDXS]                              # (heads, N, N)

    G = make_shift_mats(RES, RES)
    p["G"] = jnp.asarray(G)

    # ---- kernel-layout tensors (host-side fusions) ----
    # SCALE folded into the q columns -> no per-element score scaling in-kernel.
    p["wqkv"] = jnp.concatenate([p["wq"] * SCALE, p["wk"], p["wv"]], axis=1)   # (32, 64)
    p["bqkv"] = jnp.concatenate([p["bq"] * SCALE, p["bk"], p["bv"]], axis=1)   # (1, 64)

    # depthwise: (boundary mask tiled over the BBLK batch blocks) x folded weight
    mask9 = G.sum(axis=-1).astype(np.float32)                     # (9, N)
    mask_slab = np.tile(mask9, (1, BBLK))                         # (9, SLAB)
    p["tap_scale"] = jnp.asarray(mask_slab)[:, :, None] * p["wdw"][:, None, :]  # (9,SLAB,DH)

    # 0/1 batch-block-diagonal mask for one 128-row attention sub-block
    p["blkmask"] = jnp.asarray(np.kron(np.eye(SUB_B, dtype=np.float32),
                                       np.ones((N, N), dtype=np.float32)))      # (SUB,SUB)

    # attention bias pre-mixed through talking_head1 (incl. its bias), tiled on
    # the block diagonal; -1e9 off the diagonal (purely position-based so padded
    # batch rows keep a valid diagonal block).
    bias1_comb = (jnp.einsum("gh,hnm->gnm", p["th1w"], p["bias_attn"])
                  + p["th1b"][:, None, None])                      # (heads, N, N)
    tiled = jnp.tile(bias1_comb, (1, SUB_B, SUB_B))                # (heads, SUB, SUB)
    p["bias1m"] = p["blkmask"][None] * tiled + (1.0 - p["blkmask"][None]) * MASK_NEG

    p["wp0"] = p["wproj"][:D, :]                                   # (16, 32)
    p["wp1"] = p["wproj"][D:, :]                                   # (16, 32)
    return p


# ============================ hook bookkeeping ============================
def profile_counts(x_shape):
    """Replicates ProfileConv's hook_conv / hook_attention formulas, in call order."""
    _, C, H, W = x_shape
    macs, params = [], []

    def conv(out_c, oh, ow, k, in_c, groups, w_shape):
        macs.append(out_c * oh * ow * k * k * in_c / groups)
        params.append(w_shape[0] * w_shape[1] * w_shape[2] * w_shape[3] + w_shape[1])

    conv(NH_KD, H, W, 1, C, 1, (NH_KD, C, 1, 1))                       # q conv
    conv(NH_KD, H, W, 1, C, 1, (NH_KD, C, 1, 1))                       # k conv
    conv(DH, H, W, 1, C, 1, (DH, C, 1, 1))                             # v conv
    conv(DH, H, W, 3, DH, DH, (DH, 1, 3, 3))                           # v_local (dw)
    conv(NUM_HEADS, N, N, 1, NUM_HEADS, 1, (NUM_HEADS, NUM_HEADS, 1, 1))  # talking_head1
    conv(NUM_HEADS, N, N, 1, NUM_HEADS, 1, (NUM_HEADS, NUM_HEADS, 1, 1))  # talking_head2
    conv(DIM, H, W, 1, DH, 1, (DIM, DH, 1, 1))                         # proj conv
    macs.append(KEY_DIM * N * N * NUM_HEADS + DH * N * N)              # Attention4D hook (N2 == N)
    return macs, params


class ProfileConvPallas:
    """ProfileConv wrapping an Attention4D model: forward runs the model (Pallas
    kernel) and returns the (macs, params) lists the forward hooks would collect."""

    def __init__(self, params):
        self._p = params
        self.macs = []
        self.params = []

    def __call__(self, x):
        out = run_attention4d(x, self._p)        # the model forward (hot path, Pallas)
        self.macs, self.params = profile_counts(x.shape)
        return self.macs, self.params, out


# ============================ pure-JAX reference ============================
def reference_forward(x_nchw, p):
    B = x_nchw.shape[0]
    x = jnp.transpose(x_nchw.reshape(B, DIM, N), (0, 2, 1))
    q = x @ p["wq"] + p["bq"]
    k = x @ p["wk"] + p["bk"]
    v = x @ p["wv"] + p["bv"]
    vloc = jnp.einsum("knm,bmc,kc->bnc", p["G"], v, p["wdw"]) + p["bdw"]
    qh = q.reshape(B, N, NUM_HEADS, KEY_DIM)
    kh = k.reshape(B, N, NUM_HEADS, KEY_DIM)
    vh = v.reshape(B, N, NUM_HEADS, D)
    attn = jnp.einsum("bnhk,bmhk->bhnm", qh, kh) * SCALE + p["bias_attn"][None]
    attn = jnp.einsum("gh,bhnm->bgnm", p["th1w"], attn) + p["th1b"][None, :, None, None]
    attn = jax.nn.softmax(attn, axis=-1)
    attn = jnp.einsum("gh,bhnm->bgnm", p["th2w"], attn) + p["th2b"][None, :, None, None]
    o = jnp.einsum("bhnm,bmhd->bnhd", attn, vh).reshape(B, N, DH)
    o = jnp.maximum(o + vloc, 0.0)
    o = o @ p["wproj"] + p["bproj"]
    return jnp.transpose(o, (0, 2, 1)).reshape(B, DIM, RES, RES)


if __name__ == "__main__":
    key = jax.random.PRNGKey(0)
    kx, kp = jax.random.split(key)
    B = 128                                                      # 8 grid steps of 16 batches
    x = jax.random.normal(kx, (B, DIM, RES, RES), jnp.float32)   # NCHW, like PyTorch
    params = init_params(kp)

    model = ProfileConvPallas(params)
    macs, param_counts, out = model(x)
    out = jax.block_until_ready(out)

    ref = reference_forward(x, params)
    np.testing.assert_allclose(np.asarray(out), np.asarray(ref), rtol=2e-3, atol=2e-3)
    assert len(macs) == 8 and len(param_counts) == 7
    print("KERNEL_OK")
</pallas_src>

<mosaic_0001>
module attributes {stable_mosaic.version = 11 : i64} {
  func.func @attn4d_kernel(%arg0: i32, %arg1: memref<256x32xf32, #tpu.memory_space<vmem>>, %arg2: memref<32x64xf32, #tpu.memory_space<vmem>>, %arg3: memref<1x64xf32, #tpu.memory_space<vmem>>, %arg4: memref<9x256x32xf32, #tpu.memory_space<vmem>>, %arg5: memref<1x32xf32, #tpu.memory_space<vmem>>, %arg6: memref<2x128x128xf32, #tpu.memory_space<vmem>>, %arg7: memref<128x128xf32, #tpu.memory_space<vmem>>, %arg8: memref<2x2xf32, #tpu.memory_space<smem>>, %arg9: memref<2x2xf32, #tpu.memory_space<smem>>, %arg10: memref<2xf32, #tpu.memory_space<smem>>, %arg11: memref<16x32xf32, #tpu.memory_space<vmem>>, %arg12: memref<16x32xf32, #tpu.memory_space<vmem>>, %arg13: memref<1x32xf32, #tpu.memory_space<vmem>>, %arg14: memref<256x32xf32, #tpu.memory_space<vmem>>) attributes {dimension_semantics = [#tpu.dimension_semantics<parallel>], iteration_bounds = array<i64: 8>, scalar_prefetch = 0 : i64, scratch_operands = 0 : i64, tpu.core_type = #tpu.core_type<tc>, window_params = [{transform_indices = @transform_0, window_bounds = array<i64: 256, 32>}, {pipeline_mode = #tpu.pipeline_mode<synchronous>, transform_indices = @transform_1, window_bounds = array<i64: 32, 64>}, {pipeline_mode = #tpu.pipeline_mode<synchronous>, transform_indices = @transform_2, window_bounds = array<i64: 1, 64>}, {pipeline_mode = #tpu.pipeline_mode<synchronous>, transform_indices = @transform_3, window_bounds = array<i64: 9, 256, 32>}, {pipeline_mode = #tpu.pipeline_mode<synchronous>, transform_indices = @transform_4, window_bounds = array<i64: 1, 32>}, {pipeline_mode = #tpu.pipeline_mode<synchronous>, transform_indices = @transform_5, window_bounds = array<i64: 2, 128, 128>}, {pipeline_mode = #tpu.pipeline_mode<synchronous>, transform_indices = @transform_6, window_bounds = array<i64: 128, 128>}, {transform_indices = @transform_7, window_bounds = array<i64: 2, 2>}, {transform_indices = @transform_8, window_bounds = array<i64: 2, 2>}, {transform_indices = @transform_9, window_bounds = array<i64: 2>}, {pipeline_mode = #tpu.pipeline_mode<synchronous>, transform_indices = @transform_10, window_bounds = array<i64: 16, 32>}, {pipeline_mode = #tpu.pipeline_mode<synchronous>, transform_indices = @transform_11, window_bounds = array<i64: 16, 32>}, {pipeline_mode = #tpu.pipeline_mode<synchronous>, transform_indices = @transform_12, window_bounds = array<i64: 1, 32>}, {transform_indices = @transform_13, window_bounds = array<i64: 256, 32>}]} {
    %c0 = arith.constant 0 : index
    %c0_0 = arith.constant 0 : index
    %0 = vector.load %arg1[%c0, %c0_0] : memref<256x32xf32, #tpu.memory_space<vmem>>, vector<256x32xf32>
    %c0_1 = arith.constant 0 : index
    %c0_2 = arith.constant 0 : index
    %1 = vector.load %arg2[%c0_1, %c0_2] : memref<32x64xf32, #tpu.memory_space<vmem>>, vector<32x64xf32>
    %cst = arith.constant dense<0.000000e+00> : vector<256x64xf32>
    %2 = tpu.matmul %0, %1, %cst {dimension_numbers = #tpu.dot_dimension_numbers<[1], [0], [0], [1], [0, 0, 1, 1], [], []>} : vector<256x32xf32>, vector<32x64xf32>, vector<256x64xf32> -> vector<256x64xf32>
    %c0_3 = arith.constant 0 : index
    %c0_4 = arith.constant 0 : index
    %3 = vector.load %arg3[%c0_3, %c0_4] : memref<1x64xf32, #tpu.memory_space<vmem>>, vector<1x64xf32>
    %4 = vector.broadcast %3 : vector<1x64xf32> to vector<256x64xf32>
    %5 = arith.addf %2, %4 : vector<256x64xf32>
    %6 = vector.extract_strided_slice %5 {offsets = [0, 0], sizes = [256, 16], strides = [1, 1]} : vector<256x64xf32> to vector<256x16xf32>
    %7 = vector.extract_strided_slice %5 {offsets = [0, 16], sizes = [256, 16], strides = [1, 1]} : vector<256x64xf32> to vector<256x16xf32>
    %8 = vector.extract_strided_slice %5 {offsets = [0, 32], sizes = [256, 32], strides = [1, 1]} : vector<256x64xf32> to vector<256x32xf32>
    %c0_5 = arith.constant 0 : index
    %c0_6 = arith.constant 0 : index
    %c0_7 = arith.constant 0 : index
    %9 = vector.load %arg4[%c0_5, %c0_6, %c0_7] : memref<9x256x32xf32, #tpu.memory_space<vmem>>, vector<1x256x32xf32>
    %10 = vector.shape_cast %9 : vector<1x256x32xf32> to vector<256x32xf32>
    %cst_8 = arith.constant 0.000000e+00 : f32
    %11 = vector.broadcast %cst_8 : f32 to vector<5x32xf32>
    %12 = vector.extract_strided_slice %8 {offsets = [0, 0], sizes = [251, 32], strides = [1, 1]} : vector<256x32xf32> to vector<251x32xf32>
    %13 = tpu.concatenate %11, %12 in 0 : vector<5x32xf32>, vector<251x32xf32> -> vector<256x32xf32>
    %14 = arith.mulf %10, %13 : vector<256x32xf32>
    %c1 = arith.constant 1 : index
    %c0_9 = arith.constant 0 : index
    %c0_10 = arith.constant 0 : index
    %15 = vector.load %arg4[%c1, %c0_9, %c0_10] : memref<9x256x32xf32, #tpu.memory_space<vmem>>, vector<1x256x32xf32>
    %16 = vector.shape_cast %15 : vector<1x256x32xf32> to vector<256x32xf32>
    %cst_11 = arith.constant 0.000000e+00 : f32
    %17 = vector.broadcast %cst_11 : f32 to vector<4x32xf32>
    %18 = vector.extract_strided_slice %8 {offsets = [0, 0], sizes = [252, 32], strides = [1, 1]} : vector<256x32xf32> to vector<252x32xf32>
    %19 = tpu.concatenate %17, %18 in 0 : vector<4x32xf32>, vector<252x32xf32> -> vector<256x32xf32>
    %20 = arith.mulf %16, %19 : vector<256x32xf32>
    %21 = arith.addf %14, %20 : vector<256x32xf32>
    %c2 = arith.constant 2 : index
    %c0_12 = arith.constant 0 : index
    %c0_13 = arith.constant 0 : index
    %22 = vector.load %arg4[%c2, %c0_12, %c0_13] : memref<9x256x32xf32, #tpu.memory_space<vmem>>, vector<1x256x32xf32>
    %23 = vector.shape_cast %22 : vector<1x256x32xf32> to vector<256x32xf32>
    %cst_14 = arith.constant 0.000000e+00 : f32
    %24 = vector.broadcast %cst_14 : f32 to vector<3x32xf32>
    %25 = vector.extract_strided_slice %8 {offsets = [0, 0], sizes = [253, 32], strides = [1, 1]} : vector<256x32xf32> to vector<253x32xf32>
    %26 = tpu.concatenate %24, %25 in 0 : vector<3x32xf32>, vector<253x32xf32> -> vector<256x32xf32>
    %27 = arith.mulf %23, %26 : vector<256x32xf32>
    %28 = arith.addf %21, %27 : vector<256x32xf32>
    %c3 = arith.constant 3 : index
    %c0_15 = arith.constant 0 : index
    %c0_16 = arith.constant 0 : index
    %29 = vector.load %arg4[%c3, %c0_15, %c0_16] : memref<9x256x32xf32, #tpu.memory_space<vmem>>, vector<1x256x32xf32>
    %30 = vector.shape_cast %29 : vector<1x256x32xf32> to vector<256x32xf32>
    %cst_17 = arith.constant 0.000000e+00 : f32
    %31 = vector.broadcast %cst_17 : f32 to vector<1x32xf32>
    %32 = vector.extract_strided_slice %8 {offsets = [0, 0], sizes = [255, 32], strides = [1, 1]} : vector<256x32xf32> to vector<255x32xf32>
    %33 = tpu.concatenate %31, %32 in 0 : vector<1x32xf32>, vector<255x32xf32> -> vector<256x32xf32>
    %34 = arith.mulf %30, %33 : vector<256x32xf32>
    %35 = arith.addf %28, %34 : vector<256x32xf32>
    %c4 = arith.constant 4 : index
    %c0_18 = arith.constant 0 : index
    %c0_19 = arith.constant 0 : index
    %36 = vector.load %arg4[%c4, %c0_18, %c0_19] : memref<9x256x32xf32, #tpu.memory_space<vmem>>, vector<1x256x32xf32>
    %37 = vector.shape_cast %36 : vector<1x256x32xf32> to vector<256x32xf32>
    %38 = arith.mulf %37, %8 : vector<256x32xf32>
    %39 = arith.addf %35, %38 : vector<256x32xf32>
    %c5 = arith.constant 5 : index
    %c0_20 = arith.constant 0 : index
    %c0_21 = arith.constant 0 : index
    %40 = vector.load %arg4[%c5, %c0_20, %c0_21] : memref<9x256x32xf32, #tpu.memory_space<vmem>>, vector<1x256x32xf32>
    %41 = vector.shape_cast %40 : vector<1x256x32xf32> to vector<256x32xf32>
    %cst_22 = arith.constant 0.000000e+00 : f32
    %42 = vector.broadcast %cst_22 : f32 to vector<1x32xf32>
    %43 = vector.extract_strided_slice %8 {offsets = [1, 0], sizes = [255, 32], strides = [1, 1]} : vector<256x32xf32> to vector<255x32xf32>
    %44 = tpu.concatenate %43, %42 in 0 : vector<255x32xf32>, vector<1x32xf32> -> vector<256x32xf32>
    %45 = arith.mulf %41, %44 : vector<256x32xf32>
    %46 = arith.addf %39, %45 : vector<256x32xf32>
    %c6 = arith.constant 6 : index
    %c0_23 = arith.constant 0 : index
    %c0_24 = arith.constant 0 : index
    %47 = vector.load %arg4[%c6, %c0_23, %c0_24] : memref<9x256x32xf32, #tpu.memory_space<vmem>>, vector<1x256x32xf32>
    %48 = vector.shape_cast %47 : vector<1x256x32xf32> to vector<256x32xf32>
    %cst_25 = arith.constant 0.000000e+00 : f32
    %49 = vector.broadcast %cst_25 : f32 to vector<3x32xf32>
    %50 = vector.extract_strided_slice %8 {offsets = [3, 0], sizes = [253, 32], strides = [1, 1]} : vector<256x32xf32> to vector<253x32xf32>
    %51 = tpu.concatenate %50, %49 in 0 : vector<253x32xf32>, vector<3x32xf32> -> vector<256x32xf32>
    %52 = arith.mulf %48, %51 : vector<256x32xf32>
    %53 = arith.addf %46, %52 : vector<256x32xf32>
    %c7 = arith.constant 7 : index
    %c0_26 = arith.constant 0 : index
    %c0_27 = arith.constant 0 : index
    %54 = vector.load %arg4[%c7, %c0_26, %c0_27] : memref<9x256x32xf32, #tpu.memory_space<vmem>>, vector<1x256x32xf32>
    %55 = vector.shape_cast %54 : vector<1x256x32xf32> to vector<256x32xf32>
    %cst_28 = arith.constant 0.000000e+00 : f32
    %56 = vector.broadcast %cst_28 : f32 to vector<4x32xf32>
    %57 = vector.extract_strided_slice %8 {offsets = [4, 0], sizes = [252, 32], strides = [1, 1]} : vector<256x32xf32> to vector<252x32xf32>
    %58 = tpu.concatenate %57, %56 in 0 : vector<252x32xf32>, vector<4x32xf32> -> vector<256x32xf32>
    %59 = arith.mulf %55, %58 : vector<256x32xf32>
    %60 = arith.addf %53, %59 : vector<256x32xf32>
    %c8 = arith.constant 8 : index
    %c0_29 = arith.constant 0 : index
    %c0_30 = arith.constant 0 : index
    %61 = vector.load %arg4[%c8, %c0_29, %c0_30] : memref<9x256x32xf32, #tpu.memory_space<vmem>>, vector<1x256x32xf32>
    %62 = vector.shape_cast %61 : vector<1x256x32xf32> to vector<256x32xf32>
    %cst_31 = arith.constant 0.000000e+00 : f32
    %63 = vector.broadcast %cst_31 : f32 to vector<5x32xf32>
    %64 = vector.extract_strided_slice %8 {offsets = [5, 0], sizes = [251, 32], strides = [1, 1]} : vector<256x32xf32> to vector<251x32xf32>
    %65 = tpu.concatenate %64, %63 in 0 : vector<251x32xf32>, vector<5x32xf32> -> vector<256x32xf32>
    %66 = arith.mulf %62, %65 : vector<256x32xf32>
    %67 = arith.addf %60, %66 : vector<256x32xf32>
    %c0_32 = arith.constant 0 : index
    %c0_33 = arith.constant 0 : index
    %68 = vector.load %arg5[%c0_32, %c0_33] : memref<1x32xf32, #tpu.memory_space<vmem>>, vector<1x32xf32>
    %69 = vector.broadcast %68 : vector<1x32xf32> to vector<256x32xf32>
    %70 = arith.addf %67, %69 : vector<256x32xf32>
    %c0_34 = arith.constant 0 : index
    %c0_35 = arith.constant 0 : index
    %71 = vector.load %arg7[%c0_34, %c0_35] : memref<128x128xf32, #tpu.memory_space<vmem>>, vector<128x128xf32>
    %72 = vector.extract_strided_slice %6 {offsets = [0, 0], sizes = [128, 16], strides = [1, 1]} : vector<256x16xf32> to vector<128x16xf32>
    %73 = vector.extract_strided_slice %7 {offsets = [0, 0], sizes = [128, 16], strides = [1, 1]} : vector<256x16xf32> to vector<128x16xf32>
    %74 = vector.extract_strided_slice %8 {offsets = [0, 0], sizes = [128, 32], strides = [1, 1]} : vector<256x32xf32> to vector<128x32xf32>
    %75 = vector.extract_strided_slice %72 {offsets = [0, 0], sizes = [128, 8], strides = [1, 1]} : vector<128x16xf32> to vector<128x8xf32>
    %76 = vector.extract_strided_slice %73 {offsets = [0, 0], sizes = [128, 8], strides = [1, 1]} : vector<128x16xf32> to vector<128x8xf32>
    %cst_36 = arith.constant dense<0.000000e+00> : vector<128x128xf32>
    %77 = tpu.matmul %75, %76, %cst_36 {dimension_numbers = #tpu.dot_dimension_numbers<[1], [1], [0], [0], [0, 0, 1, 0], [], []>} : vector<128x8xf32>, vector<128x8xf32>, vector<128x128xf32> -> vector<128x128xf32>
    %78 = vector.extract_strided_slice %72 {offsets = [0, 8], sizes = [128, 8], strides = [1, 1]} : vector<128x16xf32> to vector<128x8xf32>
    %79 = vector.extract_strided_slice %73 {offsets = [0, 8], sizes = [128, 8], strides = [1, 1]} : vector<128x16xf32> to vector<128x8xf32>
    %cst_37 = arith.constant dense<0.000000e+00> : vector<128x128xf32>
    %80 = tpu.matmul %78, %79, %cst_37 {dimension_numbers = #tpu.dot_dimension_numbers<[1], [1], [0], [0], [0, 0, 1, 0], [], []>} : vector<128x8xf32>, vector<128x8xf32>, vector<128x128xf32> -> vector<128x128xf32>
    %c0_38 = arith.constant 0 : index
    %c0_39 = arith.constant 0 : index
    %81 = memref.load %arg8[%c0_38, %c0_39] : memref<2x2xf32, #tpu.memory_space<smem>>
    %82 = vector.broadcast %81 : f32 to vector<128x128xf32>
    %83 = arith.mulf %82, %77 : vector<128x128xf32>
    %c0_40 = arith.constant 0 : index
    %c1_41 = arith.constant 1 : index
    %84 = memref.load %arg8[%c0_40, %c1_41] : memref<2x2xf32, #tpu.memory_space<smem>>
    %85 = vector.broadcast %84 : f32 to vector<128x128xf32>
    %86 = arith.mulf %85, %80 : vector<128x128xf32>
    %87 = arith.addf %83, %86 : vector<128x128xf32>
    %c0_42 = arith.constant 0 : index
    %c0_43 = arith.constant 0 : index
    %c0_44 = arith.constant 0 : index
    %88 = vector.load %arg6[%c0_42, %c0_43, %c0_44] : memref<2x128x128xf32, #tpu.memory_space<vmem>>, vector<1x128x128xf32>
    %89 = vector.shape_cast %88 : vector<1x128x128xf32> to vector<128x128xf32>
    %90 = arith.addf %87, %89 : vector<128x128xf32>
    %cst_45 = arith.constant dense<0xFF800000> : vector<128xf32>
    %91 = vector.multi_reduction <maximumf>, %90, %cst_45 [1] : vector<128x128xf32> to vector<128xf32>
    %92 = vector.shape_cast %91 : vector<128xf32> to vector<128x1xf32>
    %93 = vector.broadcast %92 : vector<128x1xf32> to vector<128x128xf32>
    %94 = arith.subf %90, %93 : vector<128x128xf32>
    %95 = math.exp %94 : vector<128x128xf32>
    %cst_46 = arith.constant dense<0.000000e+00> : vector<128xf32>
    %96 = vector.multi_reduction <add>, %95, %cst_46 [1] : vector<128x128xf32> to vector<128xf32>
    %97 = vector.shape_cast %96 : vector<128xf32> to vector<128x1xf32>
    %98 = tpu.reciprocal %97 {approx = true} : vector<128x1xf32> -> vector<128x1xf32>
    %99 = vector.broadcast %98 : vector<128x1xf32> to vector<128x128xf32>
    %100 = arith.mulf %95, %99 : vector<128x128xf32>
    %c1_47 = arith.constant 1 : index
    %c0_48 = arith.constant 0 : index
    %101 = memref.load %arg8[%c1_47, %c0_48] : memref<2x2xf32, #tpu.memory_space<smem>>
    %102 = vector.broadcast %101 : f32 to vector<128x128xf32>
    %103 = arith.mulf %102, %77 : vector<128x128xf32>
    %c1_49 = arith.constant 1 : index
    %c1_50 = arith.constant 1 : index
    %104 = memref.load %arg8[%c1_49, %c1_50] : memref<2x2xf32, #tpu.memory_space<smem>>
    %105 = vector.broadcast %104 : f32 to vector<128x128xf32>
    %106 = arith.mulf %105, %80 : vector<128x128xf32>
    %107 = arith.addf %103, %106 : vector<128x128xf32>
    %c1_51 = arith.constant 1 : index
    %c0_52 = arith.constant 0 : index
    %c0_53 = arith.constant 0 : index
    %108 = vector.load %arg6[%c1_51, %c0_52, %c0_53] : memref<2x128x128xf32, #tpu.memory_space<vmem>>, vector<1x128x128xf32>
    %109 = vector.shape_cast %108 : vector<1x128x128xf32> to vector<128x128xf32>
    %110 = arith.addf %107, %109 : vector<128x128xf32>
    %cst_54 = arith.constant dense<0xFF800000> : vector<128xf32>
    %111 = vector.multi_reduction <maximumf>, %110, %cst_54 [1] : vector<128x128xf32> to vector<128xf32>
    %112 = vector.shape_cast %111 : vector<128xf32> to vector<128x1xf32>
    %113 = vector.broadcast %112 : vector<128x1xf32> to vector<128x128xf32>
    %114 = arith.subf %110, %113 : vector<128x128xf32>
    %115 = math.exp %114 : vector<128x128xf32>
    %cst_55 = arith.constant dense<0.000000e+00> : vector<128xf32>
    %116 = vector.multi_reduction <add>, %115, %cst_55 [1] : vector<128x128xf32> to vector<128xf32>
    %117 = vector.shape_cast %116 : vector<128xf32> to vector<128x1xf32>
    %118 = tpu.reciprocal %117 {approx = true} : vector<128x1xf32> -> vector<128x1xf32>
    %119 = vector.broadcast %118 : vector<128x1xf32> to vector<128x128xf32>
    %120 = arith.mulf %115, %119 : vector<128x128xf32>
    %c0_56 = arith.constant 0 : index
    %c0_57 = arith.constant 0 : index
    %121 = memref.load %arg9[%c0_56, %c0_57] : memref<2x2xf32, #tpu.memory_space<smem>>
    %122 = vector.broadcast %121 : f32 to vector<128x128xf32>
    %123 = arith.mulf %122, %100 : vector<128x128xf32>
    %c0_58 = arith.constant 0 : index
    %c1_59 = arith.constant 1 : index
    %124 = memref.load %arg9[%c0_58, %c1_59] : memref<2x2xf32, #tpu.memory_space<smem>>
    %125 = vector.broadcast %124 : f32 to vector<128x128xf32>
    %126 = arith.mulf %125, %120 : vector<128x128xf32>
    %127 = arith.addf %123, %126 : vector<128x128xf32>
    %c0_60 = arith.constant 0 : index
    %128 = memref.load %arg10[%c0_60] : memref<2xf32, #tpu.memory_space<smem>>
    %129 = vector.broadcast %128 : f32 to vector<128x128xf32>
    %130 = arith.addf %127, %129 : vector<128x128xf32>
    %131 = arith.mulf %130, %71 : vector<128x128xf32>
    %132 = vector.extract_strided_slice %74 {offsets = [0, 0], sizes = [128, 16], strides = [1, 1]} : vector<128x32xf32> to vector<128x16xf32>
    %cst_61 = arith.constant dense<0.000000e+00> : vector<128x16xf32>
    %133 = tpu.matmul %131, %132, %cst_61 {dimension_numbers = #tpu.dot_dimension_numbers<[1], [0], [0], [1], [0, 0, 1, 1], [], []>} : vector<128x128xf32>, vector<128x16xf32>, vector<128x16xf32> -> vector<128x16xf32>
    %134 = vector.extract_strided_slice %70 {offsets = [0, 0], sizes = [128, 16], strides = [1, 1]} : vector<256x32xf32> to vector<128x16xf32>
    %135 = arith.addf %133, %134 : vector<128x16xf32>
    %cst_62 = arith.constant 0.000000e+00 : f32
    %136 = vector.broadcast %cst_62 : f32 to vector<128x16xf32>
    %137 = arith.maximumf %135, %136 : vector<128x16xf32>
    %c0_63 = arith.constant 0 : index
    %c0_64 = arith.constant 0 : index
    %138 = vector.load %arg11[%c0_63, %c0_64] : memref<16x32xf32, #tpu.memory_space<vmem>>, vector<16x32xf32>
    %cst_65 = arith.constant dense<0.000000e+00> : vector<128x32xf32>
    %139 = tpu.matmul %137, %138, %cst_65 {dimension_numbers = #tpu.dot_dimension_numbers<[1], [0], [0], [1], [0, 0, 1, 1], [], []>} : vector<128x16xf32>, vector<16x32xf32>, vector<128x32xf32> -> vector<128x32xf32>
    %c1_66 = arith.constant 1 : index
    %c0_67 = arith.constant 0 : index
    %140 = memref.load %arg9[%c1_66, %c0_67] : memref<2x2xf32, #tpu.memory_space<smem>>
    %141 = vector.broadcast %140 : f32 to vector<128x128xf32>
    %142 = arith.mulf %141, %100 : vector<128x128xf32>
    %c1_68 = arith.constant 1 : index
    %c1_69 = arith.constant 1 : index
    %143 = memref.load %arg9[%c1_68, %c1_69] : memref<2x2xf32, #tpu.memory_space<smem>>
    %144 = vector.broadcast %143 : f32 to vector<128x128xf32>
    %145 = arith.mulf %144, %120 : vector<128x128xf32>
    %146 = arith.addf %142, %145 : vector<128x128xf32>
    %c1_70 = arith.constant 1 : index
    %147 = memref.load %arg10[%c1_70] : memref<2xf32, #tpu.memory_space<smem>>
    %148 = vector.broadcast %147 : f32 to vector<128x128xf32>
    %149 = arith.addf %146, %148 : vector<128x128xf32>
    %150 = arith.mulf %149, %71 : vector<128x128xf32>
    %151 = vector.extract_strided_slice %74 {offsets = [0, 16], sizes = [128, 16], strides = [1, 1]} : vector<128x32xf32> to vector<128x16xf32>
    %cst_71 = arith.constant dense<0.000000e+00> : vector<128x16xf32>
    %152 = tpu.matmul %150, %151, %cst_71 {dimension_numbers = #tpu.dot_dimension_numbers<[1], [0], [0], [1], [0, 0, 1, 1], [], []>} : vector<128x128xf32>, vector<128x16xf32>, vector<128x16xf32> -> vector<128x16xf32>
    %153 = vector.extract_strided_slice %70 {offsets = [0, 16], sizes = [128, 16], strides = [1, 1]} : vector<256x32xf32> to vector<128x16xf32>
    %154 = arith.addf %152, %153 : vector<128x16xf32>
    %cst_72 = arith.constant 0.000000e+00 : f32
    %155 = vector.broadcast %cst_72 : f32 to vector<128x16xf32>
    %156 = arith.maximumf %154, %155 : vector<128x16xf32>
    %c0_73 = arith.constant 0 : index
    %c0_74 = arith.constant 0 : index
    %157 = vector.load %arg12[%c0_73, %c0_74] : memref<16x32xf32, #tpu.memory_space<vmem>>, vector<16x32xf32>
    %cst_75 = arith.constant dense<0.000000e+00> : vector<128x32xf32>
    %158 = tpu.matmul %156, %157, %cst_75 {dimension_numbers = #tpu.dot_dimension_numbers<[1], [0], [0], [1], [0, 0, 1, 1], [], []>} : vector<128x16xf32>, vector<16x32xf32>, vector<128x32xf32> -> vector<128x32xf32>
    %159 = arith.addf %139, %158 : vector<128x32xf32>
    %c0_76 = arith.constant 0 : index
    %c0_77 = arith.constant 0 : index
    %160 = vector.load %arg13[%c0_76, %c0_77] : memref<1x32xf32, #tpu.memory_space<vmem>>, vector<1x32xf32>
    %161 = vector.broadcast %160 : vector<1x32xf32> to vector<128x32xf32>
    %162 = arith.addf %159, %161 : vector<128x32xf32>
    %c0_78 = arith.constant 0 : index
    %c0_79 = arith.constant 0 : index
    %163 = vector.load %arg14[%c0_78, %c0_79] : memref<256x32xf32, #tpu.memory_space<vmem>>, vector<128x32xf32>
    tpu.vector_store %arg14[%c0_78, %c0_79], %162 {strides = array<i32>} : memref<256x32xf32, #tpu.memory_space<vmem>>, vector<128x32xf32>,
    %164 = vector.extract_strided_slice %6 {offsets = [128, 0], sizes = [128, 16], strides = [1, 1]} : vector<256x16xf32> to vector<128x16xf32>
    %165 = vector.extract_strided_slice %7 {offsets = [128, 0], sizes = [128, 16], strides = [1, 1]} : vector<256x16xf32> to vector<128x16xf32>
    %166 = vector.extract_strided_slice %8 {offsets = [128, 0], sizes = [128, 32], strides = [1, 1]} : vector<256x32xf32> to vector<128x32xf32>
    %167 = vector.extract_strided_slice %164 {offsets = [0, 0], sizes = [128, 8], strides = [1, 1]} : vector<128x16xf32> to vector<128x8xf32>
    %168 = vector.extract_strided_slice %165 {offsets = [0, 0], sizes = [128, 8], strides = [1, 1]} : vector<128x16xf32> to vector<128x8xf32>
    %cst_80 = arith.constant dense<0.000000e+00> : vector<128x128xf32>
    %169 = tpu.matmul %167, %168, %cst_80 {dimension_numbers = #tpu.dot_dimension_numbers<[1], [1], [0], [0], [0, 0, 1, 0], [], []>} : vector<128x8xf32>, vector<128x8xf32>, vector<128x128xf32> -> vector<128x128xf32>
    %170 = vector.extract_strided_slice %164 {offsets = [0, 8], sizes = [128, 8], strides = [1, 1]} : vector<128x16xf32> to vector<128x8xf32>
    %171 = vector.extract_strided_slice %165 {offsets = [0, 8], sizes = [128, 8], strides = [1, 1]} : vector<128x16xf32> to vector<128x8xf32>
    %cst_81 = arith.constant dense<0.000000e+00> : vector<128x128xf32>
    %172 = tpu.matmul %170, %171, %cst_81 {dimension_numbers = #tpu.dot_dimension_numbers<[1], [1], [0], [0], [0, 0, 1, 0], [], []>} : vector<128x8xf32>, vector<128x8xf32>, vector<128x128xf32> -> vector<128x128xf32>
    %c0_82 = arith.constant 0 : index
    %c0_83 = arith.constant 0 : index
    %173 = memref.load %arg8[%c0_82, %c0_83] : memref<2x2xf32, #tpu.memory_space<smem>>
    %174 = vector.broadcast %173 : f32 to vector<128x128xf32>
    %175 = arith.mulf %174, %169 : vector<128x128xf32>
    %c0_84 = arith.constant 0 : index
    %c1_85 = arith.constant 1 : index
    %176 = memref.load %arg8[%c0_84, %c1_85] : memref<2x2xf32, #tpu.memory_space<smem>>
    %177 = vector.broadcast %176 : f32 to vector<128x128xf32>
    %178 = arith.mulf %177, %172 : vector<128x128xf32>
    %179 = arith.addf %175, %178 : vector<128x128xf32>
    %c0_86 = arith.constant 0 : index
    %c0_87 = arith.constant 0 : index
    %c0_88 = arith.constant 0 : index
    %180 = vector.load %arg6[%c0_86, %c0_87, %c0_88] : memref<2x128x128xf32, #tpu.memory_space<vmem>>, vector<1x128x128xf32>
    %181 = vector.shape_cast %180 : vector<1x128x128xf32> to vector<128x128xf32>
    %182 = arith.addf %179, %181 : vector<128x128xf32>
    %cst_89 = arith.constant dense<0xFF800000> : vector<128xf32>
    %183 = vector.multi_reduction <maximumf>, %182, %cst_89 [1] : vector<128x128xf32> to vector<128xf32>
    %184 = vector.shape_cast %183 : vector<128xf32> to vector<128x1xf32>
    %185 = vector.broadcast %184 : vector<128x1xf32> to vector<128x128xf32>
    %186 = arith.subf %182, %185 : vector<128x128xf32>
    %187 = math.exp %186 : vector<128x128xf32>
    %cst_90 = arith.constant dense<0.000000e+00> : vector<128xf32>
    %188 = vector.multi_reduction <add>, %187, %cst_90 [1] : vector<128x128xf32> to vector<128xf32>
    %189 = vector.shape_cast %188 : vector<128xf32> to vector<128x1xf32>
    %190 = tpu.reciprocal %189 {approx = true} : vector<128x1xf32> -> vector<128x1xf32>
    %191 = vector.broadcast %190 : vector<128x1xf32> to vector<128x128xf32>
    %192 = arith.mulf %187, %191 : vector<128x128xf32>
    %c1_91 = arith.constant 1 : index
    %c0_92 = arith.constant 0 : index
    %193 = memref.load %arg8[%c1_91, %c0_92] : memref<2x2xf32, #tpu.memory_space<smem>>
    %194 = vector.broadcast %193 : f32 to vector<128x128xf32>
    %195 = arith.mulf %194, %169 : vector<128x128xf32>
    %c1_93 = arith.constant 1 : index
    %c1_94 = arith.constant 1 : index
    %196 = memref.load %arg8[%c1_93, %c1_94] : memref<2x2xf32, #tpu.memory_space<smem>>
    %197 = vector.broadcast %196 : f32 to vector<128x128xf32>
    %198 = arith.mulf %197, %172 : vector<128x128xf32>
    %199 = arith.addf %195, %198 : vector<128x128xf32>
    %c1_95 = arith.constant 1 : index
    %c0_96 = arith.constant 0 : index
    %c0_97 = arith.constant 0 : index
    %200 = vector.load %arg6[%c1_95, %c0_96, %c0_97] : memref<2x128x128xf32, #tpu.memory_space<vmem>>, vector<1x128x128xf32>
    %201 = vector.shape_cast %200 : vector<1x128x128xf32> to vector<128x128xf32>
    %202 = arith.addf %199, %201 : vector<128x128xf32>
    %cst_98 = arith.constant dense<0xFF800000> : vector<128xf32>
    %203 = vector.multi_reduction <maximumf>, %202, %cst_98 [1] : vector<128x128xf32> to vector<128xf32>
    %204 = vector.shape_cast %203 : vector<128xf32> to vector<128x1xf32>
    %205 = vector.broadcast %204 : vector<128x1xf32> to vector<128x128xf32>
    %206 = arith.subf %202, %205 : vector<128x128xf32>
    %207 = math.exp %206 : vector<128x128xf32>
    %cst_99 = arith.constant dense<0.000000e+00> : vector<128xf32>
    %208 = vector.multi_reduction <add>, %207, %cst_99 [1] : vector<128x128xf32> to vector<128xf32>
    %209 = vector.shape_cast %208 : vector<128xf32> to vector<128x1xf32>
    %210 = tpu.reciprocal %209 {approx = true} : vector<128x1xf32> -> vector<128x1xf32>
    %211 = vector.broadcast %210 : vector<128x1xf32> to vector<128x128xf32>
    %212 = arith.mulf %207, %211 : vector<128x128xf32>
    %c0_100 = arith.constant 0 : index
    %c0_101 = arith.constant 0 : index
    %213 = memref.load %arg9[%c0_100, %c0_101] : memref<2x2xf32, #tpu.memory_space<smem>>
    %214 = vector.broadcast %213 : f32 to vector<128x128xf32>
    %215 = arith.mulf %214, %192 : vector<128x128xf32>
    %c0_102 = arith.constant 0 : index
    %c1_103 = arith.constant 1 : index
    %216 = memref.load %arg9[%c0_102, %c1_103] : memref<2x2xf32, #tpu.memory_space<smem>>
    %217 = vector.broadcast %216 : f32 to vector<128x128xf32>
    %218 = arith.mulf %217, %212 : vector<128x128xf32>
    %219 = arith.addf %215, %218 : vector<128x128xf32>
    %c0_104 = arith.constant 0 : index
    %220 = memref.load %arg10[%c0_104] : memref<2xf32, #tpu.memory_space<smem>>
    %221 = vector.broadcast %220 : f32 to vector<128x128xf32>
    %222 = arith.addf %219, %221 : vector<128x128xf32>
    %223 = arith.mulf %222, %71 : vector<128x128xf32>
    %224 = vector.extract_strided_slice %166 {offsets = [0, 0], sizes = [128, 16], strides = [1, 1]} : vector<128x32xf32> to vector<128x16xf32>
    %cst_105 = arith.constant dense<0.000000e+00> : vector<128x16xf32>
    %225 = tpu.matmul %223, %224, %cst_105 {dimension_numbers = #tpu.dot_dimension_numbers<[1], [0], [0], [1], [0, 0, 1, 1], [], []>} : vector<128x128xf32>, vector<128x16xf32>, vector<128x16xf32> -> vector<128x16xf32>
    %226 = vector.extract_strided_slice %70 {offsets = [128, 0], sizes = [128, 16], strides = [1, 1]} : vector<256x32xf32> to vector<128x16xf32>
    %227 = arith.addf %225, %226 : vector<128x16xf32>
    %cst_106 = arith.constant 0.000000e+00 : f32
    %228 = vector.broadcast %cst_106 : f32 to vector<128x16xf32>
    %229 = arith.maximumf %227, %228 : vector<128x16xf32>
    %c0_107 = arith.constant 0 : index
    %c0_108 = arith.constant 0 : index
    %230 = vector.load %arg11[%c0_107, %c0_108] : memref<16x32xf32, #tpu.memory_space<vmem>>, vector<16x32xf32>
    %cst_109 = arith.constant dense<0.000000e+00> : vector<128x32xf32>
    %231 = tpu.matmul %229, %230, %cst_109 {dimension_numbers = #tpu.dot_dimension_numbers<[1], [0], [0], [1], [0, 0, 1, 1], [], []>} : vector<128x16xf32>, vector<16x32xf32>, vector<128x32xf32> -> vector<128x32xf32>
    %c1_110 = arith.constant 1 : index
    %c0_111 = arith.constant 0 : index
    %232 = memref.load %arg9[%c1_110, %c0_111] : memref<2x2xf32, #tpu.memory_space<smem>>
    %233 = vector.broadcast %232 : f32 to vector<128x128xf32>
    %234 = arith.mulf %233, %192 : vector<128x128xf32>
    %c1_112 = arith.constant 1 : index
    %c1_113 = arith.constant 1 : index
    %235 = memref.load %arg9[%c1_112, %c1_113] : memref<2x2xf32, #tpu.memory_space<smem>>
    %236 = vector.broadcast %235 : f32 to vector<128x128xf32>
    %237 = arith.mulf %236, %212 : vector<128x128xf32>
    %238 = arith.addf %234, %237 : vector<128x128xf32>
    %c1_114 = arith.constant 1 : index
    %239 = memref.load %arg10[%c1_114] : memref<2xf32, #tpu.memory_space<smem>>
    %240 = vector.broadcast %239 : f32 to vector<128x128xf32>
    %241 = arith.addf %238, %240 : vector<128x128xf32>
    %242 = arith.mulf %241, %71 : vector<128x128xf32>
    %243 = vector.extract_strided_slice %166 {offsets = [0, 16], sizes = [128, 16], strides = [1, 1]} : vector<128x32xf32> to vector<128x16xf32>
    %cst_115 = arith.constant dense<0.000000e+00> : vector<128x16xf32>
    %244 = tpu.matmul %242, %243, %cst_115 {dimension_numbers = #tpu.dot_dimension_numbers<[1], [0], [0], [1], [0, 0, 1, 1], [], []>} : vector<128x128xf32>, vector<128x16xf32>, vector<128x16xf32> -> vector<128x16xf32>
    %245 = vector.extract_strided_slice %70 {offsets = [128, 16], sizes = [128, 16], strides = [1, 1]} : vector<256x32xf32> to vector<128x16xf32>
    %246 = arith.addf %244, %245 : vector<128x16xf32>
    %cst_116 = arith.constant 0.000000e+00 : f32
    %247 = vector.broadcast %cst_116 : f32 to vector<128x16xf32>
    %248 = arith.maximumf %246, %247 : vector<128x16xf32>
    %c0_117 = arith.constant 0 : index
    %c0_118 = arith.constant 0 : index
    %249 = vector.load %arg12[%c0_117, %c0_118] : memref<16x32xf32, #tpu.memory_space<vmem>>, vector<16x32xf32>
    %cst_119 = arith.constant dense<0.000000e+00> : vector<128x32xf32>
    %250 = tpu.matmul %248, %249, %cst_119 {dimension_numbers = #tpu.dot_dimension_numbers<[1], [0], [0], [1], [0, 0, 1, 1], [], []>} : vector<128x16xf32>, vector<16x32xf32>, vector<128x32xf32> -> vector<128x32xf32>
    %251 = arith.addf %231, %250 : vector<128x32xf32>
    %c0_120 = arith.constant 0 : index
    %c0_121 = arith.constant 0 : index
    %252 = vector.load %arg13[%c0_120, %c0_121] : memref<1x32xf32, #tpu.memory_space<vmem>>, vector<1x32xf32>
    %253 = vector.broadcast %252 : vector<1x32xf32> to vector<128x32xf32>
    %254 = arith.addf %251, %253 : vector<128x32xf32>
    %c128 = arith.constant 128 : index
    %c0_122 = arith.constant 0 : index
    %255 = vector.load %arg14[%c128, %c0_122] : memref<256x32xf32, #tpu.memory_space<vmem>>, vector<128x32xf32>
    tpu.vector_store %arg14[%c128, %c0_122], %254 {strides = array<i32>} : memref<256x32xf32, #tpu.memory_space<vmem>>, vector<128x32xf32>,
    return
  }
  func.func @transform_0(%arg0: i32) -> (i32, i32) {
    %c0_i32 = arith.constant 0 : i32
    %c0_i32_0 = arith.constant 0 : i32
    return %arg0, %c0_i32 : i32, i32
  }
  func.func @transform_1(%arg0: i32) -> (i32, i32) {
    %c0_i32 = arith.constant 0 : i32
    %c0_i32_0 = arith.constant 0 : i32
    %c0_i32_1 = arith.constant 0 : i32
    return %c0_i32, %c0_i32_0 : i32, i32
  }
  func.func @transform_2(%arg0: i32) -> (i32, i32) {
    %c0_i32 = arith.constant 0 : i32
    %c0_i32_0 = arith.constant 0 : i32
    %c0_i32_1 = arith.constant 0 : i32
    return %c0_i32, %c0_i32_0 : i32, i32
  }
  func.func @transform_3(%arg0: i32) -> (i32, i32, i32) {
    %c0_i32 = arith.constant 0 : i32
    %c0_i32_0 = arith.constant 0 : i32
    %c0_i32_1 = arith.constant 0 : i32
    %c0_i32_2 = arith.constant 0 : i32
    return %c0_i32, %c0_i32_0, %c0_i32_1 : i32, i32, i32
  }
  func.func @transform_4(%arg0: i32) -> (i32, i32) {
    %c0_i32 = arith.constant 0 : i32
    %c0_i32_0 = arith.constant 0 : i32
    %c0_i32_1 = arith.constant 0 : i32
    return %c0_i32, %c0_i32_0 : i32, i32
  }
  func.func @transform_5(%arg0: i32) -> (i32, i32, i32) {
    %c0_i32 = arith.constant 0 : i32
    %c0_i32_0 = arith.constant 0 : i32
    %c0_i32_1 = arith.constant 0 : i32
    %c0_i32_2 = arith.constant 0 : i32
    return %c0_i32, %c0_i32_0, %c0_i32_1 : i32, i32, i32
  }
  func.func @transform_6(%arg0: i32) -> (i32, i32) {
    %c0_i32 = arith.constant 0 : i32
    %c0_i32_0 = arith.constant 0 : i32
    %c0_i32_1 = arith.constant 0 : i32
    return %c0_i32, %c0_i32_0 : i32, i32
  }
  func.func @transform_7(%arg0: i32) -> (i32, i32) {
    %c0_i32 = arith.constant 0 : i32
    %c0_i32_0 = arith.constant 0 : i32
    %c0_i32_1 = arith.constant 0 : i32
    return %c0_i32, %c0_i32_0 : i32, i32
  }
  func.func @transform_8(%arg0: i32) -> (i32, i32) {
    %c0_i32 = arith.constant 0 : i32
    %c0_i32_0 = arith.constant 0 : i32
    %c0_i32_1 = arith.constant 0 : i32
    return %c0_i32, %c0_i32_0 : i32, i32
  }
  func.func @transform_9(%arg0: i32) -> i32 {
    %c0_i32 = arith.constant 0 : i32
    %c0_i32_0 = arith.constant 0 : i32
    return %c0_i32 : i32
  }
  func.func @transform_10(%arg0: i32) -> (i32, i32) {
    %c0_i32 = arith.constant 0 : i32
    %c0_i32_0 = arith.constant 0 : i32
    %c0_i32_1 = arith.constant 0 : i32
    return %c0_i32, %c0_i32_0 : i32, i32
  }
  func.func @transform_11(%arg0: i32) -> (i32, i32) {
    %c0_i32 = arith.constant 0 : i32
    %c0_i32_0 = arith.constant 0 : i32
    %c0_i32_1 = arith.constant 0 : i32
    return %c0_i32, %c0_i32_0 : i32, i32
  }
  func.func @transform_12(%arg0: i32) -> (i32, i32) {
    %c0_i32 = arith.constant 0 : i32
    %c0_i32_0 = arith.constant 0 : i32
    %c0_i32_1 = arith.constant 0 : i32
    return %c0_i32, %c0_i32_0 : i32, i32
  }
  func.func @transform_13(%arg0: i32) -> (i32, i32) {
    %c0_i32 = arith.constant 0 : i32
    %c0_i32_0 = arith.constant 0 : i32
    return %arg0, %c0_i32 : i32, i32
  }
}

</mosaic_0001>

<bundles_post_ra>
// kernel: tpu_custom_call.1
= control target key start
LH: loop header
LB: loop body
LE: loop exit
PB: predicated region body
PF: predicated region fallthrough
CT: control target
= control target key end

     0   :  { %18 = vsyncpa [#allocation3], 0  ;;  %s14525_s0 = inlined_call_operand.vmem [shape: f32[2048,32], index: 0, kind: input, shape index: {}]   ;;  %s14526_s1 = inlined_call_operand.vmem [shape: f32[32,64], index: 1, kind: input, shape index: {}]   ;;  %s14527_s2 = inlined_call_operand.vmem [shape: f32[1,64], index: 2, kind: input, shape index: {}]   ;;  %s14528_s3 = inlined_call_operand.vmem [shape: f32[9,256,32], index: 3, kind: input, shape index: {}]   ;;  %s14529_s4 = inlined_call_operand.vmem [shape: f32[1,32], index: 4, kind: input, shape index: {}]   ;;  %s14530_s5 = inlined_call_operand.vmem [shape: f32[2,128,128], index: 5, kind: input, shape index: {}]   ;;  %s14531_s6 = inlined_call_operand.vmem [shape: f32[128,128], index: 6, kind: input, shape index: {}]   ;;  %s14532_s7 = inlined_call_operand.vmem [shape: f32[2,2], index: 7, kind: input, shape index: {}]   ;;  %s14533_s8 = inlined_call_operand.vmem [shape: f32[2,2], index: 8, kind: input, shape index: {}]   ;;  %s14534_s9 = inlined_call_operand.vmem [shape: f32[2], index: 9, kind: input, shape index: {}]   ;;  %s14535_s10 = inlined_call_operand.vmem [shape: f32[16,32], index: 10, kind: input, shape index: {}]   ;;  %s14536_s11 = inlined_call_operand.vmem [shape: f32[16,32], index: 11, kind: input, shape index: {}]   ;;  %s14537_s12 = inlined_call_operand.vmem [shape: f32[1,32], index: 12, kind: input, shape index: {}]   ;;  %s14538_s13 = inlined_call_operand.vmem [shape: f32[2048,32], index: 13, kind: output, shape index: {}]  }
   0x1   :  { %19 = vsyncpa [#allocation5], 0  ;;  %s9400_s25 = smov 0  }
   0x2 LB: > { %s6796_s26 = sadd.s32 4294967295, %s9320_s25   ;;  %p6798_p0 = scmp.ge.s32.totalorder %s9320_s25, 1  ;;  %s9320_s25 = sphi %s9400_s25, %s25_s25  }
   0x3   : > { %p334_p1 = scmp.lt.s32.totalorder %s9320_s25, 9  ;;  %s376_s29 = sshll.u32 %s14533_s8, 4  ;;  %s377_s29 = int_to_ptr.vmem [resolvable:$true] %s376_s29 }
   0x4   : > { %p9417_p3 = scmp.eq.s32.totalorder %s6796_s26, 0  ;;  %s365_s17 = sshll.u32 %s14532_s7, 4  ;;  %s366_s17 = int_to_ptr.vmem [resolvable:$true] %s365_s17 }
   0x5   : > { %p9411_p2 = pnand %p6798_p0, %p334_p1  ;;  %s387_s20 = sshll.u32 %s14534_s9, 4  ;;  %s9435_s20 = int_to_ptr.vmem [resolvable:$true] %s387_s20 }
   0x6   : > { %s14663_s14 = scalar_select %p9417_p3, 1, 0 }
   0x7   : > { %s14662_s30 = scalar_select %p9411_p2, 1, 0 }
   0x8   : > { %p8713_p4 = pneg %p9411_p2  ;;  %s9261_s22 = scalar_lea.vmem %s377_s29, 32 }
   0x9   : > { %p9262_p6 = scmp.ne.s32.totalorder %s377_s29, %s9261_s22  ;;  %p9269_p10 = scmp.lt.s32.totalorder %s377_s29, %s377_s29 }
   0xa   : > { %p9431_p5 = pnand %p9417_p3, %p8713_p4  ;;  %p9270_p11 = scmp.lt.s32.totalorder %s9261_s22, %s9261_s22 }
   0xc   : > { %p9263_p7 = pneg %p9431_p5  ;;  %p9271_p12 = por %p9270_p11, %p9269_p10 }
   0xe   : > { %p9264_p8 = pnand %p9263_p7, %p9262_p6 }
  0x10   : > { %p9265_p9 = pneg %p9264_p8 }
  0x12   : > { %p9272_p13 = pnand %p9271_p12, %p9265_p9 }
  0x14   : > { %9275 = shalt.err (!%p9272_p13)
}
  0x15   : > { %s9322_s23 = smov [#allocation4]   ;;  %s9276_s24 = scalar_lea.vmem %s366_s17, 32 }
  0x16   : > { %8719 = dma.vmem_to_smem (!%p9431_p5), %s377_s29, 32, %s9322_s23, [#allocation5]  }
  0x17   : > { %p9277_p0 = scmp.ne.s32.totalorder %s366_s17, %s9276_s24  ;;  %p9284_p3 = scmp.lt.s32.totalorder %s366_s17, %s366_s17 }
  0x18   : > { %p9285_p2 = scmp.lt.s32.totalorder %s9276_s24, %s9276_s24 }
  0x19   : > { %p9279_p1 = pnand %p9277_p0, %p9263_p7 }
  0x1a   : > { %p9286_p6 = por %p9285_p2, %p9284_p3 }
  0x1b   : > { %p9280_p4 = pneg %p9279_p1 }
  0x1d   : > { %p9287_p8 = pnand %p9286_p6, %p9280_p4 }
  0x1f   : > { %9290 = shalt.err (!%p9287_p8)
}
  0x20   : > { %s9323_s27 = smov [#allocation2]   ;;  %s9291_s28 = scalar_lea.vmem %s9435_s20, 16 }
  0x21   : > { %8716 = dma.vmem_to_smem (!%p9431_p5), %s366_s17, 32, %s9323_s27, [#allocation3]  }
  0x22   : > { %p9292_p9 = scmp.ne.s32.totalorder %s9435_s20, %s9291_s28  ;;  %p9299_p12 = scmp.lt.s32.totalorder %s9435_s20, %s9435_s20 }
  0x23   : > { %p9300_p13 = scmp.lt.s32.totalorder %s9291_s28, %s9291_s28 }
  0x24   : > { %p9294_p10 = pnand %p9292_p9, %p9263_p7 }
  0x25   : > { %p9301_p2 = por %p9300_p13, %p9299_p12 }
  0x26   : > { %p9295_p11 = pneg %p9294_p10 }
  0x28   : > { %p9302_p3 = pnand %p9301_p2, %p9295_p11 }
  0x2a   : > { %9305 = shalt.err (!%p9302_p3)
}
  0x2b   : > { %s9324_s29 = smov [#allocation6]   ;;  %p14665_p0 = scmp.ne.s32.totalorder %s14662_s30, 0 }
  0x2c   : > { %8722 = dma.vmem_to_smem (!%p9431_p5), %s9435_s20, 16, %s9324_s29, [#allocation5]  }
  0x2d   : > { %418 = sbr.rel (%p14665_p0) target bundleno = 2560 (0xa00), region = 72 }
  0x34   : > { %p14666_p1 = scmp.ne.s32.totalorder %s14663_s14, 0 }
  0x36   : > { %9311 = dma.done.wait (%p14666_p1), [#allocation3], 32  }
  0x37   : > { %9313 = vsyncadd (%p14666_p1), [#allocation3], 4294967264 }
  0x38   : > { %9315 = dma.done.wait (%p14666_p1), [#allocation5], 48  }
  0x39   : > { %9317 = vsyncadd (%p14666_p1), [#allocation5], 4294967248 }
  0x3a   : > { %432 = sfence }
  0x3b   : > { %v515_v0 = vld [vmem:[%s14526_s1] sm:$0xff]  ;;  %v516_v1 = vld [vmem:[%s14526_s1 + $0x8] sm:$0xff]  ;;  %v517_v2 = vld [vmem:[%s14526_s1 + $0x10] sm:$0xff]  ;;  %s6807_s20 = sshll.u32 %s6796_s26, 5  ;;  %vm526_vm0 = vcmask 261120   ;;  %vm2728_vm1 = vcmask 64512  }
  0x3c   : > { %v8323_v3 = vpack.c.bf16 %v516_v1, %v515_v0  ;;  %v518_v4 = vld [vmem:[%s14526_s1 + $0x18] sm:$0xff]  ;;  %p472_p5 = scmp.lt.s32.totalorder %s6807_s20, 255  ;;  %v9532_v24 = vld [vmem:[%s14527_s2] ss:$0 sm:$0xff]  ;;  %s9325_s29 = smov 112   ;;  %vm9747_vm2 = vmpackc.low %vm2728_vm1, %vm2728_vm1  ;;  %vm1138_vm3 = vcmask 1043456  }
  0x3d   : > { %v8327_v5 = vpack.c.bf16 %v518_v4, %v517_v2  ;;  %s9326_s15 = smov 104   ;;  %s9327_s16 = smov 120   ;;  %vm912_vm4 = vcmask 1044480   ;;  %vm1396_vm5 = vcmask 1042432   ;;  %vm1654_vm6 = vcmask 1040384  }
  0x3e   : > { %8324 = vmatprep.subr.bf16.mxu0 %v8323_v3  ;;  %s14924_s20 = smov (!%p472_p5, %s6807_s20), 255  ;;  %s9328_s30 = smov 80   ;;  %vm2105_vm7 = vcmask 1046528   ;;  %vm4278_vm8 = vcmask 130048  }
  0x3f   : > { %8326 = vmatpush3.bf16.msra.mxu0 %v8323_v3  ;;  %s14584_s22 = sshll.u32 %s14924_s20, 3  ;;  %s9329_s17 = smov 96  }
  0x40   : > { %8328 = vmatprep.subr.bf16.mxu0 %v8327_v5  ;;  %s9491_s26 = scalar_lea.vmem %s14525_s0, %s14584_s22  ;;  %s3211_s18 = sld [smem:[#allocation2]] }
  0x41   : > { %v483_v6 = vld [vmem:[%s9491_s26] sm:$0xff]  ;;  %v484_v7 = vld [vmem:[%s9491_s26 + $0x8] sm:$0xff]  ;;  %v485_v8 = vld [vmem:[%s9491_s26 + $0x10] sm:$0xff]  ;;  %s7166_s19 = sld [smem:[#allocation2 + $0x80]]  ;;  %s7165_s21 = sld [smem:[#allocation2 + $0x1]] }
  0x42   : > { %7715 = vmatprep.mubr.msk.f32.mxu0 %vm526_vm0, %v483_v6  ;;  %v486_v9 = vld [vmem:[%s9491_s26 + $0x18] sm:$0xff]  ;;  %v487_v10 = vld [vmem:[%s9491_s26 + $0x20] sm:$0xff]  ;;  %v488_v11 = vld [vmem:[%s9491_s26 + $0x28] sm:$0xff]  ;;  %s7167_s14 = sld [smem:[#allocation2 + $0x81]]  ;;  %s3668_s27 = sld [smem:[#allocation4]] }
  0x43   : > { %8330 = vmatpush3.bf16.msra.mxu0 %v8327_v5  ;;  %v489_v12 = vld [vmem:[%s9491_s26 + $0x30] sm:$0xff]  ;;  %v490_v13 = vld [vmem:[%s9491_s26 + $0x38] sm:$0xff]  ;;  %v491_v14 = vld [vmem:[%s9491_s26 + $0x40] sm:$0xff]  ;;  %s7184_s24 = sld [smem:[#allocation4 + $0x1]]  ;;  %s7185_s28 = sld [smem:[#allocation4 + $0x80]] }
  0x44   : > { %v492_v15 = vld [vmem:[%s9491_s26 + $0x48] sm:$0xff]  ;;  %v493_v16 = vld [vmem:[%s9491_s26 + $0x50] sm:$0xff]  ;;  %v494_v17 = vld [vmem:[%s9491_s26 + $0x58] sm:$0xff]  ;;  %s14809_s22 = sshll.u32 %s14924_s20, 3  ;;  %s5218_s20 = sld [smem:[#allocation2]] }
  0x45   : > { %v495_v18 = vld [vmem:[%s9491_s26 + $0x60] sm:$0xff]  ;;  %v496_v19 = vld [vmem:[%s9491_s26 + $0x68] sm:$0xff]  ;;  %v497_v20 = vld [vmem:[%s9491_s26 + $0x70] sm:$0xff]  ;;  %s13333_s23 = sld [smem:[#allocation4 + $0x81]] }
  0x46   : > { %7716 = vmatmul.mubr.msk.f32.vlgmr.msra.gmra.mrb[0].mxu0 %vm526_vm0, %v484_v7  ;;  %v498_v21 = vld [vmem:[%s9491_s26 + $0x78] sm:$0xff]  ;;  %v499_v22 = vld [vmem:[%s9491_s26 + $0x80] sm:$0xff]  ;;  %v500_v23 = vld [vmem:[%s9491_s26 + $0x88] sm:$0xff] }
  0x47   : > { %7718 = vmatprep.mubr.msk.f32.mxu0 %vm526_vm0, %v485_v8  ;;  %v501_v25 = vld [vmem:[%s9491_s26 + $0x90] sm:$0xff]  ;;  %v502_v26 = vld [vmem:[%s9491_s26 + $0x98] sm:$0xff]  ;;  %v503_v31 = vld [vmem:[%s9491_s26 + $0xa0] sm:$0xff] }
  0x48   : > { %v504_v32 = vld [vmem:[%s9491_s26 + $0xa8] sm:$0xff]  ;;  %v505_v38 = vld [vmem:[%s9491_s26 + $0xb0] sm:$0xff]  ;;  %v506_v39 = vld [vmem:[%s9491_s26 + $0xb8] sm:$0xff] }
  0x49   : > { %v507_v45 = vld [vmem:[%s9491_s26 + $0xc0] sm:$0xff]  ;;  %v508_v46 = vld [vmem:[%s9491_s26 + $0xc8] sm:$0xff]  ;;  %v509_v52 = vld [vmem:[%s9491_s26 + $0xd0] sm:$0xff] }
  0x4a   : > { %7719 = vmatmul.mubr.msk.f32.gmra.mrb[2].mxu0 %vm526_vm0, %v486_v9  ;;  %v510_v53 = vld [vmem:[%s9491_s26 + $0xd8] sm:$0xff]  ;;  %v511_v59 = vld [vmem:[%s9491_s26 + $0xe0] sm:$0xff]  ;;  %v512_v60 = vld [vmem:[%s9491_s26 + $0xe8] sm:$0xff] }
  0x4b   : > { %7721 = vmatprep.mubr.msk.f32.mxu0 %vm526_vm0, %v487_v10  ;;  %v513_v2 = vld [vmem:[%s9491_s26 + $0xf0] sm:$0xff]  ;;  %v514_v3 = vld [vmem:[%s9491_s26 + $0xf8] sm:$0xff]  ;;  %s7186_s26 = sld [smem:[#allocation4 + $0x81]] }
  0x4e   : > { %7722 = vmatmul.mubr.msk.f32.gmra.mrb[4].mxu0 %vm526_vm0, %v488_v11 }
  0x4f   : > { %7724 = vmatprep.mubr.msk.f32.mxu0 %vm526_vm0, %v489_v12 }
  0x52   : > { %7725 = vmatmul.mubr.msk.f32.gmra.mrb[6].mxu0 %vm526_vm0, %v490_v13 }
  0x53   : > { %7727 = vmatprep.mubr.msk.f32.mxu0 %vm526_vm0, %v491_v14 }
  0x56   : > { %7728 = vmatmul.mubr.msk.f32.gmra.mrb[8].mxu0 %vm526_vm0, %v492_v15 }
  0x57   : > { %7730 = vmatprep.mubr.msk.f32.mxu0 %vm526_vm0, %v493_v16 }
  0x5a   : > { %7731 = vmatmul.mubr.msk.f32.gmra.mrb[10].mxu0 %vm526_vm0, %v494_v17 }
  0x5b   : > { %7733 = vmatprep.mubr.msk.f32.mxu0 %vm526_vm0, %v495_v18 }
  0x5e   : > { %7734 = vmatmul.mubr.msk.f32.gmra.mrb[12].mxu0 %vm526_vm0, %v496_v19 }
  0x5f   : > { %7736 = vmatprep.mubr.msk.f32.mxu0 %vm526_vm0, %v497_v20 }
  0x62   : > { %7737 = vmatmul.mubr.msk.f32.gmra.mrb[14].mxu0 %vm526_vm0, %v498_v21  ;;  %v14671_v21 = vmov 0 }
  0x63   : > { %7739 = vmatprep.mubr.msk.f32.mxu0 %vm526_vm0, %v499_v22  ;;  %v14672_v21 = vsel %vm9747_vm2, 4294967295, %v14671_v21 }
  0x64   : > { %14673 = vst [vmem:[#allocation13_spill] sm:$0xff] %v14672_v21 }
  0x66   : > { %7740 = vmatmul.mubr.msk.f32.gmra.mrb[16].mxu0 %vm526_vm0, %v500_v23 }
  0x67   : > { %7742 = vmatprep.mubr.msk.f32.mxu0 %vm526_vm0, %v501_v25 }
  0x6a   : > { %7743 = vmatmul.mubr.msk.f32.gmra.mrb[18].mxu0 %vm526_vm0, %v502_v26 }
  0x6b   : > { %7745 = vmatprep.mubr.msk.f32.mxu0 %vm526_vm0, %v503_v31 }
  0x6e   : > { %7746 = vmatmul.mubr.msk.f32.gmra.mrb[20].mxu0 %vm526_vm0, %v504_v32 }
  0x6f   : > { %7748 = vmatprep.mubr.msk.f32.mxu0 %vm526_vm0, %v505_v38 }
  0x72   : > { %7749 = vmatmul.mubr.msk.f32.gmra.mrb[22].mxu0 %vm526_vm0, %v506_v39 }
  0x73   : > { %7751 = vmatprep.mubr.msk.f32.mxu0 %vm526_vm0, %v507_v45 }
  0x76   : > { %7752 = vmatmul.mubr.msk.f32.gmra.mrb[24].mxu0 %vm526_vm0, %v508_v46 }
  0x77   : > { %7754 = vmatprep.mubr.msk.f32.mxu0 %vm526_vm0, %v509_v52 }
  0x7a   : > { %7755 = vmatmul.mubr.msk.f32.gmra.mrb[26].mxu0 %vm526_vm0, %v510_v53 }
  0x7b   : > { %7757 = vmatprep.mubr.msk.f32.mxu0 %vm526_vm0, %v511_v59 }
  0x7e   : > { %7758 = vmatmul.mubr.msk.f32.gmra.mrb[28].mxu0 %vm526_vm0, %v512_v60 }
  0x7f   : > { %7760 = vmatprep.mubr.msk.f32.mxu0 %vm526_vm0, %v513_v2 }
  0x82   : > { %7761 = vmatmul.mubr.msk.f32.gmra.mrb[30].mxu0 %vm526_vm0, %v514_v3 }
 0x119   : > { %v7717_v27 = vpop.f32.mrb[0].mxu0 }
 0x11a   : > { %v9539_v28 = vadd.f32 %v7717_v27, %v9532_v24  ;;  %v689_v29 = vpop.f32.mrb[1].mxu0 }
 0x11b   : > { %v9542_v30 = vadd.f32 %v9532_v24, %v689_v29 }
 0x11d   : > { %v7720_v33 = vpop.f32.mrb[2].mxu0  ;;  %7795 = vmatprep.mubr.msk.f32.mxu1 %vm2728_vm1, %v9542_v30  ;;  %v9550_v34 = vpack.i.bf16 %v9539_v28, %v9542_v30  ;;  %v14542_v17 = vrot.slane %v9542_v30, 3 }
 0x11e   : > { %v9554_v35 = vadd.f32 %v7720_v33, %v9532_v24  ;;  %v699_v36 = vpop.f32.mrb[3].mxu0 }
 0x11f   : > { %v9558_v37 = vadd.f32 %v9532_v24, %v699_v36  ;;  %8746 = vrot.lane.b32.xlu0 %v9550_v34, %s9325_s29  ;;  %v14543_v36 = vrot.slane %v9542_v30, 4 }
 0x121   : > { %v7723_v40 = vpop.f32.mrb[4].mxu0  ;;  %v9566_v41 = vpack.i.bf16 %v9554_v35, %v9558_v37 }
 0x122   : > { %v9570_v42 = vadd.f32 %v7723_v40, %v9532_v24  ;;  %v709_v43 = vpop.f32.mrb[5].mxu0 }
 0x123   : > { %v9574_v44 = vadd.f32 %v9532_v24, %v709_v43  ;;  %8756 = vrot.lane.b32.xlu1 %v9566_v41, %s9325_s29  ;;  %8751 = vrot.lane.b32.xlu0 %v9550_v34, %s9326_s15 }
 0x125   : > { %v7726_v47 = vpop.f32.mrb[6].mxu0  ;;  %v9584_v48 = vpack.i.bf16 %v9570_v42, %v9574_v44 }
 0x126   : > { %v9588_v49 = vadd.f32 %v7726_v47, %v9532_v24  ;;  %v719_v50 = vpop.f32.mrb[7].mxu0 }
 0x127   : > { %v9592_v51 = vadd.f32 %v9532_v24, %v719_v50  ;;  %8761 = vrot.lane.b32.xlu1 %v9566_v41, %s9326_s15  ;;  %8766 = vrot.lane.b32.xlu0 %v9584_v48, %s9325_s29 }
 0x129   : > { %v7729_v54 = vpop.f32.mrb[8].mxu0  ;;  %v9602_v55 = vpack.i.bf16 %v9588_v49, %v9592_v51 }
 0x12a   : > { %v9606_v56 = vadd.f32 %v7729_v54, %v9532_v24  ;;  %v729_v57 = vpop.f32.mrb[9].mxu0 }
 0x12b   : > { %v9610_v58 = vadd.f32 %v9532_v24, %v729_v57  ;;  %8771 = vrot.lane.b32.xlu1 %v9584_v48, %s9326_s15  ;;  %8776 = vrot.lane.b32.xlu0 %v9602_v55, %s9325_s29 }
 0x12d   : > { %v7732_v61 = vpop.f32.mrb[10].mxu0  ;;  %v8785_v62 = vpack.i.bf16 %v9606_v56, %v9610_v58 }
 0x12e   : > { %v9622_v63 = vadd.f32 %v7732_v61, %v9532_v24  ;;  %v739_v0 = vpop.f32.mrb[11].mxu0 }
 0x12f   : > { %v9626_v1 = vadd.f32 %v9532_v24, %v739_v0  ;;  %8781 = vrot.lane.b32.xlu1 %v9602_v55, %s9326_s15  ;;  %8786 = vrot.lane.b32.xlu0 %v8785_v62, %s9325_s29 }
 0x131   : > { %v7735_v4 = vpop.f32.mrb[12].mxu0  ;;  %v8795_v5 = vpack.i.bf16 %v9622_v63, %v9626_v1 }
 0x132   : > { %v9637_v6 = vadd.f32 %v7735_v4, %v9532_v24  ;;  %v749_v7 = vpop.f32.mrb[13].mxu0 }
 0x133   : > { %v9641_v8 = vadd.f32 %v9532_v24, %v749_v7  ;;  %8791 = vrot.lane.b32.xlu1 %v8785_v62, %s9326_s15  ;;  %8796 = vrot.lane.b32.xlu0 %v8795_v5, %s9325_s29 }
 0x135   : > { %v7738_v9 = vpop.f32.mrb[14].mxu0  ;;  %v8805_v10 = vpack.i.bf16 %v9637_v6, %v9641_v8 }
 0x136   : > { %v9648_v11 = vadd.f32 %v7738_v9, %v9532_v24  ;;  %v759_v12 = vpop.f32.mrb[15].mxu0 }
 0x137   : > { %v9651_v13 = vadd.f32 %v9532_v24, %v759_v12  ;;  %8801 = vrot.lane.b32.xlu1 %v8795_v5, %s9326_s15  ;;  %8806 = vrot.lane.b32.xlu0 %v8805_v10, %s9325_s29 }
 0x138   : > { %14667 = vst [vmem:[#allocation9_spill] sm:$0xff] %v9648_v11 }
 0x139   : > { %14668 = vst [vmem:[#allocation10_spill] sm:$0xff] %v9651_v13  ;;  %v9657_v14 = vpack.i.bf16 %v9648_v11, %v9651_v13  ;;  %v9659_v15 = vpop.f32.mrb[16].mxu0 }
 0x13a   : > { %14669 = vst [vmem:[#allocation11_spill] sm:$0xff] %v9659_v15  ;;  %v9661_v16 = vpop.f32.mrb[17].mxu0  ;;  %v3266_v15 = vld [vmem:[%s14530_s5 + $0x18] sm:$0xff] }
 0x13b   : > { %14670 = vst [vmem:[#allocation12_spill] sm:$0xff] %v9661_v16  ;;  %8811 = vrot.lane.b32.xlu1 %v8805_v10, %s9326_s15  ;;  %8816 = vrot.lane.b32.xlu0 %v9657_v14, %s9325_s29 }
 0x13f   : > { %8821 = vrot.lane.b32.xlu1 %v9657_v14, %s9326_s15  ;;  %2938 = vrot.lane.b32.xlu0 %v9542_v30, %s9327_s16 }
 0x143   : > { %2940 = vrot.lane.b32.xlu1 %v9539_v28, %s9327_s16  ;;  %2942 = vrot.lane.b32.xlu0 %v9558_v37, %s9327_s16 }
 0x147   : > { %2944 = vrot.lane.b32.xlu1 %v9554_v35, %s9327_s16  ;;  %2946 = vrot.lane.b32.xlu0 %v9574_v44, %s9327_s16 }
 0x14b   : > { %2948 = vrot.lane.b32.xlu1 %v9570_v42, %s9327_s16  ;;  %2950 = vrot.lane.b32.xlu0 %v9592_v51, %s9327_s16 }
 0x14f   : > { %2952 = vrot.lane.b32.xlu1 %v9588_v49, %s9327_s16  ;;  %2954 = vrot.lane.b32.xlu0 %v9610_v58, %s9327_s16 }
 0x153   : > { %2956 = vrot.lane.b32.xlu1 %v9606_v56, %s9327_s16  ;;  %2958 = vrot.lane.b32.xlu0 %v9626_v1, %s9327_s16 }
 0x157   : > { %2960 = vrot.lane.b32.xlu1 %v9622_v63, %s9327_s16  ;;  %2962 = vrot.lane.b32.xlu0 %v9641_v8, %s9327_s16 }
 0x15b   : > { %2964 = vrot.lane.b32.xlu1 %v9637_v6, %s9327_s16  ;;  %2966 = vrot.lane.b32.xlu0 %v9651_v13, %s9327_s16 }
 0x15f   : > { %2968 = vrot.lane.b32.xlu1 %v9648_v11, %s9327_s16  ;;  %8836 = vrot.lane.b32.xlu0 %v9584_v48, %s9328_s30 }
 0x163   : > { %8826 = vrot.lane.b32.xlu1 %v9550_v34, %s9328_s30  ;;  %8846 = vrot.lane.b32.xlu0 %v8785_v62, %s9328_s30 }
 0x167   : > { %8831 = vrot.lane.b32.xlu1 %v9566_v41, %s9328_s30  ;;  %8856 = vrot.lane.b32.xlu0 %v8805_v10, %s9328_s30 }
 0x16b   : > { %8841 = vrot.lane.b32.xlu1 %v9602_v55, %s9328_s30  ;;  %1912 = vrot.lane.b32.xlu0 %v9542_v30, %s9329_s17 }
 0x16f   : > { %8851 = vrot.lane.b32.xlu1 %v8795_v5, %s9328_s30  ;;  %1924 = vrot.lane.b32.xlu0 %v9592_v51, %s9329_s17 }
 0x173   : > { %1914 = vrot.lane.b32.xlu1 %v9539_v28, %s9329_s17  ;;  %1928 = vrot.lane.b32.xlu0 %v9610_v58, %s9329_s17 }
 0x177   : > { %1916 = vrot.lane.b32.xlu1 %v9558_v37, %s9329_s17  ;;  %1932 = vrot.lane.b32.xlu0 %v9626_v1, %s9329_s17 }
 0x17b   : > { %1918 = vrot.lane.b32.xlu1 %v9554_v35, %s9329_s17  ;;  %1936 = vrot.lane.b32.xlu0 %v9641_v8, %s9329_s17 }
 0x17f   : > { %1920 = vrot.lane.b32.xlu1 %v9574_v44, %s9329_s17  ;;  %976 = vrot.lane.b32.xlu0 %v14542_v17, %s9329_s17 }
 0x183   : > { %1922 = vrot.lane.b32.xlu1 %v9570_v42, %s9329_s17  ;;  %1940 = vrot.lane.b32.xlu0 %v9651_v13, %s9329_s17 }
 0x187   : > { %1926 = vrot.lane.b32.xlu1 %v9588_v49, %s9329_s17 }
 0x18b   : > { %1930 = vrot.lane.b32.xlu1 %v9606_v56, %s9329_s17 }
 0x18f   : > { %1934 = vrot.lane.b32.xlu1 %v9622_v63, %s9329_s17 }
 0x191   : > { %v8747_v18 = vpop.permute.xlu0 %8746 }
 0x192   : > { %v8749_v19 = vunpack.i.h.bf16 %v8747_v18  ;;  %v8748_v20 = vunpack.i.l.bf16 %v8747_v18 }
 0x193   : > { %1938 = vrot.lane.b32.xlu1 %v9637_v6, %s9329_s17 }
 0x194   : > { %v8331_v22 = vpack.c.bf16 %v8749_v19, %v8748_v20 }
 0x195   : > { %v8757_v23 = vpop.permute.xlu1 %8756  ;;  %v8752_v24 = vpop.permute.xlu0 %8751 }
 0x196   : > { %v8759_v25 = vunpack.i.h.bf16 %v8757_v23  ;;  %v8758_v26 = vunpack.i.l.bf16 %v8757_v23  ;;  %v8754_v27 = vunpack.i.h.bf16 %v8752_v24  ;;  %v8753_v29 = vunpack.i.l.bf16 %v8752_v24  ;;  %8333 = vmatprep.subr.msk.bf16.mxu1 %vm9747_vm2, %v8331_v22 }
 0x197   : > { %1942 = vrot.lane.b32.xlu1 %v9648_v11, %s9329_s17  ;;  %8336 = vmatpush3.bf16.xpose.msk.msra.mxu1 %vm9747_vm2, %v8331_v22 }
 0x198   : > { %v8337_v31 = vpack.c.bf16 %v8759_v25, %v8758_v26  ;;  %v8379_v32 = vpack.c.bf16 %v8754_v27, %v8753_v29 }
 0x199   : > { %v8762_v33 = vpop.permute.xlu1 %8761  ;;  %v8767_v34 = vpop.permute.xlu0 %8766 }
 0x19a   : > { %v8764_v38 = vunpack.i.h.bf16 %v8762_v33  ;;  %v8763_v39 = vunpack.i.l.bf16 %v8762_v33  ;;  %v8769_v40 = vunpack.i.h.bf16 %v8767_v34  ;;  %v8768_v41 = vunpack.i.l.bf16 %v8767_v34  ;;  %8381 = vmatprep.subr.msk.bf16.mxu0 %vm9747_vm2, %v8379_v32  ;;  %8339 = vmatprep.subr.msk.bf16.mxu1 %vm9747_vm2, %v8337_v31 }
 0x19b   : > { %8384 = vmatpush3.bf16.xpose.msk.msra.mxu0 %vm9747_vm2, %v8379_v32  ;;  %1202 = vrot.lane.b32.xlu1 %v14543_v36, %s9329_s17 }
 0x19c   : > { %v8385_v43 = vpack.c.bf16 %v8764_v38, %v8763_v39  ;;  %v8343_v45 = vpack.c.bf16 %v8769_v40, %v8768_v41 }
 0x19d   : > { %v8772_v46 = vpop.permute.xlu1 %8771  ;;  %v8777_v47 = vpop.permute.xlu0 %8776 }
 0x19e   : > { %v8774_v48 = vunpack.i.h.bf16 %v8772_v46  ;;  %v8773_v50 = vunpack.i.l.bf16 %v8772_v46  ;;  %8387 = vmatprep.subr.msk.bf16.mxu0 %vm9747_vm2, %v8385_v43  ;;  %v8779_v53 = vunpack.i.h.bf16 %v8777_v47  ;;  %v8778_v54 = vunpack.i.l.bf16 %v8777_v47 }
 0x19f   : > { %8342 = vmatpush3.bf16.xpose.msk.msra.mxu1 %vm9747_vm2, %v8337_v31  ;;  %8861 = vrot.lane.b32.xlu1 %v9657_v14, %s9328_s30 }
 0x1a0   : > { %v8391_v52 = vpack.c.bf16 %v8774_v48, %v8773_v50  ;;  %8345 = vmatprep.subr.msk.bf16.mxu1 %vm9747_vm2, %v8343_v45  ;;  %v8349_v59 = vpack.c.bf16 %v8779_v53, %v8778_v54 }
 0x1a1   : > { %v8782_v55 = vpop.permute.xlu1 %8781  ;;  %v8787_v57 = vpop.permute.xlu0 %8786 }
 0x1a2   : > { %v8784_v60 = vunpack.i.h.bf16 %v8782_v55  ;;  %v8783_v61 = vunpack.i.l.bf16 %v8782_v55  ;;  %v8789_v3 = vunpack.i.h.bf16 %v8787_v57  ;;  %v8788_v4 = vunpack.i.l.bf16 %v8787_v57 }
 0x1a3   : > { %8390 = vmatpush3.bf16.xpose.msk.msra.mxu0 %vm9747_vm2, %v8385_v43 }
 0x1a4   : > { %8393 = vmatprep.subr.msk.bf16.mxu0 %vm9747_vm2, %v8391_v52  ;;  %v8397_v2 = vpack.c.bf16 %v8784_v60, %v8783_v61  ;;  %v8355_v9 = vpack.c.bf16 %v8789_v3, %v8788_v4 }
 0x1a5   : > { %v8792_v62 = vpop.permute.xlu1 %8791  ;;  %v8797_v0 = vpop.permute.xlu0 %8796 }
 0x1a6   : > { %v8794_v10 = vunpack.i.h.bf16 %v8792_v62  ;;  %v8793_v12 = vunpack.i.l.bf16 %v8792_v62  ;;  %v8799_v20 = vunpack.i.h.bf16 %v8797_v0  ;;  %v8798_v22 = vunpack.i.l.bf16 %v8797_v0 }
 0x1a7   : > { %8348 = vmatpush3.bf16.xpose.msk.msra.mxu1 %vm9747_vm2, %v8343_v45 }
 0x1a8   : > { %8351 = vmatprep.subr.msk.bf16.mxu1 %vm9747_vm2, %v8349_v59  ;;  %v8403_v19 = vpack.c.bf16 %v8794_v10, %v8793_v12  ;;  %v8361_v25 = vpack.c.bf16 %v8799_v20, %v8798_v22 }
 0x1a9   : > { %v8802_v5 = vpop.permute.xlu1 %8801  ;;  %v8807_v7 = vpop.permute.xlu0 %8806 }
 0x1aa   : > { %v8804_v26 = vunpack.i.h.bf16 %v8802_v5  ;;  %v8803_v27 = vunpack.i.l.bf16 %v8802_v5  ;;  %v8809_v33 = vunpack.i.h.bf16 %v8807_v7  ;;  %v8808_v34 = vunpack.i.l.bf16 %v8807_v7 }
 0x1ab   : > { %8396 = vmatpush3.bf16.xpose.msk.msra.mxu0 %vm9747_vm2, %v8391_v52 }
 0x1ac   : > { %8399 = vmatprep.subr.msk.bf16.mxu0 %vm9747_vm2, %v8397_v2  ;;  %v8409_v32 = vpack.c.bf16 %v8804_v26, %v8803_v27  ;;  %v8367_v40 = vpack.c.bf16 %v8809_v33, %v8808_v34 }
 0x1ad   : > { %v8812_v14 = vpop.permute.xlu1 %8811  ;;  %v8817_v18 = vpop.permute.xlu0 %8816 }
 0x1ae   : > { %v8814_v41 = vunpack.i.h.bf16 %v8812_v14  ;;  %v8813_v43 = vunpack.i.l.bf16 %v8812_v14  ;;  %v8819_v48 = vunpack.i.h.bf16 %v8817_v18  ;;  %v8818_v50 = vunpack.i.l.bf16 %v8817_v18 }
 0x1af   : > { %8354 = vmatpush3.bf16.xpose.msk.msra.mxu1 %vm9747_vm2, %v8349_v59 }
 0x1b0   : > { %8357 = vmatprep.subr.msk.bf16.mxu1 %vm9747_vm2, %v8355_v9  ;;  %v8415_v47 = vpack.c.bf16 %v8814_v41, %v8813_v43  ;;  %v8373_v54 = vpack.c.bf16 %v8819_v48, %v8818_v50 }
 0x1b1   : > { %v8822_v23 = vpop.permute.xlu1 %8821  ;;  %v2939_v24 = vpop.permute.xlu0 %2938 }
 0x1b2   : > { %7851 = vmatprep.mubr.msk.f32.mxu0 %vm2728_vm1, %v2939_v24  ;;  %v8824_v55 = vunpack.i.h.bf16 %v8822_v23  ;;  %v8823_v57 = vunpack.i.l.bf16 %v8822_v23 }
 0x1b3   : > { %8402 = vmatpush3.bf16.xpose.msk.msra.mxu0 %vm9747_vm2, %v8397_v2 }
 0x1b4   : > { %8405 = vmatprep.subr.msk.bf16.mxu0 %vm9747_vm2, %v8403_v19  ;;  %v8421_v61 = vpack.c.bf16 %v8824_v55, %v8823_v57 }
 0x1b5   : > { %v2941_v29 = vpop.permute.xlu1 %2940  ;;  %v2943_v31 = vpop.permute.xlu0 %2942 }
 0x1b7   : > { %8360 = vmatpush3.bf16.xpose.msk.msra.mxu1 %vm9747_vm2, %v8355_v9 }
 0x1b8   : > { %8363 = vmatprep.subr.msk.bf16.mxu1 %vm9747_vm2, %v8361_v25 }
 0x1b9   : > { %v2945_v38 = vpop.permute.xlu1 %2944  ;;  %v9800_v39 = vpop.permute.xlu0 %2946 }
 0x1bb   : > { %8408 = vmatpush3.bf16.xpose.msk.msra.mxu0 %vm9747_vm2, %v8403_v19 }
 0x1bc   : > { %8411 = vmatprep.subr.msk.bf16.mxu0 %vm9747_vm2, %v8409_v32 }
 0x1bd   : > { %v2949_v45 = vpop.permute.xlu1 %2948  ;;  %v9806_v46 = vpop.permute.xlu0 %2950 }
 0x1bf   : > { %8366 = vmatpush3.bf16.xpose.msk.msra.mxu1 %vm9747_vm2, %v8361_v25 }
 0x1c0   : > { %8369 = vmatprep.subr.msk.bf16.mxu1 %vm9747_vm2, %v8367_v40 }
 0x1c1   : > { %v9812_v52 = vpop.permute.xlu1 %2952  ;;  %v9814_v53 = vpop.permute.xlu0 %2954 }
 0x1c3   : > { %8414 = vmatpush3.bf16.xpose.msk.msra.mxu0 %vm9747_vm2, %v8409_v32 }
 0x1c4   : > { %8417 = vmatprep.subr.msk.bf16.mxu0 %vm9747_vm2, %v8415_v47 }
 0x1c5   : > { %v9820_v59 = vpop.permute.xlu1 %2956  ;;  %v9822_v60 = vpop.permute.xlu0 %2958 }
 0x1c7   : > { %8372 = vmatpush3.bf16.xpose.msk.msra.mxu1 %vm9747_vm2, %v8367_v40 }
 0x1c8   : > { %8375 = vmatprep.subr.msk.bf16.mxu1 %vm9747_vm2, %v8373_v54 }
 0x1c9   : > { %v9828_v62 = vpop.permute.xlu1 %2960  ;;  %v9830_v0 = vpop.permute.xlu0 %2962 }
 0x1cb   : > { %8420 = vmatpush3.bf16.xpose.msk.msra.mxu0 %vm9747_vm2, %v8415_v47 }
 0x1cc   : > { %8423 = vmatprep.subr.msk.bf16.mxu0 %vm9747_vm2, %v8421_v61 }
 0x1cd   : > { %v9836_v2 = vpop.permute.xlu1 %2964  ;;  %v9838_v3 = vpop.permute.xlu0 %2966 }
 0x1cf   : > { %8378 = vmatpush3.bf16.xpose.msk.msra.mxu1 %vm9747_vm2, %v8373_v54  ;;  %v9896_v54 = vpop.f32.mrb[18].mxu0 }
 0x1d0   : > { %14678 = vst [vmem:[#allocation18_spill] sm:$0xff] %v9896_v54 }
 0x1d1   : > { %v9842_v4 = vpop.permute.xlu1 %2968  ;;  %v8837_v5 = vpop.permute.xlu0 %8836 }
 0x1d2   : > { %v8839_v22 = vunpack.i.h.bf16 %v8837_v5  ;;  %v8838_v23 = vunpack.i.l.bf16 %v8837_v5 }
 0x1d3   : > { %8426 = vmatpush3.bf16.xpose.msk.msra.mxu0 %vm9747_vm2, %v8421_v61 }
 0x1d5   : > { %v8827_v7 = vpop.permute.xlu1 %8826  ;;  %v8847_v12 = vpop.permute.xlu0 %8846 }
 0x1d6   : > { %v8829_v9 = vunpack.i.h.bf16 %v8827_v7  ;;  %v8828_v10 = vunpack.i.l.bf16 %v8827_v7  ;;  %7796 = vmatmul.mubr.msk.f32.vlgmr.msra.gmra.mrb[0].mxu1 %vm2728_vm1, %v9539_v28  ;;  %v8849_v33 = vunpack.i.h.bf16 %v8847_v12  ;;  %v8848_v34 = vunpack.i.l.bf16 %v8847_v12 }
 0x1d7   : > { %7798 = vmatprep.mubr.msk.f32.mxu1 %vm2728_vm1, %v9558_v37 }
 0x1d8   : > { %v8459_v14 = vpack.c.bf16 %v8829_v9, %v8828_v10 }
 0x1d9   : > { %v8832_v18 = vpop.permute.xlu1 %8831  ;;  %v8857_v26 = vpop.permute.xlu0 %8856 }
 0x1da   : > { %v8834_v19 = vunpack.i.h.bf16 %v8832_v18  ;;  %v8833_v20 = vunpack.i.l.bf16 %v8832_v18  ;;  %7799 = vmatmul.mubr.msk.f32.gmra.mrb[2].mxu1 %vm2728_vm1, %v9554_v35  ;;  %7852 = vmatmul.mubr.msk.f32.vlgmr.msra.gmra.mrb[32].mxu0 %vm2728_vm1, %v2941_v29  ;;  %v8467_v29 = vpack.c.bf16 %v8839_v22, %v8838_v23  ;;  %v8859_v50 = vunpack.i.h.bf16 %v8857_v26 }
 0x1db   : > { %8460 = vmatprep.subr.bf16.mxu0 %v8459_v14  ;;  %7801 = vmatprep.mubr.msk.f32.mxu1 %vm2728_vm1, %v9574_v44 }
 0x1dc   : > { %7854 = vmatprep.mubr.msk.f32.mxu0 %vm2728_vm1, %v2943_v31  ;;  %8462 = vmatpush3.bf16.msra.mxu0 %v8459_v14  ;;  %v8463_v24 = vpack.c.bf16 %v8834_v19, %v8833_v20 }
 0x1dd   : > { %v8842_v25 = vpop.permute.xlu1 %8841  ;;  %v9870_v40 = vpop.permute.xlu0 %1912 }
 0x1de   : > { %7802 = vmatmul.mubr.msk.f32.gmra.mrb[4].mxu1 %vm2728_vm1, %v9570_v42  ;;  %7855 = vmatmul.mubr.msk.f32.gmra.mrb[34].mxu0 %vm2728_vm1, %v2945_v38  ;;  %v8844_v27 = vunpack.i.h.bf16 %v8842_v25  ;;  %v8843_v32 = vunpack.i.l.bf16 %v8842_v25  ;;  %14674 = vst [vmem:[#allocation14_spill] sm:$0xff] %v9870_v40 }
 0x1df   : > { %8464 = vmatprep.subr.bf16.mxu0 %v8463_v24  ;;  %7804 = vmatprep.mubr.msk.f32.mxu1 %vm2728_vm1, %v9592_v51 }
 0x1e0   : > { %7857 = vmatprep.mubr.msk.f32.mxu0 %vm2728_vm1, %v9800_v39  ;;  %8466 = vmatpush3.bf16.msra.mxu0 %v8463_v24  ;;  %v8471_v38 = vpack.c.bf16 %v8844_v27, %v8843_v32 }
 0x1e1   : > { %8468 = vmatprep.subr.bf16.mxu0 %v8467_v29  ;;  %v8852_v31 = vpop.permute.xlu1 %8851  ;;  %v9886_v48 = vpop.permute.xlu0 %1924 }
 0x1e2   : > { %7805 = vmatmul.mubr.msk.f32.gmra.mrb[6].mxu1 %vm2728_vm1, %v9588_v49  ;;  %7858 = vmatmul.mubr.msk.f32.gmra.mrb[36].mxu0 %vm2728_vm1, %v2949_v45  ;;  %v8854_v43 = vunpack.i.h.bf16 %v8852_v31  ;;  %v8853_v45 = vunpack.i.l.bf16 %v8852_v31  ;;  %14677 = vst [vmem:[#allocation17_spill] sm:$0xff] %v9886_v48 }
 0x1e3   : > { %7807 = vmatprep.mubr.msk.f32.mxu1 %vm2728_vm1, %v9610_v58  ;;  %7860 = vmatprep.mubr.msk.f32.mxu0 %vm2728_vm1, %v9806_v46  ;;  %v8475_v46 = vpack.c.bf16 %v8849_v33, %v8848_v34 }
 0x1e4   : > { %8470 = vmatpush3.bf16.msra.mxu0 %v8467_v29 }
 0x1e5   : > { %8472 = vmatprep.subr.bf16.mxu0 %v8471_v38  ;;  %v9872_v39 = vpop.permute.xlu1 %1914  ;;  %v9912_v61 = vpop.permute.xlu0 %1928 }
 0x1e6   : > { %14675 = vst [vmem:[#allocation15_spill] sm:$0xff] %v9872_v39  ;;  %v8427_v41 = vpack.c.bf16 %v9872_v39, %v9870_v40  ;;  %7808 = vmatmul.mubr.msk.f32.gmra.mrb[8].mxu1 %vm2728_vm1, %v9606_v56  ;;  %7861 = vmatmul.mubr.msk.f32.gmra.mrb[38].mxu0 %vm2728_vm1, %v9812_v52  ;;  %v8858_v52 = vunpack.i.l.bf16 %v8857_v26  ;;  %14681 = vst [vmem:[#allocation21_spill] sm:$0xff] %v9912_v61 }
 0x1e7   : > { %7810 = vmatprep.mubr.msk.f32.mxu1 %vm2728_vm1, %v9626_v1  ;;  %7863 = vmatprep.mubr.msk.f32.mxu0 %vm2728_vm1, %v9814_v53  ;;  %v8479_v53 = vpack.c.bf16 %v8854_v43, %v8853_v45 }
 0x1e8   : > { %8474 = vmatpush3.bf16.msra.mxu0 %v8471_v38  ;;  %8428 = vmatprep.subr.bf16.mxu1 %v8427_v41 }
 0x1e9   : > { %8476 = vmatprep.subr.bf16.mxu0 %v8475_v46  ;;  %v9884_v47 = vpop.permute.xlu1 %1916  ;;  %8430 = vmatpush3.bf16.msra.mxu1 %v8427_v41  ;;  %v9928_v9 = vpop.permute.xlu0 %1932 }
 0x1ea   : > { %14676 = vst [vmem:[#allocation16_spill] sm:$0xff] %v9884_v47  ;;  %7811 = vmatmul.mubr.msk.f32.gmra.mrb[10].mxu1 %vm2728_vm1, %v9622_v63  ;;  %7864 = vmatmul.mubr.msk.f32.gmra.mrb[40].mxu0 %vm2728_vm1, %v9820_v59  ;;  %v9906_v59 = vpop.f32.mrb[19].mxu0  ;;  %14686 = vst [vmem:[#allocation26_spill] sm:$0xff] %v9928_v9 }
 0x1eb   : > { %7813 = vmatprep.mubr.msk.f32.mxu1 %vm2728_vm1, %v9641_v8  ;;  %7866 = vmatprep.mubr.msk.f32.mxu0 %vm2728_vm1, %v9822_v60  ;;  %14680 = vst [vmem:[#allocation20_spill] sm:$0xff] %v9906_v59  ;;  %v8483_v60 = vpack.c.bf16 %v8859_v50, %v8858_v52 }
 0x1ec   : > { %8478 = vmatpush3.bf16.msra.mxu0 %v8475_v46 }
 0x1ed   : > { %8480 = vmatprep.subr.bf16.mxu0 %v8479_v53  ;;  %v9898_v55 = vpop.permute.xlu1 %1918  ;;  %v9946_v20 = vpop.permute.xlu0 %1936 }
 0x1ee   : > { %14679 = vst [vmem:[#allocation19_spill] sm:$0xff] %v9898_v55  ;;  %v8431_v57 = vpack.c.bf16 %v9898_v55, %v9884_v47  ;;  %7814 = vmatmul.mubr.msk.f32.gmra.mrb[12].mxu1 %vm2728_vm1, %v9637_v6  ;;  %7867 = vmatmul.mubr.msk.f32.gmra.mrb[42].mxu0 %vm2728_vm1, %v9828_v62  ;;  %v9920_v62 = vpop.f32.mrb[20].mxu0  ;;  %14692 = vst [vmem:[#allocation32_spill] sm:$0xff] %v9946_v20 }
 0x1ef   : > { %7816 = vmatprep.mubr.msk.f32.mxu1 %vm2728_vm1, %v9651_v13  ;;  %7869 = vmatprep.mubr.msk.f32.mxu0 %vm2728_vm1, %v9830_v0  ;;  %14683 = vst [vmem:[#allocation23_spill] sm:$0xff] %v9920_v62  ;;  %v9924_v0 = vpop.f32.mrb[21].mxu0 }
 0x1f0   : > { %8482 = vmatpush3.bf16.msra.mxu0 %v8479_v53  ;;  %8432 = vmatprep.subr.bf16.mxu1 %v8431_v57  ;;  %14684 = vst [vmem:[#allocation24_spill] sm:$0xff] %v9924_v0  ;;  %v9934_v12 = vpop.f32.mrb[22].mxu0 }
 0x1f1   : > { %8484 = vmatprep.subr.bf16.mxu0 %v8483_v60  ;;  %v9914_v5 = vpop.permute.xlu1 %1920  ;;  %8434 = vmatpush3.bf16.msra.mxu1 %v8431_v57  ;;  %14687 = vst [vmem:[#allocation27_spill] sm:$0xff] %v9934_v12  ;;  %v9964_v29 = vpop.permute.xlu0 %976 }
 0x1f2   : > { %14682 = vst [vmem:[#allocation22_spill] sm:$0xff] %v9914_v5  ;;  %7817 = vmatmul.mubr.msk.f32.gmra.mrb[14].mxu1 %vm2728_vm1, %v9648_v11  ;;  %7870 = vmatmul.mubr.msk.f32.gmra.mrb[44].mxu0 %vm2728_vm1, %v9836_v2  ;;  %v9936_v2 = vpop.f32.mrb[23].mxu0  ;;  %14699 = vst [vmem:[#allocation39_spill] sm:$0xff] %v9964_v29 }
 0x1f3   : > { %7872 = vmatprep.mubr.msk.f32.mxu0 %vm2728_vm1, %v9838_v3  ;;  %14688 = vst [vmem:[#allocation28_spill] sm:$0xff] %v9936_v2  ;;  %v9940_v3 = vpop.f32.mrb[24].mxu0 }
 0x1f4   : > { %8486 = vmatpush3.bf16.msra.mxu0 %v8483_v60  ;;  %14690 = vst [vmem:[#allocation30_spill] sm:$0xff] %v9940_v3  ;;  %v9944_v19 = vpop.f32.mrb[25].mxu0 }
 0x1f5   : > { %v9926_v7 = vpop.permute.xlu1 %1922  ;;  %14691 = vst [vmem:[#allocation31_spill] sm:$0xff] %v9944_v19  ;;  %v9974_v41 = vpop.permute.xlu0 %1940 }
 0x1f6   : > { %14685 = vst [vmem:[#allocation25_spill] sm:$0xff] %v9926_v7  ;;  %v8435_v10 = vpack.c.bf16 %v9926_v7, %v9914_v5  ;;  %7873 = vmatmul.mubr.msk.f32.gmra.mrb[46].mxu0 %vm2728_vm1, %v9842_v4  ;;  %v9950_v4 = vpop.f32.mrb[26].mxu0  ;;  %14703 = vst [vmem:[#allocation43_spill] sm:$0xff] %v9974_v41  ;;  %v7170_v7 = vld [vmem:[%s14530_s5 + $0x90] sm:$0xff] }
 0x1f7   : > { %14694 = vst [vmem:[#allocation34_spill] sm:$0xff] %v9950_v4  ;;  %v9954_v24 = vpop.f32.mrb[27].mxu0 }
 0x1f8   : > { %8436 = vmatprep.subr.bf16.mxu1 %v8435_v10  ;;  %14695 = vst [vmem:[#allocation35_spill] sm:$0xff] %v9954_v24  ;;  %v9958_v26 = vpop.f32.mrb[28].mxu0 }
 0x1f9   : > { %v9938_v14 = vpop.permute.xlu1 %1926  ;;  %8438 = vmatpush3.bf16.msra.mxu1 %v8435_v10  ;;  %14697 = vst [vmem:[#allocation37_spill] sm:$0xff] %v9958_v26  ;;  %v9962_v32 = vpop.f32.mrb[29].mxu0 }
 0x1fa   : > { %14689 = vst [vmem:[#allocation29_spill] sm:$0xff] %v9938_v14  ;;  %v8439_v18 = vpack.c.bf16 %v9938_v14, %v9886_v48  ;;  %14698 = vst [vmem:[#allocation38_spill] sm:$0xff] %v9962_v32  ;;  %v9968_v33 = vpop.f32.mrb[30].mxu0 }
 0x1fb   : > { %14701 = vst [vmem:[#allocation41_spill] sm:$0xff] %v9968_v33  ;;  %v9972_v38 = vpop.f32.mrb[31].mxu0 }
 0x1fc   : > { %8440 = vmatprep.subr.bf16.mxu1 %v8439_v18  ;;  %14702 = vst [vmem:[#allocation42_spill] sm:$0xff] %v9972_v38 }
 0x1fd   : > { %v9948_v22 = vpop.permute.xlu1 %1930  ;;  %8442 = vmatpush3.bf16.msra.mxu1 %v8439_v18  ;;  %v9982_v18 = vstv %s3211_s18  ;;  %s10533_s18 = sld [smem:[#allocation6]] }
 0x1fe   : > { %14693 = vst [vmem:[#allocation33_spill] sm:$0xff] %v9948_v22  ;;  %v8443_v23 = vpack.c.bf16 %v9948_v22, %v9912_v61  ;;  %v7171_v22 = vld [vmem:[%s14530_s5 + $0x98] sm:$0xff] }
 0x200   : > { %8444 = vmatprep.subr.bf16.mxu1 %v8443_v23 }
 0x201   : > { %v9956_v25 = vpop.permute.xlu1 %1934  ;;  %8446 = vmatpush3.bf16.msra.mxu1 %v8443_v23  ;;  %v9984_v23 = vstv %s7166_s19  ;;  %s10535_s19 = sld [smem:[#allocation6 + $0x1]] }
 0x202   : > { %14696 = vst [vmem:[#allocation36_spill] sm:$0xff] %v9956_v25  ;;  %v8447_v27 = vpack.c.bf16 %v9956_v25, %v9928_v9 }
 0x204   : > { %8448 = vmatprep.subr.bf16.mxu1 %v8447_v27 }
 0x205   : > { %v9966_v31 = vpop.permute.xlu1 %1938  ;;  %8450 = vmatpush3.bf16.msra.mxu1 %v8447_v27  ;;  %v9986_v27 = vstv %s7165_s21  ;;  %s7287_s21 = sld [smem:[#allocation2 + $0x81]] }
 0x206   : > { %14700 = vst [vmem:[#allocation40_spill] sm:$0xff] %v9966_v31  ;;  %v8451_v34 = vpack.c.bf16 %v9966_v31, %v9946_v20 }
 0x208   : > { %8452 = vmatprep.subr.bf16.mxu1 %v8451_v34 }
 0x209   : > { %v9976_v43 = vpop.permute.xlu1 %1942  ;;  %8454 = vmatpush3.bf16.msra.mxu1 %v8451_v34  ;;  %v9988_v34 = vstv %s7167_s14 }
 0x20a   : > { %14704 = vst [vmem:[#allocation44_spill] sm:$0xff] %v9976_v43  ;;  %v8455_v45 = vpack.c.bf16 %v9976_v43, %v9974_v41 }
 0x20c   : > { %8456 = vmatprep.subr.bf16.mxu1 %v8455_v45 }
 0x20d   : > { %v9980_v46 = vpop.permute.xlu1 %1202  ;;  %8458 = vmatpush3.bf16.msra.mxu1 %v8455_v45 }
 0x20e   : > { %14705 = vst [vmem:[#allocation45_spill] sm:$0xff] %v9980_v46  ;;  %v7172_v46 = vld [vmem:[%s14530_s5 + $0xa0] sm:$0xff] }
 0x211   : > { %v8862_v50 = vpop.permute.xlu1 %8861 }
 0x212   : > { %v8864_v52 = vunpack.i.h.bf16 %v8862_v50  ;;  %v8863_v53 = vunpack.i.l.bf16 %v8862_v50 }
 0x214   : > { %v8487_v57 = vpack.c.bf16 %v8864_v52, %v8863_v53 }
 0x216   : > { %8488 = vmatprep.subr.bf16.mxu0 %v8487_v57 }
 0x217   : > { %8490 = vmatpush3.bf16.msra.mxu0 %v8487_v57 }
 0x2a9   : > { %v7797_v60 = vpop.f32.mrb[0].mxu1 }
 0x2aa   : > { %v2859_v10 = vpop.f32.mrb[1].mxu1  ;;  %v3214_v50 = vmul.f32 %v7797_v60, %v9982_v18  ;;  %v3442_v52 = vmul.f32 %v7797_v60, %v9984_v23  ;;  %v3264_v60 = vld [vmem:[%s14530_s5 + $0x8] sm:$0xff] }
 0x2ab   : > { %v3213_v38 = vmul.f32 %v9982_v18, %v2859_v10  ;;  %v3441_v33 = vmul.f32 %v9984_v23, %v2859_v10 }
 0x2ad   : > { %v7800_v45 = vpop.f32.mrb[2].mxu1  ;;  %v7853_v17 = vpop.f32.mrb[32].mxu0 }
 0x2ae   : > { %v3232_v53 = vmul.f32 %v7853_v17, %v9986_v27  ;;  %v3460_v57 = vmul.f32 %v7853_v17, %v9988_v34  ;;  %v2869_v36 = vpop.f32.mrb[3].mxu1  ;;  %v3132_v21 = vpop.f32.mrb[33].mxu0  ;;  %v7168_v17 = vld [vmem:[%s14530_s5 + $0x80] sm:$0xff]  ;;  %v3216_v10 = vmul.f32 %v7800_v45, %v9982_v18  ;;  %v3444_v0 = vmul.f32 %v7800_v45, %v9984_v23 }
 0x2af   : > { %v3231_v32 = vmul.f32 %v9986_v27, %v3132_v21  ;;  %v3459_v26 = vmul.f32 %v9988_v34, %v3132_v21  ;;  %v3443_v62 = vmul.f32 %v9984_v23, %v2869_v36 }
 0x2b0   : > { %v3248_v24 = vadd.f32 %v3232_v53, %v3214_v50  ;;  %v3476_v4 = vadd.f32 %v3460_v57, %v3442_v52  ;;  %v3215_v57 = vmul.f32 %v9982_v18, %v2869_v36 }
 0x2b1   : > { %v7803_v19 = vpop.f32.mrb[4].mxu1  ;;  %v7856_v3 = vpop.f32.mrb[34].mxu0  ;;  %v3475_v2 = vadd.f32 %v3459_v26, %v3441_v33  ;;  %v3247_v12 = vadd.f32 %v3231_v32, %v3213_v38 }
 0x2b2   : > { %v3234_v21 = vmul.f32 %v7856_v3, %v9986_v27  ;;  %v3462_v50 = vmul.f32 %v7856_v3, %v9988_v34  ;;  %v2879_v52 = vpop.f32.mrb[5].mxu1  ;;  %v3142_v53 = vpop.f32.mrb[35].mxu0  ;;  %v10012_v59 = vadd.f32 %v3264_v60, %v3248_v24  ;;  %v7169_v3 = vld [vmem:[%s14530_s5 + $0x88] sm:$0xff]  ;;  %v3218_v24 = vmul.f32 %v7803_v19, %v9982_v18 }
 0x2b3   : > { %v3233_v26 = vmul.f32 %v9986_v27, %v3142_v53  ;;  %v3461_v33 = vmul.f32 %v9988_v34, %v3142_v53  ;;  %v10014_v32 = vadd.f32 %v7168_v17, %v3475_v2  ;;  %v3446_v2 = vmul.f32 %v7803_v19, %v9984_v23 }
 0x2b4   : > { %v3250_v38 = vadd.f32 %v3234_v21, %v3216_v10  ;;  %v3478_v43 = vadd.f32 %v3462_v50, %v3444_v0  ;;  %3297 = vmax.xlane.f32.xlu0 %v10012_v59  ;;  %v3217_v53 = vmul.f32 %v9982_v18, %v2879_v52  ;;  %v3445_v20 = vmul.f32 %v9984_v23, %v2879_v52 }
 0x2b5   : > { %v7806_v45 = vpop.f32.mrb[6].mxu1  ;;  %v7859_v54 = vpop.f32.mrb[36].mxu0  ;;  %v3249_v36 = vadd.f32 %v3233_v26, %v3215_v57  ;;  %v10022_v31 = vadd.f32 %v3461_v33, %v3443_v62  ;;  %3524 = vmax.xlane.f32.xlu1 %v10014_v32  ;;  %v10034_v50 = vadd.f32 %v7169_v3, %v3476_v4 }
 0x2b6   : > { %v3236_v60 = vmul.f32 %v7859_v54, %v9986_v27  ;;  %v3464_v17 = vmul.f32 %v7859_v54, %v9988_v34  ;;  %v2889_v10 = vpop.f32.mrb[7].mxu1  ;;  %v3152_v21 = vpop.f32.mrb[37].mxu0  ;;  %v10036_v19 = vadd.f32 %v3266_v15, %v3250_v38  ;;  %v3263_v54 = vld [vmem:[%s14530_s5] sm:$0xff]  ;;  %v3220_v9 = vmul.f32 %v7806_v45, %v9982_v18 }
 0x2b7   : > { %v3235_v62 = vmul.f32 %v9986_v27, %v3152_v21  ;;  %v3463_v0 = vmul.f32 %v9988_v34, %v3152_v21  ;;  %v3448_v4 = vmul.f32 %v7806_v45, %v9984_v23  ;;  %v10060_v21 = vadd.f32 %v3263_v54, %v3247_v12 }
 0x2b8   : > { %v3252_v57 = vadd.f32 %v3236_v60, %v3218_v24  ;;  %v10043_v52 = vadd.f32 %v3464_v17, %v3446_v2  ;;  %3526 = vmax.xlane.f32.xlu0 %v10034_v50  ;;  %v3265_v60 = vld [vmem:[%s14530_s5 + $0x10] sm:$0xff]  ;;  %v3219_v2 = vmul.f32 %v9982_v18, %v2889_v10 }
 0x2b9   : > { %v7809_v26 = vpop.f32.mrb[8].mxu1  ;;  %v7862_v33 = vpop.f32.mrb[38].mxu0  ;;  %v10041_v41 = vadd.f32 %v3235_v62, %v3217_v53  ;;  %v10045_v25 = vadd.f32 %v3463_v0, %v3445_v20  ;;  %v3447_v20 = vmul.f32 %v9984_v23, %v2889_v10  ;;  %3301 = vmax.xlane.f32.xlu1 %v10036_v19 }
 0x2ba   : > { %v3238_v15 = vmul.f32 %v7862_v33, %v9986_v27  ;;  %v3466_v38 = vmul.f32 %v7862_v33, %v9988_v34  ;;  %v2899_v3 = vpop.f32.mrb[9].mxu1  ;;  %v3162_v24 = vpop.f32.mrb[39].mxu0  ;;  %v10064_v33 = vadd.f32 %v3265_v60, %v3249_v36  ;;  %v3450_v12 = vmul.f32 %v7809_v26, %v9984_v23  ;;  %v3268_v60 = vld [vmem:[%s14530_s5 + $0x28] sm:$0xff] }
 0x2bb   : > { %v3237_v45 = vmul.f32 %v9986_v27, %v3162_v24  ;;  %v3465_v17 = vmul.f32 %v9988_v34, %v3162_v24  ;;  %v3222_v24 = vmul.f32 %v7809_v26, %v9982_v18  ;;  %v10092_v48 = vadd.f32 %v3268_v60, %v3252_v57  ;;  %v3267_v60 = vld [vmem:[%s14530_s5 + $0x20] sm:$0xff] }
 0x2bc   : > { %v10062_v53 = vadd.f32 %v3238_v15, %v3220_v9  ;;  %v10071_v10 = vadd.f32 %v3466_v38, %v3448_v4  ;;  %3295 = vmax.xlane.f32.xlu0 %v10060_v21  ;;  %v3221_v4 = vmul.f32 %v9982_v18, %v2899_v3  ;;  %v3449_v38 = vmul.f32 %v9984_v23, %v2899_v3 }
 0x2bd   : > { %v7812_v62 = vpop.f32.mrb[10].mxu1  ;;  %v7865_v0 = vpop.f32.mrb[40].mxu0  ;;  %v10069_v61 = vadd.f32 %v3237_v45, %v3219_v2  ;;  %v10073_v14 = vadd.f32 %v3465_v17, %v3447_v20  ;;  %3299 = vmax.xlane.f32.xlu1 %v10064_v33  ;;  %v10088_v20 = vadd.f32 %v7171_v22, %v3478_v43  ;;  %v10122_v47 = vadd.f32 %v3267_v60, %v10041_v41  ;;  %v3270_v60 = vld [vmem:[%s14530_s5 + $0x38] sm:$0xff] }
 0x2be   : > { %v3240_v9 = vmul.f32 %v7865_v0, %v9986_v27  ;;  %v3468_v36 = vmul.f32 %v7865_v0, %v9988_v34  ;;  %v2909_v54 = vpop.f32.mrb[11].mxu1  ;;  %v3172_v15 = vpop.f32.mrb[41].mxu0  ;;  %v3452_v22 = vmul.f32 %v7812_v62, %v9984_v23 }
 0x2bf   : > { %v3239_v26 = vmul.f32 %v9986_v27, %v3172_v15  ;;  %v3467_v2 = vmul.f32 %v9988_v34, %v3172_v15  ;;  %v3224_v15 = vmul.f32 %v7812_v62, %v9982_v18 }
 0x2c0   : > { %v10090_v45 = vadd.f32 %v3240_v9, %v3222_v24  ;;  %v10099_v3 = vadd.f32 %v3468_v36, %v3450_v12  ;;  %3530 = vmax.xlane.f32.xlu0 %v10088_v20  ;;  %v3223_v12 = vmul.f32 %v9982_v18, %v2909_v54  ;;  %v3451_v36 = vmul.f32 %v9984_v23, %v2909_v54  ;;  %v7173_v54 = vld [vmem:[%s14530_s5 + $0xa8] sm:$0xff] }
 0x2c1   : > { %v7815_v17 = vpop.f32.mrb[12].mxu1  ;;  %v7868_v0 = vpop.f32.mrb[42].mxu0  ;;  %v10097_v5 = vadd.f32 %v3239_v26, %v3221_v4  ;;  %v10101_v55 = vadd.f32 %v3467_v2, %v3449_v38  ;;  %3305 = vmax.xlane.f32.xlu1 %v10092_v48  ;;  %v10117_v38 = vadd.f32 %v7170_v7, %v10022_v31 }
 0x2c2   : > { %v3242_v43 = vmul.f32 %v7868_v0, %v9986_v27  ;;  %v3470_v57 = vmul.f32 %v7868_v0, %v9988_v34  ;;  %v2919_v24 = vpop.f32.mrb[13].mxu1  ;;  %v3182_v9 = vpop.f32.mrb[43].mxu0  ;;  %v3226_v7 = vmul.f32 %v7815_v17, %v9982_v18  ;;  %v3454_v31 = vmul.f32 %v7815_v17, %v9984_v23 }
 0x2c3   : > { %v3241_v62 = vmul.f32 %v9986_v27, %v3182_v9  ;;  %v3469_v4 = vmul.f32 %v9988_v34, %v3182_v9 }
 0x2c4   : > { %v10119_v26 = vadd.f32 %v3242_v43, %v3224_v15  ;;  %v10129_v40 = vadd.f32 %v3470_v57, %v3452_v22  ;;  %3528 = vmax.xlane.f32.xlu0 %v10117_v38  ;;  %v3225_v22 = vmul.f32 %v9982_v18, %v2919_v24  ;;  %v3453_v57 = vmul.f32 %v9984_v23, %v2919_v24 }
 0x2c5   : > { %v7818_v2 = vpop.f32.mrb[14].mxu1  ;;  %v7871_v0 = vpop.f32.mrb[44].mxu0  ;;  %v10127_v39 = vadd.f32 %v3241_v62, %v3223_v12  ;;  %v10131_v29 = vadd.f32 %v3469_v4, %v3451_v36  ;;  %3303 = vmax.xlane.f32.xlu1 %v10122_v47  ;;  %v10147_v36 = vadd.f32 %v7173_v54, %v10043_v52 }
 0x2c6   : > { %v3244_v15 = vmul.f32 %v7871_v0, %v9986_v27  ;;  %v3472_v41 = vmul.f32 %v7871_v0, %v9988_v34  ;;  %v2929_v43 = vpop.f32.mrb[15].mxu1  ;;  %v3192_v9 = vpop.f32.mrb[45].mxu0  ;;  %v10150_v0 = vadd.f32 %v3270_v60, %v10062_v53  ;;  %v3228_v13 = vmul.f32 %v7818_v2, %v9982_v18 }
 0x2c7   : > { %v3243_v17 = vmul.f32 %v9986_v27, %v3192_v9  ;;  %v3471_v12 = vmul.f32 %v9988_v34, %v3192_v9  ;;  %v3456_v9 = vmul.f32 %v7818_v2, %v9984_v23  ;;  %v10171_v60 = vadd.f32 %v7172_v46, %v10045_v25  ;;  %v7174_v25 = vld [vmem:[%s14530_s5 + $0xb0] sm:$0xff]  ;;  %v3271_v46 = vld [vmem:[%s14530_s5 + $0x40] sm:$0xff] }
 0x2c8   : > { %v3260_v62 = vadd.f32 %v3244_v15, %v3226_v7  ;;  %v3488_v24 = vadd.f32 %v3472_v41, %v3454_v31  ;;  %3534 = vmax.xlane.f32.xlu0 %v10147_v36  ;;  %v3269_v7 = vld [vmem:[%s14530_s5 + $0x30] sm:$0xff]  ;;  %v3227_v15 = vmul.f32 %v9982_v18, %v2929_v43  ;;  %v3455_v31 = vmul.f32 %v9984_v23, %v2929_v43  ;;  %v7175_v18 = vld [vmem:[%s14530_s5 + $0xb8] sm:$0xff] }
 0x2c9   : > { %v7874_v4 = vpop.f32.mrb[46].mxu0  ;;  %v3259_v16 = vadd.f32 %v3243_v17, %v3225_v22  ;;  %v10155_v11 = vadd.f32 %v3471_v12, %v3453_v57  ;;  %3309 = vmax.xlane.f32.xlu1 %v10150_v0  ;;  %v10174_v17 = vadd.f32 %v3269_v7, %v10069_v61  ;;  %v3274_v43 = vld [vmem:[%s14530_s5 + $0x58] sm:$0xff]  ;;  %v3275_v7 = vld [vmem:[%s14530_s5 + $0x60] sm:$0xff] }
 0x2ca   : > { %v3246_v52 = vmul.f32 %v7874_v4, %v9986_v27  ;;  %v3474_v54 = vmul.f32 %v7874_v4, %v9988_v34  ;;  %v3202_v53 = vpop.f32.mrb[47].mxu0 }
 0x2cb   : > { %v3245_v41 = vmul.f32 %v9986_v27, %v3202_v53  ;;  %v3473_v2 = vmul.f32 %v9988_v34, %v3202_v53  ;;  %v3272_v27 = vld [vmem:[%s14530_s5 + $0x48] sm:$0xff]  ;;  %v10199_v34 = vadd.f32 %v7174_v25, %v10073_v14  ;;  %v10216_v14 = vadd.f32 %v3274_v43, %v10119_v26  ;;  %v7179_v26 = vld [vmem:[%s14530_s5 + $0xd8] sm:$0xff]  ;;  %v7182_v25 = vld [vmem:[%s14530_s5 + $0xf0] sm:$0xff] }
 0x2cc   : > { %v3262_v22 = vadd.f32 %v3246_v52, %v3228_v13  ;;  %v3490_v57 = vadd.f32 %v3474_v54, %v3456_v9  ;;  %3532 = vmax.xlane.f32.xlu0 %v10171_v60  ;;  %v10185_v13 = vadd.f32 %v7175_v18, %v10071_v10  ;;  %v10188_v61 = vadd.f32 %v3272_v27, %v10090_v45  ;;  %v7177_v45 = vld [vmem:[%s14530_s5 + $0xc8] sm:$0xff]  ;;  %v3273_v9 = vld [vmem:[%s14530_s5 + $0x50] sm:$0xff] }
 0x2cd   : > { %v3261_v12 = vadd.f32 %v3245_v41, %v3227_v15  ;;  %v3489_v23 = vadd.f32 %v3473_v2, %v3455_v31  ;;  %3307 = vmax.xlane.f32.xlu1 %v10174_v17  ;;  %v10202_v10 = vadd.f32 %v3271_v46, %v10097_v5  ;;  %v10213_v4 = vadd.f32 %v7177_v45, %v10099_v3  ;;  %v7176_v5 = vld [vmem:[%s14530_s5 + $0xc0] sm:$0xff]  ;;  %v3276_v54 = vld [vmem:[%s14530_s5 + $0x68] sm:$0xff] }
 0x2ce   : > { %v10227_v52 = vadd.f32 %v7176_v5, %v10101_v55  ;;  %v10230_v3 = vadd.f32 %v3273_v9, %v10127_v39  ;;  %v10241_v53 = vadd.f32 %v7179_v26, %v10129_v40  ;;  %v10243_v55 = vadd.f32 %v3276_v54, %v3260_v62  ;;  %v7178_v39 = vld [vmem:[%s14530_s5 + $0xd0] sm:$0xff]  ;;  %v7181_v40 = vld [vmem:[%s14530_s5 + $0xe8] sm:$0xff]  ;;  %v3278_v62 = vld [vmem:[%s14530_s5 + $0x78] sm:$0xff] }
 0x2cf   : > { %v10254_v15 = vadd.f32 %v7178_v39, %v10131_v29  ;;  %v10256_v31 = vadd.f32 %v3275_v7, %v3259_v16  ;;  %v10266_v41 = vadd.f32 %v7181_v40, %v3488_v24  ;;  %v10268_v2 = vadd.f32 %v3278_v62, %v3262_v22  ;;  %v7180_v16 = vld [vmem:[%s14530_s5 + $0xe0] sm:$0xff]  ;;  %v3277_v29 = vld [vmem:[%s14530_s5 + $0x70] sm:$0xff]  ;;  %v7183_v24 = vld [vmem:[%s14530_s5 + $0xf8] sm:$0xff] }
 0x2d0   : > { %3538 = vmax.xlane.f32.xlu0 %v10185_v13  ;;  %v10279_v18 = vadd.f32 %v7180_v16, %v10155_v11  ;;  %v10281_v27 = vadd.f32 %v3277_v29, %v3261_v12  ;;  %v10288_v22 = vadd.f32 %v7183_v24, %v3490_v57  ;;  %v10294_v11 = vadd.f32 %v7182_v25, %v3489_v23 }
 0x2d1   : > { %3313 = vmax.xlane.f32.xlu1 %v10188_v61  ;;  %v1140_v12 = vrot.slane %v9539_v28, 4  ;;  %v14706_v46 = vrot.slane %v9542_v30, 4  ;;  %v914_v45 = vrot.slane %v9539_v28, 3  ;;  %v14707_v23 = vrot.slane %v9542_v30, 3 }
 0x2d3   : > { %v1141_v57 = vsel %vm1138_vm3, %v14706_v46, %v1140_v12  ;;  %v915_v43 = vsel %vm912_vm4, %v14707_v23, %v914_v45 }
 0x2d4   : > { %3536 = vmax.xlane.f32.xlu0 %v10199_v34 }
 0x2d5   : > { %3311 = vmax.xlane.f32.xlu1 %v10202_v10 }
 0x2d8   : > { %3542 = vmax.xlane.f32.xlu0 %v10213_v4 }
 0x2d9   : > { %3317 = vmax.xlane.f32.xlu1 %v10216_v14 }
 0x2dc   : > { %3540 = vmax.xlane.f32.xlu0 %v10227_v52 }
 0x2dd   : > { %3315 = vmax.xlane.f32.xlu1 %v10230_v3 }
 0x2e0   : > { %3546 = vmax.xlane.f32.xlu0 %v10241_v53 }
 0x2e1   : > { %3321 = vmax.xlane.f32.xlu1 %v10243_v55 }
 0x2e4   : > { %3544 = vmax.xlane.f32.xlu0 %v10254_v15 }
 0x2e5   : > { %3319 = vmax.xlane.f32.xlu1 %v10256_v31 }
 0x2e8   : > { %3550 = vmax.xlane.f32.xlu0 %v10266_v41 }
 0x2e9   : > { %3325 = vmax.xlane.f32.xlu1 %v10268_v2 }
 0x2ec   : > { %3548 = vmax.xlane.f32.xlu0 %v10279_v18 }
 0x2ed   : > { %3323 = vmax.xlane.f32.xlu1 %v10281_v27 }
 0x2f0   : > { %3554 = vmax.xlane.f32.xlu0 %v10288_v22 }
 0x2f4   : > { %3552 = vmax.xlane.f32.xlu0 %v10294_v11 }
 0x2fe   : > { %1204 = vrot.lane.b32.xlu1 %v1141_v57, %s9329_s17 }
 0x30a   : > { %978 = vrot.lane.b32.xlu0 %v915_v43, %s9329_s17 }
 0x341   : > { %v3298_v5 = vpop.xlane.xlu0 %3297 }
 0x342   : > { %v3328_v9 = vsub.f32 %v10012_v59, %v3298_v5  ;;  %v3525_v26 = vpop.xlane.xlu1 %3524 }
 0x343   : > { %v3556_v39 = vsub.f32 %v10014_v32, %v3525_v26 }
 0x344   : > { %v3345_v54 = vmul.f32 1.442695, %v3328_v9 }
 0x345   : > { %v3527_v7 = vpop.xlane.xlu0 %3526  ;;  %v3572_v29 = vmul.f32 1.442695, %v3556_v39 }
 0x346   : > { %8985 = vpow2.f32 %v3345_v54  ;;  %v3557_v40 = vsub.f32 %v10034_v50, %v3527_v7  ;;  %v3302_v62 = vpop.xlane.xlu1 %3301 }
 0x347   : > { %v3330_v25 = vsub.f32 %v10036_v19, %v3302_v62 }
 0x348   : > { %v3574_v16 = vmul.f32 1.442695, %v3557_v40 }
 0x349   : > { %v3296_v24 = vpop.xlane.xlu0 %3295  ;;  %v3349_v43 = vmul.f32 1.442695, %v3330_v25 }
 0x34a   : > { %8987 = vpow2.f32 %v3574_v16  ;;  %v3327_v46 = vsub.f32 %v10060_v21, %v3296_v24  ;;  %v3300_v57 = vpop.xlane.xlu1 %3299 }
 0x34b   : > { %8989 = vpow2.f32 %v3572_v29  ;;  %v3329_v26 = vsub.f32 %v10064_v33, %v3300_v57 }
 0x34c   : > { %v3343_v23 = vmul.f32 1.442695, %v3327_v46 }
 0x34d   : > { %v3531_v59 = vpop.xlane.xlu0 %3530  ;;  %v3347_v40 = vmul.f32 1.442695, %v3329_v26 }
 0x34e   : > { %8991 = vpow2.f32 %v3343_v23  ;;  %v3559_v32 = vsub.f32 %v10088_v20, %v3531_v59  ;;  %v3306_v5 = vpop.xlane.xlu1 %3305 }
 0x34f   : > { %8993 = vpow2.f32 %v3349_v43  ;;  %v3332_v29 = vsub.f32 %v10092_v48, %v3306_v5 }
 0x350   : > { %v10317_v9 = vpop.eup %8985  ;;  %v3578_v19 = vmul.f32 1.442695, %v3559_v32 }
 0x351   : > { %3377 = vadd.xlane.f32.xlu1 %v10317_v9  ;;  %v3529_v50 = vpop.xlane.xlu0 %3528  ;;  %v3353_v59 = vmul.f32 1.442695, %v3332_v29 }
 0x352   : > { %v3304_v54 = vpop.xlane.xlu1 %3303  ;;  %v3558_v39 = vsub.f32 %v10117_v38, %v3529_v50  ;;  %8995 = vpow2.f32 %v3578_v19 }
 0x353   : > { %8997 = vpow2.f32 %v3347_v40 }
 0x354   : > { %v10321_v21 = vpop.eup %8987  ;;  %v3576_v24 = vmul.f32 1.442695, %v3558_v39 }
 0x355   : > { %v3535_v7 = vpop.xlane.xlu0 %3534  ;;  %3606 = vadd.xlane.f32.xlu0 %v10321_v21  ;;  %v10325_v62 = vpop.eup %8989 }
 0x356   : > { %v3310_v20 = vpop.xlane.xlu1 %3309  ;;  %8999 = vpow2.f32 %v3576_v24  ;;  %v3561_v43 = vsub.f32 %v10147_v36, %v3535_v7 }
 0x357   : > { %v3334_v38 = vsub.f32 %v10150_v0, %v3310_v20  ;;  %v3331_v0 = vsub.f32 %v10122_v47, %v3304_v54 }
 0x358   : > { %v10327_v16 = vpop.eup %8991 }
 0x359   : > { %3375 = vadd.xlane.f32.xlu1 %v10327_v16  ;;  %v3533_v33 = vpop.xlane.xlu0 %3532  ;;  %3604 = vadd.xlane.f32.xlu0 %v10325_v62  ;;  %v10334_v57 = vpop.eup %8993  ;;  %v3357_v32 = vmul.f32 1.442695, %v3334_v38  ;;  %v3351_v20 = vmul.f32 1.442695, %v3331_v0 }
 0x35a   : > { %v3560_v25 = vsub.f32 %v10171_v60, %v3533_v33  ;;  %v3308_v46 = vpop.xlane.xlu1 %3307  ;;  %v3582_v60 = vmul.f32 1.442695, %v3561_v43 }
 0x35c   : > { %v3580_v23 = vmul.f32 1.442695, %v3560_v25  ;;  %v10339_v26 = vpop.eup %8995 }
 0x35d   : > { %v3539_v48 = vpop.xlane.xlu0 %3538  ;;  %3381 = vadd.xlane.f32.xlu0 %v10334_v57  ;;  %v10344_v40 = vpop.eup %8997 }
 0x35e   : > { %9001 = vpow2.f32 %v3580_v23  ;;  %v3563_v5 = vsub.f32 %v10185_v13, %v3539_v48  ;;  %v3314_v50 = vpop.xlane.xlu1 %3313  ;;  %v3333_v13 = vsub.f32 %v10174_v17, %v3308_v46 }
 0x35f   : > { %9003 = vpow2.f32 %v3353_v59 }
 0x360   : > { %9005 = vpow2.f32 %v3357_v32  ;;  %v3586_v39 = vmul.f32 1.442695, %v3563_v5  ;;  %v10348_v24 = vpop.eup %8999  ;;  %v3355_v38 = vmul.f32 1.442695, %v3333_v13 }
 0x361   : > { %v3537_v19 = vpop.xlane.xlu0 %3536  ;;  %3610 = vadd.xlane.f32.xlu0 %v10339_v26  ;;  %9007 = vpow2.f32 %v3582_v60 }
 0x362   : > { %v3562_v36 = vsub.f32 %v10199_v34, %v3537_v19  ;;  %v3312_v7 = vpop.xlane.xlu1 %3311  ;;  %9009 = vpow2.f32 %v3586_v39  ;;  %v3336_v34 = vsub.f32 %v10188_v61, %v3314_v50 }
 0x363   : > { %9011 = vpow2.f32 %v3351_v20  ;;  %v3335_v19 = vsub.f32 %v10202_v10, %v3312_v7 }
 0x364   : > { %v3584_v47 = vmul.f32 1.442695, %v3562_v36  ;;  %v3361_v32 = vmul.f32 1.442695, %v3336_v34 }
 0x365   : > { %v3543_v29 = vpop.xlane.xlu0 %3542  ;;  %3379 = vadd.xlane.f32.xlu0 %v10344_v40 }
 0x366   : > { %v3318_v54 = vpop.xlane.xlu1 %3317  ;;  %9013 = vpow2.f32 %v3584_v47  ;;  %v3565_v61 = vsub.f32 %v10213_v4, %v3543_v29  ;;  %v3359_v47 = vmul.f32 1.442695, %v3335_v19 }
 0x367   : > { %v3338_v17 = vsub.f32 %v10216_v14, %v3318_v54  ;;  %9015 = vpow2.f32 %v3355_v38 }
 0x368   : > { %v10350_v33 = vpop.eup %9001  ;;  %v3590_v39 = vmul.f32 1.442695, %v3565_v61 }
 0x369   : > { %3612 = vadd.xlane.f32.xlu1 %v10350_v33  ;;  %v3541_v25 = vpop.xlane.xlu0 %3540  ;;  %3608 = vadd.xlane.f32.xlu0 %v10348_v24  ;;  %v10357_v59 = vpop.eup %9003  ;;  %v3365_v50 = vmul.f32 1.442695, %v3338_v17 }
 0x36a   : > { %v3564_v46 = vsub.f32 %v10227_v52, %v3541_v25  ;;  %v3316_v23 = vpop.xlane.xlu1 %3315  ;;  %v10359_v43 = vpop.eup %9005 }
 0x36b   : > { %v10365_v0 = vpop.eup %9007  ;;  %v3337_v54 = vsub.f32 %v10230_v3, %v3316_v23 }
 0x36c   : > { %v3588_v48 = vmul.f32 1.442695, %v3564_v46  ;;  %v10367_v60 = vpop.eup %9009 }
 0x36d   : > { %3389 = vadd.xlane.f32.xlu1 %v10359_v43  ;;  %v3547_v5 = vpop.xlane.xlu0 %3546  ;;  %3385 = vadd.xlane.f32.xlu0 %v10357_v59  ;;  %v3363_v25 = vmul.f32 1.442695, %v3337_v54 }
 0x36e   : > { %9017 = vpow2.f32 %v3588_v48  ;;  %v3567_v14 = vsub.f32 %v10241_v53, %v3547_v5  ;;  %v3322_v52 = vpop.xlane.xlu1 %3321  ;;  %v10373_v53 = vpop.eup %9011 }
 0x36f   : > { %9019 = vpow2.f32 %v3361_v32  ;;  %v3340_v17 = vsub.f32 %v10243_v55, %v3322_v52 }
 0x370   : > { %9021 = vpow2.f32 %v3365_v50  ;;  %v3594_v36 = vmul.f32 1.442695, %v3567_v14  ;;  %v10375_v29 = vpop.eup %9013 }
 0x371   : > { %3618 = vadd.xlane.f32.xlu1 %v10367_v60  ;;  %v3545_v4 = vpop.xlane.xlu0 %3544  ;;  %3614 = vadd.xlane.f32.xlu0 %v10365_v0  ;;  %9023 = vpow2.f32 %v3590_v39  ;;  %v10380_v38 = vpop.eup %9015  ;;  %v3369_v5 = vmul.f32 1.442695, %v3340_v17 }
 0x372   : > { %v3566_v20 = vsub.f32 %v10254_v15, %v3545_v4  ;;  %v3320_v13 = vpop.xlane.xlu1 %3319  ;;  %9025 = vpow2.f32 %v3594_v36 }
 0x373   : > { %9027 = vpow2.f32 %v3359_v47 }
 0x374   : > { %v3592_v7 = vmul.f32 1.442695, %v3566_v20 }
 0x375   : > { %3616 = vadd.xlane.f32.xlu1 %v10375_v29  ;;  %v3551_v10 = vpop.xlane.xlu0 %3550  ;;  %3383 = vadd.xlane.f32.xlu0 %v10373_v53 }
 0x376   : > { %v3326_v34 = vpop.xlane.xlu1 %3325  ;;  %9029 = vpow2.f32 %v3592_v7  ;;  %v3569_v50 = vsub.f32 %v10266_v41, %v3551_v10  ;;  %v3339_v41 = vsub.f32 %v10256_v31, %v3320_v13 }
 0x377   : > { %v3342_v3 = vsub.f32 %v10268_v2, %v3326_v34  ;;  %9031 = vpow2.f32 %v3363_v25 }
 0x378   : > { %v10382_v15 = vpop.eup %9017  ;;  %v3598_v19 = vmul.f32 1.442695, %v3569_v50  ;;  %v1142_v50 = vrot.slane %v9558_v37, 4 }
 0x379   : > { %3620 = vadd.xlane.f32.xlu1 %v10382_v15  ;;  %v3549_v46 = vpop.xlane.xlu0 %3548  ;;  %3387 = vadd.xlane.f32.xlu0 %v10380_v38  ;;  %v10389_v48 = vpop.eup %9019  ;;  %v3373_v14 = vmul.f32 1.442695, %v3342_v3  ;;  %v1398_v3 = vrot.slane %v9539_v28, 5 }
 0x37a   : > { %v3568_v23 = vsub.f32 %v10279_v18, %v3549_v46  ;;  %v10391_v32 = vpop.eup %9021  ;;  %v3324_v36 = vpop.xlane.xlu1 %3323  ;;  %v1397_v46 = vrot.slane %v9542_v30, 5 }
 0x37b   : > { %v10397_v52 = vpop.eup %9023  ;;  %v3341_v47 = vsub.f32 %v10281_v27, %v3324_v36  ;;  %v918_v36 = vrot.slane %v9554_v35, 3 }
 0x37c   : > { %v3596_v61 = vmul.f32 1.442695, %v3568_v23  ;;  %v10399_v18 = vpop.eup %9025  ;;  %v1399_v23 = vsel %vm1396_vm5, %v1397_v46, %v1398_v3 }
 0x37d   : > { %3397 = vadd.xlane.f32.xlu1 %v10391_v32  ;;  %v3555_v55 = vpop.xlane.xlu0 %3554  ;;  %3393 = vadd.xlane.f32.xlu0 %v10389_v48  ;;  %v10404_v4 = vpop.eup %9027  ;;  %v3371_v31 = vmul.f32 1.442695, %v3341_v47  ;;  %v1658_v47 = vrot.slane %v9558_v37, 7 }
 0x37e   : > { %9033 = vpow2.f32 %v3596_v61  ;;  %v3571_v2 = vsub.f32 %v10288_v22, %v3555_v55  ;;  %v3367_v22 = vmul.f32 1.442695, %v3339_v41 }
 0x37f   : > { %9035 = vpow2.f32 %v3369_v5  ;;  %v1655_v5 = vrot.slane %v9542_v30, 7 }
 0x380   : > { %9037 = vpow2.f32 %v3373_v14  ;;  %v3602_v39 = vmul.f32 1.442695, %v3571_v2  ;;  %v10406_v20 = vpop.eup %9029  ;;  %v1143_v14 = vsel %vm1138_vm3, %v1140_v12, %v1142_v50  ;;  %v14567_v2 = vrot.slane %v9554_v35, 4 }
 0x381   : > { %3626 = vadd.xlane.f32.xlu1 %v10399_v18  ;;  %3622 = vadd.xlane.f32.xlu0 %v10397_v52  ;;  %9039 = vpow2.f32 %v3598_v19  ;;  %v10411_v54 = vpop.eup %9031  ;;  %v3553_v61 = vpop.xlane.xlu0 %3552  ;;  %v920_v12 = vrot.slane %v9574_v44, 3 }
 0x382   : > { %9041 = vpow2.f32 %v3602_v39  ;;  %v3570_v55 = vsub.f32 %v10294_v11, %v3553_v61  ;;  %v1145_v41 = vsel %vm1138_vm3, %v1142_v50, %v14567_v2  ;;  %v1400_v39 = vrot.slane %v9558_v37, 5 }
 0x383   : > { %9043 = vpow2.f32 %v3367_v22  ;;  %v921_v22 = vsel %vm912_vm4, %v918_v36, %v920_v12  ;;  %v1660_v50 = vrot.slane %v9554_v35, 7 }
 0x384   : > { %9045 = vpow2.f32 %v3371_v31  ;;  %v3600_v19 = vmul.f32 1.442695, %v3570_v55  ;;  %v1401_v11 = vsel %vm1396_vm5, %v1398_v3, %v1400_v39  ;;  %v1656_v31 = vrot.slane %v9539_v28, 7 }
 0x385   : > { %3624 = vadd.xlane.f32.xlu1 %v10406_v20  ;;  %3391 = vadd.xlane.f32.xlu0 %v10404_v4  ;;  %v1661_v55 = vsel %vm1654_vm6, %v1658_v47, %v1660_v50 }
 0x386   : > { %9047 = vpow2.f32 %v3600_v19  ;;  %v1659_v3 = vsel %vm1654_vm6, %v1656_v31, %v1658_v47  ;;  %v14566_v19 = vrot.slane %v9574_v44, 5  ;;  %v1657_v2 = vsel %vm1654_vm6, %v1655_v5, %v1656_v31 }
 0x388   : > { %v10413_v10 = vpop.eup %9033 }
 0x389   : > { %14708 = vst [vmem:[#allocation46_spill] sm:$0xff] %v10413_v10  ;;  %3628 = vadd.xlane.f32.xlu1 %v10413_v10  ;;  %3395 = vadd.xlane.f32.xlu0 %v10411_v54  ;;  %v10417_v13 = vpop.eup %9035 }
 0x38a   : > { %v10419_v7 = vpop.eup %9037 }
 0x38b   : > { %14709 = vst [vmem:[#allocation47_spill] sm:$0xff] %v10419_v7  ;;  %v10423_v27 = vpop.eup %9039 }
 0x38c   : > { %14710 = vst [vmem:[#allocation48_spill] sm:$0xff] %v10423_v27  ;;  %v10425_v34 = vpop.eup %9041 }
 0x38d   : > { %3405 = vadd.xlane.f32.xlu1 %v10419_v7  ;;  %3401 = vadd.xlane.f32.xlu0 %v10417_v13  ;;  %14711 = vst [vmem:[#allocation49_spill] sm:$0xff] %v10425_v34  ;;  %v10429_v25 = vpop.eup %9043 }
 0x38e   : > { %14712 = vst [vmem:[#allocation50_spill] sm:$0xff] %v10429_v25  ;;  %v10432_v17 = vpop.eup %9045 }
 0x38f   : > { %14713 = vst [vmem:[#allocation51_spill] sm:$0xff] %v10432_v17 }
 0x391   : > { %3634 = vadd.xlane.f32.xlu1 %v10425_v34  ;;  %3630 = vadd.xlane.f32.xlu0 %v10423_v27  ;;  %v1670_v34 = vrot.slane %v9610_v58, 7 }
 0x395   : > { %3399 = vadd.xlane.f32.xlu0 %v10429_v25 }
 0x399   : > { %3403 = vadd.xlane.f32.xlu0 %v10432_v17 }
 0x3a2   : > { %1462 = vrot.lane.b32.xlu1 %v1399_v23, %s9329_s17  ;;  %v922_v23 = vrot.slane %v9570_v42, 3 }
 0x3a4   : > { %v923_v61 = vsel %vm912_vm4, %v920_v12, %v922_v23  ;;  %v924_v12 = vrot.slane %v9592_v51, 3 }
 0x3a6   : > { %v925_v47 = vsel %vm912_vm4, %v922_v23, %v924_v12 }
 0x3af   : > { %1460 = vrot.lane.b32.xlu0 %v1397_v46, %s9329_s17  ;;  %v10462_v46 = vpop.eup %9047 }
 0x3b0   : > { %14714 = vst [vmem:[#allocation52_spill] sm:$0xff] %v10462_v46 }
 0x3b3   : > { %1718 = vrot.lane.b32.xlu0 %v1655_v5, %s9329_s17  ;;  %v14568_v5 = vrot.slane %v9592_v51, 5 }
 0x3b7   : > { %1206 = vrot.lane.b32.xlu0 %v1143_v14, %s9329_s17  ;;  %v1402_v14 = vrot.slane %v9554_v35, 5 }
 0x3bb   : > { %1208 = vrot.lane.b32.xlu0 %v1145_v41, %s9329_s17  ;;  %v1405_v41 = vsel %vm1396_vm5, %v1402_v14, %v14566_v19 }
 0x3bf   : > { %1464 = vrot.lane.b32.xlu0 %v1401_v11, %s9329_s17  ;;  %v916_v11 = vrot.slane %v9558_v37, 3 }
 0x3c3   : > { %984 = vrot.lane.b32.xlu0 %v921_v22, %s9329_s17  ;;  %v917_v22 = vsel %vm912_vm4, %v914_v45, %v916_v11  ;;  %v10495_v45 = vpop.permute.xlu0 %978 }
 0x3c4   : > { %14716 = vst [vmem:[#allocation54_spill] sm:$0xff] %v10495_v45 }
 0x3c6   : > { %3632 = vadd.xlane.f32.xlu1 %v10462_v46 }
 0x3c7   : > { %1722 = vrot.lane.b32.xlu0 %v1659_v3, %s9329_s17  ;;  %v1662_v3 = vrot.slane %v9574_v44, 7 }
 0x3c9   : > { %v1663_v19 = vsel %vm1654_vm6, %v1660_v50, %v1662_v3 }
 0x3cb   : > { %986 = vrot.lane.b32.xlu0 %v923_v61, %s9329_s17  ;;  %v10488_v61 = vpop.permute.xlu1 %1204 }
 0x3cc   : > { %14715 = vst [vmem:[#allocation53_spill] sm:$0xff] %v10488_v61 }
 0x3cf   : > { %1724 = vrot.lane.b32.xlu0 %v1661_v55, %s9329_s17  ;;  %v919_v55 = vsel %vm912_vm4, %v916_v11, %v918_v36  ;;  %v1403_v36 = vsel %vm1396_vm5, %v1400_v39, %v1402_v14  ;;  %v14717_v14 = vrot.slane %v9554_v35, 4 }
 0x3d3   : > { %1468 = vrot.lane.b32.xlu0 %v1405_v41, %s9329_s17  ;;  %v926_v41 = vrot.slane %v9588_v49, 3 }
 0x3d7   : > { %980 = vrot.lane.b32.xlu1 %v917_v22, %s9329_s17  ;;  %988 = vrot.lane.b32.xlu0 %v925_v47, %s9329_s17  ;;  %v927_v22 = vsel %vm912_vm4, %v924_v12, %v926_v41  ;;  %v1664_v47 = vrot.slane %v9570_v42, 7 }
 0x3d9   : > { %v1665_v11 = vsel %vm1654_vm6, %v1662_v3, %v1664_v47 }
 0x3db   : > { %982 = vrot.lane.b32.xlu1 %v919_v55, %s9329_s17  ;;  %1726 = vrot.lane.b32.xlu0 %v1663_v19, %s9329_s17  ;;  %v1146_v19 = vrot.slane %v9574_v44, 4  ;;  %v1406_v55 = vrot.slane %v9570_v42, 5 }
 0x3dd   : > { %v1147_v12 = vsel %vm1138_vm3, %v14717_v14, %v1146_v19  ;;  %v1409_v3 = vsel %vm1396_vm5, %v1406_v55, %v14568_v5  ;;  %v14571_v14 = vrot.slane %v9570_v42, 4  ;;  %v10530_v5 = vstv %s7186_s26  ;;  %s13425_s26 = sld [smem:[#allocation6 + $0x1]] }
 0x3de   : > { %v3378_v23 = vpop.xlane.xlu1 %3377 }
 0x3df   : > { %1720 = vrot.lane.b32.xlu1 %v1657_v2, %s9329_s17  ;;  %990 = vrot.lane.b32.xlu0 %v927_v22, %s9329_s17  ;;  %9049 = vrcp.f32 %v3378_v23  ;;  %v2106_v2 = vrot.slane %v9542_v30, 1  ;;  %v2107_v23 = vrot.slane %v9539_v28, 1  ;;  %v928_v22 = vrot.slane %v9610_v58, 3 }
 0x3e0   : > { %v1666_v28 = vrot.slane %v9592_v51, 7 }
 0x3e2   : > { %v3607_v50 = vpop.xlane.xlu0 %3606 }
 0x3e3   : > { %9051 = vrcp.f32 %v3607_v50  ;;  %1466 = vrot.lane.b32.xlu1 %v1403_v36, %s9329_s17  ;;  %1728 = vrot.lane.b32.xlu0 %v1665_v11, %s9329_s17  ;;  %v2108_v50 = vsel %vm2105_vm7, %v2106_v2, %v2107_v23  ;;  %v929_v11 = vsel %vm912_vm4, %v926_v41, %v928_v22  ;;  %v10537_v41 = vstv %s3668_s27 }
 0x3e6   : > { %v3376_v39 = vpop.xlane.xlu1 %3375  ;;  %v3605_v31 = vpop.xlane.xlu0 %3604 }
 0x3e7   : > { %9053 = vrcp.f32 %v3376_v39  ;;  %1210 = vrot.lane.b32.xlu1 %v1147_v12, %s9329_s17  ;;  %1472 = vrot.lane.b32.xlu0 %v1409_v3, %s9329_s17  ;;  %v1149_v39 = vsel %vm1138_vm3, %v1146_v19, %v14571_v14 }
 0x3e8   : > { %9055 = vrcp.f32 %v3605_v31  ;;  %v10528_v31 = vstv %s7184_s24  ;;  %s13335_s24 = sld [smem:[#allocation4 + $0x80]] }
 0x3e9   : > { %v9050_v30 = vpop.eup %9049 }
 0x3ea   : > { %v3382_v36 = vpop.xlane.xlu0 %3381  ;;  %v3424_v3 = vmul.f32 %v9050_v30, %v10317_v9  ;;  %v1667_v9 = vsel %vm1654_vm6, %v1664_v47, %v1666_v28  ;;  %v10544_v30 = vstv %s7185_s28  ;;  %s12342_s28 = scalar_lea.vmem %s14538_s13, %s14809_s22  ;;  %s12967_s22 = sld [smem:[#allocation6]] }
 0x3eb   : > { %2172 = vrot.lane.b32.xlu1 %v2108_v50, %s9329_s17  ;;  %992 = vrot.lane.b32.xlu0 %v929_v11, %s9329_s17 }
 0x3ec   : > { %v3920_v47 = vmul.f32 %v10544_v30, %v3424_v3 }
 0x3ed   : > { %v9052_v12 = vpop.eup %9051 }
 0x3ee   : > { %v3653_v50 = vmul.f32 %v9052_v12, %v10321_v21  ;;  %v3611_v11 = vpop.xlane.xlu0 %3610  ;;  %v3671_v21 = vmul.f32 %v10537_v41, %v3424_v3 }
 0x3ef   : > { %9057 = vrcp.f32 %v3611_v11  ;;  %1212 = vrot.lane.b32.xlu1 %v1149_v39, %s9329_s17  ;;  %1730 = vrot.lane.b32.xlu0 %v1667_v9, %s9329_s17  ;;  %v14718_v11 = vrot.slane %v9558_v37, 1  ;;  %v14719_v9 = vrot.slane %v9606_v56, 3 }
 0x3f0   : > { %v3689_v2 = vmul.f32 %v10528_v31, %v3653_v50  ;;  %v3938_v61 = vmul.f32 %v10530_v5, %v3653_v50  ;;  %9059 = vrcp.f32 %v3382_v36  ;;  %v14720_v36 = vrot.slane %v9574_v44, 5 }
 0x3f1   : > { %v9054_v45 = vpop.eup %9053  ;;  %v2110_v39 = vsel %vm2105_vm7, %v2107_v23, %v14718_v11  ;;  %v931_v50 = vsel %vm912_vm4, %v928_v22, %v14719_v9 }
 0x3f2   : > { %v9056_v19 = vpop.eup %9055  ;;  %v3380_v14 = vpop.xlane.xlu0 %3379  ;;  %v3423_v46 = vmul.f32 %v9054_v45, %v10327_v16  ;;  %v1407_v3 = vsel %vm1396_vm5, %v14720_v36, %v1406_v55  ;;  %v3705_v17 = vadd.f32 %v3689_v2, %v3671_v21  ;;  %v3954_v7 = vadd.f32 %v3938_v61, %v3920_v47 }
 0x3f3   : > { %2174 = vrot.lane.b32.xlu1 %v2110_v39, %s9329_s17  ;;  %994 = vrot.lane.b32.xlu0 %v931_v50, %s9329_s17  ;;  %v3652_v12 = vmul.f32 %v9056_v19, %v10325_v62  ;;  %9061 = vrcp.f32 %v3380_v14  ;;  %v10570_v16 = vstv %s10533_s18  ;;  %v10574_v39 = vstv %s10535_s19  ;;  %s7286_s18 = sld [smem:[#allocation2 + $0x80]]  ;;  %s7285_s19 = sld [smem:[#allocation2 + $0x1]] }
 0x3f4   : > { %v3670_v23 = vmul.f32 %v10537_v41, %v3423_v46  ;;  %v3919_v11 = vmul.f32 %v10544_v30, %v3423_v46  ;;  %v14721_v55 = vrot.slane %v9588_v49, 7  ;;  %v1150_v14 = vrot.slane %v9592_v51, 4 }
 0x3f5   : > { %v3688_v22 = vmul.f32 %v10528_v31, %v3652_v12  ;;  %v3937_v45 = vmul.f32 %v10530_v5, %v3652_v12  ;;  %v1410_v2 = vrot.slane %v9588_v49, 5  ;;  %v14578_v46 = vrot.slane %v9610_v58, 5  ;;  %v2680_v12 = vld [vmem:[%s14531_s6] sm:$0xff] }
 0x3f6   : > { %v3613_v9 = vpop.xlane.xlu1 %3612  ;;  %v3609_v50 = vpop.xlane.xlu0 %3608  ;;  %v1669_v62 = vsel %vm1654_vm6, %v1666_v28, %v14721_v55  ;;  %v3723_v19 = vadd.f32 %v10570_v16, %v3705_v17  ;;  %v3972_v28 = vadd.f32 %v10574_v39, %v3954_v7 }
 0x3f7   : > { %1470 = vrot.lane.b32.xlu1 %v1407_v3, %s9329_s17  ;;  %1732 = vrot.lane.b32.xlu0 %v1669_v62, %s9329_s17  ;;  %v3704_v61 = vadd.f32 %v3688_v22, %v3670_v23  ;;  %v3953_v21 = vadd.f32 %v3937_v45, %v3919_v11  ;;  %9063 = vrcp.f32 %v3609_v50  ;;  %v2681_v3 = vld [vmem:[%s14531_s6 + $0x8] sm:$0xff]  ;;  %v2111_v23 = vrot.slane %v9554_v35, 1 }
 0x3f8   : > { %v932_v11 = vrot.slane %v9626_v1, 3  ;;  %v14722_v50 = vrot.slane %v9570_v42, 4  ;;  %v1413_v7 = vsel %vm1396_vm5, %v1410_v2, %v14578_v46  ;;  %v1152_v35 = vrot.slane %v9588_v49, 4 }
 0x3f9   : > { %v9058_v47 = vpop.eup %9057  ;;  %v3722_v36 = vadd.f32 %v10570_v16, %v3704_v61  ;;  %v3971_v55 = vadd.f32 %v10574_v39, %v3953_v21  ;;  %v3739_v25 = vmul.f32 %v3723_v19, %v2681_v3  ;;  %v3988_v27 = vmul.f32 %v3972_v28, %v2681_v3 }
 0x3fa   : > { %v3390_v22 = vpop.xlane.xlu1 %3389  ;;  %v3386_v45 = vpop.xlane.xlu0 %3385  ;;  %v1151_v17 = vsel %vm1138_vm3, %v14722_v50, %v1150_v14  ;;  %v3655_v50 = vmul.f32 %v9058_v47, %v10339_v26  ;;  %v14723_v46 = vrot.slane %v9558_v37, 1  ;;  %v2113_v28 = vrot.slane %v9574_v44, 1 }
 0x3fb   : > { %v9060_v62 = vpop.eup %9059  ;;  %1214 = vrot.lane.b32.xlu1 %v1151_v17, %s9329_s17  ;;  %1476 = vrot.lane.b32.xlu0 %v1413_v7, %s9329_s17  ;;  %v3738_v61 = vmul.f32 %v3722_v36, %v2680_v12  ;;  %v3987_v21 = vmul.f32 %v3971_v55, %v2680_v12  ;;  %9065 = vrcp.f32 %v3386_v45  ;;  %v14724_v7 = vrot.slane %v9606_v56, 3 }
 0x3fc   : > { %9067 = vrcp.f32 %v3613_v9  ;;  %v2112_v17 = vsel %vm2105_vm7, %v14723_v46, %v2111_v23  ;;  %v934_v26 = vrot.slane %v9622_v63, 3  ;;  %v3426_v9 = vmul.f32 %v9060_v62, %v10334_v57 }
 0x3fd   : > { %7907 = vmatprep.mubr.f32.mxu1 %v3738_v61  ;;  %7963 = vmatprep.mubr.f32.mxu0 %v3987_v21  ;;  %v933_v12 = vsel %vm912_vm4, %v14724_v7, %v932_v11  ;;  %v9062_v36 = vpop.eup %9061  ;;  %9069 = vrcp.f32 %v3390_v22  ;;  %v1153_v37 = vsel %vm1138_vm3, %v1150_v14, %v1152_v35  ;;  %v14725_v46 = vrot.slane %v9588_v49, 7 }
 0x3fe   : > { %7908 = vmatmul.mubr.f32.vlgmr.msra.gmra.mrb[16].mxu1 %v3739_v25  ;;  %7964 = vmatmul.mubr.f32.vlgmr.msra.gmra.mrb[48].mxu0 %v3988_v27  ;;  %v3619_v55 = vpop.xlane.xlu1 %3618  ;;  %v3615_v19 = vpop.xlane.xlu0 %3614  ;;  %v3691_v25 = vmul.f32 %v10528_v31, %v3655_v50  ;;  %v3940_v44 = vmul.f32 %v10530_v5, %v3655_v50  ;;  %v14726_v47 = vrot.slane %v9592_v51, 5  ;;  %v14580_v3 = vrot.slane %v9606_v56, 7 }
 0x3ff   : > { %9071 = vrcp.f32 %v3619_v55  ;;  %2176 = vrot.lane.b32.xlu1 %v2112_v17, %s9329_s17  ;;  %996 = vrot.lane.b32.xlu0 %v933_v12, %s9329_s17  ;;  %v1671_v27 = vsel %vm1654_vm6, %v14725_v46, %v1670_v34  ;;  %v3425_v22 = vmul.f32 %v9062_v36, %v10344_v40  ;;  %v1154_v45 = vrot.slane %v9610_v58, 4 }
 0x400   : > { %9073 = vrcp.f32 %v3615_v19  ;;  %v1411_v57 = vsel %vm1396_vm5, %v14726_v47, %v1410_v2  ;;  %v2114_v21 = vsel %vm2105_vm7, %v2111_v23, %v2113_v28  ;;  %v935_v17 = vsel %vm912_vm4, %v932_v11, %v934_v26 }
 0x401   : > { %v9064_v14 = vpop.eup %9063  ;;  %v3673_v50 = vmul.f32 %v10537_v41, %v3426_v9  ;;  %v3922_v7 = vmul.f32 %v10544_v30, %v3426_v9  ;;  %v1414_v2 = vrot.slane %v9606_v56, 5  ;;  %v14579_v12 = vrot.slane %v9626_v1, 5 }
 0x402   : > { %v3617_v62 = vpop.xlane.xlu1 %3616  ;;  %v3384_v61 = vpop.xlane.xlu0 %3383  ;;  %v3654_v40 = vmul.f32 %v9064_v14, %v10348_v24  ;;  %v14581_v11 = vrot.slane %v9570_v42, 1  ;;  %v3672_v55 = vmul.f32 %v10537_v41, %v3425_v22  ;;  %v3921_v9 = vmul.f32 %v10544_v30, %v3425_v22 }
 0x403   : > { %9075 = vrcp.f32 %v3617_v62  ;;  %1216 = vrot.lane.b32.xlu1 %v1153_v37, %s9329_s17  ;;  %1734 = vrot.lane.b32.xlu0 %v1671_v27, %s9329_s17  ;;  %v3707_v23 = vadd.f32 %v3691_v25, %v3673_v50  ;;  %v3956_v36 = vadd.f32 %v3940_v44, %v3922_v7  ;;  %v1673_v47 = vsel %vm1654_vm6, %v1670_v34, %v14580_v3 }
 0x404   : > { %9077 = vrcp.f32 %v3384_v61  ;;  %v3690_v19 = vmul.f32 %v10528_v31, %v3654_v40  ;;  %v3939_v37 = vmul.f32 %v10530_v5, %v3654_v40  ;;  %v1155_v25 = vsel %vm1138_vm3, %v1152_v35, %v1154_v45  ;;  %v2682_v35 = vld [vmem:[%s14531_s6 + $0x10] sm:$0xff] }
 0x405   : > { %v9066_v46 = vpop.eup %9065  ;;  %v14583_v44 = vrot.slane %v9641_v8, 3  ;;  %v1156_v14 = vrot.slane %v9606_v56, 4  ;;  %v1417_v50 = vsel %vm1396_vm5, %v1414_v2, %v14579_v12  ;;  %v3725_v40 = vadd.f32 %v10570_v16, %v3707_v23 }
 0x406   : > { %v3621_v27 = vpop.xlane.xlu1 %3620  ;;  %v3388_v24 = vpop.xlane.xlu0 %3387  ;;  %v3706_v22 = vadd.f32 %v3690_v19, %v3672_v55  ;;  %v3955_v61 = vadd.f32 %v3939_v37, %v3921_v9  ;;  %v2683_v37 = vld [vmem:[%s14531_s6 + $0x18] sm:$0xff]  ;;  %v14727_v12 = vrot.slane %v9610_v58, 5 }
 0x407   : > { %v9068_v62 = vpop.eup %9067  ;;  %2178 = vrot.lane.b32.xlu1 %v2114_v21, %s9329_s17  ;;  %998 = vrot.lane.b32.xlu0 %v935_v17, %s9329_s17  ;;  %9079 = vrcp.f32 %v3388_v24  ;;  %v3974_v21 = vadd.f32 %v10574_v39, %v3956_v36  ;;  %v2116_v17 = vsel %vm2105_vm7, %v2113_v28, %v14581_v11  ;;  %v3428_v24 = vmul.f32 %v9066_v46, %v10357_v59 }
 0x408   : > { %v9070_v34 = vpop.eup %9069  ;;  %v3724_v19 = vadd.f32 %v10570_v16, %v3706_v22  ;;  %v3973_v9 = vadd.f32 %v10574_v39, %v3955_v61  ;;  %v10675_v23 = vsel %vm1396_vm5, %v14727_v12, %v1414_v2  ;;  %v937_v28 = vsel %vm912_vm4, %v934_v26, %v14583_v44 }
 0x409   : > { %v9072_v55 = vpop.eup %9071  ;;  %v10685_v22 = vsel %vm1138_vm3, %v1154_v45, %v1156_v14  ;;  %v3656_v59 = vmul.f32 %v9068_v62, %v10350_v33  ;;  %v3741_v11 = vmul.f32 %v3725_v40, %v2683_v37  ;;  %v3990_v10 = vmul.f32 %v3974_v21, %v2683_v37 }
 0x40a   : > { %v9074_v36 = vpop.eup %9073  ;;  %v3398_v3 = vpop.xlane.xlu1 %3397  ;;  %v3659_v46 = vmul.f32 %v9072_v55, %v10367_v60  ;;  %v3740_v2 = vmul.f32 %v3724_v19, %v2682_v35  ;;  %v3989_v12 = vmul.f32 %v3973_v9, %v2682_v35  ;;  %v14728_v26 = vrot.slane %v9626_v1, 7 }
 0x40b   : > { %v3394_v7 = vpop.xlane.xlu0 %3393  ;;  %1474 = vrot.lane.b32.xlu1 %v1411_v57, %s9329_s17  ;;  %1736 = vrot.lane.b32.xlu0 %v1673_v47, %s9329_s17  ;;  %v3657_v61 = vmul.f32 %v9074_v36, %v10365_v0  ;;  %v14729_v44 = vrot.slane %v9606_v56, 7  ;;  %v3430_v33 = vmul.f32 %v9070_v34, %v10359_v43  ;;  %v3675_v60 = vmul.f32 %v10537_v41, %v3428_v24 }
 0x40c   : > { %9081 = vrcp.f32 %v3394_v7  ;;  %7910 = vmatprep.mubr.f32.mxu1 %v3740_v2  ;;  %7966 = vmatprep.mubr.f32.mxu0 %v3989_v12  ;;  %v3692_v21 = vmul.f32 %v10528_v31, %v3656_v59  ;;  %v2117_v43 = vrot.slane %v9592_v51, 1  ;;  %v3695_v7 = vmul.f32 %v10528_v31, %v3659_v46 }
 0x40d   : > { %v1675_v45 = vsel %vm1654_vm6, %v14729_v44, %v14728_v26  ;;  %v9076_v62 = vpop.eup %9075  ;;  %v3693_v57 = vmul.f32 %v10528_v31, %v3657_v61  ;;  %v3942_v0 = vmul.f32 %v10530_v5, %v3657_v61  ;;  %7911 = vmatmul.mubr.f32.gmra.mrb[18].mxu1 %v3741_v11  ;;  %7967 = vmatmul.mubr.f32.gmra.mrb[50].mxu0 %v3990_v10  ;;  %9083 = vrcp.f32 %v3621_v27  ;;  %v2685_v26 = vld [vmem:[%s14531_s6 + $0x28] sm:$0xff] }
 0x40e   : > { %v9078_v47 = vpop.eup %9077  ;;  %v3627_v35 = vpop.xlane.xlu1 %3626  ;;  %v3924_v44 = vmul.f32 %v10544_v30, %v3428_v24  ;;  %v3941_v11 = vmul.f32 %v10530_v5, %v3656_v59  ;;  %v3677_v19 = vmul.f32 %v10537_v41, %v3430_v33  ;;  %v3944_v9 = vmul.f32 %v10530_v5, %v3659_v46 }
 0x40f   : > { %v3623_v40 = vpop.xlane.xlu0 %3622  ;;  %1218 = vrot.lane.b32.xlu1 %v1155_v25, %s9329_s17  ;;  %1480 = vrot.lane.b32.xlu0 %v1417_v50, %s9329_s17  ;;  %v3427_v34 = vmul.f32 %v9078_v47, %v10373_v53  ;;  %v3709_v10 = vadd.f32 %v3693_v57, %v3675_v60  ;;  %v3658_v25 = vmul.f32 %v9076_v62, %v10375_v29  ;;  %v14730_v36 = vrot.slane %v9570_v42, 1  ;;  %v2684_v42 = vld [vmem:[%s14531_s6 + $0x20] sm:$0xff] }
 0x410   : > { %9085 = vrcp.f32 %v3623_v40  ;;  %v3958_v55 = vadd.f32 %v3942_v0, %v3924_v44  ;;  %v3711_v2 = vadd.f32 %v3695_v7, %v3677_v19  ;;  %v3926_v46 = vmul.f32 %v10544_v30, %v3430_v33 }
 0x411   : > { %9087 = vrcp.f32 %v3627_v35  ;;  %v3674_v37 = vmul.f32 %v10537_v41, %v3427_v34  ;;  %v3923_v27 = vmul.f32 %v10544_v30, %v3427_v34  ;;  %v9080_v24 = vpop.eup %9079  ;;  %v2118_v59 = vsel %vm2105_vm7, %v14730_v36, %v2117_v43 }
 0x412   : > { %9089 = vrcp.f32 %v3398_v3  ;;  %v3625_v50 = vpop.xlane.xlu1 %3624  ;;  %v3727_v29 = vadd.f32 %v10570_v16, %v3709_v10  ;;  %v938_v3 = vrot.slane %v9637_v6, 3  ;;  %v3976_v33 = vadd.f32 %v10574_v39, %v3958_v55 }
 0x413   : > { %v3392_v53 = vpop.xlane.xlu0 %3391  ;;  %2180 = vrot.lane.b32.xlu1 %v2116_v17, %s9329_s17  ;;  %1000 = vrot.lane.b32.xlu0 %v937_v28, %s9329_s17  ;;  %v3708_v12 = vadd.f32 %v3692_v21, %v3674_v37  ;;  %v3957_v61 = vadd.f32 %v3941_v11, %v3923_v27  ;;  %v3429_v17 = vmul.f32 %v9080_v24, %v10380_v38  ;;  %v1676_v11 = vrot.slane %v9622_v63, 7  ;;  %v2687_v27 = vld [vmem:[%s14531_s6 + $0x38] sm:$0xff] }
 0x414   : > { %9091 = vrcp.f32 %v3392_v53  ;;  %v3960_v28 = vadd.f32 %v3944_v9, %v3926_v46  ;;  %v3694_v57 = vmul.f32 %v10528_v31, %v3658_v25  ;;  %v3943_v40 = vmul.f32 %v10530_v5, %v3658_v25 }
 0x415   : > { %9093 = vrcp.f32 %v3625_v50  ;;  %v3726_v62 = vadd.f32 %v10570_v16, %v3708_v12  ;;  %v3975_v60 = vadd.f32 %v10574_v39, %v3957_v61  ;;  %v3676_v47 = vmul.f32 %v10537_v41, %v3429_v17 }
 0x416   : > { %v3925_v35 = vmul.f32 %v10544_v30, %v3429_v17  ;;  %v3729_v21 = vadd.f32 %v10570_v16, %v3711_v2  ;;  %v9082_v44 = vpop.eup %9081  ;;  %v3743_v34 = vmul.f32 %v3727_v29, %v2685_v26  ;;  %v3992_v10 = vmul.f32 %v3976_v33, %v2685_v26 }
 0x417   : > { %v3396_v0 = vpop.xlane.xlu0 %3395  ;;  %1220 = vrot.lane.b32.xlu1 %v10685_v22, %s9329_s17  ;;  %1738 = vrot.lane.b32.xlu0 %v1675_v45, %s9329_s17  ;;  %v3742_v38 = vmul.f32 %v3726_v62, %v2684_v42  ;;  %v3991_v7 = vmul.f32 %v3975_v60, %v2684_v42  ;;  %v3710_v55 = vadd.f32 %v3694_v57, %v3676_v47  ;;  %v9084_v9 = vpop.eup %9083  ;;  %v14731_v37 = vrot.slane %v9641_v8, 3  ;;  %v2686_v45 = vld [vmem:[%s14531_s6 + $0x30] sm:$0xff] }
 0x418   : > { %9095 = vrcp.f32 %v3396_v0  ;;  %v3959_v19 = vadd.f32 %v3943_v40, %v3925_v35  ;;  %v3978_v25 = vadd.f32 %v10574_v39, %v3960_v28  ;;  %v1158_v24 = vrot.slane %v9626_v1, 4  ;;  %v3629_v42 = vpop.xlane.xlu1 %3628  ;;  %v14733_v28 = vld [vmem:[#allocation10_spill] sm:$0xff] }
 0x419   : > { %7913 = vmatprep.mubr.f32.mxu1 %v3742_v38  ;;  %7969 = vmatprep.mubr.f32.mxu0 %v3991_v7  ;;  %v939_v22 = vsel %vm912_vm4, %v14731_v37, %v938_v3  ;;  %v1418_v50 = vrot.slane %v9622_v63, 5  ;;  %v3728_v2 = vadd.f32 %v10570_v16, %v3710_v55  ;;  %v1420_v12 = vrot.slane %v9641_v8, 5 }
 0x41a   : > { %v9086_v53 = vpop.eup %9085  ;;  %7914 = vmatmul.mubr.f32.gmra.mrb[20].mxu1 %v3743_v34  ;;  %7970 = vmatmul.mubr.f32.gmra.mrb[52].mxu0 %v3992_v10  ;;  %v3977_v46 = vadd.f32 %v10574_v39, %v3959_v19  ;;  %v3432_v61 = vmul.f32 %v9082_v44, %v10389_v48  ;;  %v14732_v26 = vrot.slane %v9626_v1, 7  ;;  %v2119_v17 = vrot.slane %v9588_v49, 1 }
 0x41b   : > { %v3402_v36 = vpop.xlane.xlu0 %3401  ;;  %v9088_v29 = vpop.eup %9087  ;;  %2182 = vrot.lane.b32.xlu1 %v2118_v59, %s9329_s17  ;;  %1002 = vrot.lane.b32.xlu0 %v939_v22, %s9329_s17  ;;  %v940_v62 = vrot.slane %v14733_v28, 3  ;;  %v3661_v60 = vmul.f32 %v9086_v53, %v10397_v52  ;;  %v3744_v48 = vmul.f32 %v3728_v2, %v2686_v45  ;;  %v3745_v47 = vmul.f32 %v3729_v21, %v2687_v27 }
 0x41c   : > { %v1677_v33 = vsel %vm1654_vm6, %v14732_v26, %v1676_v11  ;;  %v9090_v57 = vpop.eup %9089  ;;  %9097 = vrcp.f32 %v3402_v36  ;;  %v3993_v0 = vmul.f32 %v3977_v46, %v2686_v45  ;;  %v3994_v59 = vmul.f32 %v3978_v25, %v2687_v27 }
 0x41d   : > { %v3660_v35 = vmul.f32 %v9084_v9, %v10382_v15  ;;  %v3697_v40 = vmul.f32 %v10528_v31, %v3661_v60  ;;  %v3946_v44 = vmul.f32 %v10530_v5, %v3661_v60  ;;  %9099 = vrcp.f32 %v3629_v42  ;;  %7916 = vmatprep.mubr.f32.mxu1 %v3744_v48 }
 0x41e   : > { %v9092_v38 = vpop.eup %9091  ;;  %7972 = vmatprep.mubr.f32.mxu0 %v3993_v0  ;;  %v1159_v52 = vsel %vm1138_vm3, %v1156_v14, %v1158_v24  ;;  %v3679_v21 = vmul.f32 %v10537_v41, %v3432_v61  ;;  %v3663_v34 = vmul.f32 %v9088_v29, %v10399_v18  ;;  %7917 = vmatmul.mubr.f32.gmra.mrb[22].mxu1 %v3745_v47  ;;  %v1160_v19 = vrot.slane %v9622_v63, 4 }
 0x41f   : > { %v3631_v7 = vpop.xlane.xlu0 %3630  ;;  %v9094_v15 = vpop.eup %9093  ;;  %7973 = vmatmul.mubr.f32.gmra.mrb[54].mxu0 %v3994_v59  ;;  %v3431_v10 = vmul.f32 %v9092_v38, %v10404_v4  ;;  %v3928_v55 = vmul.f32 %v10544_v30, %v3432_v61  ;;  %v3434_v9 = vmul.f32 %v9090_v57, %v10391_v32  ;;  %1478 = vrot.lane.b32.xlu1 %v10675_v23, %s9329_s17  ;;  %v1678_v4 = vrot.slane %v9641_v8, 7  ;;  %v2689_v57 = vld [vmem:[%s14531_s6 + $0x48] sm:$0xff] }
 0x420   : > { %9101 = vrcp.f32 %v3631_v7  ;;  %1740 = vrot.lane.b32.xlu0 %v1677_v33, %s9329_s17  ;;  %v1421_v18 = vsel %vm1396_vm5, %v1418_v50, %v1420_v12  ;;  %v3713_v14 = vadd.f32 %v3697_v40, %v3679_v21  ;;  %v3696_v22 = vmul.f32 %v10528_v31, %v3660_v35 }
 0x421   : > { %v3678_v37 = vmul.f32 %v10537_v41, %v3431_v10  ;;  %v3927_v32 = vmul.f32 %v10544_v30, %v3431_v10  ;;  %v3962_v45 = vadd.f32 %v3946_v44, %v3928_v55  ;;  %v3945_v25 = vmul.f32 %v10530_v5, %v3660_v35  ;;  %v14734_v10 = vld [vmem:[#allocation9_spill] sm:$0xff] }
 0x422   : > { %v9096_v27 = vpop.eup %9095  ;;  %v3662_v53 = vmul.f32 %v9094_v15, %v10406_v20  ;;  %v3699_v36 = vmul.f32 %v10528_v31, %v3663_v34  ;;  %v3948_v2 = vmul.f32 %v10530_v5, %v3663_v34  ;;  %v2120_v46 = vsel %vm2105_vm7, %v2117_v43, %v2119_v17  ;;  %v2688_v20 = vld [vmem:[%s14531_s6 + $0x40] sm:$0xff] }
 0x423   : > { %v3400_v23 = vpop.xlane.xlu0 %3399  ;;  %v3712_v61 = vadd.f32 %v3696_v22, %v3678_v37  ;;  %v3681_v29 = vmul.f32 %v10537_v41, %v3434_v9  ;;  %1222 = vrot.lane.b32.xlu1 %v1159_v52, %s9329_s17  ;;  %v3961_v42 = vadd.f32 %v3945_v25, %v3927_v32  ;;  %v3731_v26 = vadd.f32 %v10570_v16, %v3713_v14 }
 0x424   : > { %9103 = vrcp.f32 %v3400_v23  ;;  %1484 = vrot.lane.b32.xlu0 %v1421_v18, %s9329_s17  ;;  %v3930_v33 = vmul.f32 %v10544_v30, %v3434_v9  ;;  %v2121_v51 = vrot.slane %v9610_v58, 1  ;;  %v941_v43 = vsel %vm912_vm4, %v938_v3, %v940_v62 }
 0x425   : > { %v3730_v60 = vadd.f32 %v10570_v16, %v3712_v61  ;;  %v3980_v48 = vadd.f32 %v10574_v39, %v3962_v45  ;;  %v3433_v0 = vmul.f32 %v9096_v27, %v10411_v54  ;;  %v3979_v35 = vadd.f32 %v10574_v39, %v3961_v42  ;;  %v2690_v27 = vld [vmem:[%s14531_s6 + $0x50] sm:$0xff] }
 0x426   : > { %v9098_v47 = vpop.eup %9097  ;;  %v3698_v40 = vmul.f32 %v10528_v31, %v3662_v53  ;;  %v3715_v44 = vadd.f32 %v3699_v36, %v3681_v29  ;;  %v3964_v38 = vadd.f32 %v3948_v2, %v3930_v33  ;;  %v3947_v21 = vmul.f32 %v10530_v5, %v3662_v53  ;;  %v2691_v36 = vld [vmem:[%s14531_s6 + $0x58] sm:$0xff]  ;;  %v14735_v2 = vld [vmem:[#allocation46_spill] sm:$0xff] }
 0x427   : > { %v10826_v59 = vpop.xlane.xlu0 %3403  ;;  %v3746_v3 = vmul.f32 %v3730_v60, %v2688_v20  ;;  %v3680_v7 = vmul.f32 %v10537_v41, %v3433_v0  ;;  %v3929_v52 = vmul.f32 %v10544_v30, %v3433_v0  ;;  %v9100_v34 = vpop.eup %9099  ;;  %2184 = vrot.lane.b32.xlu1 %v2120_v46, %s9329_s17  ;;  %v3995_v54 = vmul.f32 %v3979_v35, %v2688_v20 }
 0x428   : > { %1004 = vrot.lane.b32.xlu0 %v941_v43, %s9329_s17  ;;  %v3747_v15 = vmul.f32 %v3731_v26, %v2689_v57  ;;  %v942_v55 = vrot.slane %v14734_v10, 3  ;;  %v3436_v9 = vmul.f32 %v9098_v47, %v10417_v13  ;;  %v3996_v18 = vmul.f32 %v3980_v48, %v2689_v57 }
 0x429   : > { %7919 = vmatprep.mubr.f32.mxu1 %v3746_v3  ;;  %v1161_v14 = vsel %vm1138_vm3, %v1158_v24, %v1160_v19  ;;  %v3714_v37 = vadd.f32 %v3698_v40, %v3680_v7  ;;  %v3963_v22 = vadd.f32 %v3947_v21, %v3929_v52  ;;  %7975 = vmatprep.mubr.f32.mxu0 %v3995_v54 }
 0x42a   : > { %v9102_v32 = vpop.eup %9101  ;;  %7920 = vmatmul.mubr.f32.gmra.mrb[24].mxu1 %v3747_v15  ;;  %v1679_v13 = vsel %vm1654_vm6, %v1676_v11, %v1678_v4  ;;  %v3733_v23 = vadd.f32 %v10570_v16, %v3715_v44  ;;  %v3982_v24 = vadd.f32 %v10574_v39, %v3964_v38  ;;  %7976 = vmatmul.mubr.f32.gmra.mrb[56].mxu0 %v3996_v18  ;;  %v14736_v11 = vld [vmem:[#allocation48_spill] sm:$0xff] }
 0x42b   : > { %v10842_v45 = vpop.permute.xlu0 %1460  ;;  %v3732_v25 = vadd.f32 %v10570_v16, %v3714_v37  ;;  %v3981_v53 = vadd.f32 %v10574_v39, %v3963_v22  ;;  %v3664_v46 = vmul.f32 %v9100_v34, %v14735_v2  ;;  %v3665_v61 = vmul.f32 %v9102_v32, %v14736_v11  ;;  %1224 = vrot.lane.b32.xlu1 %v1161_v14, %s9329_s17  ;;  %v2692_v32 = vld [vmem:[%s14531_s6 + $0x60] sm:$0xff] }
 0x42c   : > { %1742 = vrot.lane.b32.xlu0 %v1679_v13, %s9329_s17  ;;  %v2122_v29 = vsel %vm2105_vm7, %v2119_v17, %v2121_v51  ;;  %v943_v20 = vsel %vm912_vm4, %v940_v62, %v942_v55  ;;  %v3683_v42 = vmul.f32 %v10537_v41, %v3436_v9  ;;  %v3749_v48 = vmul.f32 %v3733_v23, %v2691_v36  ;;  %v14737_v17 = vld [vmem:[#allocation50_spill] sm:$0xff] }
 0x42d   : > { %v3748_v33 = vmul.f32 %v3732_v25, %v2690_v27  ;;  %v3997_v43 = vmul.f32 %v3981_v53, %v2690_v27  ;;  %v3701_v60 = vmul.f32 %v10528_v31, %v3665_v61  ;;  %v3950_v57 = vmul.f32 %v10530_v5, %v3665_v61 }
 0x42e   : > { %v9104_v26 = vpop.eup %9103  ;;  %v3998_v0 = vmul.f32 %v3982_v24, %v2691_v36  ;;  %v3932_v35 = vmul.f32 %v10544_v30, %v3436_v9  ;;  %v1680_v62 = vrot.slane %v9637_v6, 7  ;;  %v3700_v40 = vmul.f32 %v10528_v31, %v3664_v46 }
 0x42f   : > { %v10876_v49 = vpop.permute.xlu0 %1718  ;;  %v3435_v47 = vmul.f32 %v9104_v26, %v14737_v17  ;;  %7922 = vmatprep.mubr.f32.mxu1 %v3748_v33  ;;  %7978 = vmatprep.mubr.f32.mxu0 %v3997_v43  ;;  %v3949_v44 = vmul.f32 %v10530_v5, %v3664_v46  ;;  %v3717_v38 = vadd.f32 %v3701_v60, %v3683_v42  ;;  %v14738_v34 = vrot.slane %v9626_v1, 5  ;;  %v9241_v43 = vld [vmem:[%s14527_s2] ss:$0 sm:$0xff]  ;;  %v14739_v60 = vld [vmem:[#allocation12_spill] sm:$0xff]  ;;  %v3406_v17 = vpop.xlane.xlu1 %3405 }
 0x430   : > { %7923 = vmatmul.mubr.f32.gmra.mrb[26].mxu1 %v3749_v48  ;;  %7979 = vmatmul.mubr.f32.gmra.mrb[58].mxu0 %v3998_v0  ;;  %v3966_v52 = vadd.f32 %v3950_v57, %v3932_v35  ;;  %v1681_v18 = vsel %vm1654_vm6, %v1678_v4, %v1680_v62  ;;  %v1162_v14 = vrot.slane %v9641_v8, 4  ;;  %v1422_v37 = vrot.slane %v9637_v6, 5  ;;  %v2693_v4 = vld [vmem:[%s14531_s6 + $0x68] sm:$0xff] }
 0x431   : > { %v3682_v3 = vmul.f32 %v10537_v41, %v3435_v47  ;;  %v3931_v7 = vmul.f32 %v10544_v30, %v3435_v47  ;;  %2186 = vrot.lane.b32.xlu1 %v2122_v29, %s9329_s17  ;;  %1006 = vrot.lane.b32.xlu0 %v943_v20, %s9329_s17  ;;  %v1419_v54 = vsel %vm1396_vm5, %v14738_v34, %v1418_v50  ;;  %v1424_v22 = vrot.slane %v14733_v28, 5 }
 0x432   : > { %v3735_v27 = vadd.f32 %v10570_v16, %v3717_v38  ;;  %v3984_v23 = vadd.f32 %v10574_v39, %v3966_v52  ;;  %v1163_v36 = vsel %vm1138_vm3, %v1160_v19, %v1162_v14  ;;  %v2123_v2 = vrot.slane %v9606_v56, 1 }
 0x433   : > { %v10887_v21 = vpop.permute.xlu0 %1206  ;;  %v3716_v15 = vadd.f32 %v3700_v40, %v3682_v3  ;;  %v3965_v9 = vadd.f32 %v3949_v44, %v3931_v7  ;;  %v1425_v46 = vsel %vm1396_vm5, %v1422_v37, %v1424_v22  ;;  %v1682_v29 = vrot.slane %v14733_v28, 7  ;;  %v3635_v3 = vpop.xlane.xlu1 %3634 }
 0x434   : > { %v3751_v11 = vmul.f32 %v3735_v27, %v2693_v4  ;;  %v4000_v61 = vmul.f32 %v3984_v23, %v2693_v4  ;;  %v2124_v56 = vsel %vm2105_vm7, %v2121_v51, %v2123_v2  ;;  %v1164_v42 = vrot.slane %v9637_v6, 4 }
 0x435   : > { %v3734_v13 = vadd.f32 %v10570_v16, %v3716_v15  ;;  %v3983_v50 = vadd.f32 %v10574_v39, %v3965_v9  ;;  %1482 = vrot.lane.b32.xlu1 %v1419_v54, %s9329_s17  ;;  %1744 = vrot.lane.b32.xlu0 %v1681_v18, %s9329_s17  ;;  %v1683_v19 = vsel %vm1654_vm6, %v1680_v62, %v1682_v29  ;;  %v14586_v26 = vrot.slane %v14734_v10, 7 }
 0x436   : > { %v10940_v58 = vadd.f32 %v9241_v43, %v14739_v60  ;;  %v1165_v51 = vsel %vm1138_vm3, %v1162_v14, %v1164_v42  ;;  %v2125_v48 = vrot.slane %v9626_v1, 1  ;;  %v2135_v0 = vrot.slane %v14734_v10, 1  ;;  %v6844_v60 = vld [vmem:[%s14528_s3 + $0x100] sm:$0xff] }
 0x437   : > { %v10912_v24 = vpop.permute.xlu0 %1208  ;;  %v3750_v25 = vmul.f32 %v3734_v13, %v2692_v32  ;;  %v3999_v53 = vmul.f32 %v3983_v50, %v2692_v32  ;;  %v1685_v57 = vsel %vm1654_vm6, %v1682_v29, %v14586_v26  ;;  %v2133_v35 = vrot.slane %v14733_v28, 1  ;;  %v10988_v14 = vpop.permute.xlu1 %1462  ;;  %v14786_v26 = vld [vmem:[#allocation38_spill] sm:$0xff] }
 0x438   : > { %v2126_v62 = vsel %vm2105_vm7, %v2123_v2, %v2125_v48  ;;  %v14589_v1 = vrot.slane %v10940_v58, 3  ;;  %v1423_v38 = vsel %vm1396_vm5, %v1420_v12, %v1422_v37  ;;  %v1166_v52 = vrot.slane %v14733_v28, 4  ;;  %v2695_v28 = vld [vmem:[%s14531_s6 + $0x78] sm:$0xff] }
 0x439   : > { %7925 = vmatprep.mubr.f32.mxu1 %v3750_v25  ;;  %7981 = vmatprep.mubr.f32.mxu0 %v3999_v53  ;;  %v2136_v40 = vsel %vm2105_vm7, %v2133_v35, %v2135_v0  ;;  %v1426_v34 = vrot.slane %v14734_v10, 5  ;;  %v14587_v54 = vrot.slane %v10940_v58, 5  ;;  %9105 = vrcp.f32 %v3635_v3  ;;  %v14744_v3 = vld [vmem:[#allocation39_spill] sm:$0xff] }
 0x43a   : > { %1226 = vrot.lane.b32.xlu1 %v1163_v36, %s9329_s17  ;;  %1488 = vrot.lane.b32.xlu0 %v1425_v46, %s9329_s17  ;;  %v945_v7 = vsel %vm912_vm4, %v942_v55, %v14589_v1  ;;  %v1167_v12 = vsel %vm1138_vm3, %v1164_v42, %v1166_v52  ;;  %v2127_v55 = vrot.slane %v9622_v63, 1  ;;  %9107 = vrcp.f32 %v3406_v17  ;;  %v14740_v36 = vld [vmem:[#allocation49_spill] sm:$0xff] }
 0x43b   : > { %7926 = vmatmul.mubr.f32.gmra.mrb[28].mxu1 %v3751_v11  ;;  %7982 = vmatmul.mubr.f32.gmra.mrb[60].mxu0 %v4000_v61  ;;  %v10924_v20 = vpop.permute.xlu0 %1464  ;;  %v1429_v9 = vsel %vm1396_vm5, %v1426_v34, %v14587_v54  ;;  %9109 = vrcp.f32 %v10826_v59  ;;  %v1168_v32 = vrot.slane %v14734_v10, 4  ;;  %v2129_v27 = vrot.slane %v9641_v8, 1  ;;  %v14741_v61 = vld [vmem:[#allocation47_spill] sm:$0xff] }
 0x43c   : > { %v2128_v37 = vsel %vm2105_vm7, %v2125_v48, %v2127_v55  ;;  %v14743_v48 = vld [vmem:[#allocation51_spill] sm:$0xff] }
 0x43d   : > { %v1169_v50 = vsel %vm1138_vm3, %v1166_v52, %v1168_v32  ;;  %v2130_v53 = vsel %vm2105_vm7, %v2127_v55, %v2129_v27  ;;  %v6876_v52 = vld [vmem:[%s14528_s3 + $0x200] sm:$0xff]  ;;  %v14745_v55 = vld [vmem:[#allocation52_spill] sm:$0xff] }
 0x43e   : > { %2188 = vrot.lane.b32.xlu1 %v2124_v56, %s9329_s17  ;;  %1746 = vrot.lane.b32.xlu0 %v1683_v19, %s9329_s17  ;;  %v2131_v56 = vrot.slane %v9637_v6, 1  ;;  %v1427_v19 = vsel %vm1396_vm5, %v1424_v22, %v1426_v34  ;;  %v1556_v34 = vsel %vm1396_vm5, 0.0, %v10842_v45 }
 0x43f   : > { %v10934_v33 = vpop.permute.xlu0 %984 }
 0x442   : > { %1228 = vrot.lane.b32.xlu1 %v1165_v51, %s9329_s17  ;;  %1748 = vrot.lane.b32.xlu0 %v1685_v57, %s9329_s17  ;;  %v14742_v51 = vld [vmem:[#allocation45_spill] sm:$0xff] }
 0x443   : > { %v10950_v47 = vpop.permute.xlu0 %1722  ;;  %v9106_v23 = vpop.eup %9105  ;;  %v1298_v57 = vsel %vm1138_vm3, 0.0, %v14742_v51 }
 0x444   : > { %v9108_v4 = vpop.eup %9107  ;;  %v3667_v2 = vmul.f32 %v9106_v23, %v14740_v36 }
 0x445   : > { %v9110_v46 = vpop.eup %9109  ;;  %v3438_v29 = vmul.f32 %v9108_v4, %v14741_v61  ;;  %v1557_v61 = vmul.f32 %v6876_v52, %v1556_v34 }
 0x446   : > { %2190 = vrot.lane.b32.xlu1 %v2126_v62, %s9329_s17  ;;  %2200 = vrot.lane.b32.xlu0 %v2136_v40, %s9329_s17  ;;  %v3703_v42 = vmul.f32 %v10528_v31, %v3667_v2  ;;  %v3952_v43 = vmul.f32 %v10530_v5, %v3667_v2  ;;  %v3437_v17 = vmul.f32 %v9110_v46, %v14743_v48 }
 0x447   : > { %v10962_v44 = vpop.permute.xlu0 %986  ;;  %v3685_v22 = vmul.f32 %v10537_v41, %v3438_v29  ;;  %v3934_v40 = vmul.f32 %v10544_v30, %v3438_v29 }
 0x448   : > { %v3684_v36 = vmul.f32 %v10537_v41, %v3437_v17 }
 0x449   : > { %v3719_v23 = vadd.f32 %v3703_v42, %v3685_v22  ;;  %v3968_v4 = vadd.f32 %v3952_v43, %v3934_v40  ;;  %v6845_v22 = vld [vmem:[%s14528_s3 + $0x108] sm:$0xff] }
 0x44a   : > { %1486 = vrot.lane.b32.xlu1 %v1423_v38, %s9329_s17  ;;  %1008 = vrot.lane.b32.xlu0 %v945_v7, %s9329_s17  ;;  %v848_v38 = vld [vmem:[%s14528_s3] sm:$0xff]  ;;  %v1072_v7 = vsel %vm912_vm4, 0.0, %v14744_v3 }
 0x44b   : > { %v10977_v15 = vpop.permute.xlu0 %1724  ;;  %v1073_v46 = vmul.f32 %v1072_v7, %v848_v38  ;;  %v3737_v41 = vadd.f32 %v10570_v16, %v3719_v23  ;;  %v14746_v7 = vld [vmem:[#allocation54_spill] sm:$0xff] }
 0x44c   : > { %v14747_v23 = vld [vmem:[#allocation14_spill] sm:$0xff] }
 0x44e   : > { %1230 = vrot.lane.b32.xlu1 %v1167_v12, %s9329_s17  ;;  %1492 = vrot.lane.b32.xlu0 %v1429_v9, %s9329_s17  ;;  %v2132_v12 = vsel %vm2105_vm7, %v2129_v27, %v2131_v56  ;;  %v3933_v27 = vmul.f32 %v10544_v30, %v3437_v17  ;;  %v849_v30 = vld [vmem:[%s14528_s3 + $0x8] sm:$0xff] }
 0x44f   : > { %v10986_v18 = vpop.permute.xlu0 %1468  ;;  %v1074_v52 = vmul.f32 %v14746_v7, %v849_v30  ;;  %v6941_v30 = vld [vmem:[%s14528_s3 + $0x408] sm:$0xff] }
 0x452   : > { %2192 = vrot.lane.b32.xlu1 %v2128_v37, %s9329_s17 }
 0x453   : > { %v10994_v13 = vpop.permute.xlu0 %988  ;;  %v3633_v63 = vpop.xlane.xlu1 %3632 }
 0x454   : > { %9111 = vrcp.f32 %v3633_v63  ;;  %v1299_v63 = vmul.f32 %v6844_v60, %v1298_v57 }
 0x456   : > { %1232 = vrot.lane.b32.xlu1 %v1169_v50, %s9329_s17  ;;  %v1814_v50 = vsel %vm1654_vm6, 0.0, %v10876_v49  ;;  %v1331_v60 = vadd.f32 %v1299_v63, %v1073_v46 }
 0x457   : > { %v11001_v59 = vpop.permute.xlu0 %1726  ;;  %v11003_v25 = vpop.permute.xlu1 %980 }
 0x45a   : > { %2194 = vrot.lane.b32.xlu1 %v2130_v53, %s9329_s17  ;;  %v6908_v53 = vld [vmem:[%s14528_s3 + $0x300] sm:$0xff] }
 0x45b   : > { %v11008_v11 = vpop.permute.xlu0 %990  ;;  %v11011_v8 = vpop.permute.xlu1 %982  ;;  %v1815_v51 = vmul.f32 %v6908_v53, %v1814_v50  ;;  %v6972_v50 = vld [vmem:[%s14528_s3 + $0x500] sm:$0xff] }
 0x45c   : > { %v14748_v53 = vld [vmem:[#allocation53_spill] sm:$0xff] }
 0x45e   : > { %1490 = vrot.lane.b32.xlu1 %v1427_v19, %s9329_s17  ;;  %v9112_v6 = vpop.eup %9111  ;;  %v14585_v19 = vrot.slane %v10940_v58, 1 }
 0x45f   : > { %v11026_v62 = vpop.permute.xlu0 %1728  ;;  %v1721_v9 = vpop.permute.xlu1 %1720  ;;  %v3666_v37 = vmul.f32 %v9112_v6, %v14745_v55  ;;  %v6940_v6 = vld [vmem:[%s14528_s3 + $0x400] sm:$0xff]  ;;  %v3753_v55 = vmul.f32 %v3737_v41, %v2695_v28 }
 0x461   : > { %v3702_v45 = vmul.f32 %v10528_v31, %v3666_v37  ;;  %v3951_v2 = vmul.f32 %v10530_v5, %v3666_v37  ;;  %v2134_v31 = vsel %vm2105_vm7, %v2131_v56, %v2133_v35  ;;  %v2694_v5 = vld [vmem:[%s14531_s6 + $0x70] sm:$0xff]  ;;  %v3986_v35 = vadd.f32 %v10574_v39, %v3968_v4  ;;  %v6909_v37 = vld [vmem:[%s14528_s3 + $0x308] sm:$0xff] }
 0x462   : > { %2196 = vrot.lane.b32.xlu1 %v2132_v12, %s9329_s17  ;;  %v1589_v56 = vadd.f32 %v1557_v61, %v1331_v60  ;;  %v2138_v12 = vsel %vm2105_vm7, %v2135_v0, %v14585_v19  ;;  %v2008_v4 = vmul.f32 %v6940_v6, %v14747_v23 }
 0x463   : > { %v11052_v29 = vpop.permute.xlu0 %1472  ;;  %v11054_v49 = vpop.permute.xlu1 %1466  ;;  %v3718_v42 = vadd.f32 %v3702_v45, %v3684_v36  ;;  %v3967_v43 = vadd.f32 %v3951_v2, %v3933_v27  ;;  %v4002_v63 = vmul.f32 %v3986_v35, %v2695_v28  ;;  %v1300_v36 = vmul.f32 %v6845_v22, %v14748_v53  ;;  %v7004_v27 = vld [vmem:[%s14528_s3 + $0x600] sm:$0xff] }
 0x464   : > { %v1847_v34 = vadd.f32 %v1815_v51, %v1589_v56  ;;  %v7036_v51 = vld [vmem:[%s14528_s3 + $0x700] sm:$0xff] }
 0x465   : > { %v3736_v57 = vadd.f32 %v10570_v16, %v3718_v42  ;;  %v3985_v48 = vadd.f32 %v10574_v39, %v3967_v43  ;;  %v6877_v16 = vld [vmem:[%s14528_s3 + $0x208] sm:$0xff]  ;;  %v14588_v39 = vrot.slane %v10940_v58, 4  ;;  %v1332_v61 = vadd.f32 %v1300_v36, %v1074_v52 }
 0x466   : > { %2198 = vrot.lane.b32.xlu1 %v2134_v31, %s9329_s17  ;;  %v1558_v45 = vmul.f32 %v6877_v16, %v10988_v14  ;;  %v1816_v42 = vmul.f32 %v6909_v37, %v1721_v9  ;;  %v2040_v43 = vadd.f32 %v2008_v4, %v1847_v34  ;;  %v850_v31 = vld [vmem:[%s14528_s3 + $0x10] sm:$0xff]  ;;  %v2474_v35 = vmul.f32 %v7036_v51, %v14748_v53  ;;  %v6973_v16 = vld [vmem:[%s14528_s3 + $0x508] sm:$0xff] }
 0x467   : > { %v11074_v17 = vpop.permute.xlu0 %992  ;;  %v11085_v40 = vpop.permute.xlu1 %1210  ;;  %v3752_v38 = vmul.f32 %v3736_v57, %v2694_v5  ;;  %v4001_v3 = vmul.f32 %v3985_v48, %v2694_v5  ;;  %v1171_v2 = vsel %vm1138_vm3, %v1168_v32, %v14588_v39  ;;  %v2371_v32 = vmul.f32 %v7004_v27, %v14746_v7  ;;  %v7068_v57 = vld [vmem:[%s14528_s3 + $0x800] sm:$0xff]  ;;  %v6846_v48 = vld [vmem:[%s14528_s3 + $0x110] sm:$0xff]  ;;  %v7005_v37 = vld [vmem:[%s14528_s3 + $0x608] sm:$0xff] }
 0x468   : > { %v1590_v5 = vadd.f32 %v1558_v45, %v1332_v61  ;;  %v1075_v56 = vmul.f32 %v11003_v25, %v850_v31  ;;  %v2577_v7 = vmul.f32 %v7068_v57, %v10988_v14  ;;  %v1301_v52 = vmul.f32 %v6846_v48, %v10887_v21  ;;  %v7037_v36 = vld [vmem:[%s14528_s3 + $0x708] sm:$0xff]  ;;  %v4276_v31 = vld [vmem:[%s14536_s11] sm:$0xff]  ;;  %v6847_v57 = vld [vmem:[%s14528_s3 + $0x118] sm:$0xff] }
 0x469   : > { %7928 = vmatprep.mubr.f32.mxu1 %v3752_v38  ;;  %7984 = vmatprep.mubr.f32.mxu0 %v4001_v3  ;;  %v14749_v38 = vld [vmem:[#allocation15_spill] sm:$0xff]  ;;  %v7069_v45 = vld [vmem:[%s14528_s3 + $0x808] sm:$0xff]  ;;  %v6879_v48 = vld [vmem:[%s14528_s3 + $0x218] sm:$0xff] }
 0x46a   : > { %2202 = vrot.lane.b32.xlu1 %v2138_v12, %s9329_s17  ;;  %7929 = vmatmul.mubr.f32.gmra.mrb[30].mxu1 %v3753_v55  ;;  %v1848_v6 = vadd.f32 %v1816_v42, %v1590_v5  ;;  %v2009_v3 = vmul.f32 %v6941_v30, %v14749_v38  ;;  %v6878_v55 = vld [vmem:[%s14528_s3 + $0x210] sm:$0xff]  ;;  %v1333_v14 = vadd.f32 %v1301_v52, %v1075_v56 }
 0x46b   : > { %v11104_v0 = vpop.permute.xlu0 %1730  ;;  %7985 = vmatmul.mubr.f32.gmra.mrb[62].mxu0 %v4002_v63  ;;  %v2173_v46 = vpop.permute.xlu1 %2172  ;;  %v1559_v27 = vmul.f32 %v6878_v55, %v10924_v20 }
 0x46c   : > { %v2268_v60 = vmul.f32 %v6972_v50, %v2173_v46  ;;  %8075 = vmatprep.mubr.msk.f32.mxu0 %vm2728_vm1, %v10940_v58  ;;  %v11156_v50 = vld [vmem:[%s14529_s4] ss:$0 sm:$0xff]  ;;  %v2041_v23 = vadd.f32 %v2009_v3, %v1848_v6  ;;  %v2372_v46 = vmul.f32 %v7005_v37, %v11003_v25  ;;  %v4277_v25 = vld [vmem:[%s14536_s11 + $0x8] sm:$0xff]  ;;  %v1302_v3 = vmul.f32 %v6847_v57, %v10912_v24 }
 0x46d   : > { %v1591_v5 = vadd.f32 %v1559_v27, %v1333_v14  ;;  %v8491_v30 = vpack.c.bf16 %v4277_v25, %v4276_v31 }
 0x46e   : > { %1234 = vrot.lane.b32.xlu1 %v1171_v2, %s9329_s17  ;;  %v2300_v41 = vadd.f32 %v2268_v60, %v2040_v43  ;;  %v6910_v2 = vld [vmem:[%s14528_s3 + $0x310] sm:$0xff]  ;;  %v851_v60 = vld [vmem:[%s14528_s3 + $0x18] sm:$0xff] }
 0x46f   : > { %v11124_v9 = vpop.permute.xlu0 %994  ;;  %v11135_v28 = vpop.permute.xlu1 %1212  ;;  %v1817_v56 = vmul.f32 %v6910_v2, %v10950_v47  ;;  %8492 = vmatprep.subr.bf16.mxu1 %v8491_v30  ;;  %v6974_v47 = vld [vmem:[%s14528_s3 + $0x510] sm:$0xff] }
 0x470   : > { %v2403_v22 = vadd.f32 %v2371_v32, %v2300_v41  ;;  %v2475_v32 = vmul.f32 %v7037_v36, %v10887_v21  ;;  %v1076_v21 = vmul.f32 %v11011_v8, %v851_v60  ;;  %8494 = vmatpush3.bf16.msra.mxu1 %v8491_v30  ;;  %v7038_v2 = vld [vmem:[%s14528_s3 + $0x710] sm:$0xff] }
 0x472   : > { %v2506_v34 = vadd.f32 %v2474_v35, %v2403_v22  ;;  %v2578_v35 = vmul.f32 %v7069_v45, %v10924_v20  ;;  %v1849_v20 = vadd.f32 %v1817_v56, %v1591_v5  ;;  %v1334_v37 = vadd.f32 %v1302_v3, %v1076_v21  ;;  %v852_v5 = vld [vmem:[%s14528_s3 + $0x20] sm:$0xff]  ;;  %v14751_v56 = vld [vmem:[#allocation19_spill] sm:$0xff] }
 0x473   : > { %v11145_v12 = vpop.permute.xlu0 %1732  ;;  %v2175_v63 = vpop.permute.xlu1 %2174 }
 0x474   : > { %v2269_v4 = vmul.f32 %v6973_v16, %v2175_v63  ;;  %v2609_v53 = vadd.f32 %v2577_v7, %v2506_v34  ;;  %v6942_v16 = vld [vmem:[%s14528_s3 + $0x410] sm:$0xff]  ;;  %v1560_v7 = vmul.f32 %v6879_v48, %v11054_v49  ;;  %v14750_v34 = vld [vmem:[#allocation16_spill] sm:$0xff] }
 0x475   : > { %v2010_v55 = vmul.f32 %v6942_v16, %v14750_v34 }
 0x476   : > { %v2301_v61 = vadd.f32 %v2269_v4, %v2041_v23  ;;  %v11172_v43 = vadd.f32 %v11156_v50, %v2609_v53  ;;  %v6911_v23 = vld [vmem:[%s14528_s3 + $0x318] sm:$0xff]  ;;  %v7006_v4 = vld [vmem:[%s14528_s3 + $0x610] sm:$0xff]  ;;  %v1592_v36 = vadd.f32 %v1560_v7, %v1334_v37 }
 0x477   : > { %v11169_v42 = vpop.permute.xlu0 %1476  ;;  %v11177_v51 = vpop.permute.xlu1 %1470  ;;  %v2042_v45 = vadd.f32 %v2010_v55, %v1849_v20  ;;  %v2373_v60 = vmul.f32 %v7006_v4, %v11011_v8  ;;  %v6880_v20 = vld [vmem:[%s14528_s3 + $0x220] sm:$0xff] }
 0x478   : > { %v2404_v41 = vadd.f32 %v2372_v46, %v2301_v61  ;;  %4067 = vrot.lane.b32.xlu1 %v11172_v43, %s9325_s29  ;;  %v6848_v46 = vld [vmem:[%s14528_s3 + $0x120] sm:$0xff]  ;;  %v1818_v61 = vmul.f32 %v6911_v23, %v10977_v15  ;;  %v2476_v15 = vmul.f32 %v7038_v2, %v10912_v24  ;;  %v7007_v24 = vld [vmem:[%s14528_s3 + $0x618] sm:$0xff]  ;;  %v1561_v4 = vmul.f32 %v6880_v20, %v10986_v18  ;;  %v6849_v2 = vld [vmem:[%s14528_s3 + $0x128] sm:$0xff] }
 0x479   : > { %v1303_v57 = vmul.f32 %v6848_v46, %v11085_v40  ;;  %v2374_v23 = vmul.f32 %v7007_v24, %v10934_v33 }
 0x47a   : > { %v2507_v6 = vadd.f32 %v2475_v32, %v2404_v41  ;;  %v6943_v32 = vld [vmem:[%s14528_s3 + $0x418] sm:$0xff]  ;;  %v7070_v41 = vld [vmem:[%s14528_s3 + $0x810] sm:$0xff]  ;;  %v1850_v8 = vadd.f32 %v1818_v61, %v1592_v36 }
 0x47b   : > { %v11197_v22 = vpop.permute.xlu0 %996  ;;  %v11202_v38 = vpop.permute.xlu1 %1214  ;;  %v2011_v21 = vmul.f32 %v6943_v32, %v14751_v56  ;;  %v2579_v16 = vmul.f32 %v7070_v41, %v11054_v49  ;;  %v7039_v49 = vld [vmem:[%s14528_s3 + $0x718] sm:$0xff]  ;;  %v853_v32 = vld [vmem:[%s14528_s3 + $0x28] sm:$0xff] }
 0x47c   : > { %v2610_v52 = vadd.f32 %v2578_v35, %v2507_v6  ;;  %v6975_v35 = vld [vmem:[%s14528_s3 + $0x518] sm:$0xff]  ;;  %v1077_v6 = vmul.f32 %v10934_v33, %v852_v5  ;;  %v2477_v61 = vmul.f32 %v7039_v49, %v11085_v40  ;;  %v6881_v5 = vld [vmem:[%s14528_s3 + $0x228] sm:$0xff]  ;;  %v1304_v40 = vmul.f32 %v6849_v2, %v11135_v28 }
 0x47d   : > { %v2043_v34 = vadd.f32 %v2011_v21, %v1850_v8  ;;  %v1562_v56 = vmul.f32 %v6881_v5, %v11177_v51  ;;  %v6945_v2 = vld [vmem:[%s14528_s3 + $0x428] sm:$0xff] }
 0x47e   : > { %v11213_v14 = vadd.f32 %v11156_v50, %v2610_v52 }
 0x47f   : > { %v11210_v63 = vpop.permute.xlu0 %1734  ;;  %v2177_v53 = vpop.permute.xlu1 %2176 }
 0x480   : > { %v2270_v27 = vmul.f32 %v6974_v47, %v2177_v53  ;;  %4069 = vrot.lane.b32.xlu0 %v11213_v14, %s9325_s29  ;;  %v1335_v47 = vadd.f32 %v1303_v57, %v1077_v6  ;;  %v6944_v57 = vld [vmem:[%s14528_s3 + $0x420] sm:$0xff] }
 0x482   : > { %v2302_v31 = vadd.f32 %v2270_v27, %v2042_v45  ;;  %v7071_v45 = vld [vmem:[%s14528_s3 + $0x818] sm:$0xff]  ;;  %v6912_v27 = vld [vmem:[%s14528_s3 + $0x320] sm:$0xff]  ;;  %v1593_v33 = vadd.f32 %v1561_v4, %v1335_v47  ;;  %v6913_v47 = vld [vmem:[%s14528_s3 + $0x328] sm:$0xff] }
 0x483   : > { %v11231_v25 = vpop.permute.xlu0 %998  ;;  %v11242_v30 = vpop.permute.xlu1 %1216  ;;  %v2580_v41 = vmul.f32 %v7071_v45, %v10986_v18  ;;  %v6976_v18 = vld [vmem:[%s14528_s3 + $0x520] sm:$0xff]  ;;  %v6850_v4 = vld [vmem:[%s14528_s3 + $0x130] sm:$0xff]  ;;  %v1820_v45 = vmul.f32 %v6913_v47, %v11026_v62 }
 0x484   : > { %v2405_v48 = vadd.f32 %v2373_v60, %v2302_v31  ;;  %v1305_v62 = vmul.f32 %v6850_v4, %v11202_v38 }
 0x486   : > { %v2508_v3 = vadd.f32 %v2476_v15, %v2405_v48  ;;  %v1819_v15 = vmul.f32 %v6912_v27, %v11001_v59  ;;  %v14752_v59 = vld [vmem:[#allocation22_spill] sm:$0xff] }
 0x487   : > { %v11252_v7 = vpop.permute.xlu0 %1736  ;;  %v2179_v52 = vpop.permute.xlu1 %2178 }
 0x488   : > { %v2271_v55 = vmul.f32 %v6975_v35, %v2179_v52  ;;  %v2611_v37 = vadd.f32 %v2579_v16, %v2508_v3  ;;  %v1078_v35 = vmul.f32 %v10962_v44, %v853_v32  ;;  %v1851_v21 = vadd.f32 %v1819_v15, %v1593_v33  ;;  %v7008_v52 = vld [vmem:[%s14528_s3 + $0x620] sm:$0xff]  ;;  %v854_v33 = vld [vmem:[%s14528_s3 + $0x30] sm:$0xff]  ;;  %v6977_v15 = vld [vmem:[%s14528_s3 + $0x528] sm:$0xff] }
 0x489   : > { %v2012_v16 = vmul.f32 %v6944_v57, %v14752_v59  ;;  %v1079_v57 = vmul.f32 %v10994_v13, %v854_v33  ;;  %v6883_v33 = vld [vmem:[%s14528_s3 + $0x238] sm:$0xff] }
 0x48a   : > { %v2303_v53 = vadd.f32 %v2271_v55, %v2043_v34  ;;  %v11266_v36 = vadd.f32 %v11156_v50, %v2611_v37  ;;  %v1336_v3 = vadd.f32 %v1304_v40, %v1078_v35  ;;  %v14753_v40 = vld [vmem:[#allocation25_spill] sm:$0xff] }
 0x48b   : > { %v11277_v46 = vpop.permute.xlu1 %1474  ;;  %v11280_v31 = vpop.permute.xlu0 %1480  ;;  %v2044_v37 = vadd.f32 %v2012_v16, %v1851_v21  ;;  %v6882_v21 = vld [vmem:[%s14528_s3 + $0x230] sm:$0xff] }
 0x48c   : > { %v2406_v60 = vadd.f32 %v2374_v23, %v2303_v53  ;;  %4071 = vrot.lane.b32.xlu1 %v11266_v36, %s9325_s29  ;;  %v1594_v55 = vadd.f32 %v1562_v56, %v1336_v3  ;;  %v7040_v23 = vld [vmem:[%s14528_s3 + $0x720] sm:$0xff]  ;;  %v2375_v53 = vmul.f32 %v7008_v52, %v10962_v44  ;;  %v7041_v52 = vld [vmem:[%s14528_s3 + $0x728] sm:$0xff]  ;;  %v1563_v47 = vmul.f32 %v6882_v21, %v11052_v29 }
 0x48d   : > { %v2478_v32 = vmul.f32 %v7040_v23, %v11135_v28  ;;  %v7009_v28 = vld [vmem:[%s14528_s3 + $0x628] sm:$0xff]  ;;  %v6914_v23 = vld [vmem:[%s14528_s3 + $0x330] sm:$0xff] }
 0x48e   : > { %v2509_v8 = vadd.f32 %v2477_v61, %v2406_v60  ;;  %v7072_v61 = vld [vmem:[%s14528_s3 + $0x820] sm:$0xff]  ;;  %v1852_v44 = vadd.f32 %v1820_v45, %v1594_v55  ;;  %v2479_v45 = vmul.f32 %v7041_v52, %v11202_v38  ;;  %v6946_v38 = vld [vmem:[%s14528_s3 + $0x430] sm:$0xff] }
 0x48f   : > { %v11296_v48 = vpop.permute.xlu1 %1218  ;;  %v11304_v24 = vpop.permute.xlu0 %1000  ;;  %v2581_v35 = vmul.f32 %v7072_v61, %v11177_v51  ;;  %v2376_v51 = vmul.f32 %v7009_v28, %v10994_v13  ;;  %v6851_v13 = vld [vmem:[%s14528_s3 + $0x138] sm:$0xff] }
 0x490   : > { %v2612_v6 = vadd.f32 %v2580_v41, %v2509_v8  ;;  %v2013_v8 = vmul.f32 %v6945_v2, %v14753_v40  ;;  %v855_v2 = vld [vmem:[%s14528_s3 + $0x38] sm:$0xff]  ;;  %v1564_v40 = vmul.f32 %v6883_v33, %v11277_v46 }
 0x492   : > { %v11307_v20 = vadd.f32 %v11156_v50, %v2612_v6  ;;  %v2045_v59 = vadd.f32 %v2013_v8, %v1852_v44  ;;  %v1306_v44 = vmul.f32 %v6851_v13, %v11242_v30 }
 0x493   : > { %v2181_v34 = vpop.permute.xlu1 %2180  ;;  %v11338_v5 = vpop.permute.xlu0 %1738 }
 0x494   : > { %v2272_v49 = vmul.f32 %v6976_v18, %v2181_v34  ;;  %4073 = vrot.lane.b32.xlu0 %v11307_v20, %s9325_s29  ;;  %v1337_v18 = vadd.f32 %v1305_v62, %v1079_v57 }
 0x496   : > { %v2304_v27 = vadd.f32 %v2272_v49, %v2044_v37  ;;  %v7073_v49 = vld [vmem:[%s14528_s3 + $0x828] sm:$0xff] }
 0x497   : > { %v11334_v60 = vpop.permute.xlu1 %1220  ;;  %v11357_v34 = vpop.permute.xlu0 %1002  ;;  %v2582_v61 = vmul.f32 %v7073_v49, %v11052_v29  ;;  %v6978_v29 = vld [vmem:[%s14528_s3 + $0x530] sm:$0xff] }
 0x498   : > { %v2407_v41 = vadd.f32 %v2375_v53, %v2304_v27  ;;  %v1595_v53 = vadd.f32 %v1563_v47, %v1337_v18  ;;  %v6915_v18 = vld [vmem:[%s14528_s3 + $0x338] sm:$0xff]  ;;  %v6852_v47 = vld [vmem:[%s14528_s3 + $0x140] sm:$0xff] }
 0x499   : > { %v1822_v49 = vmul.f32 %v6915_v18, %v11145_v12  ;;  %v1307_v33 = vmul.f32 %v6852_v47, %v11296_v48  ;;  %v6853_v47 = vld [vmem:[%s14528_s3 + $0x148] sm:$0xff] }
 0x49a   : > { %v2510_v56 = vadd.f32 %v2478_v32, %v2407_v41  ;;  %v1821_v32 = vmul.f32 %v6914_v23, %v11104_v0  ;;  %v14754_v0 = vld [vmem:[#allocation17_spill] sm:$0xff] }
 0x49b   : > { %v2183_v6 = vpop.permute.xlu1 %2182  ;;  %v11392_v8 = vpop.permute.xlu0 %1740 }
 0x49c   : > { %v2273_v16 = vmul.f32 %v6977_v15, %v2183_v6  ;;  %v2613_v3 = vadd.f32 %v2581_v35, %v2510_v56  ;;  %v1080_v15 = vmul.f32 %v11008_v11, %v855_v2  ;;  %v1853_v57 = vadd.f32 %v1821_v32, %v1595_v53  ;;  %v7010_v6 = vld [vmem:[%s14528_s3 + $0x630] sm:$0xff]  ;;  %v6947_v53 = vld [vmem:[%s14528_s3 + $0x438] sm:$0xff] }
 0x49d   : > { %v2014_v56 = vmul.f32 %v6946_v38, %v14754_v0  ;;  %v6979_v32 = vld [vmem:[%s14528_s3 + $0x538] sm:$0xff] }
 0x49e   : > { %v2305_v55 = vadd.f32 %v2273_v16, %v2045_v59  ;;  %v11360_v37 = vadd.f32 %v11156_v50, %v2613_v3  ;;  %v1338_v28 = vadd.f32 %v1306_v44, %v1080_v15  ;;  %v14755_v44 = vld [vmem:[#allocation29_spill] sm:$0xff] }
 0x49f   : > { %v11371_v4 = vpop.permute.xlu1 %1478  ;;  %v2046_v3 = vadd.f32 %v2014_v56, %v1853_v57  ;;  %v11417_v23 = vpop.permute.xlu0 %1484  ;;  %v7011_v57 = vld [vmem:[%s14528_s3 + $0x638] sm:$0xff] }
 0x4a0   : > { %v2408_v27 = vadd.f32 %v2376_v51, %v2305_v55  ;;  %4075 = vrot.lane.b32.xlu1 %v11360_v37, %s9325_s29  ;;  %v1596_v16 = vadd.f32 %v1564_v40, %v1338_v28  ;;  %v7042_v51 = vld [vmem:[%s14528_s3 + $0x730] sm:$0xff]  ;;  %v2377_v55 = vmul.f32 %v7010_v6, %v11008_v11  ;;  %v2378_v18 = vmul.f32 %v7011_v57, %v11074_v17 }
 0x4a1   : > { %v2480_v11 = vmul.f32 %v7042_v51, %v11242_v30  ;;  %v6884_v30 = vld [vmem:[%s14528_s3 + $0x240] sm:$0xff] }
 0x4a2   : > { %v2511_v62 = vadd.f32 %v2479_v45, %v2408_v27  ;;  %v856_v45 = vld [vmem:[%s14528_s3 + $0x40] sm:$0xff]  ;;  %v7074_v27 = vld [vmem:[%s14528_s3 + $0x830] sm:$0xff]  ;;  %v1854_v12 = vadd.f32 %v1822_v49, %v1596_v16 }
 0x4a3   : > { %v11388_v41 = vpop.permute.xlu1 %1222  ;;  %v1081_v38 = vmul.f32 %v11074_v17, %v856_v45  ;;  %v2583_v15 = vmul.f32 %v7074_v27, %v11277_v46  ;;  %v11444_v0 = vpop.permute.xlu0 %1004  ;;  %v7043_v46 = vld [vmem:[%s14528_s3 + $0x738] sm:$0xff]  ;;  %v6916_v51 = vld [vmem:[%s14528_s3 + $0x340] sm:$0xff]  ;;  %v6885_v45 = vld [vmem:[%s14528_s3 + $0x248] sm:$0xff] }
 0x4a4   : > { %v2614_v35 = vadd.f32 %v2582_v61, %v2511_v62  ;;  %v2015_v62 = vmul.f32 %v6947_v53, %v14755_v44  ;;  %v2481_v49 = vmul.f32 %v7043_v46, %v11296_v48  ;;  %v857_v53 = vld [vmem:[%s14528_s3 + $0x48] sm:$0xff] }
 0x4a5   : > { %v1082_v44 = vmul.f32 %v11124_v9, %v857_v53 }
 0x4a6   : > { %v11399_v21 = vadd.f32 %v11156_v50, %v2614_v35  ;;  %v2047_v56 = vadd.f32 %v2015_v62, %v1854_v12  ;;  %v1308_v12 = vmul.f32 %v6853_v47, %v11334_v60  ;;  %v1566_v62 = vmul.f32 %v6885_v45, %v11371_v4 }
 0x4a7   : > { %v2185_v59 = vpop.permute.xlu1 %2184 }
 0x4a8   : > { %v2274_v52 = vmul.f32 %v6978_v29, %v2185_v59  ;;  %4077 = vrot.lane.b32.xlu0 %v11399_v21, %s9325_s29  ;;  %v1339_v29 = vadd.f32 %v1307_v33, %v1081_v38  ;;  %v1565_v59 = vmul.f32 %v6884_v30, %v11169_v42  ;;  %v11477_v33 = vpop.permute.xlu0 %1742  ;;  %v1340_v57 = vadd.f32 %v1308_v12, %v1082_v44  ;;  %v14757_v12 = vld [vmem:[#allocation33_spill] sm:$0xff] }
 0x4aa   : > { %v2306_v13 = vadd.f32 %v2274_v52, %v2046_v3  ;;  %v7075_v52 = vld [vmem:[%s14528_s3 + $0x838] sm:$0xff]  ;;  %v1597_v17 = vadd.f32 %v1565_v59, %v1339_v29  ;;  %v6917_v29 = vld [vmem:[%s14528_s3 + $0x348] sm:$0xff]  ;;  %v7044_v59 = vld [vmem:[%s14528_s3 + $0x740] sm:$0xff] }
 0x4ab   : > { %v11428_v2 = vpop.permute.xlu1 %1224  ;;  %v2584_v27 = vmul.f32 %v7075_v52, %v11169_v42  ;;  %v6980_v42 = vld [vmem:[%s14528_s3 + $0x540] sm:$0xff]  ;;  %v2482_v45 = vmul.f32 %v7044_v59, %v11334_v60  ;;  %v7013_v60 = vld [vmem:[%s14528_s3 + $0x648] sm:$0xff]  ;;  %v6918_v59 = vld [vmem:[%s14528_s3 + $0x350] sm:$0xff] }
 0x4ac   : > { %v2409_v61 = vadd.f32 %v2377_v55, %v2306_v13 }
 0x4ae   : > { %v2512_v40 = vadd.f32 %v2480_v11, %v2409_v61  ;;  %v1823_v11 = vmul.f32 %v6916_v51, %v11210_v63  ;;  %v6948_v61 = vld [vmem:[%s14528_s3 + $0x440] sm:$0xff]  ;;  %v1824_v51 = vmul.f32 %v6917_v29, %v11252_v7  ;;  %v2380_v29 = vmul.f32 %v7013_v60, %v11197_v22 }
 0x4af   : > { %v2187_v35 = vpop.permute.xlu1 %2186  ;;  %v14756_v63 = vld [vmem:[#allocation21_spill] sm:$0xff] }
 0x4b0   : > { %v2275_v28 = vmul.f32 %v6979_v32, %v2187_v35  ;;  %v2615_v6 = vadd.f32 %v2583_v15, %v2512_v40  ;;  %v1855_v38 = vadd.f32 %v1823_v11, %v1597_v17  ;;  %v2016_v40 = vmul.f32 %v6948_v61, %v14756_v63  ;;  %v7012_v35 = vld [vmem:[%s14528_s3 + $0x640] sm:$0xff]  ;;  %v6949_v17 = vld [vmem:[%s14528_s3 + $0x448] sm:$0xff] }
 0x4b1   : > { %v2379_v52 = vmul.f32 %v7012_v35, %v11124_v9  ;;  %v6981_v11 = vld [vmem:[%s14528_s3 + $0x548] sm:$0xff] }
 0x4b2   : > { %v2307_v16 = vadd.f32 %v2275_v28, %v2047_v56  ;;  %v11452_v3 = vadd.f32 %v11156_v50, %v2615_v6  ;;  %v1598_v28 = vadd.f32 %v1566_v62, %v1340_v57  ;;  %v11499_v6 = vpop.permute.xlu0 %1006  ;;  %v2048_v46 = vadd.f32 %v2016_v40, %v1855_v38 }
 0x4b3   : > { %v11463_v55 = vpop.permute.xlu1 %1482 }
 0x4b4   : > { %v2410_v13 = vadd.f32 %v2378_v18, %v2307_v16  ;;  %4079 = vrot.lane.b32.xlu1 %v11452_v3, %s9325_s29  ;;  %v6854_v16 = vld [vmem:[%s14528_s3 + $0x150] sm:$0xff]  ;;  %v1856_v9 = vadd.f32 %v1824_v51, %v1598_v28 }
 0x4b5   : > { %v1309_v7 = vmul.f32 %v6854_v16, %v11388_v41  ;;  %v6855_v16 = vld [vmem:[%s14528_s3 + $0x158] sm:$0xff] }
 0x4b6   : > { %v2513_v48 = vadd.f32 %v2481_v49, %v2410_v13  ;;  %v858_v49 = vld [vmem:[%s14528_s3 + $0x50] sm:$0xff]  ;;  %v7076_v13 = vld [vmem:[%s14528_s3 + $0x840] sm:$0xff]  ;;  %v11530_v62 = vpop.permute.xlu0 %1744 }
 0x4b7   : > { %v11482_v32 = vpop.permute.xlu1 %1226  ;;  %v1083_v61 = vmul.f32 %v11197_v22, %v858_v49  ;;  %v2585_v44 = vmul.f32 %v7076_v13, %v11371_v4  ;;  %v7045_v4 = vld [vmem:[%s14528_s3 + $0x748] sm:$0xff]  ;;  %v859_v22 = vld [vmem:[%s14528_s3 + $0x58] sm:$0xff] }
 0x4b8   : > { %v2616_v15 = vadd.f32 %v2584_v27, %v2513_v48  ;;  %v2017_v48 = vmul.f32 %v6949_v17, %v14757_v12  ;;  %v6887_v13 = vld [vmem:[%s14528_s3 + $0x258] sm:$0xff]  ;;  %v6950_v12 = vld [vmem:[%s14528_s3 + $0x450] sm:$0xff] }
 0x4b9   : > { %v1341_v63 = vadd.f32 %v1309_v7, %v1083_v61  ;;  %v1825_v7 = vmul.f32 %v6918_v59, %v11338_v5 }
 0x4ba   : > { %v11491_v30 = vadd.f32 %v11156_v50, %v2616_v15  ;;  %v6886_v15 = vld [vmem:[%s14528_s3 + $0x250] sm:$0xff]  ;;  %v2049_v40 = vadd.f32 %v2017_v48, %v1856_v9  ;;  %v11561_v17 = vpop.permute.xlu0 %1488  ;;  %v1084_v48 = vmul.f32 %v11231_v25, %v859_v22 }
 0x4bb   : > { %v2189_v56 = vpop.permute.xlu1 %2188 }
 0x4bc   : > { %v2276_v18 = vmul.f32 %v6980_v42, %v2189_v56  ;;  %4081 = vrot.lane.b32.xlu0 %v11491_v30, %s9325_s29  ;;  %v1567_v56 = vmul.f32 %v6886_v15, %v11280_v31 }
 0x4be   : > { %v2308_v47 = vadd.f32 %v2276_v18, %v2048_v46  ;;  %v7077_v18 = vld [vmem:[%s14528_s3 + $0x848] sm:$0xff]  ;;  %v1599_v51 = vadd.f32 %v1567_v56, %v1341_v63 }
 0x4bf   : > { %v11520_v53 = vpop.permute.xlu1 %1228  ;;  %v2586_v9 = vmul.f32 %v7077_v18, %v11280_v31  ;;  %v6856_v31 = vld [vmem:[%s14528_s3 + $0x160] sm:$0xff]  ;;  %v14758_v63 = vld [vmem:[#allocation26_spill] sm:$0xff]  ;;  %v6919_v18 = vld [vmem:[%s14528_s3 + $0x358] sm:$0xff] }
 0x4c0   : > { %v2411_v27 = vadd.f32 %v2379_v52, %v2308_v47  ;;  %v2483_v47 = vmul.f32 %v7045_v4, %v11388_v41  ;;  %v862_v41 = vld [vmem:[%s14528_s3 + $0x70] sm:$0xff]  ;;  %v1311_v59 = vmul.f32 %v6856_v31, %v11482_v32 }
 0x4c1   : > { %v1087_v15 = vmul.f32 %v11444_v0, %v862_v41  ;;  %v6890_v4 = vld [vmem:[%s14528_s3 + $0x270] sm:$0xff] }
 0x4c2   : > { %v2514_v38 = vadd.f32 %v2482_v45, %v2411_v27  ;;  %v6858_v45 = vld [vmem:[%s14528_s3 + $0x170] sm:$0xff]  ;;  %v1310_v27 = vmul.f32 %v6855_v16, %v11428_v2 }
 0x4c3   : > { %v2191_v42 = vpop.permute.xlu1 %2190  ;;  %v6922_v31 = vld [vmem:[%s14528_s3 + $0x370] sm:$0xff] }
 0x4c4   : > { %v2277_v57 = vmul.f32 %v6981_v11, %v2191_v42  ;;  %v2617_v35 = vadd.f32 %v2585_v44, %v2514_v38  ;;  %v1568_v44 = vmul.f32 %v6887_v13, %v11463_v55  ;;  %v1857_v38 = vadd.f32 %v1825_v7, %v1599_v51  ;;  %v6982_v42 = vld [vmem:[%s14528_s3 + $0x550] sm:$0xff] }
 0x4c6   : > { %v2309_v28 = vadd.f32 %v2277_v57, %v2049_v40  ;;  %v11544_v46 = vadd.f32 %v11156_v50, %v2617_v35  ;;  %v2018_v40 = vmul.f32 %v6950_v12, %v14758_v63  ;;  %v860_v57 = vld [vmem:[%s14528_s3 + $0x60] sm:$0xff]  ;;  %v1342_v35 = vadd.f32 %v1310_v27, %v1084_v48  ;;  %v6857_v63 = vld [vmem:[%s14528_s3 + $0x168] sm:$0xff] }
 0x4c7   : > { %v11555_v52 = vpop.permute.xlu1 %1486  ;;  %v1085_v13 = vmul.f32 %v11304_v24, %v860_v57  ;;  %v3915_v27 = vld [vmem:[%s14535_s10] sm:$0xff]  ;;  %v1826_v48 = vmul.f32 %v6919_v18, %v11392_v8  ;;  %v7078_v8 = vld [vmem:[%s14528_s3 + $0x850] sm:$0xff] }
 0x4c8   : > { %v2412_v49 = vadd.f32 %v2380_v29, %v2309_v28  ;;  %4083 = vrot.lane.b32.xlu1 %v11544_v46, %s9325_s29  ;;  %v1747_v29 = vpop.permute.xlu0 %1746  ;;  %v7014_v28 = vld [vmem:[%s14528_s3 + $0x650] sm:$0xff]  ;;  %v1600_v51 = vadd.f32 %v1568_v44, %v1342_v35  ;;  %v6888_v44 = vld [vmem:[%s14528_s3 + $0x260] sm:$0xff]  ;;  %v861_v35 = vld [vmem:[%s14528_s3 + $0x68] sm:$0xff] }
 0x4c9   : > { %v2381_v12 = vmul.f32 %v7014_v28, %v11231_v25  ;;  %v6951_v25 = vld [vmem:[%s14528_s3 + $0x458] sm:$0xff] }
 0x4ca   : > { %v2515_v11 = vadd.f32 %v2483_v47, %v2412_v49  ;;  %v2050_v47 = vadd.f32 %v2018_v40, %v1857_v38  ;;  %v1858_v28 = vadd.f32 %v1826_v48, %v1600_v51  ;;  %v14759_v51 = vld [vmem:[#allocation36_spill] sm:$0xff] }
 0x4cb   : > { %v11581_v61 = vpop.permute.xlu1 %1230 }
 0x4cc   : > { %v1313_v5 = vmul.f32 %v6858_v45, %v11581_v61  ;;  %v2618_v60 = vadd.f32 %v2586_v9, %v2515_v11  ;;  %v7046_v45 = vld [vmem:[%s14528_s3 + $0x750] sm:$0xff]  ;;  %v1571_v9 = vmul.f32 %v6890_v4, %v11561_v17  ;;  %v3916_v11 = vld [vmem:[%s14535_s10 + $0x8] sm:$0xff]  ;;  %v11655_v18 = vpop.permute.xlu0 %1748 }
 0x4cd   : > { %v2484_v4 = vmul.f32 %v7046_v45, %v11428_v2  ;;  %v6954_v2 = vld [vmem:[%s14528_s3 + $0x470] sm:$0xff]  ;;  %v7015_v45 = vld [vmem:[%s14528_s3 + $0x658] sm:$0xff] }
 0x4ce   : > { %v11600_v56 = vadd.f32 %v11156_v50, %v2618_v60  ;;  %v1345_v16 = vadd.f32 %v1313_v5, %v1087_v15  ;;  %v11638_v15 = vpack.c.bf16 %v3916_v11, %v3915_v27  ;;  %v1312_v27 = vmul.f32 %v6857_v63, %v11520_v53  ;;  %v14760_v63 = vld [vmem:[#allocation43_spill] sm:$0xff] }
 0x4cf   : > { %v2193_v22 = vpop.permute.xlu1 %2192 }
 0x4d0   : > { %v2278_v49 = vmul.f32 %v6982_v42, %v2193_v22  ;;  %4085 = vrot.lane.b32.xlu0 %v11600_v56, %s9325_s29  ;;  %v1343_v42 = vadd.f32 %v1311_v59, %v1085_v13  ;;  %v1603_v40 = vadd.f32 %v1571_v9, %v1345_v16  ;;  %8496 = vmatprep.subr.bf16.mxu1 %v11638_v15  ;;  %v6889_v16 = vld [vmem:[%s14528_s3 + $0x268] sm:$0xff] }
 0x4d1   : > { %v11616_v7 = vpop.f32.mrb[16].mxu1  ;;  %v11618_v41 = vpop.f32.mrb[48].mxu0  ;;  %v1569_v59 = vmul.f32 %v6888_v44, %v11417_v23  ;;  %v2019_v13 = vmul.f32 %v6951_v25, %v14759_v51  ;;  %v2587_v9 = vmul.f32 %v7078_v8, %v11463_v55  ;;  %v863_v25 = vld [vmem:[%s14528_s3 + $0x78] sm:$0xff]  ;;  %v1570_v51 = vmul.f32 %v6889_v16, %v11555_v52 }
 0x4d2   : > { %v2310_v5 = vadd.f32 %v2278_v49, %v2050_v47  ;;  %v11634_v38 = vpop.f32.mrb[17].mxu1  ;;  %v11636_v60 = vpop.f32.mrb[49].mxu0  ;;  %v1829_v47 = vmul.f32 %v6922_v31, %v1747_v29  ;;  %v6983_v49 = vld [vmem:[%s14528_s3 + $0x558] sm:$0xff]  ;;  %v6920_v29 = vld [vmem:[%s14528_s3 + $0x360] sm:$0xff] }
 0x4d3   : > { %v11649_v57 = vpop.permute.xlu1 %1232  ;;  %v1601_v48 = vadd.f32 %v1569_v59, %v1343_v42  ;;  %v6859_v31 = vld [vmem:[%s14528_s3 + $0x178] sm:$0xff]  ;;  %v2051_v19 = vadd.f32 %v2019_v13, %v1858_v28  ;;  %v1827_v42 = vmul.f32 %v6920_v29, %v11477_v33  ;;  %v6952_v28 = vld [vmem:[%s14528_s3 + $0x460] sm:$0xff]  ;;  %v6986_v59 = vld [vmem:[%s14528_s3 + $0x570] sm:$0xff]  ;;  %v1088_v13 = vmul.f32 %v11499_v6, %v863_v25 }
 0x4d4   : > { %v2413_v22 = vadd.f32 %v2381_v12, %v2310_v5  ;;  %v1086_v12 = vmul.f32 %v11357_v34, %v861_v35  ;;  %v1861_v44 = vadd.f32 %v1829_v47, %v1603_v40  ;;  %v2382_v35 = vmul.f32 %v7015_v45, %v11304_v24  ;;  %v7047_v40 = vld [vmem:[%s14528_s3 + $0x758] sm:$0xff]  ;;  %v2201_v47 = vpop.permute.xlu0 %2200  ;;  %v6921_v45 = vld [vmem:[%s14528_s3 + $0x368] sm:$0xff]  ;;  %v6984_v25 = vld [vmem:[%s14528_s3 + $0x560] sm:$0xff] }
 0x4d5   : > { %v1314_v33 = vmul.f32 %v6859_v31, %v11649_v57 }
 0x4d6   : > { %v2516_v11 = vadd.f32 %v2484_v4, %v2413_v22  ;;  %v2022_v4 = vmul.f32 %v6954_v2, %v14760_v63  ;;  %v6891_v22 = vld [vmem:[%s14528_s3 + $0x278] sm:$0xff]  ;;  %v1344_v24 = vadd.f32 %v1312_v27, %v1086_v12  ;;  %v2485_v27 = vmul.f32 %v7047_v40, %v11482_v32  ;;  %v7018_v32 = vld [vmem:[%s14528_s3 + $0x670] sm:$0xff] }
 0x4d7   : > { %v2195_v5 = vpop.permute.xlu1 %2194  ;;  %v7079_v2 = vld [vmem:[%s14528_s3 + $0x858] sm:$0xff]  ;;  %v1346_v63 = vadd.f32 %v1314_v33, %v1088_v13 }
 0x4d8   : > { %v2279_v55 = vmul.f32 %v6983_v49, %v2195_v5  ;;  %v2619_v8 = vadd.f32 %v2587_v9, %v2516_v11  ;;  %v2054_v29 = vadd.f32 %v2022_v4, %v1861_v44  ;;  %v1859_v11 = vadd.f32 %v1827_v42, %v1601_v48  ;;  %v14761_v5 = vld [vmem:[#allocation32_spill] sm:$0xff]  ;;  %v6953_v44 = vld [vmem:[%s14528_s3 + $0x468] sm:$0xff] }
 0x4d9   : > { %v1602_v12 = vadd.f32 %v1570_v51, %v1344_v24  ;;  %v2588_v48 = vmul.f32 %v7079_v2, %v11417_v23  ;;  %v1828_v51 = vmul.f32 %v6921_v45, %v11530_v62  ;;  %v6923_v42 = vld [vmem:[%s14528_s3 + $0x378] sm:$0xff]  ;;  %v7048_v23 = vld [vmem:[%s14528_s3 + $0x760] sm:$0xff]  ;;  %v2385_v2 = vmul.f32 %v7018_v32, %v11499_v6  ;;  %v7049_v32 = vld [vmem:[%s14528_s3 + $0x768] sm:$0xff] }
 0x4da   : > { %v2311_v16 = vadd.f32 %v2279_v55, %v2051_v19  ;;  %v11702_v49 = vadd.f32 %v11156_v50, %v2619_v8  ;;  %v2020_v55 = vmul.f32 %v6952_v28, %v14761_v5  ;;  %v2282_v8 = vmul.f32 %v6986_v59, %v2201_v47  ;;  %v14762_v33 = vld [vmem:[#allocation40_spill] sm:$0xff] }
 0x4db   : > { %v1491_v9 = vpop.permute.xlu1 %1490  ;;  %v1860_v59 = vadd.f32 %v1828_v51, %v1602_v12  ;;  %v7017_v12 = vld [vmem:[%s14528_s3 + $0x668] sm:$0xff]  ;;  %v1830_v6 = vmul.f32 %v6923_v42, %v11655_v18  ;;  %v7082_v18 = vld [vmem:[%s14528_s3 + $0x870] sm:$0xff] }
 0x4dc   : > { %v2414_v19 = vadd.f32 %v2382_v35, %v2311_v16  ;;  %v1572_v31 = vmul.f32 %v6891_v22, %v1491_v9  ;;  %4087 = vrot.lane.b32.xlu1 %v11702_v49, %s9325_s29  ;;  %v7016_v35 = vld [vmem:[%s14528_s3 + $0x660] sm:$0xff]  ;;  %v2314_v40 = vadd.f32 %v2282_v8, %v2054_v29  ;;  %v2052_v28 = vadd.f32 %v2020_v55, %v1859_v11  ;;  %v6985_v29 = vld [vmem:[%s14528_s3 + $0x568] sm:$0xff]  ;;  %v6955_v11 = vld [vmem:[%s14528_s3 + $0x478] sm:$0xff] }
 0x4dd   : > { %v2021_v16 = vmul.f32 %v6953_v44, %v14762_v33 }
 0x4de   : > { %v2517_v4 = vadd.f32 %v2485_v27, %v2414_v19  ;;  %v1604_v47 = vadd.f32 %v1572_v31, %v1346_v63  ;;  %v2383_v27 = vmul.f32 %v7016_v35, %v11357_v34  ;;  %v7050_v19 = vld [vmem:[%s14528_s3 + $0x770] sm:$0xff]  ;;  %v2486_v34 = vmul.f32 %v7048_v23, %v11520_v53  ;;  %v14763_v53 = vld [vmem:[#allocation44_spill] sm:$0xff] }
 0x4df   : > { %v2197_v22 = vpop.permute.xlu1 %2196  ;;  %v2417_v44 = vadd.f32 %v2385_v2, %v2314_v40  ;;  %v2023_v42 = vmul.f32 %v6955_v11, %v14763_v53  ;;  %v2384_v40 = vmul.f32 %v7017_v12, %v11444_v0  ;;  %v6987_v23 = vld [vmem:[%s14528_s3 + $0x578] sm:$0xff] }
 0x4e0   : > { %v2280_v62 = vmul.f32 %v6984_v25, %v2197_v22  ;;  %v2620_v24 = vadd.f32 %v2588_v48, %v2517_v4  ;;  %v11737_v13 = vpop.f32.mrb[18].mxu1  ;;  %v11739_v45 = vpop.f32.mrb[50].mxu0  ;;  %v7080_v25 = vld [vmem:[%s14528_s3 + $0x860] sm:$0xff]  ;;  %v1862_v51 = vadd.f32 %v1830_v6, %v1604_v47  ;;  %v2053_v4 = vadd.f32 %v2021_v16, %v1860_v59  ;;  %v7081_v59 = vld [vmem:[%s14528_s3 + $0x868] sm:$0xff]  ;;  %v7019_v47 = vld [vmem:[%s14528_s3 + $0x678] sm:$0xff] }
 0x4e1   : > { %v11755_v5 = vpop.f32.mrb[19].mxu1  ;;  %v11757_v55 = vpop.f32.mrb[51].mxu0  ;;  %v2487_v16 = vmul.f32 %v7049_v32, %v11581_v61  ;;  %v2590_v6 = vmul.f32 %v7081_v59, %v11561_v17  ;;  %v7083_v61 = vld [vmem:[%s14528_s3 + $0x878] sm:$0xff] }
 0x4e2   : > { %v2312_v31 = vadd.f32 %v2280_v62, %v2052_v28  ;;  %v11760_v8 = vadd.f32 %v11156_v50, %v2620_v24  ;;  %v11776_v22 = vpop.permute.xlu0 %1008  ;;  %v2488_v28 = vmul.f32 %v7050_v19, %v11649_v57  ;;  %v2589_v62 = vmul.f32 %v7080_v25, %v11555_v52 }
 0x4e3   : > { %v2199_v48 = vpop.permute.xlu1 %2198  ;;  %14764 = vst [vmem:[#allocation10_spill] sm:$0xff] %v11776_v22  ;;  %v2591_v24 = vmul.f32 %v7082_v18, %v1491_v9  ;;  %v2055_v11 = vadd.f32 %v2023_v42, %v1862_v51  ;;  %v2386_v19 = vmul.f32 %v7019_v47, %v11776_v22  ;;  %v11811_v51 = vld [vmem:[%s14527_s2] ss:$0 sm:$0xff] }
 0x4e4   : > { %v2415_v63 = vadd.f32 %v2383_v27, %v2312_v31  ;;  %v2281_v35 = vmul.f32 %v6985_v29, %v2199_v48  ;;  %4089 = vrot.lane.b32.xlu0 %v11760_v8, %s9325_s29  ;;  %v2520_v57 = vadd.f32 %v2488_v28, %v2417_v44  ;;  %v7051_v31 = vld [vmem:[%s14528_s3 + $0x778] sm:$0xff]  ;;  %v11967_v54 = vadd.f32 %v11811_v51, %v14786_v26 }
 0x4e6   : > { %v2518_v0 = vadd.f32 %v2486_v34, %v2415_v63  ;;  %v2313_v33 = vadd.f32 %v2281_v35, %v2053_v4  ;;  %v2623_v52 = vadd.f32 %v2591_v24, %v2520_v57  ;;  %v11801_v44 = vpop.permute.xlu0 %1492  ;;  %v14767_v63 = vld [vmem:[#allocation11_spill] sm:$0xff]  ;;  %14787 = vst [vmem:[#allocation39_spill] sm:$0xff] %v11967_v54 }
 0x4e7   : > { %v2203_v2 = vpop.permute.xlu1 %2202  ;;  %14765 = vst [vmem:[#allocation9_spill] sm:$0xff] %v11801_v44  ;;  %v11815_v4 = vadd.f32 %v11811_v51, %v14767_v63  ;;  %v2592_v42 = vmul.f32 %v7083_v61, %v11801_v44 }
 0x4e8   : > { %v2416_v29 = vadd.f32 %v2384_v40, %v2313_v33  ;;  %v2283_v27 = vmul.f32 %v6987_v23, %v2203_v2  ;;  %v2621_v12 = vadd.f32 %v2589_v62, %v2518_v0  ;;  %v11830_v47 = vadd.f32 %v11156_v50, %v2623_v52  ;;  %v14768_v33 = vld [vmem:[#allocation18_spill] sm:$0xff] }
 0x4ea   : > { %v2519_v9 = vadd.f32 %v2487_v16, %v2416_v29  ;;  %v2315_v34 = vadd.f32 %v2283_v27, %v2055_v11  ;;  %v11796_v25 = vadd.f32 %v11156_v50, %v2621_v12  ;;  %v11839_v16 = vadd.f32 %v11811_v51, %v14768_v33 }
 0x4eb   : > { %v11803_v18 = vpop.permute.xlu1 %1234  ;;  %v11845_v11 = vpack.i.bf16 %v11815_v4, %v10940_v58 }
 0x4ec   : > { %14766 = vst [vmem:[#allocation46_spill] sm:$0xff] %v11803_v18  ;;  %v2418_v17 = vadd.f32 %v2386_v19, %v2315_v34  ;;  %v2489_v48 = vmul.f32 %v7051_v31, %v11803_v18  ;;  %4091 = vrot.lane.b32.xlu1 %v11796_v25, %s9325_s29  ;;  %v2622_v32 = vadd.f32 %v2590_v6, %v2519_v9  ;;  %v14769_v19 = vld [vmem:[#allocation20_spill] sm:$0xff] }
 0x4ed   : > { %v11817_v35 = vpop.f32.mrb[20].mxu1  ;;  %v11819_v53 = vpop.f32.mrb[52].mxu0  ;;  %v11857_v31 = vadd.f32 %v11811_v51, %v14769_v19 }
 0x4ee   : > { %v2521_v40 = vadd.f32 %v2489_v48, %v2418_v17  ;;  %v11822_v28 = vpop.f32.mrb[21].mxu1  ;;  %v11824_v23 = vpop.f32.mrb[53].mxu0  ;;  %v11827_v59 = vadd.f32 %v11156_v50, %v2622_v32  ;;  %v14772_v17 = vld [vmem:[#allocation24_spill] sm:$0xff] }
 0x4ef   : > { %v4068_v62 = vpop.permute.xlu1 %4067  ;;  %v11874_v61 = vpack.i.bf16 %v11839_v16, %v11857_v31  ;;  %v11878_v48 = vadd.f32 %v11811_v51, %v14772_v17 }
 0x4f0   : > { %v2624_v24 = vadd.f32 %v2592_v42, %v2521_v40  ;;  %v4182_v0 = vadd.f32 %v11636_v60, %v4068_v62  ;;  %4093 = vrot.lane.b32.xlu0 %v11827_v59, %s9325_s29  ;;  %4095 = vrot.lane.b32.xlu1 %v11830_v47, %s9325_s29  ;;  %v14775_v42 = vld [vmem:[#allocation28_spill] sm:$0xff] }
 0x4f1   : > { %v7918_v2 = vpop.f32.mrb[22].mxu1  ;;  %v11896_v40 = vadd.f32 %v11811_v51, %v14775_v42 }
 0x4f2   : > { %v4260_v57 = vmax.f32 %v4182_v0, 0.0  ;;  %v11841_v29 = vpop.f32.mrb[54].mxu0  ;;  %v11848_v60 = vadd.f32 %v11156_v50, %v2624_v24  ;;  %v11851_v27 = vadd.f32 %v7918_v2, %v11491_v30  ;;  %v3850_v12 = vpop.f32.mrb[23].mxu1  ;;  %v14770_v30 = vld [vmem:[#allocation23_spill] sm:$0xff]  ;;  %v14777_v24 = vld [vmem:[#allocation30_spill] sm:$0xff] }
 0x4f3   : > { %v11853_v6 = vpop.f32.mrb[55].mxu0  ;;  %v11860_v52 = vadd.f32 %v3850_v12, %v11452_v3  ;;  %v4070_v9 = vpop.permute.xlu0 %4069  ;;  %v11870_v34 = vadd.f32 %v11811_v51, %v14770_v30  ;;  %14776 = vst [vmem:[#allocation12_spill] sm:$0xff] %v11896_v40  ;;  %v11904_v0 = vadd.f32 %v11811_v51, %v14777_v24  ;;  %v14783_v24 = vld [vmem:[#allocation35_spill] sm:$0xff] }
 0x4f4   : > { %7991 = vmatprep.mubr.msk.f32.mxu1 %vm4278_vm8, %v4260_v57  ;;  %8866 = vrot.lane.b32.xlu1 %v11845_v11, %s9325_s29  ;;  %v4187_v50 = vadd.f32 %v11618_v41, %v4070_v9  ;;  %v14773_v41 = vld [vmem:[#allocation27_spill] sm:$0xff] }
 0x4f5   : > { %4097 = vrot.lane.b32.xlu0 %v11848_v60, %s9325_s29  ;;  %14771 = vst [vmem:[#allocation48_spill] sm:$0xff] %v11870_v34  ;;  %v11887_v32 = vadd.f32 %v11811_v51, %v14773_v41  ;;  %v11891_v63 = vpack.i.bf16 %v11870_v34, %v11878_v48  ;;  %14778 = vst [vmem:[#allocation49_spill] sm:$0xff] %v11904_v0 }
 0x4f6   : > { %v4261_v3 = vmax.f32 %v4187_v50, 0.0  ;;  %v14779_v50 = vld [vmem:[#allocation31_spill] sm:$0xff] }
 0x4f7   : > { %14774 = vst [vmem:[#allocation50_spill] sm:$0xff] %v11887_v32  ;;  %v11913_v2 = vpack.i.bf16 %v11887_v32, %v11896_v40  ;;  %v11922_v30 = vadd.f32 %v11811_v51, %v14779_v50 }
 0x4f8   : > { %8876 = vrot.lane.b32.xlu1 %v11874_v61, %s9325_s29  ;;  %7992 = vmatmul.mubr.msk.f32.vlgmr.msra.gmra.mrb[32].mxu1 %vm4278_vm8, %v4261_v3  ;;  %v14781_v3 = vld [vmem:[#allocation34_spill] sm:$0xff] }
 0x4f9   : > { %8871 = vrot.lane.b32.xlu0 %v11845_v11, %s9326_s15  ;;  %8498 = vmatpush3.bf16.msra.mxu1 %v11638_v15  ;;  %14780 = vst [vmem:[#allocation47_spill] sm:$0xff] %v11922_v30  ;;  %v11931_v17 = vadd.f32 %v11811_v51, %v14781_v3  ;;  %v11935_v41 = vpack.i.bf16 %v11904_v0, %v11922_v30  ;;  %v14785_v3 = vld [vmem:[#allocation37_spill] sm:$0xff] }
 0x4fb   : > { %14782 = vst [vmem:[#allocation45_spill] sm:$0xff] %v11931_v17 }
 0x4fc   : > { %8886 = vrot.lane.b32.xlu1 %v11891_v63, %s9325_s29 }
 0x4fd   : > { %v7921_v62 = vpop.f32.mrb[24].mxu1  ;;  %8881 = vrot.lane.b32.xlu0 %v11874_v61, %s9326_s15  ;;  %v11909_v57 = vpop.f32.mrb[56].mxu0 }
 0x4fe   : > { %v11907_v33 = vadd.f32 %v7921_v62, %v11600_v56  ;;  %v3860_v15 = vpop.f32.mrb[25].mxu1  ;;  %v11918_v19 = vpop.f32.mrb[57].mxu0 }
 0x4ff   : > { %v11916_v12 = vadd.f32 %v3860_v15, %v11544_v46  ;;  %v4072_v9 = vpop.permute.xlu1 %4071 }
 0x500   : > { %v4192_v56 = vadd.f32 %v11757_v55, %v4072_v9  ;;  %8896 = vrot.lane.b32.xlu1 %v11913_v2, %s9325_s29  ;;  %v11941_v55 = vadd.f32 %v11811_v51, %v14783_v24  ;;  %v11958_v24 = vadd.f32 %v11811_v51, %v14785_v3 }
 0x501   : > { %8891 = vrot.lane.b32.xlu0 %v11891_v63, %s9326_s15 }
 0x502   : > { %v4262_v46 = vmax.f32 %v4192_v56, 0.0  ;;  %14784 = vst [vmem:[#allocation51_spill] sm:$0xff] %v11941_v55  ;;  %v11979_v39 = vpack.i.bf16 %v11958_v24, %v11967_v54 }
 0x503   : > { %v7924_v42 = vpop.f32.mrb[26].mxu1  ;;  %v11937_v62 = vpop.f32.mrb[58].mxu0 }
 0x504   : > { %v11944_v15 = vadd.f32 %v7924_v42, %v11760_v8  ;;  %v3870_v9 = vpop.f32.mrb[27].mxu1  ;;  %v11946_v50 = vpop.f32.mrb[59].mxu0  ;;  %7994 = vmatprep.mubr.msk.f32.mxu1 %vm4278_vm8, %v4262_v46  ;;  %8906 = vrot.lane.b32.xlu1 %v11935_v41, %s9325_s29  ;;  %v11962_v42 = vpack.i.bf16 %v11931_v17, %v11941_v55 }
 0x505   : > { %v11952_v56 = vadd.f32 %v3870_v9, %v11702_v49  ;;  %8901 = vrot.lane.b32.xlu0 %v11913_v2, %s9326_s15  ;;  %v14788_v9 = vld [vmem:[#allocation41_spill] sm:$0xff] }
 0x506   : > { %v4074_v8 = vpop.permute.xlu0 %4073  ;;  %v11975_v3 = vadd.f32 %v11811_v51, %v14788_v9 }
 0x507   : > { %v4197_v46 = vadd.f32 %v11739_v45, %v4074_v8  ;;  %v14789_v45 = vld [vmem:[#allocation42_spill] sm:$0xff] }
 0x508   : > { %8916 = vrot.lane.b32.xlu1 %v11962_v42, %s9325_s29  ;;  %v11984_v26 = vadd.f32 %v11811_v51, %v14789_v45 }
 0x509   : > { %v4263_v49 = vmax.f32 %v4197_v46, 0.0  ;;  %8911 = vrot.lane.b32.xlu0 %v11935_v41, %s9326_s15 }
 0x50a   : > { %14790 = vst [vmem:[#allocation52_spill] sm:$0xff] %v11984_v26 }
 0x50b   : > { %7995 = vmatmul.mubr.msk.f32.gmra.mrb[34].mxu1 %vm4278_vm8, %v4263_v49  ;;  %v11999_v49 = vpack.i.bf16 %v11975_v3, %v11984_v26 }
 0x50c   : > { %8926 = vrot.lane.b32.xlu1 %v11979_v39, %s9325_s29 }
 0x50d   : > { %8921 = vrot.lane.b32.xlu0 %v11962_v42, %s9326_s15 }
 0x50e   : > { %v7927_v8 = vpop.f32.mrb[28].mxu1  ;;  %v11988_v46 = vpop.f32.mrb[60].mxu0 }
 0x50f   : > { %v11993_v9 = vadd.f32 %v7927_v8, %v11827_v59  ;;  %v3880_v1 = vpop.f32.mrb[29].mxu1  ;;  %v11995_v44 = vpop.f32.mrb[61].mxu0 }
 0x510   : > { %v12002_v51 = vadd.f32 %v3880_v1, %v11796_v25  ;;  %8936 = vrot.lane.b32.xlu1 %v11999_v49, %s9325_s29 }
 0x511   : > { %8931 = vrot.lane.b32.xlu0 %v11979_v39, %s9326_s15 }
 0x512   : > { %v4076_v45 = vpop.permute.xlu1 %4075 }
 0x513   : > { %v4202_v59 = vadd.f32 %v11824_v23, %v4076_v45 }
 0x514   : > { %4945 = vrot.lane.b32.xlu1 %v10940_v58, %s9327_s16 }
 0x515   : > { %v4264_v8 = vmax.f32 %v4202_v59, 0.0  ;;  %8941 = vrot.lane.b32.xlu0 %v11999_v49, %s9326_s15 }
 0x517   : > { %7997 = vmatprep.mubr.msk.f32.mxu1 %vm4278_vm8, %v4264_v8 }
 0x518   : > { %4949 = vrot.lane.b32.xlu1 %v11857_v31, %s9327_s16 }
 0x519   : > { %4947 = vrot.lane.b32.xlu0 %v11815_v4, %s9327_s16 }
 0x51a   : > { %v4078_v1 = vpop.permute.xlu0 %4077 }
 0x51b   : > { %v4207_v25 = vadd.f32 %v11819_v53, %v4078_v1 }
 0x51c   : > { %4953 = vrot.lane.b32.xlu1 %v11878_v48, %s9327_s16 }
 0x51d   : > { %v4265_v23 = vmax.f32 %v4207_v25, 0.0  ;;  %4951 = vrot.lane.b32.xlu0 %v11839_v16, %s9327_s16 }
 0x51f   : > { %7998 = vmatmul.mubr.msk.f32.gmra.mrb[36].mxu1 %vm4278_vm8, %v4265_v23 }
 0x520   : > { %4957 = vrot.lane.b32.xlu1 %v11896_v40, %s9327_s16 }
 0x521   : > { %4955 = vrot.lane.b32.xlu0 %v11870_v34, %s9327_s16 }
 0x524   : > { %4961 = vrot.lane.b32.xlu1 %v11922_v30, %s9327_s16 }
 0x525   : > { %4959 = vrot.lane.b32.xlu0 %v11887_v32, %s9327_s16 }
 0x526   : > { %v4080_v53 = vpop.permute.xlu1 %4079 }
 0x527   : > { %v4212_v45 = vadd.f32 %v11853_v6, %v4080_v53 }
 0x528   : > { %4965 = vrot.lane.b32.xlu1 %v11941_v55, %s9327_s16 }
 0x529   : > { %v4266_v59 = vmax.f32 %v4212_v45, 0.0  ;;  %4963 = vrot.lane.b32.xlu0 %v11904_v0, %s9327_s16 }
 0x52b   : > { %8000 = vmatprep.mubr.msk.f32.mxu1 %vm4278_vm8, %v4266_v59 }
 0x52c   : > { %4969 = vrot.lane.b32.xlu1 %v11967_v54, %s9327_s16 }
 0x52d   : > { %4967 = vrot.lane.b32.xlu0 %v11931_v17, %s9327_s16 }
 0x52e   : > { %v4082_v8 = vpop.permute.xlu0 %4081 }
 0x52f   : > { %v4217_v1 = vadd.f32 %v11841_v29, %v4082_v8 }
 0x530   : > { %4973 = vrot.lane.b32.xlu1 %v11984_v26, %s9327_s16 }
 0x531   : > { %v4267_v6 = vmax.f32 %v4217_v1, 0.0  ;;  %4971 = vrot.lane.b32.xlu0 %v11958_v24, %s9327_s16 }
 0x533   : > { %8001 = vmatmul.mubr.msk.f32.gmra.mrb[38].mxu1 %vm4278_vm8, %v4267_v6 }
 0x534   : > { %1946 = vrot.lane.b32.xlu1 %v11815_v4, %s9329_s17 }
 0x535   : > { %4975 = vrot.lane.b32.xlu0 %v11975_v3, %s9327_s16  ;;  %s5674_s16 = sld [smem:[#allocation4]] }
 0x538   : > { %1950 = vrot.lane.b32.xlu1 %v11839_v16, %s9329_s17 }
 0x539   : > { %1944 = vrot.lane.b32.xlu0 %v10940_v58, %s9329_s17 }
 0x53a   : > { %v4084_v29 = vpop.permute.xlu1 %4083 }
 0x53b   : > { %v4222_v25 = vadd.f32 %v11918_v19, %v4084_v29 }
 0x53c   : > { %1954 = vrot.lane.b32.xlu1 %v11870_v34, %s9329_s17 }
 0x53d   : > { %v4268_v23 = vmax.f32 %v4222_v25, 0.0  ;;  %1948 = vrot.lane.b32.xlu0 %v11857_v31, %s9329_s17  ;;  %v12061_v53 = vpop.f32.mrb[30].mxu1 }
 0x53e   : > { %v7986_v45 = vpop.f32.mrb[62].mxu0  ;;  %v12063_v59 = vpop.f32.mrb[31].mxu1 }
 0x53f   : > { %v4251_v8 = vpop.f32.mrb[63].mxu0  ;;  %8003 = vmatprep.mubr.msk.f32.mxu1 %vm4278_vm8, %v4268_v23 }
 0x540   : > { %1958 = vrot.lane.b32.xlu1 %v11887_v32, %s9329_s17 }
 0x541   : > { %1952 = vrot.lane.b32.xlu0 %v11878_v48, %s9329_s17 }
 0x542   : > { %v4086_v19 = vpop.permute.xlu0 %4085 }
 0x543   : > { %v4227_v1 = vadd.f32 %v11909_v57, %v4086_v19 }
 0x544   : > { %1962 = vrot.lane.b32.xlu1 %v11904_v0, %s9329_s17 }
 0x545   : > { %v4269_v6 = vmax.f32 %v4227_v1, 0.0  ;;  %1956 = vrot.lane.b32.xlu0 %v11896_v40, %s9329_s17 }
 0x547   : > { %8004 = vmatmul.mubr.msk.f32.gmra.mrb[40].mxu1 %vm4278_vm8, %v4269_v6 }
 0x548   : > { %1966 = vrot.lane.b32.xlu1 %v11931_v17, %s9329_s17 }
 0x549   : > { %1960 = vrot.lane.b32.xlu0 %v11922_v30, %s9329_s17 }
 0x54c   : > { %1970 = vrot.lane.b32.xlu1 %v11958_v24, %s9329_s17 }
 0x54d   : > { %1964 = vrot.lane.b32.xlu0 %v11941_v55, %s9329_s17 }
 0x54e   : > { %v4088_v57 = vpop.permute.xlu1 %4087 }
 0x54f   : > { %v4232_v29 = vadd.f32 %v11946_v50, %v4088_v57 }
 0x550   : > { %1974 = vrot.lane.b32.xlu1 %v11975_v3, %s9329_s17 }
 0x551   : > { %v4270_v25 = vmax.f32 %v4232_v29, 0.0  ;;  %1968 = vrot.lane.b32.xlu0 %v11967_v54, %s9329_s17 }
 0x553   : > { %8006 = vmatprep.mubr.msk.f32.mxu1 %vm4278_vm8, %v4270_v25 }
 0x554   : > { %8946 = vrot.lane.b32.xlu1 %v11845_v11, %s9328_s30 }
 0x555   : > { %1972 = vrot.lane.b32.xlu0 %v11984_v26, %s9329_s17 }
 0x556   : > { %v4090_v23 = vpop.permute.xlu0 %4089 }
 0x557   : > { %v4237_v19 = vadd.f32 %v11937_v62, %v4090_v23 }
 0x558   : > { %8956 = vrot.lane.b32.xlu1 %v11891_v63, %s9328_s30 }
 0x559   : > { %v4271_v50 = vmax.f32 %v4237_v19, 0.0  ;;  %8951 = vrot.lane.b32.xlu0 %v11874_v61, %s9328_s30  ;;  %v3821_v19 = vadd.f32 %v11634_v38, %v11172_v43 }
 0x55b   : > { %8007 = vmatmul.mubr.msk.f32.gmra.mrb[42].mxu1 %vm4278_vm8, %v4271_v50 }
 0x55e   : > { %v4092_v1 = vpop.permute.xlu1 %4091 }
 0x55f   : > { %v4242_v6 = vadd.f32 %v11995_v44, %v4092_v1 }
 0x561   : > { %v4272_v57 = vmax.f32 %v4242_v6, 0.0 }
 0x562   : > { %v4096_v11 = vpop.permute.xlu1 %4095  ;;  %v4094_v29 = vpop.permute.xlu0 %4093 }
 0x563   : > { %v4252_v25 = vadd.f32 %v4251_v8, %v4096_v11  ;;  %v4247_v22 = vadd.f32 %v11988_v46, %v4094_v29  ;;  %8009 = vmatprep.mubr.msk.f32.mxu1 %vm4278_vm8, %v4272_v57  ;;  %v3826_v46 = vadd.f32 %v11616_v7, %v11213_v14  ;;  %v3899_v57 = vmax.f32 %v3821_v19, 0.0 }
 0x565   : > { %v4274_v62 = vmax.f32 %v4252_v25, 0.0  ;;  %v4273_v23 = vmax.f32 %v4247_v22, 0.0  ;;  %v3831_v22 = vadd.f32 %v11755_v5, %v11266_v36  ;;  %v3900_v7 = vmax.f32 %v3826_v46, 0.0 }
 0x566   : > { %v8867_v63 = vpop.permute.xlu1 %8866  ;;  %v3836_v36 = vadd.f32 %v11737_v13, %v11307_v20 }
 0x567   : > { %v8869_v61 = vunpack.i.h.bf16 %v8867_v63  ;;  %v8868_v18 = vunpack.i.l.bf16 %v8867_v63  ;;  %v4098_v50 = vpop.permute.xlu0 %4097  ;;  %8010 = vmatmul.mubr.msk.f32.gmra.mrb[44].mxu1 %vm4278_vm8, %v4273_v23  ;;  %v3841_v23 = vadd.f32 %v11822_v28, %v11360_v37  ;;  %v3846_v37 = vadd.f32 %v11817_v35, %v11399_v21 }
 0x568   : > { %v4257_v44 = vadd.f32 %v7986_v45, %v4098_v50  ;;  %8012 = vmatprep.mubr.msk.f32.mxu1 %vm4278_vm8, %v4274_v62  ;;  %v3901_v62 = vmax.f32 %v3831_v22, 0.0  ;;  %v3902_v20 = vmax.f32 %v3836_v36, 0.0  ;;  %v3905_v35 = vmax.f32 %v11860_v52, 0.0 }
 0x569   : > { %v8499_v1 = vpack.c.bf16 %v8869_v61, %v8868_v18  ;;  %v3904_v22 = vmax.f32 %v3846_v37, 0.0 }
 0x56a   : > { %v4275_v8 = vmax.f32 %v4257_v44, 0.0  ;;  %v8877_v6 = vpop.permute.xlu1 %8876 }
 0x56b   : > { %v8879_v11 = vunpack.i.h.bf16 %v8877_v6  ;;  %v8878_v43 = vunpack.i.l.bf16 %v8877_v6  ;;  %v8872_v38 = vpop.permute.xlu0 %8871  ;;  %8501 = vmatprep.subr.msk.bf16.mxu0 %vm9747_vm2, %v8499_v1 }
 0x56c   : > { %v8874_v25 = vunpack.i.h.bf16 %v8872_v38  ;;  %v8873_v45 = vunpack.i.l.bf16 %v8872_v38  ;;  %8013 = vmatmul.mubr.msk.f32.gmra.mrb[46].mxu1 %vm4278_vm8, %v4275_v8  ;;  %8504 = vmatpush3.bf16.xpose.msk.msra.mxu0 %vm9747_vm2, %v8499_v1  ;;  %v3903_v1 = vmax.f32 %v3841_v23, 0.0  ;;  %v3909_v23 = vmax.f32 %v11952_v56, 0.0 }
 0x56d   : > { %v8505_v14 = vpack.c.bf16 %v8879_v11, %v8878_v43  ;;  %8019 = vmatprep.mubr.msk.f32.mxu1 %vm4278_vm8, %v3899_v57  ;;  %v3891_v56 = vadd.f32 %v12063_v59, %v11830_v47 }
 0x56e   : > { %v8547_v5 = vpack.c.bf16 %v8874_v25, %v8873_v45  ;;  %v8887_v18 = vpop.permute.xlu1 %8886  ;;  %v3906_v45 = vmax.f32 %v11851_v27, 0.0 }
 0x56f   : > { %v8882_v63 = vpop.permute.xlu0 %8881  ;;  %8507 = vmatprep.subr.msk.bf16.mxu0 %vm9747_vm2, %v8505_v14  ;;  %v8889_v19 = vunpack.i.h.bf16 %v8887_v18  ;;  %v8888_v61 = vunpack.i.l.bf16 %v8887_v18 }
 0x570   : > { %v8884_v50 = vunpack.i.h.bf16 %v8882_v63  ;;  %v8883_v44 = vunpack.i.l.bf16 %v8882_v63  ;;  %8020 = vmatmul.mubr.msk.f32.vlgmr.msra.gmra.mrb[32].mxu1 %vm4278_vm8, %v3900_v7  ;;  %8549 = vmatprep.subr.msk.bf16.mxu1 %vm9747_vm2, %v8547_v5  ;;  %v3907_v7 = vmax.f32 %v11916_v12, 0.0 }
 0x571   : > { %8022 = vmatprep.mubr.msk.f32.mxu1 %vm4278_vm8, %v3901_v62  ;;  %8552 = vmatpush3.bf16.xpose.msk.msra.mxu1 %vm9747_vm2, %v8547_v5  ;;  %v8511_v8 = vpack.c.bf16 %v8889_v19, %v8888_v61  ;;  %v3908_v62 = vmax.f32 %v11907_v33, 0.0 }
 0x572   : > { %v8553_v13 = vpack.c.bf16 %v8884_v50, %v8883_v44  ;;  %v8897_v28 = vpop.permute.xlu1 %8896  ;;  %v3910_v50 = vmax.f32 %v11944_v15, 0.0  ;;  %v3911_v44 = vmax.f32 %v12002_v51, 0.0  ;;  %v3912_v15 = vmax.f32 %v11993_v9, 0.0 }
 0x573   : > { %v8892_v46 = vpop.permute.xlu0 %8891  ;;  %v8899_v43 = vunpack.i.h.bf16 %v8897_v28  ;;  %v8898_v38 = vunpack.i.l.bf16 %v8897_v28  ;;  %v3913_v51 = vmax.f32 %v3891_v56, 0.0 }
 0x574   : > { %v8894_v6 = vunpack.i.h.bf16 %v8892_v46  ;;  %v8893_v57 = vunpack.i.l.bf16 %v8892_v46  ;;  %8023 = vmatmul.mubr.msk.f32.gmra.mrb[34].mxu1 %vm4278_vm8, %v3902_v20  ;;  %8555 = vmatprep.subr.msk.bf16.mxu1 %vm9747_vm2, %v8553_v13 }
 0x575   : > { %8025 = vmatprep.mubr.msk.f32.mxu1 %vm4278_vm8, %v3903_v1  ;;  %8510 = vmatpush3.bf16.xpose.msk.msra.mxu0 %vm9747_vm2, %v8505_v14  ;;  %v8517_v36 = vpack.c.bf16 %v8899_v43, %v8898_v38  ;;  %v3896_v1 = vadd.f32 %v12061_v53, %v11848_v60 }
 0x576   : > { %8513 = vmatprep.subr.msk.bf16.mxu0 %vm9747_vm2, %v8511_v8  ;;  %v8907_v21 = vpop.permute.xlu1 %8906  ;;  %v8559_v25 = vpack.c.bf16 %v8894_v6, %v8893_v57 }
 0x577   : > { %v8902_v11 = vpop.permute.xlu0 %8901  ;;  %v8909_v63 = vunpack.i.h.bf16 %v8907_v21  ;;  %v8908_v19 = vunpack.i.l.bf16 %v8907_v21  ;;  %v3914_v9 = vmax.f32 %v3896_v1, 0.0 }
 0x578   : > { %8026 = vmatmul.mubr.msk.f32.gmra.mrb[36].mxu1 %vm4278_vm8, %v3904_v22  ;;  %v8904_v5 = vunpack.i.h.bf16 %v8902_v11  ;;  %v8903_v18 = vunpack.i.l.bf16 %v8902_v11 }
 0x579   : > { %8028 = vmatprep.mubr.msk.f32.mxu1 %vm4278_vm8, %v3905_v35  ;;  %8558 = vmatpush3.bf16.xpose.msk.msra.mxu1 %vm9747_vm2, %v8553_v13  ;;  %v8523_v37 = vpack.c.bf16 %v8909_v63, %v8908_v19 }
 0x57a   : > { %8561 = vmatprep.subr.msk.bf16.mxu1 %vm9747_vm2, %v8559_v25  ;;  %v8917_v14 = vpop.permute.xlu1 %8916  ;;  %v8565_v61 = vpack.c.bf16 %v8904_v5, %v8903_v18 }
 0x57b   : > { %v8912_v52 = vpop.permute.xlu0 %8911  ;;  %v8919_v46 = vunpack.i.h.bf16 %v8917_v14 }
 0x57c   : > { %8029 = vmatmul.mubr.msk.f32.gmra.mrb[38].mxu1 %vm4278_vm8, %v3906_v45  ;;  %v8914_v13 = vunpack.i.h.bf16 %v8912_v52  ;;  %v8913_v28 = vunpack.i.l.bf16 %v8912_v52 }
 0x57d   : > { %8031 = vmatprep.mubr.msk.f32.mxu1 %vm4278_vm8, %v3907_v7  ;;  %8516 = vmatpush3.bf16.xpose.msk.msra.mxu0 %vm9747_vm2, %v8511_v8  ;;  %v8918_v8 = vunpack.i.l.bf16 %v8917_v14 }
 0x57e   : > { %8519 = vmatprep.subr.msk.bf16.mxu0 %vm9747_vm2, %v8517_v36  ;;  %v8927_v27 = vpop.permute.xlu1 %8926  ;;  %v8571_v6 = vpack.c.bf16 %v8914_v13, %v8913_v28 }
 0x57f   : > { %v8922_v12 = vpop.permute.xlu0 %8921  ;;  %v8529_v57 = vpack.c.bf16 %v8919_v46, %v8918_v8  ;;  %v8929_v43 = vunpack.i.h.bf16 %v8927_v27  ;;  %v8928_v38 = vunpack.i.l.bf16 %v8927_v27 }
 0x580   : > { %8032 = vmatmul.mubr.msk.f32.gmra.mrb[40].mxu1 %vm4278_vm8, %v3908_v62  ;;  %v8924_v22 = vunpack.i.h.bf16 %v8922_v12  ;;  %v8923_v21 = vunpack.i.l.bf16 %v8922_v12 }
 0x581   : > { %8034 = vmatprep.mubr.msk.f32.mxu1 %vm4278_vm8, %v3909_v23  ;;  %8564 = vmatpush3.bf16.xpose.msk.msra.mxu1 %vm9747_vm2, %v8559_v25  ;;  %v8535_v7 = vpack.c.bf16 %v8929_v43, %v8928_v38 }
 0x582   : > { %8567 = vmatprep.subr.msk.bf16.mxu1 %vm9747_vm2, %v8565_v61  ;;  %v8937_v33 = vpop.permute.xlu1 %8936  ;;  %v8577_v25 = vpack.c.bf16 %v8924_v22, %v8923_v21 }
 0x583   : > { %v8932_v20 = vpop.permute.xlu0 %8931  ;;  %v8939_v62 = vunpack.i.h.bf16 %v8937_v33  ;;  %v8938_v27 = vunpack.i.l.bf16 %v8937_v33 }
 0x584   : > { %8035 = vmatmul.mubr.msk.f32.gmra.mrb[42].mxu1 %vm4278_vm8, %v3910_v50  ;;  %v8934_v52 = vunpack.i.h.bf16 %v8932_v20 }
 0x585   : > { %8037 = vmatprep.mubr.msk.f32.mxu1 %vm4278_vm8, %v3911_v44  ;;  %8522 = vmatpush3.bf16.xpose.msk.msra.mxu0 %vm9747_vm2, %v8517_v36  ;;  %v8933_v36 = vunpack.i.l.bf16 %v8932_v20  ;;  %v8541_v19 = vpack.c.bf16 %v8939_v62, %v8938_v27  ;;  %v7220_v62 = vld [vmem:[%s14537_s12] ss:$0 sm:$0xff] }
 0x586   : > { %8525 = vmatprep.subr.msk.bf16.mxu0 %vm9747_vm2, %v8523_v37  ;;  %v4946_v47 = vpop.permute.xlu1 %4945 }
 0x587   : > { %v8942_v59 = vpop.permute.xlu0 %8941  ;;  %v8583_v23 = vpack.c.bf16 %v8934_v52, %v8933_v36 }
 0x588   : > { %8038 = vmatmul.mubr.msk.f32.gmra.mrb[44].mxu1 %vm4278_vm8, %v3912_v15  ;;  %v8943_v50 = vunpack.i.l.bf16 %v8942_v59 }
 0x589   : > { %8040 = vmatprep.mubr.msk.f32.mxu1 %vm4278_vm8, %v3913_v51  ;;  %8570 = vmatpush3.bf16.xpose.msk.msra.mxu1 %vm9747_vm2, %v8565_v61  ;;  %v8944_v61 = vunpack.i.h.bf16 %v8942_v59 }
 0x58a   : > { %8573 = vmatprep.subr.msk.bf16.mxu1 %vm9747_vm2, %v8571_v6  ;;  %v4950_v60 = vpop.permute.xlu1 %4949 }
 0x58b   : > { %v4948_v53 = vpop.permute.xlu0 %4947  ;;  %v8589_v56 = vpack.c.bf16 %v8944_v61, %v8943_v50 }
 0x58c   : > { %8041 = vmatmul.mubr.msk.f32.gmra.mrb[46].mxu1 %vm4278_vm8, %v3914_v9 }
 0x58d   : > { %8528 = vmatpush3.bf16.xpose.msk.msra.mxu0 %vm9747_vm2, %v8523_v37  ;;  %8131 = vmatprep.mubr.msk.f32.mxu1 %vm2728_vm1, %v4946_v47 }
 0x58e   : > { %8531 = vmatprep.subr.msk.bf16.mxu0 %vm9747_vm2, %v8529_v57  ;;  %v4954_v35 = vpop.permute.xlu1 %4953 }
 0x58f   : > { %v4952_v11 = vpop.permute.xlu0 %4951 }
 0x591   : > { %8576 = vmatpush3.bf16.xpose.msk.msra.mxu1 %vm9747_vm2, %v8571_v6 }
 0x592   : > { %8579 = vmatprep.subr.msk.bf16.mxu1 %vm9747_vm2, %v8577_v25  ;;  %v12191_v45 = vpop.permute.xlu1 %4957 }
 0x593   : > { %v4956_v14 = vpop.permute.xlu0 %4955 }
 0x595   : > { %8534 = vmatpush3.bf16.xpose.msk.msra.mxu0 %vm9747_vm2, %v8529_v57 }
 0x596   : > { %8537 = vmatprep.subr.msk.bf16.mxu0 %vm9747_vm2, %v8535_v7  ;;  %v12197_v5 = vpop.permute.xlu1 %4961 }
 0x597   : > { %v4960_v18 = vpop.permute.xlu0 %4959 }
 0x599   : > { %8582 = vmatpush3.bf16.xpose.msk.msra.mxu1 %vm9747_vm2, %v8577_v25 }
 0x59a   : > { %8585 = vmatprep.subr.msk.bf16.mxu1 %vm9747_vm2, %v8583_v23  ;;  %v12203_v12 = vpop.permute.xlu1 %4965 }
 0x59b   : > { %v12205_v63 = vpop.permute.xlu0 %4963 }
 0x59d   : > { %8540 = vmatpush3.bf16.xpose.msk.msra.mxu0 %vm9747_vm2, %v8535_v7 }
 0x59e   : > { %8543 = vmatprep.subr.msk.bf16.mxu0 %vm9747_vm2, %v8541_v19  ;;  %v12211_v33 = vpop.permute.xlu1 %4969 }
 0x59f   : > { %v12213_v44 = vpop.permute.xlu0 %4967 }
 0x5a1   : > { %8588 = vmatpush3.bf16.xpose.msk.msra.mxu1 %vm9747_vm2, %v8583_v23 }
 0x5a2   : > { %8591 = vmatprep.subr.msk.bf16.mxu1 %vm9747_vm2, %v8589_v56  ;;  %v12219_v20 = vpop.permute.xlu1 %4973 }
 0x5a3   : > { %v12221_v37 = vpop.permute.xlu0 %4971 }
 0x5a5   : > { %8546 = vmatpush3.bf16.xpose.msk.msra.mxu0 %vm9747_vm2, %v8541_v19 }
 0x5a6   : > { %v12225_v13 = vpop.permute.xlu1 %1946 }
 0x5a7   : > { %14792 = vst [vmem:[#allocation54_spill] sm:$0xff] %v12225_v13  ;;  %v12227_v28 = vpop.permute.xlu0 %4975 }
 0x5a9   : > { %8594 = vmatpush3.bf16.xpose.msk.msra.mxu1 %vm9747_vm2, %v8589_v56 }
 0x5aa   : > { %v12231_v15 = vpop.permute.xlu1 %1950 }
 0x5ab   : > { %14793 = vst [vmem:[#allocation14_spill] sm:$0xff] %v12231_v15  ;;  %v12233_v1 = vpop.permute.xlu0 %1944 }
 0x5ac   : > { %14794 = vst [vmem:[#allocation53_spill] sm:$0xff] %v12233_v1  ;;  %v8595_v47 = vpack.c.bf16 %v12225_v13, %v12233_v1  ;;  %8076 = vmatmul.mubr.msk.f32.vlgmr.msra.gmra.mrb[64].mxu0 %vm2728_vm1, %v11815_v4 }
 0x5ad   : > { %8078 = vmatprep.mubr.msk.f32.mxu0 %vm2728_vm1, %v11857_v31 }
 0x5ae   : > { %8596 = vmatprep.subr.bf16.mxu0 %v8595_v47  ;;  %v12241_v51 = vpop.permute.xlu1 %1954 }
 0x5af   : > { %14795 = vst [vmem:[#allocation15_spill] sm:$0xff] %v12241_v51  ;;  %8598 = vmatpush3.bf16.msra.mxu0 %v8595_v47  ;;  %v12243_v59 = vpop.permute.xlu0 %1948 }
 0x5b0   : > { %14796 = vst [vmem:[#allocation16_spill] sm:$0xff] %v12243_v59  ;;  %v8599_v29 = vpack.c.bf16 %v12231_v15, %v12243_v59  ;;  %8079 = vmatmul.mubr.msk.f32.gmra.mrb[66].mxu0 %vm2728_vm1, %v11839_v16  ;;  %8132 = vmatmul.mubr.msk.f32.vlgmr.msra.gmra.mrb[48].mxu1 %vm2728_vm1, %v4948_v53 }
 0x5b1   : > { %8081 = vmatprep.mubr.msk.f32.mxu0 %vm2728_vm1, %v11878_v48  ;;  %8134 = vmatprep.mubr.msk.f32.mxu1 %vm2728_vm1, %v4950_v60 }
 0x5b2   : > { %8600 = vmatprep.subr.bf16.mxu0 %v8599_v29  ;;  %v12253_v46 = vpop.permute.xlu1 %1958 }
 0x5b3   : > { %14797 = vst [vmem:[#allocation19_spill] sm:$0xff] %v12253_v46  ;;  %8602 = vmatpush3.bf16.msra.mxu0 %v8599_v29  ;;  %v12255_v8 = vpop.permute.xlu0 %1952 }
 0x5b4   : > { %14798 = vst [vmem:[#allocation22_spill] sm:$0xff] %v12255_v8  ;;  %v8603_v6 = vpack.c.bf16 %v12241_v51, %v12255_v8  ;;  %8082 = vmatmul.mubr.msk.f32.gmra.mrb[68].mxu0 %vm2728_vm1, %v11870_v34  ;;  %8135 = vmatmul.mubr.msk.f32.gmra.mrb[50].mxu1 %vm2728_vm1, %v4952_v11 }
 0x5b5   : > { %8084 = vmatprep.mubr.msk.f32.mxu0 %vm2728_vm1, %v11896_v40  ;;  %8137 = vmatprep.mubr.msk.f32.mxu1 %vm2728_vm1, %v4954_v35 }
 0x5b6   : > { %8604 = vmatprep.subr.bf16.mxu0 %v8603_v6  ;;  %v12265_v9 = vpop.permute.xlu1 %1962 }
 0x5b7   : > { %14799 = vst [vmem:[#allocation25_spill] sm:$0xff] %v12265_v9  ;;  %8606 = vmatpush3.bf16.msra.mxu0 %v8603_v6  ;;  %v12267_v60 = vpop.permute.xlu0 %1956 }
 0x5b8   : > { %14800 = vst [vmem:[#allocation17_spill] sm:$0xff] %v12267_v60  ;;  %v8607_v53 = vpack.c.bf16 %v12253_v46, %v12267_v60  ;;  %8085 = vmatmul.mubr.msk.f32.gmra.mrb[70].mxu0 %vm2728_vm1, %v11887_v32  ;;  %8138 = vmatmul.mubr.msk.f32.gmra.mrb[52].mxu1 %vm2728_vm1, %v4956_v14  ;;  %v7295_v32 = vld [vmem:[%s14530_s5 + $0xb8] sm:$0xff] }
 0x5b9   : > { %8087 = vmatprep.mubr.msk.f32.mxu0 %vm2728_vm1, %v11922_v30  ;;  %8140 = vmatprep.mubr.msk.f32.mxu1 %vm2728_vm1, %v12191_v45 }
 0x5ba   : > { %8608 = vmatprep.subr.bf16.mxu0 %v8607_v53  ;;  %v12278_v57 = vpop.permute.xlu1 %1966 }
 0x5bb   : > { %14801 = vst [vmem:[#allocation29_spill] sm:$0xff] %v12278_v57  ;;  %8610 = vmatpush3.bf16.msra.mxu0 %v8607_v53  ;;  %v12280_v22 = vpop.permute.xlu0 %1960 }
 0x5bc   : > { %14802 = vst [vmem:[#allocation21_spill] sm:$0xff] %v12280_v22  ;;  %v8611_v21 = vpack.c.bf16 %v12265_v9, %v12280_v22  ;;  %8088 = vmatmul.mubr.msk.f32.gmra.mrb[72].mxu0 %vm2728_vm1, %v11904_v0  ;;  %8141 = vmatmul.mubr.msk.f32.gmra.mrb[54].mxu1 %vm2728_vm1, %v4960_v18  ;;  %v7288_v22 = vld [vmem:[%s14530_s5 + $0x80] sm:$0xff] }
 0x5bd   : > { %8090 = vmatprep.mubr.msk.f32.mxu0 %vm2728_vm1, %v11941_v55  ;;  %8143 = vmatprep.mubr.msk.f32.mxu1 %vm2728_vm1, %v12197_v5 }
 0x5be   : > { %8612 = vmatprep.subr.bf16.mxu0 %v8611_v21  ;;  %v12291_v35 = vpop.permute.xlu1 %1970 }
 0x5bf   : > { %14803 = vst [vmem:[#allocation33_spill] sm:$0xff] %v12291_v35  ;;  %8614 = vmatpush3.bf16.msra.mxu0 %v8611_v21  ;;  %v12293_v11 = vpop.permute.xlu0 %1964 }
 0x5c0   : > { %14804 = vst [vmem:[#allocation26_spill] sm:$0xff] %v12293_v11  ;;  %v8615_v43 = vpack.c.bf16 %v12278_v57, %v12293_v11  ;;  %8091 = vmatmul.mubr.msk.f32.gmra.mrb[74].mxu0 %vm2728_vm1, %v11931_v17  ;;  %8144 = vmatmul.mubr.msk.f32.gmra.mrb[56].mxu1 %vm2728_vm1, %v12205_v63 }
 0x5c1   : > { %8093 = vmatprep.mubr.msk.f32.mxu0 %vm2728_vm1, %v11967_v54  ;;  %8146 = vmatprep.mubr.msk.f32.mxu1 %vm2728_vm1, %v12203_v12 }
 0x5c2   : > { %8616 = vmatprep.subr.bf16.mxu0 %v8615_v43  ;;  %v12305_v38 = vpop.permute.xlu1 %1974 }
 0x5c3   : > { %14805 = vst [vmem:[#allocation36_spill] sm:$0xff] %v12305_v38  ;;  %8618 = vmatpush3.bf16.msra.mxu0 %v8615_v43  ;;  %v12307_v25 = vpop.permute.xlu0 %1968 }
 0x5c4   : > { %14806 = vst [vmem:[#allocation43_spill] sm:$0xff] %v12307_v25  ;;  %v8619_v45 = vpack.c.bf16 %v12291_v35, %v12307_v25  ;;  %8094 = vmatmul.mubr.msk.f32.gmra.mrb[76].mxu0 %vm2728_vm1, %v11958_v24  ;;  %8147 = vmatmul.mubr.msk.f32.gmra.mrb[58].mxu1 %vm2728_vm1, %v12213_v44 }
 0x5c5   : > { %8096 = vmatprep.mubr.msk.f32.mxu0 %vm2728_vm1, %v11984_v26  ;;  %8149 = vmatprep.mubr.msk.f32.mxu1 %vm2728_vm1, %v12211_v33 }
 0x5c6   : > { %8620 = vmatprep.subr.bf16.mxu0 %v8619_v45  ;;  %v8947_v14 = vpop.permute.xlu1 %8946 }
 0x5c7   : > { %v8949_v7 = vunpack.i.h.bf16 %v8947_v14  ;;  %v8948_v52 = vunpack.i.l.bf16 %v8947_v14  ;;  %8622 = vmatpush3.bf16.msra.mxu0 %v8619_v45  ;;  %v12319_v36 = vpop.permute.xlu0 %1972 }
 0x5c8   : > { %14807 = vst [vmem:[#allocation32_spill] sm:$0xff] %v12319_v36  ;;  %v8623_v5 = vpack.c.bf16 %v12305_v38, %v12319_v36  ;;  %8097 = vmatmul.mubr.msk.f32.gmra.mrb[78].mxu0 %vm2728_vm1, %v11975_v3  ;;  %8150 = vmatmul.mubr.msk.f32.gmra.mrb[60].mxu1 %vm2728_vm1, %v12221_v37 }
 0x5c9   : > { %8152 = vmatprep.mubr.msk.f32.mxu1 %vm2728_vm1, %v12219_v20  ;;  %v12329_v18 = vpack.c.bf16 %v8949_v7, %v8948_v52 }
 0x5ca   : > { %8624 = vmatprep.subr.bf16.mxu0 %v8623_v5 }
 0x5cb   : > { %14808 = vst [vmem:[#allocation40_spill] sm:$0xff] %v12329_v18  ;;  %8626 = vmatpush3.bf16.msra.mxu0 %v8623_v5 }
 0x5cc   : > { %8153 = vmatmul.mubr.msk.f32.gmra.mrb[62].mxu1 %vm2728_vm1, %v12227_v28  ;;  %8628 = vmatprep.subr.bf16.mxu0 %v12329_v18 }
 0x643   : > { %v8021_v27 = vpop.f32.mrb[32].mxu1 }
 0x644   : > { %v4673_v23 = vadd.f32 %v8021_v27, %v7220_v62  ;;  %v4586_v12 = vpop.f32.mrb[33].mxu1 }
 0x645   : > { %v4672_v63 = vadd.f32 %v7220_v62, %v4586_v12 }
 0x646   : > { %4689 = vst.msk [vmem:[%s12342_s28 + $0x8] sm:$0xff] %vm526_vm0, %v4673_v23 }
 0x647   : > { %4688 = vst.msk [vmem:[%s12342_s28] sm:$0xff] %vm526_vm0, %v4672_v63  ;;  %v8024_v19 = vpop.f32.mrb[34].mxu1 }
 0x648   : > { %v4675_v61 = vadd.f32 %v8024_v19, %v7220_v62  ;;  %v4596_v50 = vpop.f32.mrb[35].mxu1 }
 0x649   : > { %v4674_v33 = vadd.f32 %v7220_v62, %v4596_v50 }
 0x64a   : > { %4691 = vst.msk [vmem:[%s12342_s28 + $0x18] sm:$0xff] %vm526_vm0, %v4675_v61 }
 0x64b   : > { %4690 = vst.msk [vmem:[%s12342_s28 + $0x10] sm:$0xff] %vm526_vm0, %v4674_v33  ;;  %v8027_v44 = vpop.f32.mrb[36].mxu1 }
 0x64c   : > { %v4677_v56 = vadd.f32 %v8027_v44, %v7220_v62  ;;  %v4606_v20 = vpop.f32.mrb[37].mxu1 }
 0x64d   : > { %v4676_v37 = vadd.f32 %v7220_v62, %v4606_v20  ;;  %v12376_v20 = vstv %s5218_s20 }
 0x64e   : > { %4693 = vst.msk [vmem:[%s12342_s28 + $0x28] sm:$0xff] %vm526_vm0, %v4677_v56 }
 0x64f   : > { %4692 = vst.msk [vmem:[%s12342_s28 + $0x20] sm:$0xff] %vm526_vm0, %v4676_v37  ;;  %v8030_v28 = vpop.f32.mrb[38].mxu1  ;;  %v12378_v37 = vstv %s7286_s18 }
 0x650   : > { %v4679_v47 = vadd.f32 %v8030_v28, %v7220_v62  ;;  %v4616_v29 = vpop.f32.mrb[39].mxu1  ;;  %v12380_v28 = vstv %s7285_s19 }
 0x651   : > { %v4678_v6 = vadd.f32 %v7220_v62, %v4616_v29 }
 0x652   : > { %4695 = vst.msk [vmem:[%s12342_s28 + $0x38] sm:$0xff] %vm526_vm0, %v4679_v47  ;;  %v12382_v47 = vstv %s7287_s21 }
 0x653   : > { %4694 = vst.msk [vmem:[%s12342_s28 + $0x30] sm:$0xff] %vm526_vm0, %v4678_v6  ;;  %v8033_v53 = vpop.f32.mrb[40].mxu1 }
 0x654   : > { %v4681_v21 = vadd.f32 %v8033_v53, %v7220_v62  ;;  %v4626_v43 = vpop.f32.mrb[41].mxu1 }
 0x655   : > { %v4680_v45 = vadd.f32 %v7220_v62, %v4626_v43 }
 0x656   : > { %4697 = vst.msk [vmem:[%s12342_s28 + $0x48] sm:$0xff] %vm526_vm0, %v4681_v21 }
 0x657   : > { %4696 = vst.msk [vmem:[%s12342_s28 + $0x40] sm:$0xff] %vm526_vm0, %v4680_v45  ;;  %v8036_v14 = vpop.f32.mrb[42].mxu1 }
 0x658   : > { %v4683_v7 = vadd.f32 %v8036_v14, %v7220_v62  ;;  %v4636_v52 = vpop.f32.mrb[43].mxu1 }
 0x659   : > { %v4682_v5 = vadd.f32 %v7220_v62, %v4636_v52 }
 0x65a   : > { %4699 = vst.msk [vmem:[%s12342_s28 + $0x58] sm:$0xff] %vm526_vm0, %v4683_v7 }
 0x65b   : > { %4698 = vst.msk [vmem:[%s12342_s28 + $0x50] sm:$0xff] %vm526_vm0, %v4682_v5  ;;  %v8039_v27 = vpop.f32.mrb[44].mxu1 }
 0x65c   : > { %v4685_v23 = vadd.f32 %v8039_v27, %v7220_v62  ;;  %v4646_v12 = vpop.f32.mrb[45].mxu1 }
 0x65d   : > { %v4684_v63 = vadd.f32 %v7220_v62, %v4646_v12 }
 0x65e   : > { %4701 = vst.msk [vmem:[%s12342_s28 + $0x68] sm:$0xff] %vm526_vm0, %v4685_v23 }
 0x65f   : > { %4700 = vst.msk [vmem:[%s12342_s28 + $0x60] sm:$0xff] %vm526_vm0, %v4684_v63  ;;  %v8042_v19 = vpop.f32.mrb[46].mxu1 }
 0x660   : > { %v4687_v61 = vadd.f32 %v8042_v19, %v7220_v62  ;;  %v4656_v50 = vpop.f32.mrb[47].mxu1 }
 0x661   : > { %v4686_v33 = vadd.f32 %v7220_v62, %v4656_v50 }
 0x662   : > { %4703 = vst.msk [vmem:[%s12342_s28 + $0x78] sm:$0xff] %vm526_vm0, %v4687_v61 }
 0x663   : > { %4702 = vst.msk [vmem:[%s12342_s28 + $0x70] sm:$0xff] %vm526_vm0, %v4686_v33  ;;  %v7289_v33 = vld [vmem:[%s14530_s5 + $0x88] sm:$0xff] }
 0x67f   : > { %v8077_v44 = vpop.f32.mrb[64].mxu0 }
 0x680   : > { %v4866_v56 = vpop.f32.mrb[65].mxu0  ;;  %v5221_v6 = vmul.f32 %v8077_v44, %v12376_v20  ;;  %v5449_v53 = vmul.f32 %v8077_v44, %v12378_v37  ;;  %v5271_v44 = vld [vmem:[%s14530_s5 + $0x8] sm:$0xff] }
 0x681   : > { %v5220_v7 = vmul.f32 %v12376_v20, %v4866_v56  ;;  %v5448_v52 = vmul.f32 %v12378_v37, %v4866_v56 }
 0x683   : > { %v8080_v29 = vpop.f32.mrb[66].mxu0  ;;  %v8133_v62 = vpop.f32.mrb[48].mxu1 }
 0x684   : > { %v5239_v21 = vmul.f32 %v8133_v62, %v12380_v28  ;;  %v5467_v43 = vmul.f32 %v8133_v62, %v12382_v47  ;;  %v4876_v45 = vpop.f32.mrb[67].mxu0  ;;  %v5139_v14 = vpop.f32.mrb[49].mxu1  ;;  %v5223_v56 = vmul.f32 %v8080_v29, %v12376_v20  ;;  %v5451_v62 = vmul.f32 %v8080_v29, %v12378_v37 }
 0x685   : > { %v5238_v5 = vmul.f32 %v12380_v28, %v5139_v14  ;;  %v5466_v27 = vmul.f32 %v12382_v47, %v5139_v14 }
 0x686   : > { %v5255_v23 = vadd.f32 %v5239_v21, %v5221_v6  ;;  %v5483_v12 = vadd.f32 %v5467_v43, %v5449_v53  ;;  %v5222_v43 = vmul.f32 %v12376_v20, %v4876_v45 }
 0x687   : > { %v5254_v63 = vadd.f32 %v5238_v5, %v5220_v7  ;;  %v5482_v19 = vadd.f32 %v5466_v27, %v5448_v52  ;;  %v8083_v61 = vpop.f32.mrb[68].mxu0  ;;  %v8136_v50 = vpop.f32.mrb[50].mxu1  ;;  %v5450_v7 = vmul.f32 %v12378_v37, %v4876_v45  ;;  %v5270_v45 = vld [vmem:[%s14530_s5] sm:$0xff] }
 0x688   : > { %v5241_v14 = vmul.f32 %v8136_v50, %v12380_v28  ;;  %v5469_v6 = vmul.f32 %v8136_v50, %v12382_v47  ;;  %v4886_v53 = vpop.f32.mrb[69].mxu0  ;;  %v5149_v21 = vpop.f32.mrb[51].mxu1  ;;  %v12406_v25 = vadd.f32 %v7289_v33, %v5483_v12  ;;  %v12408_v57 = vadd.f32 %v5271_v44, %v5255_v23 }
 0x689   : > { %v5240_v52 = vmul.f32 %v12380_v28, %v5149_v21  ;;  %v5468_v5 = vmul.f32 %v12382_v47, %v5149_v21  ;;  %v5225_v21 = vmul.f32 %v8083_v61, %v12376_v20  ;;  %v5224_v44 = vmul.f32 %v12376_v20, %v4886_v53 }
 0x68a   : > { %v5257_v27 = vadd.f32 %v5241_v14, %v5223_v56  ;;  %v5485_v35 = vadd.f32 %v5469_v6, %v5451_v62  ;;  %v5453_v56 = vmul.f32 %v8083_v61, %v12378_v37  ;;  %5532 = vmax.xlane.f32.xlu1 %v12406_v25  ;;  %5304 = vmax.xlane.f32.xlu0 %v12408_v57 }
 0x68b   : > { %v5256_v29 = vadd.f32 %v5240_v52, %v5222_v43  ;;  %v5484_v11 = vadd.f32 %v5468_v5, %v5450_v7  ;;  %v8086_v9 = vpop.f32.mrb[70].mxu0  ;;  %v8139_v50 = vpop.f32.mrb[52].mxu1  ;;  %v5452_v62 = vmul.f32 %v12378_v37, %v4886_v53  ;;  %v12426_v61 = vadd.f32 %v7288_v22, %v5482_v19  ;;  %v7291_v53 = vld [vmem:[%s14530_s5 + $0x98] sm:$0xff] }
 0x68c   : > { %v5243_v23 = vmul.f32 %v8139_v50, %v12380_v28  ;;  %v4896_v12 = vpop.f32.mrb[71].mxu0  ;;  %v5159_v33 = vpop.f32.mrb[53].mxu1  ;;  %v5471_v14 = vmul.f32 %v8139_v50, %v12382_v47  ;;  %v12428_v52 = vadd.f32 %v5270_v45, %v5254_v63  ;;  %v5273_v50 = vld [vmem:[%s14530_s5 + $0x18] sm:$0xff]  ;;  %v5455_v22 = vmul.f32 %v8086_v9, %v12378_v37 }
 0x68d   : > { %v5242_v6 = vmul.f32 %v12380_v28, %v5159_v33  ;;  %v5470_v7 = vmul.f32 %v12382_v47, %v5159_v33  ;;  %v5454_v33 = vmul.f32 %v12378_v37, %v4896_v12  ;;  %v12458_v8 = vadd.f32 %v5273_v50, %v5257_v27  ;;  %v7293_v50 = vld [vmem:[%s14530_s5 + $0xa8] sm:$0xff] }
 0x68e   : > { %v5259_v43 = vadd.f32 %v5243_v23, %v5225_v21  ;;  %v5487_v5 = vadd.f32 %v5471_v14, %v5453_v56  ;;  %v5227_v21 = vmul.f32 %v8086_v9, %v12376_v20  ;;  %5530 = vmax.xlane.f32.xlu0 %v12426_v61  ;;  %5302 = vmax.xlane.f32.xlu1 %v12428_v52  ;;  %v7290_v56 = vld [vmem:[%s14530_s5 + $0x90] sm:$0xff] }
 0x68f   : > { %v12430_v46 = vadd.f32 %v5242_v6, %v5224_v44  ;;  %v8089_v60 = vpop.f32.mrb[72].mxu0  ;;  %v8142_v51 = vpop.f32.mrb[54].mxu1  ;;  %v12440_v19 = vadd.f32 %v5470_v7, %v5452_v62  ;;  %v5226_v23 = vmul.f32 %v12376_v20, %v4896_v12  ;;  %v5272_v62 = vld [vmem:[%s14530_s5 + $0x10] sm:$0xff]  ;;  %v12456_v7 = vadd.f32 %v7291_v53, %v5485_v35 }
 0x690   : > { %v4906_v63 = vpop.f32.mrb[73].mxu0  ;;  %v5169_v45 = vpop.f32.mrb[55].mxu1  ;;  %v5245_v44 = vmul.f32 %v8142_v51, %v12380_v28  ;;  %v5473_v9 = vmul.f32 %v8142_v51, %v12382_v47  ;;  %v12464_v38 = vadd.f32 %v7290_v56, %v5484_v11  ;;  %v12472_v27 = vadd.f32 %v5272_v62, %v5256_v29  ;;  %v5275_v56 = vld [vmem:[%s14530_s5 + $0x28] sm:$0xff] }
 0x691   : > { %v5244_v14 = vmul.f32 %v12380_v28, %v5169_v45  ;;  %v5472_v6 = vmul.f32 %v12382_v47, %v5169_v45  ;;  %v5457_v11 = vmul.f32 %v8089_v60, %v12378_v37  ;;  %v5456_v29 = vmul.f32 %v12378_v37, %v4906_v63 }
 0x692   : > { %v12460_v15 = vadd.f32 %v5245_v44, %v5227_v21  ;;  %v12462_v59 = vadd.f32 %v5473_v9, %v5455_v22  ;;  %5536 = vmax.xlane.f32.xlu1 %v12456_v7  ;;  %5308 = vmax.xlane.f32.xlu0 %v12458_v8  ;;  %v5229_v21 = vmul.f32 %v8089_v60, %v12376_v20 }
 0x693   : > { %v8092_v12 = vpop.f32.mrb[74].mxu0  ;;  %v8145_v13 = vpop.f32.mrb[56].mxu1  ;;  %v12466_v51 = vadd.f32 %v5244_v14, %v5226_v23  ;;  %v12468_v1 = vadd.f32 %v5472_v6, %v5454_v33  ;;  %v5228_v23 = vmul.f32 %v12376_v20, %v4906_v63  ;;  %v12492_v6 = vadd.f32 %v7293_v50, %v5487_v5  ;;  %v5274_v5 = vld [vmem:[%s14530_s5 + $0x20] sm:$0xff] }
 0x694   : > { %v4916_v35 = vpop.f32.mrb[75].mxu0  ;;  %v5179_v53 = vpop.f32.mrb[57].mxu1  ;;  %v5247_v22 = vmul.f32 %v8145_v13, %v12380_v28  ;;  %v5475_v45 = vmul.f32 %v8145_v13, %v12382_v47  ;;  %v12500_v17 = vadd.f32 %v5275_v56, %v5259_v43  ;;  %v5231_v50 = vmul.f32 %v8092_v12, %v12376_v20 }
 0x695   : > { %v5246_v33 = vmul.f32 %v12380_v28, %v5179_v53  ;;  %v5474_v44 = vmul.f32 %v12382_v47, %v5179_v53  ;;  %v7292_v53 = vld [vmem:[%s14530_s5 + $0xa0] sm:$0xff]  ;;  %v5458_v43 = vmul.f32 %v12378_v37, %v4916_v35  ;;  %v12524_v0 = vadd.f32 %v5274_v5, %v12430_v46 }
 0x696   : > { %v12488_v9 = vadd.f32 %v5247_v22, %v5229_v21  ;;  %v12490_v62 = vadd.f32 %v5475_v45, %v5457_v11  ;;  %5534 = vmax.xlane.f32.xlu1 %v12464_v38  ;;  %5306 = vmax.xlane.f32.xlu0 %v12472_v27  ;;  %v5459_v21 = vmul.f32 %v8092_v12, %v12378_v37 }
 0x697   : > { %v8095_v60 = vpop.f32.mrb[76].mxu0  ;;  %v8148_v14 = vpop.f32.mrb[58].mxu1  ;;  %v12494_v13 = vadd.f32 %v5246_v33, %v5228_v23  ;;  %v12496_v36 = vadd.f32 %v5474_v44, %v5456_v29  ;;  %v5230_v45 = vmul.f32 %v12376_v20, %v4916_v35  ;;  %v12521_v12 = vadd.f32 %v7292_v53, %v12440_v19 }
 0x698   : > { %v4926_v63 = vpop.f32.mrb[77].mxu0  ;;  %v5189_v54 = vpop.f32.mrb[59].mxu1  ;;  %v5249_v11 = vmul.f32 %v8148_v14, %v12380_v28  ;;  %v5477_v22 = vmul.f32 %v8148_v14, %v12382_v47  ;;  %v5233_v14 = vmul.f32 %v8095_v60, %v12376_v20  ;;  %v12557_v34 = vadd.f32 %v7295_v32, %v12462_v59  ;;  %v7297_v59 = vld [vmem:[%s14530_s5 + $0xc8] sm:$0xff] }
 0x699   : > { %v5248_v56 = vmul.f32 %v12380_v28, %v5189_v54  ;;  %v5476_v23 = vmul.f32 %v12382_v47, %v5189_v54  ;;  %v5232_v19 = vmul.f32 %v12376_v20, %v4926_v63  ;;  %v5460_v5 = vmul.f32 %v12378_v37, %v4926_v63 }
 0x69a   : > { %v12516_v29 = vadd.f32 %v5249_v11, %v5231_v50  ;;  %v12518_v33 = vadd.f32 %v5477_v22, %v5459_v21  ;;  %5540 = vmax.xlane.f32.xlu1 %v12492_v6  ;;  %5312 = vmax.xlane.f32.xlu0 %v12500_v17  ;;  %v5461_v21 = vmul.f32 %v8095_v60, %v12378_v37 }
 0x69b   : > { %v8098_v44 = vpop.f32.mrb[78].mxu0  ;;  %v8151_v55 = vpop.f32.mrb[60].mxu1  ;;  %v12527_v18 = vadd.f32 %v5248_v56, %v5230_v45  ;;  %v12529_v35 = vadd.f32 %v5476_v23, %v5458_v43 }
 0x69c   : > { %v4936_v54 = vpop.f32.mrb[79].mxu0  ;;  %v5199_v50 = vpop.f32.mrb[61].mxu1  ;;  %v5251_v53 = vmul.f32 %v8151_v55, %v12380_v28  ;;  %v5479_v46 = vmul.f32 %v8151_v55, %v12382_v47  ;;  %v5235_v11 = vmul.f32 %v8098_v44, %v12376_v20  ;;  %v5463_v43 = vmul.f32 %v8098_v44, %v12378_v37  ;;  %v5277_v55 = vld [vmem:[%s14530_s5 + $0x38] sm:$0xff] }
 0x69d   : > { %v5250_v22 = vmul.f32 %v12380_v28, %v5199_v50  ;;  %v5478_v45 = vmul.f32 %v12382_v47, %v5199_v50  ;;  %v5234_v60 = vmul.f32 %v12376_v20, %v4936_v54  ;;  %v5462_v20 = vmul.f32 %v12378_v37, %v4936_v54  ;;  %v7294_v37 = vld [vmem:[%s14530_s5 + $0xb0] sm:$0xff]  ;;  %v5278_v54 = vld [vmem:[%s14530_s5 + $0x40] sm:$0xff] }
 0x69e   : > { %v5267_v56 = vadd.f32 %v5251_v53, %v5233_v14  ;;  %v5495_v23 = vadd.f32 %v5479_v46, %v5461_v21  ;;  %5538 = vmax.xlane.f32.xlu1 %v12521_v12  ;;  %5310 = vmax.xlane.f32.xlu0 %v12524_v0  ;;  %v12571_v32 = vadd.f32 %v7294_v37, %v12468_v1 }
 0x69f   : > { %v8154_v30 = vpop.f32.mrb[62].mxu1  ;;  %v5266_v63 = vadd.f32 %v5250_v22, %v5232_v19  ;;  %v5494_v40 = vadd.f32 %v5478_v45, %v5460_v5  ;;  %v12560_v19 = vadd.f32 %v5277_v55, %v12460_v15  ;;  %v5280_v55 = vld [vmem:[%s14530_s5 + $0x50] sm:$0xff] }
 0x6a0   : > { %v5253_v44 = vmul.f32 %v8154_v30, %v12380_v28  ;;  %v5209_v14 = vpop.f32.mrb[63].mxu1  ;;  %v5481_v50 = vmul.f32 %v8154_v30, %v12382_v47  ;;  %v5276_v30 = vld [vmem:[%s14530_s5 + $0x30] sm:$0xff] }
 0x6a1   : > { %v5252_v21 = vmul.f32 %v12380_v28, %v5209_v14  ;;  %v5480_v53 = vmul.f32 %v12382_v47, %v5209_v14  ;;  %v12574_v15 = vadd.f32 %v5276_v30, %v12466_v51  ;;  %v5279_v28 = vld [vmem:[%s14530_s5 + $0x48] sm:$0xff]  ;;  %v12585_v47 = vadd.f32 %v7297_v59, %v12490_v62  ;;  %v7296_v51 = vld [vmem:[%s14530_s5 + $0xc0] sm:$0xff] }
 0x6a2   : > { %v5269_v46 = vadd.f32 %v5253_v44, %v5235_v11  ;;  %v5497_v5 = vadd.f32 %v5481_v50, %v5463_v43  ;;  %5544 = vmax.xlane.f32.xlu1 %v12557_v34  ;;  %5316 = vmax.xlane.f32.xlu0 %v12560_v19  ;;  %v12588_v1 = vadd.f32 %v5279_v28, %v12488_v9  ;;  %v7299_v9 = vld [vmem:[%s14530_s5 + $0xd8] sm:$0xff]  ;;  %v5283_v14 = vld [vmem:[%s14530_s5 + $0x68] sm:$0xff] }
 0x6a3   : > { %v5268_v22 = vadd.f32 %v5252_v21, %v5234_v60  ;;  %v5496_v45 = vadd.f32 %v5480_v53, %v5462_v20  ;;  %v12599_v11 = vadd.f32 %v7296_v51, %v12496_v36  ;;  %v12602_v62 = vadd.f32 %v5278_v54, %v12494_v13  ;;  %v5281_v43 = vld [vmem:[%s14530_s5 + $0x58] sm:$0xff]  ;;  %v7298_v13 = vld [vmem:[%s14530_s5 + $0xd0] sm:$0xff] }
 0x6a4   : > { %v12613_v60 = vadd.f32 %v7299_v9, %v12518_v33  ;;  %v12616_v36 = vadd.f32 %v5281_v43, %v12516_v29  ;;  %v12627_v44 = vadd.f32 %v7298_v13, %v12529_v35  ;;  %v12630_v33 = vadd.f32 %v5280_v55, %v12527_v18  ;;  %v7301_v29 = vld [vmem:[%s14530_s5 + $0xe8] sm:$0xff]  ;;  %v7300_v18 = vld [vmem:[%s14530_s5 + $0xe0] sm:$0xff] }
 0x6a5   : > { %v12640_v20 = vadd.f32 %v7301_v29, %v5495_v23  ;;  %v12642_v50 = vadd.f32 %v5283_v14, %v5267_v56  ;;  %v5282_v35 = vld [vmem:[%s14530_s5 + $0x60] sm:$0xff]  ;;  %v12652_v21 = vadd.f32 %v7300_v18, %v5494_v40  ;;  %v7303_v56 = vld [vmem:[%s14530_s5 + $0xf8] sm:$0xff]  ;;  %v7302_v40 = vld [vmem:[%s14530_s5 + $0xf0] sm:$0xff] }
 0x6a6   : > { %5542 = vmax.xlane.f32.xlu1 %v12571_v32  ;;  %5314 = vmax.xlane.f32.xlu0 %v12574_v15  ;;  %v12654_v53 = vadd.f32 %v5282_v35, %v5266_v63  ;;  %v5285_v23 = vld [vmem:[%s14530_s5 + $0x78] sm:$0xff]  ;;  %v12664_v37 = vadd.f32 %v7303_v56, %v5497_v5  ;;  %v5284_v63 = vld [vmem:[%s14530_s5 + $0x70] sm:$0xff]  ;;  %v12676_v59 = vadd.f32 %v7302_v40, %v5496_v45  ;;  %v12688_v5 = vpop.permute.xlu0 %8951 }
 0x6a7   : > { %v12666_v30 = vadd.f32 %v5285_v23, %v5269_v46  ;;  %v12678_v28 = vadd.f32 %v5284_v63, %v5268_v22  ;;  %v12686_v46 = vpop.permute.xlu1 %8956 }
 0x6aa   : > { %5548 = vmax.xlane.f32.xlu1 %v12585_v47  ;;  %5320 = vmax.xlane.f32.xlu0 %v12588_v1 }
 0x6ae   : > { %5546 = vmax.xlane.f32.xlu1 %v12599_v11  ;;  %5318 = vmax.xlane.f32.xlu0 %v12602_v62 }
 0x6b2   : > { %5552 = vmax.xlane.f32.xlu1 %v12613_v60  ;;  %5324 = vmax.xlane.f32.xlu0 %v12616_v36 }
 0x6b6   : > { %5550 = vmax.xlane.f32.xlu1 %v12627_v44  ;;  %5322 = vmax.xlane.f32.xlu0 %v12630_v33 }
 0x6ba   : > { %5556 = vmax.xlane.f32.xlu1 %v12640_v20  ;;  %5328 = vmax.xlane.f32.xlu0 %v12642_v50 }
 0x6be   : > { %5554 = vmax.xlane.f32.xlu1 %v12652_v21  ;;  %5326 = vmax.xlane.f32.xlu0 %v12654_v53 }
 0x6c2   : > { %5560 = vmax.xlane.f32.xlu1 %v12664_v37  ;;  %5332 = vmax.xlane.f32.xlu0 %v12666_v30 }
 0x6c6   : > { %5558 = vmax.xlane.f32.xlu1 %v12676_v59  ;;  %5330 = vmax.xlane.f32.xlu0 %v12678_v28 }
 0x6d7   : > { %8966 = vrot.lane.b32.xlu1 %v11935_v41, %s9328_s30 }
 0x6dc   : > { %8961 = vrot.lane.b32.xlu0 %v11913_v2, %s9328_s30 }
 0x717   : > { %v5533_v51 = vpop.xlane.xlu1 %5532  ;;  %v5305_v54 = vpop.xlane.xlu0 %5304 }
 0x718   : > { %v5563_v45 = vsub.f32 %v12406_v25, %v5533_v51  ;;  %v5335_v22 = vsub.f32 %v12408_v57, %v5305_v54 }
 0x71a   : > { %v5580_v9 = vmul.f32 1.442695, %v5563_v45  ;;  %v5352_v43 = vmul.f32 1.442695, %v5335_v22 }
 0x71b   : > { %v5531_v13 = vpop.xlane.xlu0 %5530  ;;  %v5303_v55 = vpop.xlane.xlu1 %5302 }
 0x71c   : > { %9113 = vpow2.f32 %v5580_v9  ;;  %v5562_v41 = vsub.f32 %v12426_v61, %v5531_v13  ;;  %v5334_v29 = vsub.f32 %v12428_v52, %v5303_v55 }
 0x71d   : > { %9115 = vpow2.f32 %v5352_v43 }
 0x71e   : > { %v5578_v2 = vmul.f32 1.442695, %v5562_v41  ;;  %v5350_v14 = vmul.f32 1.442695, %v5334_v29 }
 0x71f   : > { %v5537_v18 = vpop.xlane.xlu1 %5536  ;;  %v5309_v35 = vpop.xlane.xlu0 %5308 }
 0x720   : > { %9117 = vpow2.f32 %v5578_v2  ;;  %v5565_v56 = vsub.f32 %v12456_v7, %v5537_v18  ;;  %v5337_v25 = vsub.f32 %v12458_v8, %v5309_v35 }
 0x721   : > { %9119 = vpow2.f32 %v5350_v14 }
 0x722   : > { %v5584_v57 = vmul.f32 1.442695, %v5565_v56  ;;  %v5356_v23 = vmul.f32 1.442695, %v5337_v25 }
 0x723   : > { %v5535_v40 = vpop.xlane.xlu1 %5534  ;;  %v5307_v63 = vpop.xlane.xlu0 %5306 }
 0x724   : > { %9121 = vpow2.f32 %v5584_v57  ;;  %v5564_v61 = vsub.f32 %v12464_v38, %v5535_v40  ;;  %v5336_v52 = vsub.f32 %v12472_v27, %v5307_v63 }
 0x725   : > { %9123 = vpow2.f32 %v5356_v23 }
 0x726   : > { %v12698_v51 = vpop.eup %9113  ;;  %v5582_v54 = vmul.f32 1.442695, %v5564_v61  ;;  %v5354_v45 = vmul.f32 1.442695, %v5336_v52 }
 0x727   : > { %v12700_v22 = vpop.eup %9115  ;;  %v5541_v7 = vpop.xlane.xlu1 %5540  ;;  %5612 = vadd.xlane.f32.xlu1 %v12698_v51 }
 0x728   : > { %v5313_v9 = vpop.xlane.xlu0 %5312  ;;  %9125 = vpow2.f32 %v5582_v54  ;;  %v5567_v8 = vsub.f32 %v12492_v6, %v5541_v7  ;;  %5384 = vadd.xlane.f32.xlu0 %v12700_v22 }
 0x729   : > { %v5339_v43 = vsub.f32 %v12500_v17, %v5313_v9  ;;  %9127 = vpow2.f32 %v5354_v45 }
 0x72a   : > { %v12706_v38 = vpop.eup %9117  ;;  %v5588_v27 = vmul.f32 1.442695, %v5567_v8 }
 0x72b   : > { %v5360_v13 = vmul.f32 1.442695, %v5339_v43  ;;  %v12708_v55 = vpop.eup %9119  ;;  %v5539_v41 = vpop.xlane.xlu1 %5538  ;;  %5610 = vadd.xlane.f32.xlu1 %v12706_v38 }
 0x72c   : > { %v5311_v29 = vpop.xlane.xlu0 %5310  ;;  %9129 = vpow2.f32 %v5588_v27  ;;  %v5566_v2 = vsub.f32 %v12521_v12, %v5539_v41  ;;  %5382 = vadd.xlane.f32.xlu0 %v12708_v55 }
 0x72d   : > { %v5338_v6 = vsub.f32 %v12524_v0, %v5311_v29  ;;  %9131 = vpow2.f32 %v5360_v13 }
 0x72e   : > { %v12714_v17 = vpop.eup %9121  ;;  %v5586_v14 = vmul.f32 1.442695, %v5566_v2 }
 0x72f   : > { %v5358_v18 = vmul.f32 1.442695, %v5338_v6  ;;  %v12716_v35 = vpop.eup %9123  ;;  %v5545_v56 = vpop.xlane.xlu1 %5544  ;;  %5616 = vadd.xlane.f32.xlu1 %v12714_v17 }
 0x730   : > { %v5317_v25 = vpop.xlane.xlu0 %5316  ;;  %9133 = vpow2.f32 %v5586_v14  ;;  %v5569_v57 = vsub.f32 %v12557_v34, %v5545_v56  ;;  %5388 = vadd.xlane.f32.xlu0 %v12716_v35 }
 0x731   : > { %v5341_v12 = vsub.f32 %v12560_v19, %v5317_v25  ;;  %9135 = vpow2.f32 %v5358_v18 }
 0x732   : > { %v12722_v0 = vpop.eup %9125  ;;  %v5592_v23 = vmul.f32 1.442695, %v5569_v57 }
 0x733   : > { %v5364_v40 = vmul.f32 1.442695, %v5341_v12  ;;  %v12724_v63 = vpop.eup %9127  ;;  %v5543_v61 = vpop.xlane.xlu1 %5542 }
 0x734   : > { %v5315_v52 = vpop.xlane.xlu0 %5314  ;;  %9137 = vpow2.f32 %v5592_v23  ;;  %v5568_v54 = vsub.f32 %v12571_v32, %v5543_v61  ;;  %5386 = vadd.xlane.f32.xlu1 %v12724_v63  ;;  %5614 = vadd.xlane.f32.xlu0 %v12722_v0 }
 0x735   : > { %v5340_v45 = vsub.f32 %v12574_v15, %v5315_v52  ;;  %9139 = vpow2.f32 %v5364_v40 }
 0x736   : > { %v12730_v34 = vpop.eup %9129  ;;  %v5590_v19 = vmul.f32 1.442695, %v5568_v54 }
 0x737   : > { %v5362_v7 = vmul.f32 1.442695, %v5340_v45  ;;  %v12732_v9 = vpop.eup %9131  ;;  %v5549_v8 = vpop.xlane.xlu1 %5548 }
 0x738   : > { %v5321_v43 = vpop.xlane.xlu0 %5320  ;;  %9141 = vpow2.f32 %v5590_v19  ;;  %v5571_v27 = vsub.f32 %v12585_v47, %v5549_v8  ;;  %5620 = vadd.xlane.f32.xlu1 %v12730_v34  ;;  %5392 = vadd.xlane.f32.xlu0 %v12732_v9 }
 0x739   : > { %v5343_v32 = vsub.f32 %v12588_v1, %v5321_v43  ;;  %9143 = vpow2.f32 %v5362_v7 }
 0x73a   : > { %v12738_v15 = vpop.eup %9133  ;;  %v5596_v13 = vmul.f32 1.442695, %v5571_v27 }
 0x73b   : > { %v5368_v41 = vmul.f32 1.442695, %v5343_v32  ;;  %v12740_v29 = vpop.eup %9135  ;;  %v5547_v2 = vpop.xlane.xlu1 %5546 }
 0x73c   : > { %v5319_v6 = vpop.xlane.xlu0 %5318  ;;  %9145 = vpow2.f32 %v5596_v13  ;;  %v5570_v14 = vsub.f32 %v12599_v11, %v5547_v2  ;;  %5390 = vadd.xlane.f32.xlu1 %v12740_v29  ;;  %5618 = vadd.xlane.f32.xlu0 %v12738_v15 }
 0x73d   : > { %v5342_v47 = vsub.f32 %v12602_v62, %v5319_v6  ;;  %9147 = vpow2.f32 %v5368_v41 }
 0x73e   : > { %v12746_v1 = vpop.eup %9137  ;;  %v5594_v18 = vmul.f32 1.442695, %v5570_v14 }
 0x73f   : > { %v5366_v56 = vmul.f32 1.442695, %v5342_v47  ;;  %v12748_v25 = vpop.eup %9139  ;;  %v5553_v57 = vpop.xlane.xlu1 %5552 }
 0x740   : > { %v5325_v12 = vpop.xlane.xlu0 %5324  ;;  %9149 = vpow2.f32 %v5594_v18  ;;  %v5573_v23 = vsub.f32 %v12613_v60, %v5553_v57  ;;  %5624 = vadd.xlane.f32.xlu1 %v12746_v1  ;;  %5396 = vadd.xlane.f32.xlu0 %v12748_v25 }
 0x741   : > { %v5345_v11 = vsub.f32 %v12616_v36, %v5325_v12  ;;  %9151 = vpow2.f32 %v5366_v56 }
 0x742   : > { %v12754_v62 = vpop.eup %9141  ;;  %v5600_v40 = vmul.f32 1.442695, %v5573_v23 }
 0x743   : > { %v5372_v61 = vmul.f32 1.442695, %v5345_v11  ;;  %v12756_v52 = vpop.eup %9143  ;;  %v5551_v54 = vpop.xlane.xlu1 %5550 }
 0x744   : > { %v5323_v45 = vpop.xlane.xlu0 %5322  ;;  %9153 = vpow2.f32 %v5600_v40  ;;  %v5572_v19 = vsub.f32 %v12627_v44, %v5551_v54  ;;  %5394 = vadd.xlane.f32.xlu1 %v12756_v52  ;;  %5622 = vadd.xlane.f32.xlu0 %v12754_v62 }
 0x745   : > { %v5344_v60 = vsub.f32 %v12630_v33, %v5323_v45  ;;  %9155 = vpow2.f32 %v5372_v61 }
 0x746   : > { %v12762_v36 = vpop.eup %9145  ;;  %v5598_v7 = vmul.f32 1.442695, %v5572_v19 }
 0x747   : > { %v5370_v8 = vmul.f32 1.442695, %v5344_v60  ;;  %v12764_v43 = vpop.eup %9147  ;;  %v5557_v27 = vpop.xlane.xlu1 %5556 }
 0x748   : > { %v5329_v32 = vpop.xlane.xlu0 %5328  ;;  %9157 = vpow2.f32 %v5598_v7  ;;  %v5575_v13 = vsub.f32 %v12640_v20, %v5557_v27  ;;  %5628 = vadd.xlane.f32.xlu1 %v12762_v36  ;;  %5400 = vadd.xlane.f32.xlu0 %v12764_v43 }
 0x749   : > { %v5347_v44 = vsub.f32 %v12642_v50, %v5329_v32  ;;  %9159 = vpow2.f32 %v5370_v8 }
 0x74a   : > { %v12770_v33 = vpop.eup %9149  ;;  %v5604_v41 = vmul.f32 1.442695, %v5575_v13 }
 0x74b   : > { %v5376_v2 = vmul.f32 1.442695, %v5347_v44  ;;  %v12772_v6 = vpop.eup %9151  ;;  %v5555_v14 = vpop.xlane.xlu1 %5554 }
 0x74c   : > { %v5327_v47 = vpop.xlane.xlu0 %5326  ;;  %9161 = vpow2.f32 %v5604_v41  ;;  %v5574_v18 = vsub.f32 %v12652_v21, %v5555_v14  ;;  %5398 = vadd.xlane.f32.xlu1 %v12772_v6  ;;  %5626 = vadd.xlane.f32.xlu0 %v12770_v33  ;;  %v14630_v14 = vrot.slane %v11958_v24, 3 }
 0x74d   : > { %v5346_v20 = vsub.f32 %v12654_v53, %v5327_v47  ;;  %9163 = vpow2.f32 %v5376_v2  ;;  %v972_v47 = vrot.slane %v11984_v26, 3 }
 0x74e   : > { %v12778_v50 = vpop.eup %9153  ;;  %v5602_v56 = vmul.f32 1.442695, %v5574_v18 }
 0x74f   : > { %v5374_v57 = vmul.f32 1.442695, %v5346_v20  ;;  %v12780_v12 = vpop.eup %9155  ;;  %v5561_v23 = vpop.xlane.xlu1 %5560  ;;  %v973_v18 = vsel %vm912_vm4, %v14630_v14, %v972_v47  ;;  %v974_v20 = vrot.slane %v11975_v3, 3 }
 0x750   : > { %v5333_v11 = vpop.xlane.xlu0 %5332  ;;  %9165 = vpow2.f32 %v5602_v56  ;;  %v5577_v40 = vsub.f32 %v12664_v37, %v5561_v23  ;;  %5632 = vadd.xlane.f32.xlu1 %v12778_v50  ;;  %5404 = vadd.xlane.f32.xlu0 %v12780_v12  ;;  %v1456_v23 = vrot.slane %v11984_v26, 5 }
 0x751   : > { %v5349_v21 = vsub.f32 %v12666_v30, %v5333_v11  ;;  %9167 = vpow2.f32 %v5374_v57  ;;  %v975_v56 = vsel %vm912_vm4, %v972_v47, %v974_v20  ;;  %v14627_v57 = vrot.slane %v11958_v24, 5 }
 0x752   : > { %v12786_v53 = vpop.eup %9157  ;;  %v5608_v61 = vmul.f32 1.442695, %v5577_v40  ;;  %v1198_v11 = vrot.slane %v11984_v26, 4  ;;  %v14628_v40 = vrot.slane %v11958_v24, 7 }
 0x753   : > { %v5380_v54 = vmul.f32 1.442695, %v5349_v21  ;;  %v12788_v45 = vpop.eup %9159  ;;  %v5559_v19 = vpop.xlane.xlu1 %5558  ;;  %v1714_v21 = vrot.slane %v11984_v26, 7 }
 0x754   : > { %v5331_v60 = vpop.xlane.xlu0 %5330  ;;  %9169 = vpow2.f32 %v5608_v61  ;;  %5402 = vadd.xlane.f32.xlu1 %v12788_v45  ;;  %v5576_v37 = vsub.f32 %v12676_v59, %v5559_v19  ;;  %5630 = vadd.xlane.f32.xlu0 %v12786_v53  ;;  %v946_v19 = vrot.slane %v11815_v4, 3 }
 0x755   : > { %v5348_v30 = vsub.f32 %v12678_v28, %v5331_v60  ;;  %9171 = vpow2.f32 %v5380_v54  ;;  %v1200_v54 = vrot.slane %v11975_v3, 4 }
 0x756   : > { %v12794_v7 = vpop.eup %9161  ;;  %v5606_v8 = vmul.f32 1.442695, %v5576_v37  ;;  %v1458_v37 = vrot.slane %v11975_v3, 5 }
 0x757   : > { %v5378_v27 = vmul.f32 1.442695, %v5348_v30  ;;  %v12796_v32 = vpop.eup %9163  ;;  %v1201_v60 = vsel %vm1138_vm3, %v1198_v11, %v1200_v54  ;;  %v14810_v30 = vrot.slane %v10940_v58, 3 }
 0x758   : > { %9173 = vpow2.f32 %v5606_v8  ;;  %5636 = vadd.xlane.f32.xlu1 %v12794_v7  ;;  %5408 = vadd.xlane.f32.xlu0 %v12796_v32  ;;  %v1459_v47 = vsel %vm1396_vm5, %v1456_v23, %v1458_v37 }
 0x759   : > { %9175 = vpow2.f32 %v5378_v27  ;;  %v947_v8 = vsel %vm912_vm4, %v14810_v30, %v946_v19  ;;  %v2167_v27 = vrot.slane %v11975_v3, 1 }
 0x75a   : > { %v12800_v13 = vpop.eup %9165 }
 0x75b   : > { %v12802_v59 = vpop.eup %9167 }
 0x75c   : > { %5406 = vadd.xlane.f32.xlu1 %v12802_v59  ;;  %5634 = vadd.xlane.f32.xlu0 %v12800_v13 }
 0x75e   : > { %v12806_v28 = vpop.eup %9169 }
 0x75f   : > { %v12808_v44 = vpop.eup %9171 }
 0x760   : > { %5640 = vadd.xlane.f32.xlu1 %v12806_v28  ;;  %5412 = vadd.xlane.f32.xlu0 %v12808_v44 }
 0x762   : > { %v12812_v41 = vpop.eup %9173 }
 0x763   : > { %v12814_v2 = vpop.eup %9175 }
 0x764   : > { %5638 = vadd.xlane.f32.xlu0 %v12812_v41  ;;  %5410 = vadd.xlane.f32.xlu1 %v12814_v2 }
 0x775   : > { %8976 = vrot.lane.b32.xlu1 %v11979_v39, %s9328_s30  ;;  %v14629_v39 = vrot.slane %v11958_v24, 4 }
 0x777   : > { %v1199_v61 = vsel %vm1138_vm3, %v14629_v39, %v1198_v11 }
 0x779   : > { %1036 = vrot.lane.b32.xlu1 %v973_v18, %s9329_s17  ;;  %v1716_v18 = vrot.slane %v11975_v3, 7 }
 0x77a   : > { %8971 = vrot.lane.b32.xlu0 %v11962_v42, %s9328_s30  ;;  %v1457_v42 = vsel %vm1396_vm5, %v14627_v57, %v1456_v23  ;;  %v2170_v23 = vsel %vm2105_vm7, %v2167_v27, 0.0 }
 0x77d   : > { %1038 = vrot.lane.b32.xlu1 %v975_v56, %s9329_s17  ;;  %v14626_v56 = vrot.slane %v11984_v26, 1 }
 0x77e   : > { %8981 = vrot.lane.b32.xlu0 %v11999_v49, %s9328_s30  ;;  %v1715_v49 = vsel %vm1654_vm6, %v14628_v40, %v1714_v21  ;;  %s7304_s30 = sld [smem:[#allocation4 + $0x1]] }
 0x77f   : > { %v2168_v11 = vsel %vm2105_vm7, %v14626_v56, %v2167_v27  ;;  %v14812_v27 = vrot.slane %v10940_v58, 5  ;;  %v1176_v56 = vrot.slane %v11839_v16, 4 }
 0x781   : > { %1520 = vrot.lane.b32.xlu1 %v1457_v42, %s9329_s17  ;;  %v1717_v42 = vsel %vm1654_vm6, %v1714_v21, %v1716_v18 }
 0x782   : > { %1262 = vrot.lane.b32.xlu0 %v1199_v61, %s9329_s17  ;;  %v1172_v61 = vrot.slane %v11815_v4, 4 }
 0x785   : > { %1778 = vrot.lane.b32.xlu1 %v1715_v49, %s9329_s17  ;;  %v1174_v49 = vrot.slane %v11857_v31, 4 }
 0x786   : > { %1264 = vrot.lane.b32.xlu0 %v1201_v60, %s9329_s17  ;;  %v14811_v60 = vrot.slane %v10940_v58, 4 }
 0x787   : > { %v1175_v21 = vsel %vm1138_vm3, %v1172_v61, %v1174_v49 }
 0x788   : > { %v1173_v30 = vsel %vm1138_vm3, %v14811_v60, %v1172_v61  ;;  %v1686_v60 = vrot.slane %v10940_v58, 7 }
 0x789   : > { %1010 = vrot.lane.b32.xlu1 %v947_v8, %s9329_s17  ;;  %v1430_v8 = vrot.slane %v11815_v4, 5 }
 0x78a   : > { %1522 = vrot.lane.b32.xlu0 %v1459_v47, %s9329_s17  ;;  %v950_v47 = vrot.slane %v11839_v16, 3 }
 0x78b   : > { %v1431_v18 = vsel %vm1396_vm5, %v14812_v27, %v1430_v8  ;;  %v14813_v27 = vrot.slane %v14734_v10, 7  ;;  %v2366_v10 = vsel %vm912_vm4, %v974_v20, 0.0 }
 0x78d   : > { %2232 = vrot.lane.b32.xlu1 %v2168_v11, %s9329_s17  ;;  %v948_v11 = vrot.slane %v11857_v31, 3 }
 0x78e   : > { %1780 = vrot.lane.b32.xlu0 %v1717_v42, %s9329_s17 }
 0x78f   : > { %v951_v42 = vsel %vm912_vm4, %v948_v11, %v950_v47  ;;  %v949_v61 = vsel %vm912_vm4, %v946_v19, %v948_v11  ;;  %v1177_v11 = vsel %vm1138_vm3, %v1174_v49, %v1176_v56  ;;  %v2139_v49 = vrot.slane %v11815_v4, 1 }
 0x791   : > { %2234 = vrot.lane.b32.xlu1 %v2170_v23, %s9329_s17  ;;  %v1688_v23 = vrot.slane %v11815_v4, 7  ;;  %v1690_v4 = vrot.slane %v11857_v31, 7 }
 0x792   : > { %1236 = vrot.lane.b32.xlu0 %v1173_v30, %s9329_s17 }
 0x793   : > { %v1689_v30 = vsel %vm1654_vm6, %v1686_v60, %v1688_v23 }
 0x795   : > { %1238 = vrot.lane.b32.xlu1 %v1175_v21, %s9329_s17  ;;  %v1432_v21 = vrot.slane %v11857_v31, 5 }
 0x796   : > { %1494 = vrot.lane.b32.xlu0 %v1431_v18, %s9329_s17  ;;  %v1687_v18 = vsel %vm1654_vm6, %v14813_v27, %v1686_v60  ;;  %v1434_v60 = vrot.slane %v11839_v16, 5  ;;  %v14814_v27 = vrot.slane %v10940_v58, 1  ;;  %v2141_v58 = vrot.slane %v11857_v31, 1 }
 0x797   : > { %v1433_v19 = vsel %vm1396_vm5, %v1430_v8, %v1432_v21 }
 0x798   : > { %v2140_v20 = vsel %vm2105_vm7, %v14814_v27, %v2139_v49  ;;  %v1436_v27 = vrot.slane %v11878_v48, 5 }
 0x799   : > { %1014 = vrot.lane.b32.xlu1 %v951_v42, %s9329_s17  ;;  %v2469_v42 = vsel %vm1138_vm3, %v1200_v54, 0.0  ;;  %v1435_v54 = vsel %vm1396_vm5, %v1432_v21, %v1434_v60 }
 0x79a   : > { %1012 = vrot.lane.b32.xlu0 %v949_v61, %s9329_s17  ;;  %v1178_v61 = vrot.slane %v11878_v48, 4 }
 0x79c   : > { %v1179_v8 = vsel %vm1138_vm3, %v1176_v56, %v1178_v61 }
 0x79d   : > { %1752 = vrot.lane.b32.xlu1 %v1689_v30, %s9329_s17  ;;  %v952_v30 = vrot.slane %v11878_v48, 3 }
 0x79e   : > { %1750 = vrot.lane.b32.xlu0 %v1687_v18, %s9329_s17  ;;  %v14815_v18 = vld [vmem:[#allocation48_spill] sm:$0xff] }
 0x79f   : > { %v953_v56 = vsel %vm912_vm4, %v950_v47, %v952_v30  ;;  %v954_v47 = vrot.slane %v14815_v18, 3 }
 0x7a1   : > { %1496 = vrot.lane.b32.xlu1 %v1433_v19, %s9329_s17  ;;  %v1180_v19 = vrot.slane %v14815_v18, 4 }
 0x7a2   : > { %1240 = vrot.lane.b32.xlu0 %v1177_v11, %s9329_s17  ;;  %v12932_v11 = vpop.permute.xlu1 %8966 }
 0x7a3   : > { %v1181_v21 = vsel %vm1138_vm3, %v1178_v61, %v1180_v19 }
 0x7a5   : > { %2471 = vrot.lane.b32.xlu1 %v2469_v42, %s9329_s17  ;;  %v12938_v42 = vpop.permute.xlu0 %8961 }
 0x7a6   : > { %2368 = vrot.lane.b32.xlu0 %v2366_v10, %s9329_s17  ;;  %v1691_v10 = vsel %vm1654_vm6, %v1688_v23, %v1690_v4 }
 0x7a9   : > { %1242 = vrot.lane.b32.xlu1 %v1179_v8, %s9329_s17 }
 0x7aa   : > { %1498 = vrot.lane.b32.xlu0 %v1435_v54, %s9329_s17  ;;  %v2142_v54 = vsel %vm2105_vm7, %v2139_v49, %v2141_v58 }
 0x7ad   : > { %2204 = vrot.lane.b32.xlu1 %v2140_v20, %s9329_s17  ;;  %v955_v20 = vsel %vm912_vm4, %v952_v30, %v954_v47 }
 0x7ae   : > { %1016 = vrot.lane.b32.xlu0 %v953_v56, %s9329_s17  ;;  %v1692_v56 = vrot.slane %v11839_v16, 7 }
 0x7b1   : > { %1244 = vrot.lane.b32.xlu1 %v1181_v21, %s9329_s17  ;;  %v1437_v21 = vsel %vm1396_vm5, %v1434_v60, %v1436_v27 }
 0x7b2   : > { %1754 = vrot.lane.b32.xlu0 %v1691_v10, %s9329_s17  ;;  %v14816_v10 = vld [vmem:[#allocation12_spill] sm:$0xff] }
 0x7b3   : > { %v956_v49 = vrot.slane %v14816_v10, 3 }
 0x7b4   : > { %v5613_v8 = vpop.xlane.xlu1 %5612 }
 0x7b5   : > { %9177 = vrcp.f32 %v5613_v8  ;;  %2206 = vrot.lane.b32.xlu1 %v2142_v54, %s9329_s17  ;;  %v5385_v61 = vpop.xlane.xlu0 %5384  ;;  %v1693_v54 = vsel %vm1654_vm6, %v1690_v4, %v1692_v56 }
 0x7b6   : > { %9179 = vrcp.f32 %v5385_v61  ;;  %1018 = vrot.lane.b32.xlu0 %v955_v20, %s9329_s17  ;;  %v957_v61 = vsel %vm912_vm4, %v954_v47, %v956_v49  ;;  %v1694_v20 = vrot.slane %v11878_v48, 7 }
 0x7b8   : > { %v5611_v23 = vpop.xlane.xlu1 %5610  ;;  %v1695_v3 = vsel %vm1654_vm6, %v1692_v56, %v1694_v20 }
 0x7b9   : > { %9181 = vrcp.f32 %v5611_v23  ;;  %1500 = vrot.lane.b32.xlu1 %v1437_v21, %s9329_s17  ;;  %v5383_v8 = vpop.xlane.xlu0 %5382  ;;  %v2572_v23 = vsel %vm1396_vm5, %v1458_v37, 0.0  ;;  %v14631_v21 = vrot.slane %v14815_v18, 5 }
 0x7ba   : > { %9183 = vrcp.f32 %v5383_v8  ;;  %1756 = vrot.lane.b32.xlu0 %v1693_v54, %s9329_s17  ;;  %v12965_v8 = vstv %s7304_s30 }
 0x7bb   : > { %v1439_v40 = vsel %vm1396_vm5, %v1436_v27, %v14631_v21  ;;  %v14634_v27 = vrot.slane %v14815_v18, 7 }
 0x7bc   : > { %v5617_v30 = vpop.xlane.xlu1 %5616 }
 0x7bd   : > { %9185 = vrcp.f32 %v5617_v30  ;;  %1020 = vrot.lane.b32.xlu1 %v957_v61, %s9329_s17  ;;  %v5389_v60 = vpop.xlane.xlu0 %5388  ;;  %v12972_v30 = vstv %s5674_s16  ;;  %v14817_v61 = vld [vmem:[#allocation50_spill] sm:$0xff] }
 0x7be   : > { %9187 = vrcp.f32 %v5389_v60  ;;  %2574 = vrot.lane.b32.xlu0 %v2572_v23, %s9329_s17  ;;  %v14632_v37 = vrot.slane %v14817_v61, 3 }
 0x7bf   : > { %v9178_v4 = vpop.eup %9177 }
 0x7c0   : > { %v9180_v47 = vpop.eup %9179  ;;  %v12970_v54 = vmul.f32 %v9178_v4, %v12698_v51  ;;  %v1182_v51 = vrot.slane %v14816_v10, 4 }
 0x7c1   : > { %v12977_v57 = vmul.f32 %v9180_v47, %v12700_v22  ;;  %v5387_v60 = vpop.xlane.xlu1 %5386  ;;  %1758 = vrot.lane.b32.xlu1 %v1695_v3, %s9329_s17  ;;  %v5615_v23 = vpop.xlane.xlu0 %5614  ;;  %v959_v3 = vsel %vm912_vm4, %v956_v49, %v14632_v37  ;;  %v13010_v37 = vstv %s12967_s22 }
 0x7c2   : > { %v5695_v4 = vmul.f32 %v12965_v8, %v12970_v54  ;;  %9189 = vrcp.f32 %v5387_v60  ;;  %1502 = vrot.lane.b32.xlu0 %v1439_v40, %s9329_s17  ;;  %v1183_v60 = vsel %vm1138_vm3, %v1180_v19, %v1182_v51 }
 0x7c3   : > { %v9182_v56 = vpop.eup %9181  ;;  %v5677_v22 = vmul.f32 %v12972_v30, %v12977_v57  ;;  %9191 = vrcp.f32 %v5615_v23  ;;  %v14635_v23 = vrot.slane %v11839_v16, 1 }
 0x7c4   : > { %v9184_v47 = vpop.eup %9183  ;;  %v12994_v39 = vmul.f32 %v9182_v56, %v12706_v38 }
 0x7c5   : > { %v5621_v14 = vpop.xlane.xlu1 %5620  ;;  %1022 = vrot.lane.b32.xlu1 %v959_v3, %s9329_s17  ;;  %v5393_v40 = vpop.xlane.xlu0 %5392  ;;  %v13002_v21 = vmul.f32 %v9184_v47, %v12708_v55  ;;  %v5711_v49 = vadd.f32 %v5695_v4, %v5677_v22  ;;  %v1697_v55 = vsel %vm1654_vm6, %v1694_v20, %v14634_v27  ;;  %v2144_v22 = vsel %vm2105_vm7, %v2141_v58, %v14635_v23  ;;  %v13051_v23 = vld [vmem:[%s14531_s6] sm:$0xff] }
 0x7c6   : > { %9193 = vrcp.f32 %v5621_v14  ;;  %1246 = vrot.lane.b32.xlu0 %v1183_v60, %s9329_s17  ;;  %v5694_v38 = vmul.f32 %v12965_v8, %v12994_v39  ;;  %v14637_v14 = vrot.slane %v14816_v10, 5 }
 0x7c7   : > { %v9186_v56 = vpop.eup %9185  ;;  %9195 = vrcp.f32 %v5393_v40  ;;  %v5676_v3 = vmul.f32 %v12972_v30, %v13002_v21  ;;  %v14636_v40 = vrot.slane %v14817_v61, 4 }
 0x7c8   : > { %v9188_v19 = vpop.eup %9187  ;;  %v13017_v47 = vmul.f32 %v9186_v56, %v12714_v17  ;;  %v5729_v17 = vadd.f32 %v13010_v37, %v5711_v49  ;;  %v14818_v56 = vld [vmem:[#allocation47_spill] sm:$0xff]  ;;  %v14819_v49 = vrot.slane %v14815_v18, 5 }
 0x7c9   : > { %v5391_v60 = vpop.xlane.xlu1 %5390  ;;  %1760 = vrot.lane.b32.xlu1 %v1697_v55, %s9329_s17  ;;  %v5619_v4 = vpop.xlane.xlu0 %5618  ;;  %v5710_v26 = vadd.f32 %v5694_v38, %v5676_v3  ;;  %v13027_v20 = vmul.f32 %v9188_v19, %v12716_v35  ;;  %v8954_v35 = vunpack.i.h.bf16 %v12688_v5  ;;  %v8953_v3 = vunpack.i.l.bf16 %v12688_v5 }
 0x7ca   : > { %9197 = vrcp.f32 %v5391_v60  ;;  %2208 = vrot.lane.b32.xlu0 %v2144_v22, %s9329_s17  ;;  %v5697_v58 = vmul.f32 %v12965_v8, %v13017_v47  ;;  %v1441_v19 = vsel %vm1396_vm5, %v14819_v49, %v14637_v14  ;;  %v1185_v22 = vsel %vm1138_vm3, %v1182_v51, %v14636_v40 }
 0x7cb   : > { %9199 = vrcp.f32 %v5619_v4  ;;  %v5728_v27 = vadd.f32 %v13010_v37, %v5710_v26  ;;  %v5679_v31 = vmul.f32 %v12972_v30, %v13027_v20  ;;  %v8958_v40 = vunpack.i.l.bf16 %v12686_v46 }
 0x7cc   : > { %v9190_v38 = vpop.eup %9189 }
 0x7cd   : > { %v9192_v60 = vpop.eup %9191  ;;  %v5625_v4 = vpop.xlane.xlu1 %5624  ;;  %1504 = vrot.lane.b32.xlu1 %v1441_v19, %s9329_s17  ;;  %v5744_v5 = vmul.f32 %v13051_v23, %v5728_v27  ;;  %v13056_v49 = vmul.f32 %v9190_v38, %v12724_v63  ;;  %v13062_v19 = vld [vmem:[%s14531_s6 + $0x8] sm:$0xff]  ;;  %v14821_v63 = vrot.slane %v14818_v56, 3  ;;  %v14822_v27 = vrot.slane %v14817_v61, 3 }
 0x7ce   : > { %v5397_v26 = vpop.xlane.xlu0 %5396  ;;  %9201 = vrcp.f32 %v5625_v4  ;;  %1248 = vrot.lane.b32.xlu0 %v1185_v22, %s9329_s17  ;;  %14820 = vst [vmem:[#allocation44_spill] sm:$0xff] %v13062_v19  ;;  %v5745_v51 = vmul.f32 %v13062_v19, %v5729_v17  ;;  %v13067_v14 = vmul.f32 %v9192_v60, %v12722_v0  ;;  %v5713_v22 = vadd.f32 %v5697_v58, %v5679_v31 }
 0x7cf   : > { %9203 = vrcp.f32 %v5397_v26  ;;  %8187 = vmatprep.mubr.f32.mxu0 %v5744_v5  ;;  %v961_v38 = vsel %vm912_vm4, %v14822_v27, %v14821_v63  ;;  %v5678_v4 = vmul.f32 %v12972_v30, %v13056_v49  ;;  %v8959_v17 = vunpack.i.h.bf16 %v12686_v46  ;;  %v14823_v5 = vld [vmem:[#allocation40_spill] sm:$0xff] }
 0x7d0   : > { %v9194_v55 = vpop.eup %9193  ;;  %8188 = vmatmul.mubr.f32.vlgmr.msra.gmra.mrb[80].mxu0 %v5745_v51  ;;  %v8631_v0 = vpack.c.bf16 %v8954_v35, %v8953_v3  ;;  %v5696_v60 = vmul.f32 %v12965_v8, %v13067_v14  ;;  %v14824_v27 = vrot.slane %v11878_v48, 1  ;;  %v14825_v31 = vrot.slane %v11839_v16, 1  ;;  %v14826_v51 = vld [vmem:[#allocation49_spill] sm:$0xff] }
 0x7d1   : > { %v9196_v26 = vpop.eup %9195  ;;  %8630 = vmatpush3.bf16.msra.mxu0 %v14823_v5  ;;  %v5395_v19 = vpop.xlane.xlu1 %5394  ;;  %1024 = vrot.lane.b32.xlu1 %v961_v38, %s9329_s17  ;;  %v14639_v46 = vrot.slane %v14817_v61, 5  ;;  %v13089_v35 = vmul.f32 %v9194_v55, %v12730_v34  ;;  %v14827_v16 = vrot.slane %v14816_v10, 7  ;;  %v5731_v34 = vadd.f32 %v13010_v37, %v5713_v22 }
 0x7d2   : > { %v5623_v63 = vpop.xlane.xlu0 %5622  ;;  %v2146_v58 = vsel %vm2105_vm7, %v14825_v31, %v14824_v27  ;;  %9205 = vrcp.f32 %v5395_v19  ;;  %8632 = vmatprep.subr.bf16.mxu0 %v8631_v0  ;;  %v5712_v3 = vadd.f32 %v5696_v60, %v5678_v4  ;;  %v13094_v38 = vmul.f32 %v9196_v26, %v12732_v9 }
 0x7d3   : > { %2210 = vrot.lane.b32.xlu0 %v2146_v58, %s9329_s17  ;;  %9207 = vrcp.f32 %v5623_v63  ;;  %v14828_v27 = vrot.slane %v14815_v18, 7  ;;  %v5699_v55 = vmul.f32 %v12965_v8, %v13089_v35  ;;  %v8635_v58 = vpack.c.bf16 %v8959_v17, %v8958_v40 }
 0x7d4   : > { %v9198_v19 = vpop.eup %9197  ;;  %v5730_v4 = vadd.f32 %v13010_v37, %v5712_v3  ;;  %v14642_v60 = vrot.slane %v14818_v56, 4  ;;  %v5681_v9 = vmul.f32 %v12972_v30, %v13094_v38  ;;  %v8964_v63 = vunpack.i.h.bf16 %v12938_v42 }
 0x7d5   : > { %v1699_v31 = vsel %vm1654_vm6, %v14828_v27, %v14827_v16  ;;  %v9200_v26 = vpop.eup %9199  ;;  %v8963_v5 = vunpack.i.l.bf16 %v12938_v42  ;;  %8634 = vmatpush3.bf16.msra.mxu0 %v8631_v0  ;;  %v5629_v16 = vpop.xlane.xlu1 %5628  ;;  %v14829_v40 = vrot.slane %v14816_v10, 5  ;;  %v13117_v3 = vmul.f32 %v9198_v19, %v12740_v29  ;;  %v13123_v42 = vld [vmem:[%s14531_s6 + $0x10] sm:$0xff]  ;;  %v13137_v19 = vld [vmem:[%s14531_s6 + $0x18] sm:$0xff] }
 0x7d6   : > { %1762 = vrot.lane.b32.xlu1 %v1699_v31, %s9329_s17  ;;  %v5401_v22 = vpop.xlane.xlu0 %5400  ;;  %9209 = vrcp.f32 %v5629_v16  ;;  %8636 = vmatprep.subr.bf16.mxu0 %v8635_v58  ;;  %14830 = vst [vmem:[#allocation11_spill] sm:$0xff] %v13123_v42  ;;  %v5746_v0 = vmul.f32 %v13123_v42, %v5730_v4  ;;  %v14831_v27 = vrot.slane %v14826_v51, 3  ;;  %v14832_v31 = vrot.slane %v14818_v56, 3  ;;  %14833 = vst [vmem:[#allocation18_spill] sm:$0xff] %v13137_v19 }
 0x7d7   : > { %v1443_v17 = vsel %vm1396_vm5, %v14829_v40, %v14639_v46  ;;  %v13132_v29 = vmul.f32 %v9200_v26, %v12738_v15  ;;  %9211 = vrcp.f32 %v5401_v22  ;;  %v5747_v16 = vmul.f32 %v13137_v19, %v5731_v34 }
 0x7d8   : > { %1506 = vrot.lane.b32.xlu0 %v1443_v17, %s9329_s17  ;;  %v963_v40 = vsel %vm912_vm4, %v14832_v31, %v14831_v27  ;;  %v5680_v4 = vmul.f32 %v12972_v30, %v13117_v3  ;;  %v5715_v17 = vadd.f32 %v5699_v55, %v5681_v9  ;;  %v9202_v46 = vpop.eup %9201  ;;  %8190 = vmatprep.mubr.f32.mxu0 %v5746_v0  ;;  %v14834_v27 = vrot.slane %v14817_v61, 4 }
 0x7d9   : > { %v1700_v26 = vrot.slane %v14817_v61, 7  ;;  %v5698_v31 = vmul.f32 %v12965_v8, %v13132_v29  ;;  %v9204_v34 = vpop.eup %9203  ;;  %v8969_v19 = vunpack.i.h.bf16 %v12932_v11  ;;  %v8968_v55 = vunpack.i.l.bf16 %v12932_v11  ;;  %8191 = vmatmul.mubr.f32.gmra.mrb[82].mxu0 %v5747_v16  ;;  %v5399_v9 = vpop.xlane.xlu1 %5398 }
 0x7da   : > { %v1187_v15 = vsel %vm1138_vm3, %v14834_v27, %v14642_v60  ;;  %1026 = vrot.lane.b32.xlu1 %v963_v40, %s9329_s17  ;;  %v5627_v0 = vpop.xlane.xlu0 %5626  ;;  %v8639_v42 = vpack.c.bf16 %v8964_v63, %v8963_v5  ;;  %v13155_v27 = vmul.f32 %v9202_v46, %v12746_v1  ;;  %8638 = vmatpush3.bf16.msra.mxu0 %v8635_v58  ;;  %9213 = vrcp.f32 %v5399_v9 }
 0x7db   : > { %v5714_v60 = vadd.f32 %v5698_v31, %v5680_v4  ;;  %v13159_v22 = vmul.f32 %v9204_v34, %v12748_v25  ;;  %9215 = vrcp.f32 %v5627_v0  ;;  %v5733_v11 = vadd.f32 %v13010_v37, %v5715_v17 }
 0x7dc   : > { %1250 = vrot.lane.b32.xlu0 %v1187_v15, %s9329_s17  ;;  %8640 = vmatprep.subr.bf16.mxu0 %v8639_v42  ;;  %v5701_v40 = vmul.f32 %v12965_v8, %v13155_v27  ;;  %v9206_v16 = vpop.eup %9205  ;;  %v14835_v1 = vrot.slane %v14816_v10, 7  ;;  %v14643_v58 = vrot.slane %v14818_v56, 5  ;;  %v8643_v15 = vpack.c.bf16 %v8969_v19, %v8968_v55 }
 0x7dd   : > { %v5732_v5 = vadd.f32 %v13010_v37, %v5714_v60  ;;  %v5683_v25 = vmul.f32 %v12972_v30, %v13159_v22  ;;  %v9208_v63 = vpop.eup %9207  ;;  %v5633_v4 = vpop.xlane.xlu1 %5632  ;;  %v14836_v31 = vrot.slane %v14815_v18, 1  ;;  %v14837_v34 = vrot.slane %v11878_v48, 1 }
 0x7de   : > { %v1701_v46 = vsel %vm1654_vm6, %v14835_v1, %v1700_v26  ;;  %v5405_v17 = vpop.xlane.xlu0 %5404  ;;  %v14644_v0 = vrot.slane %v14826_v51, 4  ;;  %v13181_v60 = vmul.f32 %v9206_v16, %v12756_v52  ;;  %8642 = vmatpush3.bf16.msra.mxu0 %v8639_v42  ;;  %9217 = vrcp.f32 %v5633_v4  ;;  %v13187_v1 = vld [vmem:[%s14531_s6 + $0x20] sm:$0xff]  ;;  %v13196_v52 = vld [vmem:[%s14531_s6 + $0x28] sm:$0xff] }
 0x7df   : > { %1764 = vrot.lane.b32.xlu1 %v1701_v46, %s9329_s17  ;;  %v2148_v9 = vsel %vm2105_vm7, %v14837_v34, %v14836_v31  ;;  %v5748_v19 = vmul.f32 %v13187_v1, %v5732_v5  ;;  %v13191_v48 = vmul.f32 %v9208_v63, %v12754_v62  ;;  %9219 = vrcp.f32 %v5405_v17  ;;  %8644 = vmatprep.subr.bf16.mxu0 %v8643_v15  ;;  %v14840_v63 = vld [vmem:[#allocation51_spill] sm:$0xff] }
 0x7e0   : > { %2212 = vrot.lane.b32.xlu0 %v2148_v9, %s9329_s17  ;;  %14838 = vst [vmem:[#allocation20_spill] sm:$0xff] %v13196_v52  ;;  %v5749_v42 = vmul.f32 %v13196_v52, %v5733_v11  ;;  %v5682_v55 = vmul.f32 %v12972_v30, %v13181_v60  ;;  %v5717_v16 = vadd.f32 %v5701_v40, %v5683_v25  ;;  %v9210_v46 = vpop.eup %9209  ;;  %v14839_v62 = vrot.slane %v14817_v61, 5 }
 0x7e1   : > { %8193 = vmatprep.mubr.f32.mxu0 %v5748_v19  ;;  %v14646_v4 = vrot.slane %v14840_v63, 3  ;;  %v5700_v17 = vmul.f32 %v12965_v8, %v13191_v48  ;;  %v9212_v31 = vpop.eup %9211  ;;  %v5403_v11 = vpop.xlane.xlu1 %5402  ;;  %v14841_v40 = vrot.slane %v14818_v56, 4  ;;  %v14645_v9 = vrot.slane %v14816_v10, 1 }
 0x7e2   : > { %v1445_v5 = vsel %vm1396_vm5, %v14839_v62, %v14643_v58  ;;  %8194 = vmatmul.mubr.f32.gmra.mrb[84].mxu0 %v5749_v42  ;;  %v5631_v34 = vpop.xlane.xlu0 %5630  ;;  %v13217_v19 = vmul.f32 %v9210_v46, %v12762_v36  ;;  %9221 = vrcp.f32 %v5403_v11  ;;  %v13221_v62 = vmul.f32 %v9212_v31, %v12764_v43 }
 0x7e3   : > { %1508 = vrot.lane.b32.xlu1 %v1445_v5, %s9329_s17  ;;  %v1189_v25 = vsel %vm1138_vm3, %v14841_v40, %v14644_v0  ;;  %8646 = vmatpush3.bf16.msra.mxu0 %v8643_v15  ;;  %v5716_v42 = vadd.f32 %v5700_v17, %v5682_v55  ;;  %9223 = vrcp.f32 %v5631_v34  ;;  %v5735_v5 = vadd.f32 %v13010_v37, %v5717_v16 }
 0x7e4   : > { %1252 = vrot.lane.b32.xlu0 %v1189_v25, %s9329_s17  ;;  %v5703_v58 = vmul.f32 %v12965_v8, %v13217_v19  ;;  %v9214_v40 = vpop.eup %9213  ;;  %v14842_v36 = vrot.slane %v14826_v51, 3  ;;  %v1702_v55 = vrot.slane %v14818_v56, 7  ;;  %v5685_v43 = vmul.f32 %v12972_v30, %v13221_v62 }
 0x7e5   : > { %v5734_v46 = vadd.f32 %v13010_v37, %v5716_v42  ;;  %v9216_v17 = vpop.eup %9215  ;;  %v5637_v31 = vpop.xlane.xlu1 %5636  ;;  %v14843_v11 = vrot.slane %v14815_v18, 1  ;;  %v14648_v25 = vrot.slane %v14826_v51, 5  ;;  %v13243_v42 = vmul.f32 %v9214_v40, %v12772_v6  ;;  %v13258_v18 = vld [vmem:[%s14531_s6 + $0x38] sm:$0xff] }
 0x7e6   : > { %v965_v15 = vsel %vm912_vm4, %v14842_v36, %v14646_v4  ;;  %v5409_v16 = vpop.xlane.xlu0 %5408  ;;  %9225 = vrcp.f32 %v5637_v31  ;;  %v13249_v36 = vld [vmem:[%s14531_s6 + $0x30] sm:$0xff]  ;;  %v13253_v0 = vmul.f32 %v9216_v17, %v12770_v33  ;;  %14845 = vst [vmem:[#allocation24_spill] sm:$0xff] %v13258_v18  ;;  %v5751_v6 = vmul.f32 %v13258_v18, %v5735_v5  ;;  %v14846_v33 = vld [vmem:[#allocation45_spill] sm:$0xff] }
 0x7e7   : > { %1028 = vrot.lane.b32.xlu1 %v965_v15, %s9329_s17  ;;  %v2150_v34 = vsel %vm2105_vm7, %v14843_v11, %v14645_v9  ;;  %14844 = vst [vmem:[#allocation23_spill] sm:$0xff] %v13249_v36  ;;  %v5750_v15 = vmul.f32 %v13249_v36, %v5734_v46  ;;  %9227 = vrcp.f32 %v5409_v16  ;;  %v5684_v40 = vmul.f32 %v12972_v30, %v13243_v42 }
 0x7e8   : > { %2214 = vrot.lane.b32.xlu0 %v2150_v34, %s9329_s17  ;;  %v5719_v31 = vadd.f32 %v5703_v58, %v5685_v43  ;;  %v9218_v11 = vpop.eup %9217  ;;  %v1703_v46 = vsel %vm1654_vm6, %v1700_v26, %v1702_v55  ;;  %v5702_v16 = vmul.f32 %v12965_v8, %v13253_v0  ;;  %v14847_v58 = vrot.slane %v14818_v56, 5 }
 0x7e9   : > { %8196 = vmatprep.mubr.f32.mxu0 %v5750_v15  ;;  %v9220_v34 = vpop.eup %9219  ;;  %v5407_v9 = vpop.xlane.xlu1 %5406  ;;  %v1190_v15 = vrot.slane %v14840_v63, 4  ;;  %v13278_v4 = vmul.f32 %v9218_v11, %v12778_v50  ;;  %v2151_v18 = vrot.slane %v14817_v61, 1  ;;  %v14851_v26 = vrot.slane %v14840_v63, 3 }
 0x7ea   : > { %8197 = vmatmul.mubr.f32.gmra.mrb[86].mxu0 %v5751_v6  ;;  %v5635_v5 = vpop.xlane.xlu0 %5634  ;;  %v1447_v43 = vsel %vm1396_vm5, %v14847_v58, %v14648_v25  ;;  %9229 = vrcp.f32 %v5407_v9  ;;  %v5718_v6 = vadd.f32 %v5702_v16, %v5684_v40  ;;  %v5737_v17 = vadd.f32 %v13010_v37, %v5719_v31 }
 0x7eb   : > { %1766 = vrot.lane.b32.xlu1 %v1703_v46, %s9329_s17  ;;  %14848 = vst [vmem:[#allocation27_spill] sm:$0xff] %v13278_v4  ;;  %v13282_v46 = vmul.f32 %v9220_v34, %v12780_v12  ;;  %9231 = vrcp.f32 %v5635_v5  ;;  %v14850_v25 = vrot.slane %v14846_v33, 3  ;;  %v5705_v12 = vmul.f32 %v12965_v8, %v13278_v4 }
 0x7ec   : > { %1510 = vrot.lane.b32.xlu0 %v1447_v43, %s9329_s17  ;;  %v9222_v58 = vpop.eup %9221  ;;  %v5736_v9 = vadd.f32 %v13010_v37, %v5718_v6  ;;  %v14852_v31 = vrot.slane %v14826_v51, 4  ;;  %v14853_v5 = vrot.slane %v14826_v51, 7  ;;  %v1448_v43 = vrot.slane %v14840_v63, 5  ;;  %v13311_v6 = vld [vmem:[%s14531_s6 + $0x40] sm:$0xff] }
 0x7ed   : > { %14849 = vst [vmem:[#allocation28_spill] sm:$0xff] %v13282_v46  ;;  %v967_v50 = vsel %vm912_vm4, %v14851_v26, %v14850_v25  ;;  %v5687_v40 = vmul.f32 %v12972_v30, %v13282_v46  ;;  %v9224_v11 = vpop.eup %9223  ;;  %v5641_v16 = vpop.xlane.xlu1 %5640  ;;  %v13305_v26 = vmul.f32 %v9222_v58, %v12788_v45  ;;  %14854 = vst [vmem:[#allocation30_spill] sm:$0xff] %v13311_v6  ;;  %v13321_v45 = vld [vmem:[%s14531_s6 + $0x48] sm:$0xff]  ;;  %v14862_v46 = vrot.slane %v14846_v33, 3 }
 0x7ee   : > { %v5413_v61 = vpop.xlane.xlu0 %5412  ;;  %v1191_v34 = vsel %vm1138_vm3, %v14852_v31, %v1190_v15  ;;  %v1705_v25 = vsel %vm1654_vm6, %v1702_v55, %v14853_v5  ;;  %9233 = vrcp.f32 %v5641_v16  ;;  %v1192_v31 = vrot.slane %v14846_v33, 4  ;;  %14856 = vst [vmem:[#allocation34_spill] sm:$0xff] %v13321_v45  ;;  %v14857_v16 = vld [vmem:[#allocation39_spill] sm:$0xff] }
 0x7ef   : > { %1030 = vrot.lane.b32.xlu1 %v967_v50, %s9329_s17  ;;  %v5752_v50 = vmul.f32 %v13311_v6, %v5736_v9  ;;  %v13316_v36 = vmul.f32 %v9224_v11, %v12786_v53  ;;  %9235 = vrcp.f32 %v5413_v61  ;;  %v5753_v55 = vmul.f32 %v13321_v45, %v5737_v17 }
 0x7f0   : > { %1254 = vrot.lane.b32.xlu0 %v1191_v34, %s9329_s17  ;;  %v5686_v58 = vmul.f32 %v12972_v30, %v13305_v26  ;;  %v968_v34 = vrot.slane %v14857_v16, 3  ;;  %v9226_v5 = vpop.eup %9225  ;;  %v14858_v9 = vrot.slane %v14816_v10, 1  ;;  %v5721_v61 = vadd.f32 %v5705_v12, %v5687_v40 }
 0x7f1   : > { %14855 = vst [vmem:[#allocation31_spill] sm:$0xff] %v13316_v36  ;;  %8199 = vmatprep.mubr.f32.mxu0 %v5752_v50  ;;  %v5704_v11 = vmul.f32 %v12965_v8, %v13316_v36  ;;  %v9228_v4 = vpop.eup %9227  ;;  %v5411_v17 = vpop.xlane.xlu1 %5410  ;;  %v14859_v10 = vrot.slane %v14826_v51, 5  ;;  %v13344_v12 = vmul.f32 %v9226_v5, %v12794_v7  ;;  %v14866_v40 = vrot.slane %v14846_v33, 5 }
 0x7f2   : > { %v2152_v53 = vsel %vm2105_vm7, %v14858_v9, %v2151_v18  ;;  %8200 = vmatmul.mubr.f32.gmra.mrb[88].mxu0 %v5753_v55  ;;  %v5639_v50 = vpop.xlane.xlu0 %5638  ;;  %9237 = vrcp.f32 %v5411_v17  ;;  %v1193_v55 = vsel %vm1138_vm3, %v1190_v15, %v1192_v31 }
 0x7f3   : > { %1768 = vrot.lane.b32.xlu1 %v1705_v25, %s9329_s17  ;;  %v1449_v9 = vsel %vm1396_vm5, %v14859_v10, %v1448_v43  ;;  %14860 = vst [vmem:[#allocation35_spill] sm:$0xff] %v13344_v12  ;;  %v5720_v6 = vadd.f32 %v5704_v11, %v5686_v58  ;;  %v13349_v25 = vmul.f32 %v9228_v4, %v12796_v32  ;;  %9239 = vrcp.f32 %v5639_v50 }
 0x7f4   : > { %2216 = vrot.lane.b32.xlu0 %v2152_v53, %s9329_s17  ;;  %v969_v10 = vsel %vm912_vm4, %v14862_v46, %v968_v34  ;;  %v9230_v7 = vpop.eup %9229  ;;  %v5739_v53 = vadd.f32 %v13010_v37, %v5721_v61  ;;  %v5707_v32 = vmul.f32 %v12965_v8, %v13344_v12  ;;  %v14863_v11 = vrot.slane %v14818_v56, 1 }
 0x7f5   : > { %14861 = vst [vmem:[#allocation37_spill] sm:$0xff] %v13349_v25  ;;  %v5738_v5 = vadd.f32 %v13010_v37, %v5720_v6  ;;  %v5689_v15 = vmul.f32 %v12972_v30, %v13349_v25  ;;  %v9232_v4 = vpop.eup %9231  ;;  %v8977_v58 = vpop.permute.xlu1 %8976  ;;  %v14864_v50 = vrot.slane %v14840_v63, 7  ;;  %v14865_v6 = vrot.slane %v14826_v51, 7 }
 0x7f6   : > { %v8972_v46 = vpop.permute.xlu0 %8971  ;;  %v2154_v17 = vsel %vm2105_vm7, %v2151_v18, %v14863_v11  ;;  %v1451_v45 = vsel %vm1396_vm5, %v1448_v43, %v14866_v40  ;;  %v13375_v12 = vmul.f32 %v9230_v7, %v12802_v59  ;;  %v8978_v25 = vunpack.i.l.bf16 %v8977_v58  ;;  %v13381_v18 = vld [vmem:[%s14531_s6 + $0x50] sm:$0xff] }
 0x7f7   : > { %1512 = vrot.lane.b32.xlu1 %v1449_v9, %s9329_s17  ;;  %v1707_v61 = vsel %vm1654_vm6, %v14865_v6, %v14864_v50  ;;  %v8979_v9 = vunpack.i.h.bf16 %v8977_v58  ;;  %v8974_v52 = vunpack.i.h.bf16 %v8972_v46  ;;  %v8973_v36 = vunpack.i.l.bf16 %v8972_v46  ;;  %14868 = vst [vmem:[#allocation41_spill] sm:$0xff] %v13381_v18 }
 0x7f8   : > { %14867 = vst [vmem:[#allocation38_spill] sm:$0xff] %v13375_v12  ;;  %1256 = vrot.lane.b32.xlu0 %v1193_v55, %s9329_s17  ;;  %v5754_v11 = vmul.f32 %v13381_v18, %v5738_v5  ;;  %v13385_v43 = vmul.f32 %v9232_v4, %v12800_v13  ;;  %v5688_v59 = vmul.f32 %v12972_v30, %v13375_v12  ;;  %v14869_v40 = vrot.slane %v11958_v24, 3  ;;  %v9234_v58 = vpop.eup %9233  ;;  %v13397_v55 = vld [vmem:[%s14531_s6 + $0x58] sm:$0xff] }
 0x7f9   : > { %v5755_v46 = vmul.f32 %v13397_v55, %v5739_v53  ;;  %v8647_v5 = vpack.c.bf16 %v8974_v52, %v8973_v36  ;;  %v5723_v50 = vadd.f32 %v5707_v32, %v5689_v15  ;;  %v14870_v13 = vrot.slane %v14857_v16, 4  ;;  %v9236_v6 = vpop.eup %9235 }
 0x7fa   : > { %v13392_v7 = vsel %vm912_vm4, %v968_v34, %v14869_v40  ;;  %v13406_v18 = vstv %s13333_s23  ;;  %v13409_v34 = vstv %s13335_s24  ;;  %8202 = vmatprep.mubr.f32.mxu0 %v5754_v11  ;;  %v13412_v40 = vpop.permute.xlu1 %1036  ;;  %v8982_v12 = vpop.permute.xlu0 %8981  ;;  %v5706_v52 = vmul.f32 %v12965_v8, %v13385_v43 }
 0x7fb   : > { %v13403_v4 = vsel %vm1138_vm3, %v1192_v31, %v14870_v13  ;;  %1032 = vrot.lane.b32.xlu1 %v969_v10, %s9329_s17  ;;  %v13417_v36 = vmul.f32 %v9234_v58, %v12806_v28  ;;  %v8651_v53 = vpack.c.bf16 %v8979_v9, %v8978_v25  ;;  %8203 = vmatmul.mubr.f32.gmra.mrb[90].mxu0 %v5755_v46  ;;  %v14660_v31 = vrot.slane %v14826_v51, 1 }
 0x7fc   : > { %2218 = vrot.lane.b32.xlu0 %v2154_v17, %s9329_s17  ;;  %v5925_v15 = vmul.f32 %v13409_v34, %v13002_v21  ;;  %v5943_v10 = vmul.f32 %v13406_v18, %v12994_v39  ;;  %v8984_v32 = vunpack.i.h.bf16 %v8982_v12  ;;  %v8983_v11 = vunpack.i.l.bf16 %v8982_v12  ;;  %8648 = vmatprep.subr.bf16.mxu0 %v8647_v5  ;;  %v9238_v25 = vpop.eup %9237 }
 0x7fd   : > { %v5722_v13 = vadd.f32 %v5706_v52, %v5688_v59  ;;  %v13428_v28 = vmul.f32 %v9236_v6, %v12808_v44  ;;  %v5944_v17 = vmul.f32 %v13406_v18, %v12970_v54  ;;  %8650 = vmatpush3.bf16.msra.mxu0 %v8647_v5  ;;  %v5741_v9 = vadd.f32 %v13010_v37, %v5723_v50  ;;  %v9240_v59 = vpop.eup %9239 }
 0x7fe   : > { %v14871_v21 = vrot.slane %v14846_v33, 7  ;;  %v14872_v39 = vrot.slane %v14840_v63, 7  ;;  %v5709_v12 = vmul.f32 %v12965_v8, %v13417_v36  ;;  %8652 = vmatprep.subr.bf16.mxu0 %v8651_v53  ;;  %v13441_v44 = vpop.permute.xlu1 %1038  ;;  %v13443_v46 = vpop.permute.xlu0 %1262  ;;  %v13447_v5 = vmul.f32 %v9238_v25, %v12814_v2  ;;  %v6874_v2 = vld [vmem:[%s14528_s3 + $0x1f0] sm:$0xff] }
 0x7ff   : > { %1770 = vrot.lane.b32.xlu1 %v1707_v61, %s9329_s17  ;;  %14873 = vst [vmem:[#allocation42_spill] sm:$0xff] %v13443_v46  ;;  %v5740_v54 = vadd.f32 %v13010_v37, %v5722_v13  ;;  %v5691_v50 = vmul.f32 %v12972_v30, %v13428_v28  ;;  %v5926_v6 = vmul.f32 %v13409_v34, %v12977_v57  ;;  %v13464_v13 = vld [vmem:[%s14531_s6 + $0x60] sm:$0xff] }
 0x800   : > { %v1709_v58 = vsel %vm1654_vm6, %v14872_v39, %v14871_v21  ;;  %1514 = vrot.lane.b32.xlu0 %v1451_v45, %s9329_s17  ;;  %v5959_v52 = vadd.f32 %v5943_v10, %v5925_v15  ;;  %v5927_v61 = vmul.f32 %v13409_v34, %v13056_v49  ;;  %v5945_v21 = vmul.f32 %v13406_v18, %v13067_v14  ;;  %v13475_v14 = vld [vmem:[%s14531_s6 + $0x68] sm:$0xff] }
 0x801   : > { %v8655_v39 = vpack.c.bf16 %v8984_v32, %v8983_v11  ;;  %v5756_v57 = vmul.f32 %v13464_v13, %v5740_v54  ;;  %v13468_v45 = vmul.f32 %v9240_v59, %v12812_v41  ;;  %v5690_v49 = vmul.f32 %v12972_v30, %v13447_v5  ;;  %8654 = vmatpush3.bf16.msra.mxu0 %v8651_v53  ;;  %v878_v30 = vld [vmem:[%s14528_s3 + $0xf0] sm:$0xff] }
 0x802   : > { %v5757_v15 = vmul.f32 %v13475_v14, %v5741_v9  ;;  %v14874_v10 = vrot.slane %v14818_v56, 1  ;;  %v5725_v41 = vadd.f32 %v5709_v12, %v5691_v50  ;;  %v6906_v53 = vld [vmem:[%s14528_s3 + $0x2f0] sm:$0xff]  ;;  %v13490_v25 = vpop.permute.xlu1 %1520  ;;  %v13492_v9 = vpop.permute.xlu0 %1264  ;;  %v14875_v12 = vrot.slane %v11958_v24, 4 }
 0x803   : > { %8205 = vmatprep.mubr.f32.mxu0 %v5756_v57  ;;  %8656 = vmatprep.subr.bf16.mxu0 %v8655_v39  ;;  %v5708_v56 = vmul.f32 %v12965_v8, %v13468_v45  ;;  %v14876_v59 = vrot.slane %v14857_v16, 4  ;;  %v1710_v50 = vrot.slane %v14857_v16, 7  ;;  %v5960_v11 = vadd.f32 %v5944_v17, %v5926_v6 }
 0x804   : > { %v2156_v32 = vsel %vm2105_vm7, %v14874_v10, %v14660_v31  ;;  %v1329_v10 = vmul.f32 %v6874_v2, %v13443_v46  ;;  %8206 = vmatmul.mubr.f32.gmra.mrb[92].mxu0 %v5757_v15  ;;  %1034 = vrot.lane.b32.xlu1 %v13392_v7, %s9329_s17  ;;  %v13507_v31 = vstv %s13425_s26  ;;  %v5946_v8 = vmul.f32 %v13406_v18, %v13017_v47 }
 0x805   : > { %v1197_v54 = vsel %vm1138_vm3, %v14876_v59, %v14875_v12  ;;  %1258 = vrot.lane.b32.xlu0 %v13403_v4, %s9329_s17  ;;  %v6938_v12 = vld [vmem:[%s14528_s3 + $0x3f0] sm:$0xff]  ;;  %v5724_v59 = vadd.f32 %v5708_v56, %v5690_v49  ;;  %v5977_v2 = vadd.f32 %v13507_v31, %v5959_v52  ;;  %v5961_v15 = vadd.f32 %v5945_v21, %v5927_v61 }
 0x806   : > { %v5928_v7 = vmul.f32 %v13409_v34, %v13027_v20  ;;  %v1103_v57 = vmul.f32 %v13412_v40, %v878_v30  ;;  %v1587_v17 = vmul.f32 %v6906_v53, %v13490_v25  ;;  %8658 = vmatpush3.bf16.msra.mxu0 %v8655_v39  ;;  %v5743_v47 = vadd.f32 %v13010_v37, %v5725_v41  ;;  %v1779_v6 = vpop.permute.xlu1 %1778  ;;  %v13524_v46 = vpop.permute.xlu0 %1522 }
 0x807   : > { %v5948_v4 = vmul.f32 %v13406_v18, %v13089_v35  ;;  %v5742_v49 = vadd.f32 %v13010_v37, %v5724_v59  ;;  %v5929_v52 = vmul.f32 %v13409_v34, %v13117_v3  ;;  %v5947_v20 = vmul.f32 %v13406_v18, %v13132_v29 }
 0x808   : > { %v5930_v61 = vmul.f32 %v13409_v34, %v13094_v38  ;;  %v1361_v21 = vadd.f32 %v1329_v10, %v1103_v57  ;;  %1772 = vrot.lane.b32.xlu1 %v1709_v58, %s9329_s17  ;;  %v1845_v39 = vmul.f32 %v6938_v12, %v1779_v6  ;;  %v14877_v35 = vrot.slane %v14857_v16, 5  ;;  %v13546_v38 = vld [vmem:[%s14531_s6 + $0x70] sm:$0xff] }
 0x809   : > { %v14878_v41 = vrot.slane %v14846_v33, 5  ;;  %v14879_v37 = vrot.slane %v14846_v33, 7  ;;  %2220 = vrot.lane.b32.xlu0 %v2156_v32, %s9329_s17  ;;  %v5758_v29 = vmul.f32 %v13546_v38, %v5742_v49  ;;  %v5993_v58 = vmul.f32 %v13051_v23, %v5977_v2  ;;  %v13559_v32 = vld [vmem:[%s14531_s6 + $0x78] sm:$0xff]  ;;  %v6970_v23 = vld [vmem:[%s14528_s3 + $0x4f0] sm:$0xff] }
 0x80a   : > { %v5978_v53 = vadd.f32 %v13507_v31, %v5960_v11  ;;  %v14880_v56 = vrot.slane %v14840_v63, 1  ;;  %v14881_v57 = vrot.slane %v14826_v51, 1  ;;  %v1619_v12 = vadd.f32 %v1587_v17, %v1361_v21  ;;  %v13566_v11 = vpop.permute.xlu1 %1010  ;;  %v13568_v51 = vpop.permute.xlu0 %1780 }
 0x80b   : > { %v1453_v30 = vsel %vm1396_vm5, %v14878_v41, %v14877_v35  ;;  %v1711_v3 = vsel %vm1654_vm6, %v14879_v37, %v1710_v50  ;;  %v5759_v59 = vmul.f32 %v13559_v32, %v5743_v47  ;;  %v5979_v6 = vadd.f32 %v13507_v31, %v5961_v15  ;;  %8208 = vmatprep.mubr.f32.mxu0 %v5758_v29  ;;  %v7034_v37 = vld [vmem:[%s14528_s3 + $0x6f0] sm:$0xff] }
 0x80c   : > { %v2158_v10 = vsel %vm2105_vm7, %v14881_v57, %v14880_v56  ;;  %v5962_v49 = vadd.f32 %v5946_v8, %v5928_v7  ;;  %v5963_v2 = vadd.f32 %v5947_v20, %v5929_v52  ;;  %v5964_v17 = vadd.f32 %v5948_v4, %v5930_v61  ;;  %1516 = vrot.lane.b32.xlu1 %v1453_v30, %s9329_s17  ;;  %v14884_v61 = vld [vmem:[#allocation44_spill] sm:$0xff] }
 0x80d   : > { %v5931_v21 = vmul.f32 %v13409_v34, %v13181_v60  ;;  %v5949_v47 = vmul.f32 %v13406_v18, %v13191_v48  ;;  %v1877_v35 = vadd.f32 %v1845_v39, %v1619_v12  ;;  %8209 = vmatmul.mubr.f32.gmra.mrb[94].mxu0 %v5759_v59  ;;  %v5932_v8 = vmul.f32 %v13409_v34, %v13159_v22  ;;  %v7002_v60 = vld [vmem:[%s14528_s3 + $0x5f0] sm:$0xff] }
 0x80e   : > { %v5950_v15 = vmul.f32 %v13406_v18, %v13155_v27  ;;  %8243 = vmatprep.mubr.f32.mxu0 %v5993_v58  ;;  %1260 = vrot.lane.b32.xlu0 %v1197_v54, %s9329_s17  ;;  %v14882_v7 = vrot.slane %v11958_v24, 7  ;;  %v2163_v4 = vrot.slane %v11958_v24, 1  ;;  %v5933_v52 = vmul.f32 %v13409_v34, %v13243_v42  ;;  %v14883_v27 = vld [vmem:[#allocation32_spill] sm:$0xff]  ;;  %v2233_v42 = vpop.permute.xlu1 %2232  ;;  %v13602_v29 = vpop.permute.xlu0 %1236 }
 0x80f   : > { %v5951_v22 = vmul.f32 %v13406_v18, %v13253_v0  ;;  %v2038_v20 = vmul.f32 %v6970_v23, %v14883_v27  ;;  %v5994_v54 = vmul.f32 %v14884_v61, %v5978_v53  ;;  %v5980_v39 = vadd.f32 %v13507_v31, %v5962_v49  ;;  %v14887_v0 = vld [vmem:[#allocation11_spill] sm:$0xff]  ;;  %v14890_v61 = vld [vmem:[#allocation20_spill] sm:$0xff] }
 0x810   : > { %v1713_v48 = vsel %vm1654_vm6, %v1710_v50, %v14882_v7  ;;  %v14885_v41 = vrot.slane %v11958_v24, 5  ;;  %v14886_v30 = vrot.slane %v14857_v16, 5  ;;  %v5995_v58 = vmul.f32 %v14887_v0, %v5979_v6  ;;  %1774 = vrot.lane.b32.xlu1 %v1711_v3, %s9329_s17  ;;  %v7066_v7 = vld [vmem:[%s14528_s3 + $0x7f0] sm:$0xff] }
 0x811   : > { %v5981_v56 = vadd.f32 %v13507_v31, %v5963_v2  ;;  %v5982_v53 = vadd.f32 %v13507_v31, %v5964_v17  ;;  %v5965_v57 = vadd.f32 %v5949_v47, %v5931_v21  ;;  %8244 = vmatmul.mubr.f32.vlgmr.msra.gmra.mrb[96].mxu0 %v5994_v54  ;;  %v2070_v12 = vadd.f32 %v2038_v20, %v1877_v35  ;;  %v14888_v47 = vld [vmem:[#allocation18_spill] sm:$0xff] }
 0x812   : > { %v1455_v50 = vsel %vm1396_vm5, %v14886_v30, %v14885_v41  ;;  %v2298_v59 = vmul.f32 %v7002_v60, %v2233_v42  ;;  %v2161_v49 = vrot.slane %v14857_v16, 1  ;;  %v5966_v23 = vadd.f32 %v5950_v15, %v5932_v8  ;;  %8246 = vmatprep.mubr.f32.mxu0 %v5995_v58  ;;  %2222 = vrot.lane.b32.xlu0 %v2158_v10, %s9329_s17  ;;  %v7098_v10 = vld [vmem:[%s14528_s3 + $0x8f0] sm:$0xff]  ;;  %v13625_v8 = vpop.permute.xlu1 %2234  ;;  %v13627_v15 = vpop.permute.xlu0 %1494  ;;  %v14891_v42 = vld [vmem:[#allocation28_spill] sm:$0xff] }
 0x813   : > { %v5967_v6 = vadd.f32 %v5951_v22, %v5933_v52  ;;  %v5934_v2 = vmul.f32 %v13409_v34, %v13221_v62  ;;  %v5952_v17 = vmul.f32 %v13406_v18, %v13217_v19  ;;  %v2401_v3 = vmul.f32 %v7034_v37, %v13441_v44  ;;  %v14889_v52 = vld [vmem:[#allocation31_spill] sm:$0xff] }
 0x814   : > { %v2330_v21 = vadd.f32 %v2298_v59, %v2070_v12  ;;  %v5996_v16 = vmul.f32 %v14888_v47, %v5980_v39  ;;  %v2164_v35 = vsel %vm2105_vm7, %v2161_v49, %v2163_v4  ;;  %v5997_v62 = vmul.f32 %v13187_v1, %v5981_v56  ;;  %1776 = vrot.lane.b32.xlu1 %v1713_v48, %s9329_s17  ;;  %v14892_v58 = vld [vmem:[#allocation27_spill] sm:$0xff]  ;;  %v14894_v12 = vld [vmem:[#allocation38_spill] sm:$0xff] }
 0x815   : > { %v5983_v19 = vadd.f32 %v13507_v31, %v5965_v57  ;;  %v5935_v60 = vmul.f32 %v13409_v34, %v13305_v26  ;;  %v5953_v22 = vmul.f32 %v13406_v18, %v14889_v52  ;;  %v2504_v27 = vmul.f32 %v7066_v7, %v13492_v9 }
 0x816   : > { %v2433_v20 = vadd.f32 %v2401_v3, %v2330_v21  ;;  %8247 = vmatmul.mubr.f32.gmra.mrb[98].mxu0 %v5996_v16  ;;  %v5998_v54 = vmul.f32 %v14890_v61, %v5982_v53  ;;  %v2159_v39 = vrot.slane %v14846_v33, 1  ;;  %1518 = vrot.lane.b32.xlu0 %v1455_v50, %s9329_s17  ;;  %v5984_v1 = vadd.f32 %v13507_v31, %v5966_v23  ;;  %v13647_v56 = vpop.permute.xlu1 %1238  ;;  %v13649_v33 = vpop.permute.xlu0 %1012  ;;  %v14893_v53 = vld [vmem:[#allocation23_spill] sm:$0xff]  ;;  %v14897_v21 = vld [vmem:[#allocation30_spill] sm:$0xff] }
 0x817   : > { %8249 = vmatprep.mubr.f32.mxu0 %v5997_v62  ;;  %v5985_v26 = vadd.f32 %v13507_v31, %v5967_v6  ;;  %v5968_v41 = vadd.f32 %v5952_v17, %v5934_v2  ;;  %v2607_v30 = vmul.f32 %v7098_v10, %v13524_v46  ;;  %v5936_v0 = vmul.f32 %v13409_v34, %v14891_v42  ;;  %v14896_v17 = vld [vmem:[#allocation24_spill] sm:$0xff]  ;;  %v14898_v10 = vld [vmem:[#allocation37_spill] sm:$0xff] }
 0x818   : > { %v2536_v37 = vadd.f32 %v2504_v27, %v2433_v20  ;;  %v5954_v48 = vmul.f32 %v13406_v18, %v14892_v58  ;;  %v5999_v50 = vmul.f32 %v14893_v53, %v5983_v19  ;;  %v5969_v57 = vadd.f32 %v5953_v22, %v5935_v60  ;;  %2228 = vrot.lane.b32.xlu1 %v2164_v35, %s9329_s17  ;;  %v14899_v19 = vld [vmem:[#allocation35_spill] sm:$0xff] }
 0x819   : > { %v5937_v59 = vmul.f32 %v13409_v34, %v14894_v12  ;;  %v5955_v23 = vmul.f32 %v13406_v18, %v13385_v43  ;;  %v14895_v6 = vrot.slane %v14840_v63, 1  ;;  %v6000_v3 = vmul.f32 %v14896_v17, %v5984_v1  ;;  %v13667_v43 = vld [vmem:[%s14529_s4] ss:$0 sm:$0xff] }
 0x81a   : > { %v2639_v7 = vadd.f32 %v2607_v30, %v2536_v37  ;;  %8250 = vmatmul.mubr.f32.gmra.mrb[100].mxu0 %v5998_v54  ;;  %v6001_v47 = vmul.f32 %v14897_v21, %v5985_v26  ;;  %v5986_v16 = vadd.f32 %v13507_v31, %v5968_v41  ;;  %v5970_v63 = vadd.f32 %v5954_v48, %v5936_v0  ;;  %v13676_v52 = vpop.permute.xlu1 %1014  ;;  %v1751_v22 = vpop.permute.xlu0 %1750  ;;  %v14900_v26 = vld [vmem:[#allocation34_spill] sm:$0xff]  ;;  %v14901_v0 = vld [vmem:[#allocation41_spill] sm:$0xff] }
 0x81b   : > { %v2160_v2 = vsel %vm2105_vm7, %v14895_v6, %v2159_v39  ;;  %8252 = vmatprep.mubr.f32.mxu0 %v5999_v50  ;;  %v5938_v62 = vmul.f32 %v13409_v34, %v14898_v10  ;;  %v5956_v60 = vmul.f32 %v13406_v18, %v14899_v19  ;;  %v5987_v27 = vadd.f32 %v13507_v31, %v5969_v57  ;;  %v14902_v50 = vld [vmem:[#allocation52_spill] sm:$0xff]  ;;  %v14906_v19 = vld [vmem:[#allocation9_spill] sm:$0xff] }
 0x81c   : > { %2224 = vrot.lane.b32.xlu0 %v2160_v2, %s9329_s17  ;;  %v13670_v35 = vadd.f32 %v13667_v43, %v2639_v7  ;;  %v5971_v20 = vadd.f32 %v5955_v23, %v5937_v59  ;;  %v5939_v61 = vmul.f32 %v13409_v34, %v13447_v5  ;;  %v5957_v54 = vmul.f32 %v13406_v18, %v13468_v45  ;;  %v14905_v2 = vld [vmem:[#allocation10_spill] sm:$0xff] }
 0x81d   : > { %v2162_v1 = vsel %vm2105_vm7, %v2159_v39, %v2161_v49  ;;  %v6002_v41 = vmul.f32 %v14900_v26, %v5986_v16  ;;  %v5988_v30 = vadd.f32 %v13507_v31, %v5970_v63  ;;  %v5972_v37 = vadd.f32 %v5956_v60, %v5938_v62  ;;  %v6860_v49 = vld [vmem:[%s14528_s3 + $0x180] sm:$0xff] }
 0x81e   : > { %8253 = vmatmul.mubr.f32.gmra.mrb[102].mxu0 %v6000_v3  ;;  %6101 = vrot.lane.b32.xlu1 %v13670_v35, %s9325_s29  ;;  %v5940_v5 = vmul.f32 %v13409_v34, %v13428_v28  ;;  %v5958_v45 = vmul.f32 %v13406_v18, %v13417_v36  ;;  %v13696_v39 = vpop.permute.xlu1 %1752  ;;  %v13698_v42 = vpop.permute.xlu0 %1240  ;;  %v6003_v58 = vmul.f32 %v14901_v0, %v5987_v27  ;;  %v14903_v57 = vrot.slane %v14902_v50, 1  ;;  %v864_v34 = vld [vmem:[%s14528_s3 + $0x80] sm:$0xff]  ;;  %v14904_v36 = vld [vmem:[#allocation46_spill] sm:$0xff]  ;;  %v879_v27 = vld [vmem:[%s14528_s3 + $0xf8] sm:$0xff] }
 0x81f   : > { %8255 = vmatprep.mubr.f32.mxu0 %v6001_v47  ;;  %v5989_v48 = vadd.f32 %v13507_v31, %v5971_v20  ;;  %v5973_v53 = vadd.f32 %v5957_v54, %v5939_v61  ;;  %v1315_v28 = vmul.f32 %v6860_v49, %v14904_v36  ;;  %v6004_v12 = vmul.f32 %v13397_v55, %v5988_v30  ;;  %v6892_v3 = vld [vmem:[%s14528_s3 + $0x280] sm:$0xff]  ;;  %v6875_v47 = vld [vmem:[%s14528_s3 + $0x1f8] sm:$0xff]  ;;  %v6893_v30 = vld [vmem:[%s14528_s3 + $0x288] sm:$0xff] }
 0x820   : > { %2226 = vrot.lane.b32.xlu0 %v2162_v1, %s9329_s17  ;;  %v2166_v18 = vsel %vm2105_vm7, %v2163_v4, %v14903_v57  ;;  %v5990_v59 = vadd.f32 %v13507_v31, %v5972_v37  ;;  %v5974_v23 = vadd.f32 %v5958_v45, %v5940_v5  ;;  %v1089_v17 = vmul.f32 %v14905_v2, %v864_v34  ;;  %v6924_v55 = vld [vmem:[%s14528_s3 + $0x380] sm:$0xff]  ;;  %v6907_v20 = vld [vmem:[%s14528_s3 + $0x2f8] sm:$0xff] }
 0x821   : > { %v6005_v24 = vmul.f32 %v13464_v13, %v5989_v48  ;;  %v5991_v4 = vadd.f32 %v13507_v31, %v5973_v53  ;;  %v1573_v60 = vmul.f32 %v6892_v3, %v14906_v19  ;;  %v1831_v61 = vmul.f32 %v6924_v55, %v1751_v22  ;;  %v6956_v26 = vld [vmem:[%s14528_s3 + $0x480] sm:$0xff]  ;;  %v6971_v36 = vld [vmem:[%s14528_s3 + $0x4f8] sm:$0xff] }
 0x822   : > { %8256 = vmatmul.mubr.f32.gmra.mrb[104].mxu0 %v6002_v41  ;;  %v13714_v7 = vpop.permute.xlu1 %1496  ;;  %v13716_v6 = vpop.permute.xlu0 %2368  ;;  %v1347_v21 = vadd.f32 %v1315_v28, %v1089_v17  ;;  %v6006_v13 = vmul.f32 %v13475_v14, %v5990_v59  ;;  %v5992_v16 = vadd.f32 %v13507_v31, %v5974_v23  ;;  %v1330_v31 = vmul.f32 %v6875_v47, %v13492_v9  ;;  %v6861_v14 = vld [vmem:[%s14528_s3 + $0x188] sm:$0xff]  ;;  %v6988_v0 = vld [vmem:[%s14528_s3 + $0x580] sm:$0xff]  ;;  %v14908_v47 = vld [vmem:[#allocation36_spill] sm:$0xff] }
 0x823   : > { %8258 = vmatprep.mubr.f32.mxu0 %v6003_v58  ;;  %v6007_v62 = vmul.f32 %v13546_v38, %v5991_v4  ;;  %v6939_v38 = vld [vmem:[%s14528_s3 + $0x3f8] sm:$0xff]  ;;  %v1104_v22 = vmul.f32 %v13441_v44, %v879_v27  ;;  %v1588_v9 = vmul.f32 %v6907_v20, %v13524_v46  ;;  %v865_v41 = vld [vmem:[%s14528_s3 + $0x88] sm:$0xff]  ;;  %v14907_v58 = vld [vmem:[#allocation53_spill] sm:$0xff]  ;;  %v1574_v50 = vmul.f32 %v6893_v30, %v13627_v15 }
 0x824   : > { %2230 = vrot.lane.b32.xlu0 %v2166_v18, %s9329_s17  ;;  %v1605_v54 = vadd.f32 %v1573_v60, %v1347_v21  ;;  %v6008_v1 = vmul.f32 %v13559_v32, %v5992_v16  ;;  %v1316_v32 = vmul.f32 %v6861_v14, %v13602_v29  ;;  %v1846_v44 = vmul.f32 %v6939_v38, %v13568_v51  ;;  %v6925_v46 = vld [vmem:[%s14528_s3 + $0x388] sm:$0xff]  ;;  %v7020_v18 = vld [vmem:[%s14528_s3 + $0x680] sm:$0xff]  ;;  %v6862_v30 = vld [vmem:[%s14528_s3 + $0x190] sm:$0xff] }
 0x825   : > { %v1362_v49 = vadd.f32 %v1330_v31, %v1104_v22  ;;  %v2024_v48 = vmul.f32 %v6956_v26, %v14907_v58  ;;  %v1090_v53 = vmul.f32 %v13566_v11, %v865_v41  ;;  %v1832_v59 = vmul.f32 %v6925_v46, %v13696_v39  ;;  %v7052_v2 = vld [vmem:[%s14528_s3 + $0x780] sm:$0xff]  ;;  %v6957_v21 = vld [vmem:[%s14528_s3 + $0x488] sm:$0xff]  ;;  %v7099_v46 = vld [vmem:[%s14528_s3 + $0x8f8] sm:$0xff] }
 0x826   : > { %8259 = vmatmul.mubr.f32.gmra.mrb[106].mxu0 %v6004_v12  ;;  %v13732_v63 = vpop.permute.xlu1 %2471  ;;  %v13734_v10 = vpop.permute.xlu0 %1498  ;;  %v1863_v45 = vadd.f32 %v1831_v61, %v1605_v54  ;;  %v7003_v12 = vld [vmem:[%s14528_s3 + $0x5f8] sm:$0xff]  ;;  %v2387_v17 = vmul.f32 %v7020_v18, %v13566_v11  ;;  %v7084_v39 = vld [vmem:[%s14528_s3 + $0x880] sm:$0xff]  ;;  %v2490_v60 = vmul.f32 %v7052_v2, %v13602_v29  ;;  %v6989_v31 = vld [vmem:[%s14528_s3 + $0x588] sm:$0xff] }
 0x827   : > { %8261 = vmatprep.mubr.f32.mxu0 %v6005_v24  ;;  %v1620_v57 = vadd.f32 %v1588_v9, %v1362_v49  ;;  %v1348_v28 = vadd.f32 %v1316_v32, %v1090_v53  ;;  %v2299_v16 = vmul.f32 %v7003_v12, %v13625_v8  ;;  %v7067_v8 = vld [vmem:[%s14528_s3 + $0x7f8] sm:$0xff]  ;;  %v14909_v14 = vld [vmem:[#allocation54_spill] sm:$0xff]  ;;  %v2593_v54 = vmul.f32 %v7084_v39, %v13627_v15 }
 0x828   : > { %v2056_v23 = vadd.f32 %v2024_v48, %v1863_v45  ;;  %v2025_v38 = vmul.f32 %v6957_v21, %v14909_v14  ;;  %v7021_v29 = vld [vmem:[%s14528_s3 + $0x688] sm:$0xff]  ;;  %v2505_v15 = vmul.f32 %v7067_v8, %v13732_v63  ;;  %v1317_v63 = vmul.f32 %v6862_v30, %v13647_v56  ;;  %v6990_v14 = vld [vmem:[%s14528_s3 + $0x590] sm:$0xff] }
 0x829   : > { %v1878_v4 = vadd.f32 %v1846_v44, %v1620_v57  ;;  %v1606_v3 = vadd.f32 %v1574_v50, %v1348_v28  ;;  %v7053_v32 = vld [vmem:[%s14528_s3 + $0x788] sm:$0xff]  ;;  %v866_v44 = vld [vmem:[%s14528_s3 + $0x90] sm:$0xff] }
 0x82a   : > { %8262 = vmatmul.mubr.f32.gmra.mrb[108].mxu0 %v6006_v13  ;;  %v13763_v37 = vpop.permute.xlu1 %1242  ;;  %v13765_v5 = vpop.permute.xlu0 %1016  ;;  %v2039_v13 = vmul.f32 %v6971_v36, %v14908_v47  ;;  %v2491_v50 = vmul.f32 %v7053_v32, %v13647_v56  ;;  %v6894_v57 = vld [vmem:[%s14528_s3 + $0x290] sm:$0xff]  ;;  %v7085_v18 = vld [vmem:[%s14528_s3 + $0x888] sm:$0xff]  ;;  %v1091_v28 = vmul.f32 %v13649_v33, %v866_v44 }
 0x82b   : > { %8264 = vmatprep.mubr.f32.mxu0 %v6007_v62  ;;  %v7035_v62 = vld [vmem:[%s14528_s3 + $0x6f8] sm:$0xff]  ;;  %v1864_v27 = vadd.f32 %v1832_v59, %v1606_v3  ;;  %v6926_v56 = vld [vmem:[%s14528_s3 + $0x390] sm:$0xff] }
 0x82c   : > { %v2071_v61 = vadd.f32 %v2039_v13, %v1878_v4  ;;  %v2594_v4 = vmul.f32 %v7085_v18, %v13714_v7  ;;  %v868_v18 = vld [vmem:[%s14528_s3 + $0xa0] sm:$0xff] }
 0x82e   : > { %8265 = vmatmul.mubr.f32.gmra.mrb[110].mxu0 %v6008_v1  ;;  %v2205_v51 = vpop.permute.xlu1 %2204  ;;  %v13781_v34 = vpop.permute.xlu0 %1754  ;;  %v2402_v1 = vmul.f32 %v7035_v62, %v13716_v6  ;;  %v2331_v22 = vadd.f32 %v2299_v16, %v2071_v61  ;;  %v2057_v6 = vadd.f32 %v2025_v38, %v1864_v27  ;;  %v6863_v16 = vld [vmem:[%s14528_s3 + $0x198] sm:$0xff] }
 0x82f   : > { %v2284_v24 = vmul.f32 %v6988_v0, %v2205_v51  ;;  %v2388_v0 = vmul.f32 %v7021_v29, %v13649_v33  ;;  %v1349_v33 = vadd.f32 %v1317_v63, %v1091_v28  ;;  %v1833_v21 = vmul.f32 %v6926_v56, %v13781_v34  ;;  %v867_v34 = vld [vmem:[%s14528_s3 + $0x98] sm:$0xff]  ;;  %v14911_v28 = vld [vmem:[#allocation14_spill] sm:$0xff] }
 0x830   : > { %v2434_v58 = vadd.f32 %v2402_v1, %v2331_v22  ;;  %v6895_v62 = vld [vmem:[%s14528_s3 + $0x298] sm:$0xff]  ;;  %v1092_v1 = vmul.f32 %v13676_v52, %v867_v34  ;;  %v7022_v22 = vld [vmem:[%s14528_s3 + $0x690] sm:$0xff] }
 0x831   : > { %v2316_v55 = vadd.f32 %v2284_v24, %v2056_v23  ;;  %v1575_v24 = vmul.f32 %v6894_v57, %v13714_v7  ;;  %v6958_v7 = vld [vmem:[%s14528_s3 + $0x490] sm:$0xff]  ;;  %v14910_v38 = vld [vmem:[#allocation16_spill] sm:$0xff] }
 0x832   : > { %v13805_v19 = vpop.permute.xlu1 %1244  ;;  %v13807_v11 = vpop.permute.xlu0 %1018  ;;  %v2537_v12 = vadd.f32 %v2505_v15, %v2434_v58  ;;  %v7086_v58 = vld [vmem:[%s14528_s3 + $0x890] sm:$0xff]  ;;  %v7023_v56 = vld [vmem:[%s14528_s3 + $0x698] sm:$0xff] }
 0x833   : > { %v2419_v20 = vadd.f32 %v2387_v17, %v2316_v55  ;;  %v1607_v39 = vadd.f32 %v1575_v24, %v1349_v33  ;;  %v6896_v24 = vld [vmem:[%s14528_s3 + $0x2a0] sm:$0xff] }
 0x835   : > { %v2522_v26 = vadd.f32 %v2490_v60, %v2419_v20  ;;  %v1318_v20 = vmul.f32 %v6863_v16, %v13698_v42  ;;  %v1865_v61 = vadd.f32 %v1833_v21, %v1607_v39  ;;  %v6928_v16 = vld [vmem:[%s14528_s3 + $0x3a0] sm:$0xff]  ;;  %v2390_v39 = vmul.f32 %v7023_v56, %v13765_v5 }
 0x836   : > { %v2207_v9 = vpop.permute.xlu1 %2206  ;;  %v1757_v41 = vpop.permute.xlu0 %1756 }
 0x837   : > { %v2625_v45 = vadd.f32 %v2593_v54, %v2522_v26  ;;  %v2285_v49 = vmul.f32 %v6989_v31, %v2207_v9  ;;  %v6927_v31 = vld [vmem:[%s14528_s3 + $0x398] sm:$0xff]  ;;  %v2026_v54 = vmul.f32 %v6958_v7, %v14910_v38  ;;  %v1576_v26 = vmul.f32 %v6895_v62, %v13734_v10 }
 0x838   : > { %v1350_v30 = vadd.f32 %v1318_v20, %v1092_v1  ;;  %v1834_v32 = vmul.f32 %v6927_v31, %v1757_v41  ;;  %v7087_v20 = vld [vmem:[%s14528_s3 + $0x898] sm:$0xff] }
 0x839   : > { %v2317_v48 = vadd.f32 %v2285_v49, %v2057_v6  ;;  %v13837_v53 = vadd.f32 %v13667_v43, %v2625_v45  ;;  %v2058_v15 = vadd.f32 %v2026_v54, %v1865_v61  ;;  %v7054_v6 = vld [vmem:[%s14528_s3 + $0x790] sm:$0xff]  ;;  %v2389_v49 = vmul.f32 %v7022_v22, %v13676_v52 }
 0x83a   : > { %v13847_v51 = vpop.permute.xlu1 %1500  ;;  %v2575_v36 = vpop.permute.xlu0 %2574  ;;  %v1608_v44 = vadd.f32 %v1576_v26, %v1350_v30  ;;  %v2492_v63 = vmul.f32 %v7054_v6, %v13698_v42  ;;  %v869_v26 = vld [vmem:[%s14528_s3 + $0xa8] sm:$0xff] }
 0x83b   : > { %v2420_v59 = vadd.f32 %v2388_v0, %v2317_v48  ;;  %v2608_v23 = vmul.f32 %v7099_v46, %v2575_v36  ;;  %6073 = vrot.lane.b32.xlu1 %v13837_v53, %s9325_s29  ;;  %v6959_v0 = vld [vmem:[%s14528_s3 + $0x498] sm:$0xff]  ;;  %v1577_v7 = vmul.f32 %v6896_v24, %v13847_v51  ;;  %v1094_v6 = vmul.f32 %v13807_v11, %v869_v26 }
 0x83c   : > { %v1866_v52 = vadd.f32 %v1834_v32, %v1608_v44  ;;  %v6991_v36 = vld [vmem:[%s14528_s3 + $0x598] sm:$0xff] }
 0x83d   : > { %v2523_v2 = vadd.f32 %v2491_v50, %v2420_v59  ;;  %v2640_v17 = vadd.f32 %v2608_v23, %v2537_v12  ;;  %v6864_v50 = vld [vmem:[%s14528_s3 + $0x1a0] sm:$0xff]  ;;  %v2027_v12 = vmul.f32 %v6959_v0, %v14911_v28  ;;  %v2595_v59 = vmul.f32 %v7086_v58, %v13734_v10  ;;  %v7055_v10 = vld [vmem:[%s14528_s3 + $0x798] sm:$0xff]  ;;  %v14912_v0 = vld [vmem:[#allocation22_spill] sm:$0xff] }
 0x83e   : > { %v13857_v3 = vpop.permute.xlu1 %1020  ;;  %v13859_v55 = vpop.permute.xlu0 %1502  ;;  %v1319_v42 = vmul.f32 %v6864_v50, %v13763_v37 }
 0x83f   : > { %v2626_v47 = vadd.f32 %v2594_v4, %v2523_v2  ;;  %v13863_v13 = vadd.f32 %v13667_v43, %v2640_v17  ;;  %v1093_v17 = vmul.f32 %v13765_v5, %v868_v18  ;;  %v2059_v21 = vadd.f32 %v2027_v12, %v1866_v52  ;;  %v6865_v5 = vld [vmem:[%s14528_s3 + $0x1a8] sm:$0xff]  ;;  %v7024_v52 = vld [vmem:[%s14528_s3 + $0x6a0] sm:$0xff] }
 0x841   : > { %6103 = vrot.lane.b32.xlu0 %v13863_v13, %s9325_s29  ;;  %v13883_v8 = vadd.f32 %v13667_v43, %v2626_v47  ;;  %v1351_v38 = vadd.f32 %v1319_v42, %v1093_v17  ;;  %v2391_v42 = vmul.f32 %v7024_v52, %v13807_v11  ;;  %v6866_v11 = vld [vmem:[%s14528_s3 + $0x1b0] sm:$0xff] }
 0x842   : > { %v1759_v60 = vpop.permute.xlu1 %1758  ;;  %v13879_v27 = vpop.permute.xlu0 %1246 }
 0x843   : > { %v1835_v54 = vmul.f32 %v6928_v16, %v1759_v60  ;;  %v1609_v22 = vadd.f32 %v1577_v7, %v1351_v38  ;;  %v6897_v60 = vld [vmem:[%s14528_s3 + $0x2a8] sm:$0xff]  ;;  %v6898_v38 = vld [vmem:[%s14528_s3 + $0x2b0] sm:$0xff] }
 0x844   : > { %v6993_v16 = vld [vmem:[%s14528_s3 + $0x5a8] sm:$0xff] }
 0x845   : > { %6075 = vrot.lane.b32.xlu0 %v13883_v8, %s9325_s29 }
 0x846   : > { %v13899_v29 = vpop.permute.xlu1 %1022  ;;  %v2209_v9 = vpop.permute.xlu0 %2208 }
 0x847   : > { %v2286_v45 = vmul.f32 %v6990_v14, %v2209_v9  ;;  %v2493_v14 = vmul.f32 %v7055_v10, %v13763_v37  ;;  %v2596_v9 = vmul.f32 %v7087_v20, %v13847_v51  ;;  %v6960_v37 = vld [vmem:[%s14528_s3 + $0x4a0] sm:$0xff]  ;;  %v6929_v51 = vld [vmem:[%s14528_s3 + $0x3a8] sm:$0xff] }
 0x848   : > { %v2028_v58 = vmul.f32 %v6960_v37, %v14912_v0  ;;  %v6930_v37 = vld [vmem:[%s14528_s3 + $0x3b0] sm:$0xff]  ;;  %v6282_v0 = vld [vmem:[%s14536_s11] sm:$0xff] }
 0x849   : > { %v2318_v46 = vadd.f32 %v2286_v45, %v2058_v15  ;;  %v1320_v45 = vmul.f32 %v6865_v5, %v13805_v19  ;;  %v1321_v5 = vmul.f32 %v6866_v11, %v13879_v27 }
 0x84a   : > { %v1761_v48 = vpop.permute.xlu1 %1760  ;;  %v13911_v41 = vpop.permute.xlu0 %1248 }
 0x84b   : > { %v2421_v57 = vadd.f32 %v2389_v49, %v2318_v46  ;;  %v1867_v49 = vadd.f32 %v1835_v54, %v1609_v22  ;;  %v6992_v46 = vld [vmem:[%s14528_s3 + $0x5a0] sm:$0xff]  ;;  %v1836_v28 = vmul.f32 %v6929_v51, %v1761_v48 }
 0x84c   : > { %v7088_v48 = vld [vmem:[%s14528_s3 + $0x8a0] sm:$0xff] }
 0x84d   : > { %v2524_v23 = vadd.f32 %v2492_v63, %v2421_v57  ;;  %v1578_v63 = vmul.f32 %v6897_v60, %v13859_v55  ;;  %v2060_v12 = vadd.f32 %v2028_v58, %v1867_v49  ;;  %v2597_v20 = vmul.f32 %v7088_v48, %v13859_v55  ;;  %v7057_v55 = vld [vmem:[%s14528_s3 + $0x7a8] sm:$0xff] }
 0x84e   : > { %v13932_v4 = vpop.permute.xlu1 %1504  ;;  %v2211_v2 = vpop.permute.xlu0 %2210 }
 0x84f   : > { %v2627_v33 = vadd.f32 %v2595_v59, %v2524_v23  ;;  %v2287_v47 = vmul.f32 %v6991_v36, %v2211_v2  ;;  %v1352_v36 = vadd.f32 %v1320_v45, %v1094_v6  ;;  %v7056_v23 = vld [vmem:[%s14528_s3 + $0x7a0] sm:$0xff]  ;;  %v6961_v2 = vld [vmem:[%s14528_s3 + $0x4a8] sm:$0xff]  ;;  %v1579_v45 = vmul.f32 %v6898_v38, %v13932_v4 }
 0x851   : > { %v2319_v34 = vadd.f32 %v2287_v47, %v2059_v21  ;;  %v13944_v62 = vadd.f32 %v13667_v43, %v2627_v33  ;;  %v1610_v56 = vadd.f32 %v1578_v63, %v1352_v36  ;;  %v2494_v21 = vmul.f32 %v7056_v23, %v13805_v19  ;;  %v7025_v19 = vld [vmem:[%s14528_s3 + $0x6a8] sm:$0xff]  ;;  %v6867_v36 = vld [vmem:[%s14528_s3 + $0x1b8] sm:$0xff] }
 0x852   : > { %v13949_v61 = vpop.permute.xlu1 %1024  ;;  %v13951_v31 = vpop.permute.xlu0 %1506  ;;  %v2392_v60 = vmul.f32 %v7025_v19, %v13857_v3  ;;  %v2495_v63 = vmul.f32 %v7057_v55, %v13879_v27  ;;  %v871_v27 = vld [vmem:[%s14528_s3 + $0xb8] sm:$0xff] }
 0x853   : > { %v2422_v1 = vadd.f32 %v2390_v39, %v2319_v34  ;;  %6077 = vrot.lane.b32.xlu1 %v13944_v62, %s9325_s29  ;;  %v1868_v47 = vadd.f32 %v1836_v28, %v1610_v56  ;;  %v14913_v39 = vld [vmem:[#allocation15_spill] sm:$0xff]  ;;  %v6963_v55 = vld [vmem:[%s14528_s3 + $0x4b8] sm:$0xff] }
 0x854   : > { %v2029_v7 = vmul.f32 %v6961_v2, %v14913_v39  ;;  %v870_v34 = vld [vmem:[%s14528_s3 + $0xb0] sm:$0xff] }
 0x855   : > { %v2525_v30 = vadd.f32 %v2493_v14, %v2422_v1 }
 0x856   : > { %v1763_v32 = vpop.permute.xlu1 %1762  ;;  %v13969_v15 = vpop.permute.xlu0 %1250  ;;  %v2061_v22 = vadd.f32 %v2029_v7, %v1868_v47  ;;  %v6994_v47 = vld [vmem:[%s14528_s3 + $0x5b0] sm:$0xff] }
 0x857   : > { %v2628_v44 = vadd.f32 %v2596_v9, %v2525_v30  ;;  %v1095_v30 = vmul.f32 %v13857_v3, %v870_v34  ;;  %v6283_v3 = vld [vmem:[%s14536_s11 + $0x8] sm:$0xff]  ;;  %v1837_v52 = vmul.f32 %v6930_v37, %v1763_v32  ;;  %v6899_v32 = vld [vmem:[%s14528_s3 + $0x2b8] sm:$0xff]  ;;  %v7026_v34 = vld [vmem:[%s14528_s3 + $0x6b0] sm:$0xff] }
 0x858   : > { %v8659_v28 = vpack.c.bf16 %v6283_v3, %v6282_v0  ;;  %v1580_v39 = vmul.f32 %v6899_v32, %v13951_v31  ;;  %v6995_v0 = vld [vmem:[%s14528_s3 + $0x5b8] sm:$0xff]  ;;  %v14915_v3 = vld [vmem:[#allocation19_spill] sm:$0xff] }
 0x859   : > { %v13982_v50 = vadd.f32 %v13667_v43, %v2628_v44  ;;  %v7089_v44 = vld [vmem:[%s14528_s3 + $0x8a8] sm:$0xff]  ;;  %v1353_v58 = vadd.f32 %v1321_v5, %v1095_v30 }
 0x85a   : > { %v13987_v57 = vpop.permute.xlu1 %1026  ;;  %v2213_v18 = vpop.permute.xlu0 %2212  ;;  %8660 = vmatprep.subr.bf16.mxu0 %v8659_v28  ;;  %8667 = vmatprep.subr.bf16.mxu1 %v8659_v28 }
 0x85b   : > { %v2288_v59 = vmul.f32 %v6992_v46, %v2213_v18  ;;  %6079 = vrot.lane.b32.xlu0 %v13982_v50, %s9325_s29  ;;  %8662 = vmatpush3.bf16.msra.mxu0 %v8659_v28 }
 0x85c   : > { %8668 = vmatpush3.bf16.msra.mxu1 %v8659_v28 }
 0x85d   : > { %v2320_v24 = vadd.f32 %v2288_v59, %v2060_v12  ;;  %v1611_v12 = vadd.f32 %v1579_v45, %v1353_v58  ;;  %v2598_v59 = vmul.f32 %v7089_v44, %v13932_v4  ;;  %v1322_v4 = vmul.f32 %v6867_v36, %v13911_v41  ;;  %v6900_v36 = vld [vmem:[%s14528_s3 + $0x2c0] sm:$0xff] }
 0x85e   : > { %v14001_v17 = vpop.permute.xlu1 %1764  ;;  %v14003_v33 = vpop.permute.xlu0 %1252  ;;  %v2031_v58 = vmul.f32 %v6963_v55, %v14915_v3 }
 0x85f   : > { %v2423_v10 = vadd.f32 %v2391_v42, %v2320_v24  ;;  %v6962_v42 = vld [vmem:[%s14528_s3 + $0x4b0] sm:$0xff]  ;;  %v1869_v2 = vadd.f32 %v1837_v52, %v1611_v12 }
 0x861   : > { %v2526_v14 = vadd.f32 %v2494_v21, %v2423_v10  ;;  %v6931_v21 = vld [vmem:[%s14528_s3 + $0x3b8] sm:$0xff]  ;;  %v14914_v10 = vld [vmem:[#allocation17_spill] sm:$0xff] }
 0x862   : > { %v14023_v54 = vpop.permute.xlu1 %1508  ;;  %v2215_v1 = vpop.permute.xlu0 %2214  ;;  %v2030_v11 = vmul.f32 %v6962_v42, %v14914_v10  ;;  %v1838_v38 = vmul.f32 %v6931_v21, %v14001_v17  ;;  %v7090_v17 = vld [vmem:[%s14528_s3 + $0x8b0] sm:$0xff]  ;;  %v7091_v10 = vld [vmem:[%s14528_s3 + $0x8b8] sm:$0xff] }
 0x863   : > { %v2629_v26 = vadd.f32 %v2597_v20, %v2526_v14  ;;  %v2289_v9 = vmul.f32 %v6993_v16, %v2215_v1  ;;  %v1096_v16 = vmul.f32 %v13899_v29, %v871_v27  ;;  %v2599_v52 = vmul.f32 %v7090_v17, %v13951_v31  ;;  %v7059_v31 = vld [vmem:[%s14528_s3 + $0x7b8] sm:$0xff]  ;;  %v6933_v17 = vld [vmem:[%s14528_s3 + $0x3c8] sm:$0xff] }
 0x864   : > { %v2062_v1 = vadd.f32 %v2030_v11, %v1869_v2 }
 0x865   : > { %v2321_v6 = vadd.f32 %v2289_v9, %v2061_v22  ;;  %v14036_v49 = vadd.f32 %v13667_v43, %v2629_v26  ;;  %v1354_v19 = vadd.f32 %v1322_v4, %v1096_v16  ;;  %v7058_v26 = vld [vmem:[%s14528_s3 + $0x7b0] sm:$0xff]  ;;  %v2393_v22 = vmul.f32 %v7026_v34, %v13899_v29  ;;  %v6868_v29 = vld [vmem:[%s14528_s3 + $0x1c0] sm:$0xff] }
 0x866   : > { %v14041_v51 = vpop.permute.xlu1 %1028  ;;  %v14043_v46 = vpop.permute.xlu0 %1510  ;;  %v2496_v45 = vmul.f32 %v7058_v26, %v13911_v41  ;;  %v7027_v41 = vld [vmem:[%s14528_s3 + $0x6b8] sm:$0xff]  ;;  %v6932_v4 = vld [vmem:[%s14528_s3 + $0x3c0] sm:$0xff]  ;;  %v2497_v34 = vmul.f32 %v7059_v31, %v13969_v15 }
 0x867   : > { %v2424_v18 = vadd.f32 %v2392_v60, %v2321_v6  ;;  %6081 = vrot.lane.b32.xlu1 %v14036_v49, %s9325_s29  ;;  %v1612_v9 = vadd.f32 %v1580_v39, %v1354_v19  ;;  %v2394_v2 = vmul.f32 %v7027_v41, %v13949_v61  ;;  %v6964_v26 = vld [vmem:[%s14528_s3 + $0x4c0] sm:$0xff]  ;;  %v6870_v41 = vld [vmem:[%s14528_s3 + $0x1d0] sm:$0xff] }
 0x869   : > { %v2527_v23 = vadd.f32 %v2495_v63, %v2424_v18  ;;  %v1870_v6 = vadd.f32 %v1838_v38, %v1612_v9  ;;  %v872_v63 = vld [vmem:[%s14528_s3 + $0xc0] sm:$0xff] }
 0x86a   : > { %v1767_v56 = vpop.permute.xlu1 %1766  ;;  %v14067_v24 = vpop.permute.xlu0 %1254  ;;  %v1097_v32 = vmul.f32 %v13949_v61, %v872_v63  ;;  %v6869_v61 = vld [vmem:[%s14528_s3 + $0x1c8] sm:$0xff] }
 0x86b   : > { %v2630_v48 = vadd.f32 %v2598_v59, %v2527_v23  ;;  %v1323_v59 = vmul.f32 %v6868_v29, %v13969_v15  ;;  %v2063_v42 = vadd.f32 %v2031_v58, %v1870_v6  ;;  %v873_v15 = vld [vmem:[%s14528_s3 + $0xc8] sm:$0xff]  ;;  %v14916_v6 = vld [vmem:[#allocation21_spill] sm:$0xff] }
 0x86c   : > { %v1098_v29 = vmul.f32 %v13987_v57, %v873_v15  ;;  %v7028_v58 = vld [vmem:[%s14528_s3 + $0x6c0] sm:$0xff] }
 0x86d   : > { %v14080_v7 = vadd.f32 %v13667_v43, %v2630_v48  ;;  %v1581_v48 = vmul.f32 %v6900_v36, %v14023_v54  ;;  %v1355_v39 = vadd.f32 %v1323_v59, %v1097_v32  ;;  %v6872_v15 = vld [vmem:[%s14528_s3 + $0x1e0] sm:$0xff] }
 0x86e   : > { %v14085_v20 = vpop.permute.xlu1 %1030  ;;  %v2217_v14 = vpop.permute.xlu0 %2216 }
 0x86f   : > { %v2290_v5 = vmul.f32 %v6994_v47, %v2217_v14  ;;  %6083 = vrot.lane.b32.xlu0 %v14080_v7, %s9325_s29  ;;  %v1839_v14 = vmul.f32 %v6932_v4, %v1767_v56  ;;  %v1613_v38 = vadd.f32 %v1581_v48, %v1355_v39  ;;  %v6901_v56 = vld [vmem:[%s14528_s3 + $0x2c8] sm:$0xff]  ;;  %v5921_v4 = vld [vmem:[%s14535_s10] sm:$0xff] }
 0x870   : > { %v6965_v48 = vld [vmem:[%s14528_s3 + $0x4c8] sm:$0xff] }
 0x871   : > { %v2322_v30 = vadd.f32 %v2290_v5, %v2062_v1  ;;  %v2600_v1 = vmul.f32 %v7091_v10, %v14023_v54  ;;  %v1871_v55 = vadd.f32 %v1839_v14, %v1613_v38  ;;  %v6934_v38 = vld [vmem:[%s14528_s3 + $0x3d0] sm:$0xff] }
 0x872   : > { %v1769_v37 = vpop.permute.xlu1 %1768  ;;  %v14100_v60 = vpop.permute.xlu0 %1256 }
 0x873   : > { %v2425_v44 = vadd.f32 %v2393_v22, %v2322_v30  ;;  %v1324_v30 = vmul.f32 %v6869_v61, %v14003_v33  ;;  %v1840_v36 = vmul.f32 %v6933_v17, %v1769_v37  ;;  %v6902_v37 = vld [vmem:[%s14528_s3 + $0x2d0] sm:$0xff]  ;;  %v6871_v61 = vld [vmem:[%s14528_s3 + $0x1d8] sm:$0xff] }
 0x874   : > { %v875_v17 = vld [vmem:[%s14528_s3 + $0xd8] sm:$0xff] }
 0x875   : > { %v2528_v18 = vadd.f32 %v2496_v45, %v2425_v44  ;;  %v6996_v45 = vld [vmem:[%s14528_s3 + $0x5c0] sm:$0xff]  ;;  %v2032_v44 = vmul.f32 %v6964_v26, %v14916_v6 }
 0x876   : > { %v14120_v28 = vpop.permute.xlu1 %1512  ;;  %v2219_v12 = vpop.permute.xlu0 %2218 }
 0x877   : > { %v2631_v23 = vadd.f32 %v2599_v52, %v2528_v18  ;;  %v2291_v27 = vmul.f32 %v6995_v0, %v2219_v12  ;;  %v1582_v0 = vmul.f32 %v6901_v56, %v14043_v46  ;;  %v1356_v18 = vadd.f32 %v1324_v30, %v1098_v29  ;;  %v14917_v56 = vld [vmem:[#allocation25_spill] sm:$0xff] }
 0x878   : > { %v2064_v12 = vadd.f32 %v2032_v44, %v1871_v55  ;;  %v1583_v26 = vmul.f32 %v6902_v37, %v14120_v28  ;;  %v2033_v30 = vmul.f32 %v6965_v48, %v14917_v56  ;;  %v7029_v55 = vld [vmem:[%s14528_s3 + $0x6c8] sm:$0xff]  ;;  %v1326_v29 = vmul.f32 %v6871_v61, %v14100_v60 }
 0x879   : > { %v2323_v21 = vadd.f32 %v2291_v27, %v2063_v42  ;;  %v14133_v47 = vadd.f32 %v13667_v43, %v2631_v23  ;;  %v7060_v23 = vld [vmem:[%s14528_s3 + $0x7c0] sm:$0xff]  ;;  %v874_v42 = vld [vmem:[%s14528_s3 + $0xd0] sm:$0xff]  ;;  %v2395_v27 = vmul.f32 %v7028_v58, %v13987_v57  ;;  %v1614_v32 = vadd.f32 %v1582_v0, %v1356_v18 }
 0x87a   : > { %v14138_v11 = vpop.permute.xlu1 %1032  ;;  %v14140_v16 = vpop.permute.xlu0 %1514  ;;  %v7092_v57 = vld [vmem:[%s14528_s3 + $0x8c0] sm:$0xff]  ;;  %v2498_v14 = vmul.f32 %v7060_v23, %v14003_v33  ;;  %v6997_v33 = vld [vmem:[%s14528_s3 + $0x5c8] sm:$0xff] }
 0x87b   : > { %v2426_v19 = vadd.f32 %v2394_v2, %v2323_v21  ;;  %6085 = vrot.lane.b32.xlu1 %v14133_v47, %s9325_s29  ;;  %v5922_v2 = vld [vmem:[%s14535_s10 + $0x8] sm:$0xff]  ;;  %v1325_v21 = vmul.f32 %v6870_v41, %v14067_v24  ;;  %v876_v0 = vld [vmem:[%s14528_s3 + $0xe0] sm:$0xff] }
 0x87c   : > { %v1101_v48 = vmul.f32 %v14138_v11, %v876_v0  ;;  %v6967_v0 = vld [vmem:[%s14528_s3 + $0x4d8] sm:$0xff] }
 0x87d   : > { %v2529_v5 = vadd.f32 %v2497_v34, %v2426_v19  ;;  %v14208_v34 = vpack.c.bf16 %v5922_v2, %v5921_v4  ;;  %v1872_v19 = vadd.f32 %v1840_v36, %v1614_v32  ;;  %v1100_v32 = vmul.f32 %v14085_v20, %v875_v17  ;;  %v6936_v4 = vld [vmem:[%s14528_s3 + $0x3e0] sm:$0xff]  ;;  %v6966_v2 = vld [vmem:[%s14528_s3 + $0x4d0] sm:$0xff]  ;;  %v14918_v17 = vld [vmem:[#allocation26_spill] sm:$0xff] }
 0x87e   : > { %v1771_v22 = vpop.permute.xlu1 %1770  ;;  %v14158_v9 = vpop.permute.xlu0 %1258 }
 0x87f   : > { %v2632_v54 = vadd.f32 %v2600_v1, %v2529_v5  ;;  %v1099_v5 = vmul.f32 %v14041_v51, %v874_v42  ;;  %8664 = vmatprep.subr.bf16.mxu1 %v14208_v34  ;;  %v1841_v58 = vmul.f32 %v6934_v38, %v1771_v22  ;;  %v1327_v41 = vmul.f32 %v6872_v15, %v14158_v9  ;;  %v7093_v38 = vld [vmem:[%s14528_s3 + $0x8c8] sm:$0xff] }
 0x880   : > { %v2065_v23 = vadd.f32 %v2033_v30, %v1872_v19  ;;  %v2396_v42 = vmul.f32 %v7029_v55, %v14041_v51  ;;  %v877_v51 = vld [vmem:[%s14528_s3 + $0xe8] sm:$0xff]  ;;  %v1358_v61 = vadd.f32 %v1326_v29, %v1100_v32 }
 0x881   : > { %v14171_v3 = vadd.f32 %v13667_v43, %v2632_v54  ;;  %v2601_v54 = vmul.f32 %v7092_v57, %v14043_v46  ;;  %v1357_v44 = vadd.f32 %v1325_v21, %v1099_v5  ;;  %v6904_v46 = vld [vmem:[%s14528_s3 + $0x2e0] sm:$0xff]  ;;  %v1359_v30 = vadd.f32 %v1327_v41, %v1101_v48  ;;  %v6937_v29 = vld [vmem:[%s14528_s3 + $0x3e8] sm:$0xff] }
 0x882   : > { %v14176_v63 = vpop.permute.xlu1 %1034  ;;  %v2221_v52 = vpop.permute.xlu0 %2220  ;;  %v6968_v41 = vld [vmem:[%s14528_s3 + $0x4e0] sm:$0xff] }
 0x883   : > { %v2292_v59 = vmul.f32 %v6996_v45, %v2221_v52  ;;  %6087 = vrot.lane.b32.xlu0 %v14171_v3, %s9325_s29  ;;  %v6903_v45 = vld [vmem:[%s14528_s3 + $0x2d8] sm:$0xff]  ;;  %v1615_v37 = vadd.f32 %v1583_v26, %v1357_v44  ;;  %v1102_v44 = vmul.f32 %v14176_v63, %v877_v51  ;;  %v7000_v51 = vld [vmem:[%s14528_s3 + $0x5e0] sm:$0xff] }
 0x885   : > { %v2324_v31 = vadd.f32 %v2292_v59, %v2064_v12  ;;  %v6935_v12 = vld [vmem:[%s14528_s3 + $0x3d8] sm:$0xff]  ;;  %v6873_v59 = vld [vmem:[%s14528_s3 + $0x1e8] sm:$0xff] }
 0x886   : > { %v1773_v10 = vpop.permute.xlu1 %1772  ;;  %v14206_v39 = vpop.permute.xlu0 %1260 }
 0x887   : > { %v2427_v1 = vadd.f32 %v2395_v27, %v2324_v31  ;;  %v7061_v27 = vld [vmem:[%s14528_s3 + $0x7c8] sm:$0xff]  ;;  %v1584_v31 = vmul.f32 %v6903_v45, %v14140_v16  ;;  %v1842_v5 = vmul.f32 %v6935_v12, %v1773_v10  ;;  %v1328_v26 = vmul.f32 %v6873_v59, %v14206_v39 }
 0x888   : > { %v2499_v56 = vmul.f32 %v7061_v27, %v14067_v24  ;;  %v2034_v45 = vmul.f32 %v6966_v2, %v14918_v17  ;;  %v6998_v24 = vld [vmem:[%s14528_s3 + $0x5d0] sm:$0xff] }
 0x889   : > { %v2530_v6 = vadd.f32 %v2498_v14, %v2427_v1  ;;  %v6905_v14 = vld [vmem:[%s14528_s3 + $0x2e8] sm:$0xff]  ;;  %v1873_v1 = vadd.f32 %v1841_v58, %v1615_v37  ;;  %v2602_v58 = vmul.f32 %v7093_v38, %v14120_v28  ;;  %v1360_v59 = vadd.f32 %v1328_v26, %v1102_v44  ;;  %v7062_v27 = vld [vmem:[%s14528_s3 + $0x7d0] sm:$0xff] }
 0x88a   : > { %v14244_v52 = vpop.permute.xlu1 %1516  ;;  %v2223_v18 = vpop.permute.xlu0 %2222 }
 0x88b   : > { %v2633_v36 = vadd.f32 %v2601_v54, %v2530_v6  ;;  %v2293_v22 = vmul.f32 %v6997_v33, %v2223_v18  ;;  %v1585_v57 = vmul.f32 %v6904_v46, %v14244_v52  ;;  %v1616_v6 = vadd.f32 %v1584_v31, %v1358_v61 }
 0x88d   : > { %v2325_v21 = vadd.f32 %v2293_v22, %v2065_v23  ;;  %v14274_v19 = vadd.f32 %v13667_v43, %v2633_v36  ;;  %v1617_v46 = vadd.f32 %v1585_v57, %v1359_v30  ;;  %v7030_v36 = vld [vmem:[%s14528_s3 + $0x6d0] sm:$0xff]  ;;  %v1874_v12 = vadd.f32 %v1842_v5, %v1616_v6  ;;  %v6999_v57 = vld [vmem:[%s14528_s3 + $0x5d8] sm:$0xff]  ;;  %v7032_v30 = vld [vmem:[%s14528_s3 + $0x6e0] sm:$0xff] }
 0x88e   : > { %v1775_v15 = vpop.permute.xlu1 %1774  ;;  %v14280_v33 = vpop.permute.xlu0 %1518  ;;  %v2066_v22 = vadd.f32 %v2034_v45, %v1873_v1  ;;  %v2397_v38 = vmul.f32 %v7030_v36, %v14085_v20  ;;  %v7031_v1 = vld [vmem:[%s14528_s3 + $0x6d8] sm:$0xff]  ;;  %v7094_v5 = vld [vmem:[%s14528_s3 + $0x8d0] sm:$0xff]  ;;  %v7064_v6 = vld [vmem:[%s14528_s3 + $0x7e0] sm:$0xff] }
 0x88f   : > { %v2428_v55 = vadd.f32 %v2396_v42, %v2325_v21  ;;  %v1843_v54 = vmul.f32 %v6936_v4, %v1775_v15  ;;  %6089 = vrot.lane.b32.xlu1 %v14274_v19, %s9325_s29  ;;  %v1586_v10 = vmul.f32 %v6905_v14, %v14280_v33  ;;  %v14919_v4 = vld [vmem:[#allocation29_spill] sm:$0xff]  ;;  %v6969_v21 = vld [vmem:[%s14528_s3 + $0x4e8] sm:$0xff]  ;;  %v14920_v14 = vld [vmem:[#allocation43_spill] sm:$0xff] }
 0x890   : > { %v2035_v2 = vmul.f32 %v6967_v0, %v14919_v4  ;;  %v2036_v61 = vmul.f32 %v6968_v41, %v14920_v14  ;;  %v7063_v45 = vld [vmem:[%s14528_s3 + $0x7d8] sm:$0xff]  ;;  %v2398_v0 = vmul.f32 %v7031_v1, %v14138_v11  ;;  %v2399_v41 = vmul.f32 %v7032_v30, %v14176_v63  ;;  %v7096_v11 = vld [vmem:[%s14528_s3 + $0x8e0] sm:$0xff]  ;;  %v7065_v4 = vld [vmem:[%s14528_s3 + $0x7e8] sm:$0xff] }
 0x891   : > { %v2531_v18 = vadd.f32 %v2499_v56, %v2428_v55  ;;  %v1875_v32 = vadd.f32 %v1843_v54, %v1617_v46  ;;  %v1618_v48 = vadd.f32 %v1586_v10, %v1360_v59  ;;  %v2500_v56 = vmul.f32 %v7062_v27, %v14100_v60  ;;  %v7001_v46 = vld [vmem:[%s14528_s3 + $0x5e8] sm:$0xff]  ;;  %v7095_v36 = vld [vmem:[%s14528_s3 + $0x8d8] sm:$0xff] }
 0x892   : > { %v1777_v23 = vpop.permute.xlu1 %1776  ;;  %v2225_v42 = vpop.permute.xlu0 %2224  ;;  %v2067_v54 = vadd.f32 %v2035_v2, %v1874_v12  ;;  %v2604_v2 = vmul.f32 %v7095_v36, %v14244_v52  ;;  %v14922_v14 = vld [vmem:[#allocation42_spill] sm:$0xff] }
 0x893   : > { %v2634_v28 = vadd.f32 %v2602_v58, %v2531_v18  ;;  %v1844_v37 = vmul.f32 %v6937_v29, %v1777_v23  ;;  %v2294_v31 = vmul.f32 %v6998_v24, %v2225_v42  ;;  %v2068_v44 = vadd.f32 %v2036_v61, %v1875_v32  ;;  %v14921_v29 = vld [vmem:[#allocation33_spill] sm:$0xff]  ;;  %v7033_v18 = vld [vmem:[%s14528_s3 + $0x6e8] sm:$0xff] }
 0x894   : > { %v2037_v24 = vmul.f32 %v6969_v21, %v14921_v29  ;;  %v2603_v58 = vmul.f32 %v7094_v5, %v14140_v16  ;;  %v2501_v23 = vmul.f32 %v7063_v45, %v14158_v9  ;;  %v2503_v61 = vmul.f32 %v7065_v4, %v14922_v14 }
 0x895   : > { %v2326_v26 = vadd.f32 %v2294_v31, %v2066_v22  ;;  %v14326_v15 = vadd.f32 %v13667_v43, %v2634_v28  ;;  %v1876_v55 = vadd.f32 %v1844_v37, %v1618_v48  ;;  %v2502_v22 = vmul.f32 %v7064_v6, %v14206_v39  ;;  %v9260_v39 = vld [vmem:[%s14529_s4] ss:$0 sm:$0xff] }
 0x896   : > { %v2229_v20 = vpop.permute.xlu1 %2228  ;;  %v2227_v17 = vpop.permute.xlu0 %2226  ;;  %v2400_v31 = vmul.f32 %v7033_v18, %v13412_v40  ;;  %v2605_v48 = vmul.f32 %v7096_v11, %v14280_v33  ;;  %v7097_v40 = vld [vmem:[%s14528_s3 + $0x8e8] sm:$0xff] }
 0x897   : > { %v2429_v43 = vadd.f32 %v2397_v38, %v2326_v26  ;;  %v2296_v10 = vmul.f32 %v7000_v51, %v2229_v20  ;;  %v2295_v60 = vmul.f32 %v6999_v57, %v2227_v17  ;;  %6091 = vrot.lane.b32.xlu0 %v14326_v15, %s9325_s29  ;;  %v2069_v42 = vadd.f32 %v2037_v24, %v1876_v55 }
 0x898   : > { %v2606_v52 = vmul.f32 %v7097_v40, %v13490_v25 }
 0x899   : > { %v2532_v12 = vadd.f32 %v2500_v56, %v2429_v43  ;;  %v2328_v16 = vadd.f32 %v2296_v10, %v2068_v44  ;;  %v2327_v59 = vadd.f32 %v2295_v60, %v2067_v54 }
 0x89a   : > { %v2231_v27 = vpop.permute.xlu0 %2230 }
 0x89b   : > { %v2635_v28 = vadd.f32 %v2603_v58, %v2532_v12  ;;  %v2431_v32 = vadd.f32 %v2399_v41, %v2328_v16  ;;  %v2430_v63 = vadd.f32 %v2398_v0, %v2327_v59  ;;  %v2297_v37 = vmul.f32 %v7001_v46, %v2231_v27  ;;  %v6102_v59 = vpop.permute.xlu1 %6101 }
 0x89d   : > { %v2534_v51 = vadd.f32 %v2502_v22, %v2431_v32  ;;  %v2533_v9 = vadd.f32 %v2501_v23, %v2430_v63  ;;  %v2329_v57 = vadd.f32 %v2297_v37, %v2069_v42  ;;  %v2674_v21 = vadd.f32 %v9260_v39, %v2635_v28 }
 0x89f   : > { %v2637_v38 = vadd.f32 %v2605_v48, %v2534_v51  ;;  %v2636_v1 = vadd.f32 %v2604_v2, %v2533_v9  ;;  %v2432_v5 = vadd.f32 %v2400_v31, %v2329_v57  ;;  %6093 = vrot.lane.b32.xlu1 %v2674_v21, %s9325_s29 }
 0x8a1   : > { %v2535_v33 = vadd.f32 %v2503_v61, %v2432_v5  ;;  %v2676_v26 = vadd.f32 %v9260_v39, %v2637_v38  ;;  %v2675_v56 = vadd.f32 %v9260_v39, %v2636_v1 }
 0x8a3   : > { %v2638_v30 = vadd.f32 %v2606_v52, %v2535_v33  ;;  %6097 = vrot.lane.b32.xlu1 %v2676_v26, %s9325_s29  ;;  %6095 = vrot.lane.b32.xlu0 %v2675_v56, %s9325_s29  ;;  %v14375_v55 = vpop.f32.mrb[80].mxu0 }
 0x8a4   : > { %v14377_v20 = vpop.f32.mrb[81].mxu0 }
 0x8a5   : > { %v2677_v54 = vadd.f32 %v9260_v39, %v2638_v30 }
 0x8a7   : > { %6099 = vrot.lane.b32.xlu0 %v2677_v54, %s9325_s29 }
 0x8ac   : > { %v14380_v17 = vpop.f32.mrb[82].mxu0 }
 0x8ad   : > { %v14382_v45 = vpop.f32.mrb[83].mxu0 }
 0x8b3   : > { %v6104_v16 = vpop.permute.xlu0 %6103 }
 0x8b5   : > { %v14384_v25 = vpop.f32.mrb[84].mxu0 }
 0x8b6   : > { %v14386_v6 = vpop.f32.mrb[85].mxu0 }
 0x8b7   : > { %v6076_v22 = vpop.permute.xlu0 %6075 }
 0x8bd   : > { %v8198_v43 = vpop.f32.mrb[86].mxu0 }
 0x8be   : > { %v14389_v44 = vadd.f32 %v8198_v43, %v14171_v3  ;;  %v14391_v10 = vpop.f32.mrb[87].mxu0 }
 0x8c5   : > { %v8201_v60 = vpop.f32.mrb[88].mxu0 }
 0x8c6   : > { %v14394_v29 = vadd.f32 %v8201_v60, %v14326_v15  ;;  %v5866_v24 = vpop.f32.mrb[89].mxu0 }
 0x8c7   : > { %v14397_v0 = vadd.f32 %v5866_v24, %v14274_v19  ;;  %v6074_v19 = vpop.permute.xlu1 %6073 }
 0x8cb   : > { %v6078_v63 = vpop.permute.xlu1 %6077 }
 0x8cd   : > { %v6080_v37 = vpop.permute.xlu0 %6079 }
 0x8ce   : > { %v8204_v58 = vpop.f32.mrb[90].mxu0 }
 0x8cf   : > { %v14399_v46 = vadd.f32 %v8204_v58, %v2675_v56  ;;  %v5876_v18 = vpop.f32.mrb[91].mxu0 }
 0x8d0   : > { %v14401_v41 = vadd.f32 %v5876_v18, %v2674_v21 }
 0x8d7   : > { %v8207_v36 = vpop.f32.mrb[92].mxu0 }
 0x8d8   : > { %v14403_v11 = vadd.f32 %v8207_v36, %v2677_v54  ;;  %v5886_v3 = vpop.f32.mrb[93].mxu0 }
 0x8d9   : > { %v14405_v12 = vadd.f32 %v5886_v3, %v2676_v26  ;;  %v6082_v57 = vpop.permute.xlu1 %6081 }
 0x8e0   : > { %v14407_v15 = vpop.f32.mrb[94].mxu0 }
 0x8e1   : > { %v14409_v23 = vpop.f32.mrb[95].mxu0  ;;  %v6084_v39 = vpop.permute.xlu0 %6083 }
 0x8e4   : > { %v8245_v42 = vpop.f32.mrb[96].mxu0 }
 0x8e5   : > { %v6193_v27 = vadd.f32 %v8245_v42, %v6076_v22  ;;  %v6187_v28 = vpop.f32.mrb[97].mxu0 }
 0x8e6   : > { %v6188_v32 = vadd.f32 %v6187_v28, %v6074_v19 }
 0x8e7   : > { %v6267_v2 = vmax.f32 %v6193_v27, 0.0 }
 0x8e8   : > { %v6266_v31 = vmax.f32 %v6188_v32, 0.0  ;;  %v5827_v32 = vadd.f32 %v14377_v20, %v13837_v53  ;;  %v5842_v20 = vadd.f32 %v14380_v17, %v13982_v50  ;;  %v5857_v50 = vadd.f32 %v14391_v10, %v14133_v47 }
 0x8e9   : > { %v8248_v4 = vpop.f32.mrb[98].mxu0 }
 0x8ea   : > { %v6203_v48 = vadd.f32 %v8248_v4, %v6080_v37  ;;  %v6197_v51 = vpop.f32.mrb[99].mxu0  ;;  %8271 = vmatprep.mubr.msk.f32.mxu0 %vm4278_vm8, %v6266_v31 }
 0x8eb   : > { %v6198_v9 = vadd.f32 %v6197_v51, %v6078_v63  ;;  %8272 = vmatmul.mubr.msk.f32.vlgmr.msra.gmra.mrb[112].mxu0 %vm4278_vm8, %v6267_v2  ;;  %v5832_v2 = vadd.f32 %v14375_v55, %v13883_v8  ;;  %v5905_v51 = vmax.f32 %v5827_v32, 0.0  ;;  %v5847_v55 = vadd.f32 %v14386_v6, %v14036_v49 }
 0x8ec   : > { %v6269_v14 = vmax.f32 %v6203_v48, 0.0  ;;  %v5911_v6 = vmax.f32 %v5857_v50, 0.0 }
 0x8ed   : > { %v6268_v21 = vmax.f32 %v6198_v9, 0.0  ;;  %v8251_v40 = vpop.f32.mrb[100].mxu0  ;;  %v6086_v5 = vpop.permute.xlu1 %6085  ;;  %v5837_v9 = vadd.f32 %v14382_v45, %v13944_v62  ;;  %v5906_v53 = vmax.f32 %v5832_v2, 0.0 }
 0x8ee   : > { %v6213_v61 = vadd.f32 %v8251_v40, %v6084_v39  ;;  %v6207_v38 = vpop.f32.mrb[101].mxu0 }
 0x8ef   : > { %v6208_v1 = vadd.f32 %v6207_v38, %v6082_v57  ;;  %8274 = vmatprep.mubr.msk.f32.mxu0 %vm4278_vm8, %v6268_v21  ;;  %v5907_v8 = vmax.f32 %v5837_v9, 0.0  ;;  %v5914_v38 = vmax.f32 %v14394_v29, 0.0  ;;  %v5897_v29 = vadd.f32 %v14409_v23, %v13670_v35 }
 0x8f0   : > { %8275 = vmatmul.mubr.msk.f32.gmra.mrb[114].mxu0 %vm4278_vm8, %v6269_v14  ;;  %v6271_v26 = vmax.f32 %v6213_v61, 0.0 }
 0x8f1   : > { %v6270_v52 = vmax.f32 %v6208_v1, 0.0  ;;  %v8254_v33 = vpop.f32.mrb[102].mxu0  ;;  %v5915_v1 = vmax.f32 %v14401_v41, 0.0 }
 0x8f2   : > { %v6217_v56 = vpop.f32.mrb[103].mxu0 }
 0x8f3   : > { %v6218_v30 = vadd.f32 %v6217_v56, %v6086_v5  ;;  %8277 = vmatprep.mubr.msk.f32.mxu0 %vm4278_vm8, %v6270_v52  ;;  %v5918_v56 = vmax.f32 %v14403_v11, 0.0 }
 0x8f4   : > { %8278 = vmatmul.mubr.msk.f32.gmra.mrb[116].mxu0 %vm4278_vm8, %v6271_v26  ;;  %v5917_v26 = vmax.f32 %v14405_v12, 0.0 }
 0x8f5   : > { %v6272_v54 = vmax.f32 %v6218_v30, 0.0  ;;  %v8257_v43 = vpop.f32.mrb[104].mxu0  ;;  %v6088_v24 = vpop.permute.xlu0 %6087  ;;  %v5902_v30 = vadd.f32 %v14407_v15, %v13863_v13  ;;  %v14472_v13 = vld [vmem:[%s14537_s12] ss:$0 sm:$0xff] }
 0x8f6   : > { %v6227_v60 = vpop.f32.mrb[105].mxu0  ;;  %v6223_v18 = vadd.f32 %v8254_v33, %v6088_v24  ;;  %v5916_v33 = vmax.f32 %v14399_v46, 0.0  ;;  %v5919_v46 = vmax.f32 %v5897_v29, 0.0 }
 0x8f7   : > { %8280 = vmatprep.mubr.msk.f32.mxu0 %vm4278_vm8, %v6272_v54  ;;  %v5920_v12 = vmax.f32 %v5902_v30, 0.0 }
 0x8f8   : > { %v6273_v3 = vmax.f32 %v6223_v18, 0.0 }
 0x8f9   : > { %v8260_v58 = vpop.f32.mrb[106].mxu0 }
 0x8fa   : > { %v6237_v36 = vpop.f32.mrb[107].mxu0  ;;  %8281 = vmatmul.mubr.msk.f32.gmra.mrb[118].mxu0 %vm4278_vm8, %v6273_v3 }
 0x8fd   : > { %v8263_v19 = vpop.f32.mrb[108].mxu0 }
 0x8fe   : > { %v6247_v22 = vpop.f32.mrb[109].mxu0 }
 0x901   : > { %v8266_v42 = vpop.f32.mrb[110].mxu0  ;;  %v6090_v37 = vpop.permute.xlu1 %6089 }
 0x902   : > { %v6263_v27 = vadd.f32 %v8266_v42, %v6104_v16  ;;  %v6257_v28 = vpop.f32.mrb[111].mxu0  ;;  %v6228_v4 = vadd.f32 %v6227_v60, %v6090_v37  ;;  %v5908_v16 = vmax.f32 %v5842_v20, 0.0 }
 0x903   : > { %v6258_v63 = vadd.f32 %v6257_v28, %v6102_v59  ;;  %v5909_v59 = vmax.f32 %v5847_v55, 0.0 }
 0x904   : > { %v6281_v48 = vmax.f32 %v6263_v27, 0.0  ;;  %v6274_v57 = vmax.f32 %v6228_v4, 0.0 }
 0x905   : > { %v6280_v31 = vmax.f32 %v6258_v63, 0.0 }
 0x906   : > { %8283 = vmatprep.mubr.msk.f32.mxu0 %vm4278_vm8, %v6274_v57 }
 0x907   : > { %8292 = vmatprep.mubr.msk.f32.mxu1 %vm4278_vm8, %v6280_v31 }
 0x908   : > { %8293 = vmatmul.mubr.msk.f32.vlgmr.msra.gmra.mrb[64].mxu1 %vm4278_vm8, %v6281_v48 }
 0x909   : > { %8666 = vmatpush3.bf16.msra.mxu1 %v14208_v34  ;;  %8299 = vmatprep.mubr.msk.f32.mxu1 %vm4278_vm8, %v5905_v51  ;;  %v6092_v62 = vpop.permute.xlu0 %6091  ;;  %v5852_v34 = vadd.f32 %v14384_v25, %v14080_v7  ;;  %v5912_v7 = vmax.f32 %v14389_v44, 0.0  ;;  %v5913_v25 = vmax.f32 %v14397_v0, 0.0 }
 0x90a   : > { %v6233_v45 = vadd.f32 %v8257_v43, %v6092_v62 }
 0x90b   : > { %v5910_v49 = vmax.f32 %v5852_v34, 0.0 }
 0x90c   : > { %8300 = vmatmul.mubr.msk.f32.vlgmr.msra.gmra.mrb[66].mxu1 %vm4278_vm8, %v5906_v53  ;;  %v6275_v17 = vmax.f32 %v6233_v45, 0.0 }
 0x90d   : > { %8302 = vmatprep.mubr.msk.f32.mxu1 %vm4278_vm8, %v5907_v8 }
 0x90e   : > { %8284 = vmatmul.mubr.msk.f32.gmra.mrb[120].mxu0 %vm4278_vm8, %v6275_v17 }
 0x910   : > { %8303 = vmatmul.mubr.msk.f32.gmra.mrb[68].mxu1 %vm4278_vm8, %v5908_v16 }
 0x911   : > { %8305 = vmatprep.mubr.msk.f32.mxu1 %vm4278_vm8, %v5909_v59  ;;  %v6094_v39 = vpop.permute.xlu1 %6093 }
 0x912   : > { %v6238_v21 = vadd.f32 %v6237_v36, %v6094_v39 }
 0x914   : > { %8306 = vmatmul.mubr.msk.f32.gmra.mrb[70].mxu1 %vm4278_vm8, %v5910_v49  ;;  %v6276_v47 = vmax.f32 %v6238_v21, 0.0 }
 0x915   : > { %8308 = vmatprep.mubr.msk.f32.mxu1 %vm4278_vm8, %v5911_v6  ;;  %v6098_v10 = vpop.permute.xlu1 %6097  ;;  %v6096_v40 = vpop.permute.xlu0 %6095 }
 0x916   : > { %v6248_v14 = vadd.f32 %v6247_v22, %v6098_v10  ;;  %v6243_v61 = vadd.f32 %v8260_v58, %v6096_v40  ;;  %8286 = vmatprep.mubr.msk.f32.mxu0 %vm4278_vm8, %v6276_v47 }
 0x918   : > { %8309 = vmatmul.mubr.msk.f32.gmra.mrb[72].mxu1 %vm4278_vm8, %v5912_v7  ;;  %v6278_v5 = vmax.f32 %v6248_v14, 0.0  ;;  %v6277_v52 = vmax.f32 %v6243_v61, 0.0 }
 0x919   : > { %8311 = vmatprep.mubr.msk.f32.mxu1 %vm4278_vm8, %v5913_v25  ;;  %v6100_v44 = vpop.permute.xlu0 %6099 }
 0x91a   : > { %v6253_v0 = vadd.f32 %v8263_v19, %v6100_v44  ;;  %8287 = vmatmul.mubr.msk.f32.gmra.mrb[122].mxu0 %vm4278_vm8, %v6277_v52 }
 0x91b   : > { %8289 = vmatprep.mubr.msk.f32.mxu0 %vm4278_vm8, %v6278_v5 }
 0x91c   : > { %8312 = vmatmul.mubr.msk.f32.gmra.mrb[74].mxu1 %vm4278_vm8, %v5914_v38  ;;  %v6279_v41 = vmax.f32 %v6253_v0, 0.0 }
 0x91d   : > { %8314 = vmatprep.mubr.msk.f32.mxu1 %vm4278_vm8, %v5915_v1 }
 0x91e   : > { %8290 = vmatmul.mubr.msk.f32.gmra.mrb[124].mxu0 %vm4278_vm8, %v6279_v41 }
 0x920   : > { %8315 = vmatmul.mubr.msk.f32.gmra.mrb[76].mxu1 %vm4278_vm8, %v5916_v33 }
 0x921   : > { %8317 = vmatprep.mubr.msk.f32.mxu1 %vm4278_vm8, %v5917_v26 }
 0x924   : > { %8318 = vmatmul.mubr.msk.f32.gmra.mrb[78].mxu1 %vm4278_vm8, %v5918_v56 }
 0x925   : > { %8320 = vmatprep.mubr.msk.f32.mxu1 %vm4278_vm8, %v5919_v46 }
 0x928   : > { %8321 = vmatmul.mubr.msk.f32.gmra.mrb[64].mxu1 %vm4278_vm8, %v5920_v12 }
 0x9be   : > { %v8273_v35 = vpop.f32.mrb[112].mxu0 }
 0x9bf   : > { %v6398_v23 = vpop.f32.mrb[113].mxu0 }
 0x9c3   : > { %v8276_v54 = vpop.f32.mrb[114].mxu0 }
 0x9c4   : > { %v6408_v43 = vpop.f32.mrb[115].mxu0 }
 0x9c7   : > { %v8279_v60 = vpop.f32.mrb[116].mxu0 }
 0x9c8   : > { %v6418_v24 = vpop.f32.mrb[117].mxu0 }
 0x9cd   : > { %v8282_v11 = vpop.f32.mrb[118].mxu0 }
 0x9ce   : > { %v6428_v58 = vpop.f32.mrb[119].mxu0 }
 0x9df   : > { %v8301_v18 = vpop.f32.mrb[66].mxu1 }
 0x9e0   : > { %v6597_v15 = vadd.f32 %v8301_v18, %v8273_v35  ;;  %v6591_v36 = vpop.f32.mrb[67].mxu1 }
 0x9e1   : > { %v6592_v3 = vadd.f32 %v6591_v36, %v6398_v23  ;;  %v8285_v32 = vpop.f32.mrb[120].mxu0 }
 0x9e2   : > { %v6678_v19 = vadd.f32 %v14472_v13, %v6597_v15  ;;  %v6438_v37 = vpop.f32.mrb[121].mxu0 }
 0x9e3   : > { %v6677_v22 = vadd.f32 %v14472_v13, %v6592_v3  ;;  %v8304_v42 = vpop.f32.mrb[68].mxu1 }
 0x9e4   : > { %6694 = vst.msk [vmem:[%s12342_s28 + $0x88] sm:$0xff] %vm526_vm0, %v6678_v19  ;;  %v6607_v27 = vadd.f32 %v8304_v42, %v8276_v54  ;;  %v6601_v28 = vpop.f32.mrb[69].mxu1 }
 0x9e5   : > { %6693 = vst.msk [vmem:[%s12342_s28 + $0x80] sm:$0xff] %vm526_vm0, %v6677_v22  ;;  %v6602_v63 = vadd.f32 %v6601_v28, %v6408_v43 }
 0x9e6   : > { %v6680_v31 = vadd.f32 %v14472_v13, %v6607_v27 }
 0x9e7   : > { %v6679_v4 = vadd.f32 %v14472_v13, %v6602_v63  ;;  %v8307_v2 = vpop.f32.mrb[70].mxu1 }
 0x9e8   : > { %6696 = vst.msk [vmem:[%s12342_s28 + $0x98] sm:$0xff] %vm526_vm0, %v6680_v31  ;;  %v6617_v48 = vadd.f32 %v8307_v2, %v8279_v60  ;;  %v6611_v51 = vpop.f32.mrb[71].mxu1 }
 0x9e9   : > { %6695 = vst.msk [vmem:[%s12342_s28 + $0x90] sm:$0xff] %vm526_vm0, %v6679_v4  ;;  %v6612_v9 = vadd.f32 %v6611_v51, %v6418_v24 }
 0x9ea   : > { %v6682_v57 = vadd.f32 %v14472_v13, %v6617_v48 }
 0x9eb   : > { %v6681_v53 = vadd.f32 %v14472_v13, %v6612_v9  ;;  %v8310_v20 = vpop.f32.mrb[72].mxu1 }
 0x9ec   : > { %6698 = vst.msk [vmem:[%s12342_s28 + $0xa8] sm:$0xff] %vm526_vm0, %v6682_v57  ;;  %v6627_v8 = vadd.f32 %v8310_v20, %v8282_v11  ;;  %v6621_v55 = vpop.f32.mrb[73].mxu1 }
 0x9ed   : > { %6697 = vst.msk [vmem:[%s12342_s28 + $0xa0] sm:$0xff] %vm526_vm0, %v6681_v53  ;;  %v6622_v62 = vadd.f32 %v6621_v55, %v6428_v58  ;;  %v8288_v17 = vpop.f32.mrb[122].mxu0 }
 0x9ee   : > { %v6684_v45 = vadd.f32 %v14472_v13, %v6627_v8  ;;  %v6448_v6 = vpop.f32.mrb[123].mxu0 }
 0x9ef   : > { %v6683_v16 = vadd.f32 %v14472_v13, %v6622_v62  ;;  %v8313_v34 = vpop.f32.mrb[74].mxu1 }
 0x9f0   : > { %6700 = vst.msk [vmem:[%s12342_s28 + $0xb8] sm:$0xff] %vm526_vm0, %v6684_v45  ;;  %v6637_v59 = vadd.f32 %v8313_v34, %v8285_v32  ;;  %v6631_v50 = vpop.f32.mrb[75].mxu1 }
 0x9f1   : > { %6699 = vst.msk [vmem:[%s12342_s28 + $0xb0] sm:$0xff] %vm526_vm0, %v6683_v16  ;;  %v6632_v49 = vadd.f32 %v6631_v50, %v6438_v37  ;;  %v8291_v10 = vpop.f32.mrb[124].mxu0 }
 0x9f2   : > { %v6686_v39 = vadd.f32 %v14472_v13, %v6637_v59  ;;  %v6458_v14 = vpop.f32.mrb[125].mxu0 }
 0x9f3   : > { %v6685_v21 = vadd.f32 %v14472_v13, %v6632_v49  ;;  %v8316_v7 = vpop.f32.mrb[76].mxu1 }
 0x9f4   : > { %6702 = vst.msk [vmem:[%s12342_s28 + $0xc8] sm:$0xff] %vm526_vm0, %v6686_v39  ;;  %v6647_v25 = vadd.f32 %v8316_v7, %v8288_v17  ;;  %v6641_v47 = vpop.f32.mrb[77].mxu1 }
 0x9f5   : > { %6701 = vst.msk [vmem:[%s12342_s28 + $0xc0] sm:$0xff] %vm526_vm0, %v6685_v21  ;;  %v6642_v40 = vadd.f32 %v6641_v47, %v6448_v6 }
 0x9f6   : > { %v6688_v61 = vadd.f32 %v14472_v13, %v6647_v25 }
 0x9f7   : > { %v6687_v38 = vadd.f32 %v14472_v13, %v6642_v40  ;;  %v8319_v1 = vpop.f32.mrb[78].mxu1 }
 0x9f8   : > { %6704 = vst.msk [vmem:[%s12342_s28 + $0xd8] sm:$0xff] %vm526_vm0, %v6688_v61  ;;  %v6657_v5 = vadd.f32 %v8319_v1, %v8291_v10  ;;  %v6651_v52 = vpop.f32.mrb[79].mxu1 }
 0x9f9   : > { %6703 = vst.msk [vmem:[%s12342_s28 + $0xd0] sm:$0xff] %vm526_vm0, %v6687_v38  ;;  %v6652_v44 = vadd.f32 %v6651_v52, %v6458_v14 }
 0x9fa   : > { %v6690_v0 = vadd.f32 %v14472_v13, %v6657_v5 }
 0x9fb   : > { %v6689_v33 = vadd.f32 %v14472_v13, %v6652_v44  ;;  %v8322_v26 = vpop.f32.mrb[64].mxu1 }
 0x9fc   : > { %6706 = vst.msk [vmem:[%s12342_s28 + $0xe8] sm:$0xff] %vm526_vm0, %v6690_v0  ;;  %v6692_v29 = vadd.f32 %v8322_v26, %v14472_v13  ;;  %v6661_v41 = vpop.f32.mrb[65].mxu1 }
 0x9fd   : > { %6705 = vst.msk [vmem:[%s12342_s28 + $0xe0] sm:$0xff] %vm526_vm0, %v6689_v33  ;;  %v6691_v56 = vadd.f32 %v14472_v13, %v6661_v41 }
 0x9fe   : > { %6708 = vst.msk [vmem:[%s12342_s28 + $0xf8] sm:$0xff] %vm526_vm0, %v6692_v29 }
 0x9ff   : > { %6707 = vst.msk [vmem:[%s12342_s28 + $0xf0] sm:$0xff] %vm526_vm0, %v6691_v56 }
 0xa00 PF: > { %s25_s25 = sadd.s32 1, %s9320_s25  }
 0xa01   : > { %p22_p7 = scmp.ge.s32.totalorder %s25_s25, 10  }
 0xa03   :  { %24 = sbr.rel (!%p22_p7) target bundleno = 2 (0x2), region = 124 }
 0xa0a   :  { %6731 = vsyncpa [#allocation3], 1 }
 0xa0b   :  { %6733 = vsyncpa [#allocation3 + $0x1], 1 }
 0xa0c   :  { %6734 = vsyncpa [#allocation5], 1 }

</bundles_post_ra>
